<compile_context>
chip_gen: v7x
topology: tpu7x:2x2x1
jax: 0.10.0
libtpu: 0.0.40
codegen_flags: <defaults>
</compile_context>

<pallas_src>
import functools
import math

import jax
import jax.numpy as jnp
from jax.experimental import pallas as pl
from jax.experimental.pallas import tpu as pltpu


# --------------------------------------------------------------------------
# In-kernel helpers (f32 math, bf16 MXU feeds)
# --------------------------------------------------------------------------
def _bf16(x):
    return x.astype(jnp.bfloat16)


def _mm(a, b):
    """a: f32 activation, b: bf16 (resident) weight -> f32 accumulate on MXU."""
    return jax.lax.dot_general(_bf16(a), b, (((1,), (0,)), ((), ())),
                               preferred_element_type=jnp.float32)


def _ln(x, g, b, eps=1e-5):
    mu = jnp.mean(x, axis=-1, keepdims=True)
    xc = x - mu
    var = jnp.mean(xc * xc, axis=-1, keepdims=True)
    return xc * jax.lax.rsqrt(var + eps) * g + b


def _attn_core(q_all, k_all, v_all, wo, *, nhead, causal):
    """Multi-head softmax(QK^T/sqrt(dh))V projected by wo (no bias).
    q_all:(Nq,D) k_all,v_all:(Nk,D) f32; wo:(D,D) bf16 -> (Nq,D) f32."""
    Nq, D = q_all.shape
    Nk = k_all.shape[0]
    dh = D // nhead
    scale = 1.0 / math.sqrt(dh)
    if causal:
        row = jax.lax.broadcasted_iota(jnp.int32, (Nq, Nk), 0)
        col = jax.lax.broadcasted_iota(jnp.int32, (Nq, Nk), 1)
        neg = jnp.where(col > row, -1e9, 0.0)
    heads = []
    for h in range(nhead):
        sl = slice(h * dh, (h + 1) * dh)
        q = q_all[:, sl] * scale                       # pre-scale q (Nq x dh)
        k = k_all[:, sl]
        v = v_all[:, sl]
        s = jax.lax.dot_general(_bf16(q), _bf16(k), (((1,), (1,)), ((), ())),
                                preferred_element_type=jnp.float32)
        if causal:
            s = s + neg
        s = s - jnp.max(s, axis=-1, keepdims=True)
        p = jnp.exp(s)
        inv_l = pl.reciprocal(jnp.sum(p, axis=-1, keepdims=True), approx=True)
        o = jax.lax.dot_general(_bf16(p), _bf16(v), (((1,), (0,)), ((), ())),
                                preferred_element_type=jnp.float32)
        heads.append(o * inv_l)
    ctx = jnp.concatenate(heads, axis=-1)              # (Nq, D)
    return _mm(ctx, wo)


# --------------------------------------------------------------------------
# Fused transformer resblock (CLIP-style pre-LN, QuickGELU MLP)
# --------------------------------------------------------------------------
def _block_kernel(x_ref, ln1g, ln1b, wqkv, bqkv, wo, bo,
                  ln2g, ln2b, w1, b1, w2, b2, o_ref, *, nhead, causal):
    x = x_ref[0].astype(jnp.float32)                   # (N, D)
    D = x.shape[-1]
    # attention sub-block
    h = _ln(x, ln1g[...], ln1b[...])
    qkv = _mm(h, wqkv[...]) + bqkv[...]                # packed (N, 3D)
    proj = _attn_core(qkv[:, :D], qkv[:, D:2 * D], qkv[:, 2 * D:], wo[...],
                      nhead=nhead, causal=causal)
    x = x + proj + bo[...]
    # MLP sub-block (QuickGELU)
    h = _ln(x, ln2g[...], ln2b[...])
    h1 = _mm(h, w1[...]) + b1[...]
    h1 = h1 * jax.nn.sigmoid(1.702 * h1)
    h2 = _mm(h1, w2[...]) + b2[...]
    o_ref[0] = x + h2


def pl_resblock(x, p, nhead, causal=False):
    B, N, D = x.shape
    H = p["w1"].shape[1]

    def full(shape):
        return pl.BlockSpec(shape, lambda b, _s=shape: (0,) * len(_s))

    return pl.pallas_call(
        functools.partial(_block_kernel, nhead=nhead, causal=causal),
        out_shape=jax.ShapeDtypeStruct((B, N, D), jnp.float32),
        grid=(B,),
        in_specs=[
            pl.BlockSpec((1, N, D), lambda b: (b, 0, 0)),
            full((1, D)), full((1, D)),
            full((D, 3 * D)), full((1, 3 * D)),
            full((D, D)), full((1, D)),
            full((1, D)), full((1, D)),
            full((D, H)), full((1, H)),
            full((H, D)), full((1, D)),
        ],
        out_specs=pl.BlockSpec((1, N, D), lambda b: (b, 0, 0)),
        compiler_params=pltpu.CompilerParams(dimension_semantics=("parallel",)),
    )(x, p["ln1_g"], p["ln1_b"], p["wqkv"], p["bqkv"], p["wo"], p["bo"],
      p["ln2_g"], p["ln2_b"], p["w1"], p["b1"], p["w2"], p["b2"])


# --------------------------------------------------------------------------
# Fused InteractorT (pre-LN cross-attention block + QuickGELU MLP)
# --------------------------------------------------------------------------
def _interactor_kernel(x_ref, y_ref, lnqg, lnqb, lnkg, lnkb,
                       wq, bq, wkv, bkv, wo, bo,
                       ln2g, ln2b, w1, b1, w2, b2, o_ref, *, nhead):
    x = x_ref[0].astype(jnp.float32)                   # (Nx, D) queries
    y = y_ref[0].astype(jnp.float32)                   # (Ny, D) keys/values
    D = x.shape[-1]
    xq = _ln(x, lnqg[...], lnqb[...])
    ykv = _ln(y, lnkg[...], lnkb[...])
    q = _mm(xq, wq[...]) + bq[...]                     # (Nx, D)
    kv = _mm(ykv, wkv[...]) + bkv[...]                 # packed (Ny, 2D)
    proj = _attn_core(q, kv[:, :D], kv[:, D:], wo[...], nhead=nhead, causal=False)
    x = x + proj + bo[...]
    h = _ln(x, ln2g[...], ln2b[...])
    h1 = _mm(h, w1[...]) + b1[...]
    h1 = h1 * jax.nn.sigmoid(1.702 * h1)
    h2 = _mm(h1, w2[...]) + b2[...]
    o_ref[0] = x + h2


def pl_interactor(x, y, p, nhead):
    B, Nx, D = x.shape
    Ny = y.shape[1]
    H = p["w1"].shape[1]

    def full(shape):
        return pl.BlockSpec(shape, lambda b, _s=shape: (0,) * len(_s))

    return pl.pallas_call(
        functools.partial(_interactor_kernel, nhead=nhead),
        out_shape=jax.ShapeDtypeStruct((B, Nx, D), jnp.float32),
        grid=(B,),
        in_specs=[
            pl.BlockSpec((1, Nx, D), lambda b: (b, 0, 0)),
            pl.BlockSpec((1, Ny, D), lambda b: (b, 0, 0)),
            full((1, D)), full((1, D)), full((1, D)), full((1, D)),
            full((D, D)), full((1, D)),
            full((D, 2 * D)), full((1, 2 * D)),
            full((D, D)), full((1, D)),
            full((1, D)), full((1, D)),
            full((D, H)), full((1, H)),
            full((H, D)), full((1, D)),
        ],
        out_specs=pl.BlockSpec((1, Nx, D), lambda b: (b, 0, 0)),
        compiler_params=pltpu.CompilerParams(dimension_semantics=("parallel",)),
    )(x, y, p["lnq_g"], p["lnq_b"], p["lnk_g"], p["lnk_b"],
      p["wq"], p["bq"], p["wkv"], p["bkv"], p["wo"], p["bo"],
      p["ln2_g"], p["ln2_b"], p["w1"], p["b1"], p["w2"], p["b2"])


# --------------------------------------------------------------------------
# Small standalone kernels (stems / heads / bridge zoom layers)
# --------------------------------------------------------------------------
def _linear_kernel(x_ref, w_ref, *rest, activation, has_bias):
    if has_bias:
        b_ref, o_ref = rest
    else:
        (o_ref,) = rest
    acc = _mm(x_ref[...].astype(jnp.float32), w_ref[...])
    if has_bias:
        acc = acc + b_ref[...]
    if activation == "relu":
        acc = jnp.maximum(acc, 0.0)
    o_ref[...] = acc


def pl_linear(x, w, b=None, activation="none"):
    """act(x @ w [+ b]).  x:(M,K) f32, w:(K,N) bf16, b:(1,N) f32 -> (M,N) f32."""
    M, K = x.shape
    N = w.shape[1]
    has_bias = b is not None
    in_specs = [pl.BlockSpec((M, K), lambda i: (0, 0)),
                pl.BlockSpec((K, N), lambda i: (0, 0))]
    args = [x, w]
    if has_bias:
        in_specs.append(pl.BlockSpec((1, N), lambda i: (0, 0)))
        args.append(b)
    return pl.pallas_call(
        functools.partial(_linear_kernel, activation=activation, has_bias=has_bias),
        out_shape=jax.ShapeDtypeStruct((M, N), jnp.float32),
        grid=(1,),
        in_specs=in_specs,
        out_specs=pl.BlockSpec((M, N), lambda i: (0, 0)),
    )(*args)


def _ln_kernel(x_ref, g_ref, b_ref, o_ref, *, eps):
    o_ref[...] = _ln(x_ref[...].astype(jnp.float32), g_ref[...], b_ref[...], eps)


def pl_layernorm(x, gamma, beta, eps=1e-5):
    shape = x.shape
    D = shape[-1]
    x2 = x.reshape(-1, D)
    M = x2.shape[0]
    out = pl.pallas_call(
        functools.partial(_ln_kernel, eps=eps),
        out_shape=jax.ShapeDtypeStruct((M, D), jnp.float32),
        grid=(1,),
        in_specs=[pl.BlockSpec((M, D), lambda i: (0, 0)),
                  pl.BlockSpec((1, D), lambda i: (0, 0)),
                  pl.BlockSpec((1, D), lambda i: (0, 0))],
        out_specs=pl.BlockSpec((M, D), lambda i: (0, 0)),
    )(x2, gamma, beta)
    return out.reshape(shape)


# --------------------------------------------------------------------------
# Bridger_ViT forward (batch-first layout; conv/deconv k=s=1 -> matmuls)
# --------------------------------------------------------------------------
def bridger_vit_forward(img, text, bb, br, cfg):
    B, C, Hi, Wi = img.shape
    P = cfg["patch"]
    Dv, Dt, dm = cfg["d_vis"], cfg["d_txt"], cfg["d_model"]
    gh, gw = Hi // P, Wi // P

    # ---- visual stem (conv1 patch embedding as matmul) ----
    patches = img.reshape(B, C, gh, P, gw, P).transpose(0, 2, 4, 1, 3, 5)
    patches = patches.reshape(B * gh * gw, C * P * P)
    vis = pl_linear(patches, bb["conv1_w"]).reshape(B, gh * gw, Dv)
    cls = jnp.broadcast_to(bb["class_embedding"], (B, 1, Dv))
    vis = jnp.concatenate([cls, vis], axis=1)                  # (B, 1+N, Dv)
    vis = vis + bb["pos_embed_v"][None]
    vis = pl_layernorm(vis, bb["ln_pre_g"], bb["ln_pre_b"])

    # ---- text stem ----
    L = text.shape[1]
    txt = jnp.take(bb["token_embedding"], text, axis=0)        # (B, L, Dt)
    txt = txt + bb["pos_embed_t"][:L][None]

    stage_i = 0
    vis_outs = []
    last_v = last_t = None
    for i in range(cfg["num_layers"]):
        vis = pl_resblock(vis, bb["vis_blocks"][i], cfg["nhead_vis"], causal=False)
        txt = pl_resblock(txt, bb["txt_blocks"][i], cfg["nhead_txt"], causal=True)
        if (i + 1) % 4 == 0:
            Nv = vis.shape[1] - 1
            v = vis[:, 1:, :]                                   # (B, Nv, Dv)
            # zoom_in: 1x1 conv (+identity BN) + ReLU -> matmul + relu
            v = pl_linear(v.reshape(B * Nv, Dv), br["zoom_in_w"][stage_i],
                          activation="relu").reshape(B, Nv, dm)
            t = pl_linear(txt.reshape(B * L, Dt), br["linear1"][stage_i]["w"],
                          br["linear1"][stage_i]["b"]).reshape(B, L, dm)
            if stage_i > 0:
                v = pl_layernorm(v + last_v, br["ln_v"][stage_i - 1]["g"],
                                 br["ln_v"][stage_i - 1]["b"])
                t = pl_layernorm(t + last_t, br["ln_t"][stage_i - 1]["g"],
                                 br["ln_t"][stage_i - 1]["b"])
            last_v, last_t = v, t
            v_new = pl_interactor(v, t, br["fusion_v"][stage_i], cfg["nhead_bridge"])
            t_new = pl_interactor(t, v, br["fusion_t"][stage_i], cfg["nhead_bridge"])
            v, t = v_new, t_new
            v = pl_linear(v.reshape(B * Nv, dm), br["zoom_out_w"][stage_i],
                          activation="relu").reshape(B, Nv, Dv)
            t = pl_linear(t.reshape(B * L, dm), br["linear2"][stage_i]["w"],
                          br["linear2"][stage_i]["b"]).reshape(B, L, Dt)
            vis = vis.at[:, 1:, :].add(v)
            txt = txt + t
            stage_i += 1
            if stage_i < cfg["num_stages"]:
                H_ = int(Nv ** 0.5)
                W_ = Nv // H_
                vis_outs.append(vis[:, 1:, :].transpose(0, 2, 1)
                                .reshape(B, Dv, H_, W_))        # NCHW

    # ---- heads ----
    Nv = vis.shape[1] - 1
    vfin = pl_layernorm(vis[:, 1:, :], bb["ln_post_g"], bb["ln_post_b"])
    vfin = pl_linear(vfin.reshape(B * Nv, Dv), bb["proj"]).reshape(B, Nv, -1)
    H_ = int(Nv ** 0.5)
    W_ = Nv // H_
    Cp = vfin.shape[-1]
    vis_outs.append(vfin.transpose(0, 2, 1).reshape(B, Cp, H_, W_))  # NCHW

    txt = pl_layernorm(txt, bb["ln_final_g"], bb["ln_final_b"])
    eot = jnp.argmax(text, axis=-1)                              # CLIP EOT = max id
    state = pl_linear(txt[jnp.arange(B), eot], bb["text_projection"])
    return vis_outs, txt, state


# --------------------------------------------------------------------------
# Deterministic parameter initialization (weights stored bf16, LN/bias f32)
# --------------------------------------------------------------------------
class KeyGen:
    def __init__(self, key):
        self.key = key

    def __call__(self):
        self.key, sub = jax.random.split(self.key)
        return sub


def _w(kg, din, dout, std=0.02):
    return (jax.random.normal(kg(), (din, dout), jnp.float32) * std).astype(jnp.bfloat16)


def _bias(dout):
    return jnp.zeros((1, dout), jnp.float32)


def _ln_params(d):
    return jnp.ones((1, d), jnp.float32), jnp.zeros((1, d), jnp.float32)


def init_block(kg, d, mlp_ratio=4):
    h = d * mlp_ratio
    g1, b1 = _ln_params(d)
    g2, b2 = _ln_params(d)
    return dict(ln1_g=g1, ln1_b=b1,
                wqkv=_w(kg, d, 3 * d), bqkv=_bias(3 * d),
                wo=_w(kg, d, d), bo=_bias(d),
                ln2_g=g2, ln2_b=b2,
                w1=_w(kg, d, h), b1=_bias(h),
                w2=_w(kg, h, d), b2=_bias(d))


def init_interactor(kg, d, mlp_ratio=4):
    h = d * mlp_ratio
    gq, bq_ = _ln_params(d)
    gk, bk_ = _ln_params(d)
    g2, b2_ = _ln_params(d)
    return dict(lnq_g=gq, lnq_b=bq_, lnk_g=gk, lnk_b=bk_,
                wq=_w(kg, d, d), bq=_bias(d),
                wkv=_w(kg, d, 2 * d), bkv=_bias(2 * d),
                wo=_w(kg, d, d), bo=_bias(d),
                ln2_g=g2, ln2_b=b2_,
                w1=_w(kg, d, h), b1=_bias(h),
                w2=_w(kg, h, d), b2=_bias(d))


def init_backbone(kg, cfg):
    P, C, Dv, Dt = cfg["patch"], cfg["in_chans"], cfg["d_vis"], cfg["d_txt"]
    Ngrid = (cfg["img_size"] // P) ** 2
    ln_pre = _ln_params(Dv)
    ln_post = _ln_params(Dv)
    ln_final = _ln_params(Dt)
    return dict(
        conv1_w=(jax.random.normal(kg(), (C * P * P, Dv), jnp.float32)
                 * math.sqrt(2.0 / (Dv * P * P))).astype(jnp.bfloat16),
        class_embedding=jax.random.normal(kg(), (Dv,), jnp.float32) * 0.02,
        pos_embed_v=jax.random.normal(kg(), (Ngrid + 1, Dv), jnp.float32) * 0.02,
        ln_pre_g=ln_pre[0], ln_pre_b=ln_pre[1],
        vis_blocks=[init_block(kg, Dv) for _ in range(cfg["num_layers"])],
        ln_post_g=ln_post[0], ln_post_b=ln_post[1],
        proj=(jax.random.normal(kg(), (Dv, cfg["embed_dim"]), jnp.float32)
              * Dv ** -0.5).astype(jnp.bfloat16),
        token_embedding=jax.random.normal(kg(), (cfg["vocab"], Dt), jnp.float32) * 0.02,
        pos_embed_t=jax.random.normal(kg(), (cfg["ctx_len"], Dt), jnp.float32) * 0.01,
        txt_blocks=[init_block(kg, Dt) for _ in range(cfg["num_layers"])],
        ln_final_g=ln_final[0], ln_final_b=ln_final[1],
        text_projection=(jax.random.normal(kg(), (Dt, cfg["embed_dim"]), jnp.float32)
                         * Dt ** -0.5).astype(jnp.bfloat16),
    )


def init_bridger(kg, cfg):
    Dv, Dt, dm, ns = cfg["d_vis"], cfg["d_txt"], cfg["d_model"], cfg["num_stages"]
    p = dict(zoom_in_w=[], zoom_out_w=[], linear1=[], linear2=[],
             fusion_v=[], fusion_t=[], ln_v=[], ln_t=[])
    for i in range(ns):
        # kaiming_normal (fan_out, relu) for the 1x1 conv / deconv weights
        p["zoom_in_w"].append((jax.random.normal(kg(), (Dv, dm), jnp.float32)
                               * math.sqrt(2.0 / dm)).astype(jnp.bfloat16))
        p["zoom_out_w"].append((jax.random.normal(kg(), (dm, Dv), jnp.float32)
                                * math.sqrt(2.0 / Dv)).astype(jnp.bfloat16))
        p["linear1"].append(dict(w=_w(kg, Dt, dm), b=_bias(dm)))
        p["linear2"].append(dict(w=_w(kg, dm, Dt), b=_bias(Dt)))
        p["fusion_v"].append(init_interactor(kg, dm))
        p["fusion_t"].append(init_interactor(kg, dm))
        if i < ns - 1:
            g, b = _ln_params(dm)
            p["ln_v"].append(dict(g=g, b=b))
            g, b = _ln_params(dm)
            p["ln_t"].append(dict(g=g, b=b))
    return p


# --------------------------------------------------------------------------
CFG = dict(
    batch=2, img_size=16, patch=4, in_chans=3,
    d_vis=32, nhead_vis=4,
    d_txt=32, nhead_txt=4,
    vocab=50, ctx_len=8,
    embed_dim=32,
    num_layers=12,
    d_model=16, nhead_bridge=4,
    num_stages=3,
)


if __name__ == "__main__":
    kg = KeyGen(jax.random.PRNGKey(0))
    backbone_params = init_backbone(kg, CFG)
    bridger_params = init_bridger(kg, CFG)

    k_img, k_txt = jax.random.split(jax.random.PRNGKey(0), 2)
    img = jax.random.normal(
        k_img, (CFG["batch"], CFG["in_chans"], CFG["img_size"], CFG["img_size"]),
        jnp.float32)
    text = jax.random.randint(k_txt, (CFG["batch"], CFG["ctx_len"]),
                              1, CFG["vocab"] - 2, dtype=jnp.int32)
    text = text.at[:, -1].set(CFG["vocab"] - 1)   # EOT token = max id, last position

    fwd = jax.jit(functools.partial(bridger_vit_forward, cfg=CFG))
    vis_outs, txt, state = fwd(img, text, backbone_params, bridger_params)
    jax.block_until_ready((vis_outs, txt, state))

    # sanity: 3 NCHW feature maps, text features, pooled state
    assert len(vis_outs) == CFG["num_stages"]
    assert vis_outs[0].shape == (2, 32, 4, 4)
    assert vis_outs[-1].shape == (2, CFG["embed_dim"], 4, 4)
    assert txt.shape == (2, CFG["ctx_len"], CFG["d_txt"])
    assert state.shape == (2, CFG["embed_dim"])
    print("KERNEL_OK")
</pallas_src>

<mosaic_0001>
module attributes {stable_mosaic.version = 11 : i64} {
  func.func @_linear_kernel(%arg0: i32, %arg1: memref<32x48xf32, #tpu.memory_space<vmem>>, %arg2: memref<48x32xbf16, #tpu.memory_space<vmem>>, %arg3: memref<32x32xf32, #tpu.memory_space<vmem>>) attributes {dimension_semantics = [#tpu.dimension_semantics<arbitrary>], iteration_bounds = array<i64: 1>, scalar_prefetch = 0 : i64, scratch_operands = 0 : i64, tpu.core_type = #tpu.core_type<tc>, window_params = [{pipeline_mode = #tpu.pipeline_mode<synchronous>, transform_indices = @transform_0, window_bounds = array<i64: 32, 48>}, {pipeline_mode = #tpu.pipeline_mode<synchronous>, transform_indices = @transform_1, window_bounds = array<i64: 48, 32>}, {pipeline_mode = #tpu.pipeline_mode<synchronous>, transform_indices = @transform_2, window_bounds = array<i64: 32, 32>}]} {
    %c0 = arith.constant 0 : index
    %c0_0 = arith.constant 0 : index
    %0 = vector.load %arg1[%c0, %c0_0] : memref<32x48xf32, #tpu.memory_space<vmem>>, vector<32x48xf32>
    %c0_1 = arith.constant 0 : index
    %c0_2 = arith.constant 0 : index
    %1 = vector.load %arg2[%c0_1, %c0_2] : memref<48x32xbf16, #tpu.memory_space<vmem>>, vector<48x32xbf16>
    %2 = arith.truncf %0 : vector<32x48xf32> to vector<32x48xbf16>
    %cst = arith.constant dense<0.000000e+00> : vector<32x32xf32>
    %3 = tpu.matmul %2, %1, %cst {dimension_numbers = #tpu.dot_dimension_numbers<[1], [0], [0], [1], [0, 0, 1, 1], [], []>} : vector<32x48xbf16>, vector<48x32xbf16>, vector<32x32xf32> -> vector<32x32xf32>
    %c0_3 = arith.constant 0 : index
    %c0_4 = arith.constant 0 : index
    %4 = vector.load %arg3[%c0_3, %c0_4] : memref<32x32xf32, #tpu.memory_space<vmem>>, vector<32x32xf32>
    tpu.vector_store %arg3[%c0_3, %c0_4], %3 {strides = array<i32>} : memref<32x32xf32, #tpu.memory_space<vmem>>, vector<32x32xf32>,
    return
  }
  func.func @transform_0(%arg0: i32) -> (i32, i32) {
    %c0_i32 = arith.constant 0 : i32
    %c0_i32_0 = arith.constant 0 : i32
    %c0_i32_1 = arith.constant 0 : i32
    return %c0_i32, %c0_i32_0 : i32, i32
  }
  func.func @transform_1(%arg0: i32) -> (i32, i32) {
    %c0_i32 = arith.constant 0 : i32
    %c0_i32_0 = arith.constant 0 : i32
    %c0_i32_1 = arith.constant 0 : i32
    return %c0_i32, %c0_i32_0 : i32, i32
  }
  func.func @transform_2(%arg0: i32) -> (i32, i32) {
    %c0_i32 = arith.constant 0 : i32
    %c0_i32_0 = arith.constant 0 : i32
    %c0_i32_1 = arith.constant 0 : i32
    return %c0_i32, %c0_i32_0 : i32, i32
  }
}

module attributes {stable_mosaic.version = 11 : i64} {
  func.func @_block_kernel(%arg0: i32, %arg1: memref<1x17x32xf32, #tpu.memory_space<vmem>>, %arg2: memref<1x32xf32, #tpu.memory_space<vmem>>, %arg3: memref<1x32xf32, #tpu.memory_space<vmem>>, %arg4: memref<32x96xbf16, #tpu.memory_space<vmem>>, %arg5: memref<1x96xf32, #tpu.memory_space<vmem>>, %arg6: memref<32x32xbf16, #tpu.memory_space<vmem>>, %arg7: memref<1x32xf32, #tpu.memory_space<vmem>>, %arg8: memref<1x32xf32, #tpu.memory_space<vmem>>, %arg9: memref<1x32xf32, #tpu.memory_space<vmem>>, %arg10: memref<32x128xbf16, #tpu.memory_space<vmem>>, %arg11: memref<1x128xf32, #tpu.memory_space<vmem>>, %arg12: memref<128x32xbf16, #tpu.memory_space<vmem>>, %arg13: memref<1x32xf32, #tpu.memory_space<vmem>>, %arg14: memref<1x17x32xf32, #tpu.memory_space<vmem>>) attributes {dimension_semantics = [#tpu.dimension_semantics<parallel>], iteration_bounds = array<i64: 2>, scalar_prefetch = 0 : i64, scratch_operands = 0 : i64, tpu.core_type = #tpu.core_type<tc>, window_params = [{transform_indices = @transform_0, window_bounds = array<i64: 1, 17, 32>}, {pipeline_mode = #tpu.pipeline_mode<synchronous>, transform_indices = @transform_1, window_bounds = array<i64: 1, 32>}, {pipeline_mode = #tpu.pipeline_mode<synchronous>, transform_indices = @transform_2, window_bounds = array<i64: 1, 32>}, {pipeline_mode = #tpu.pipeline_mode<synchronous>, transform_indices = @transform_3, window_bounds = array<i64: 32, 96>}, {pipeline_mode = #tpu.pipeline_mode<synchronous>, transform_indices = @transform_4, window_bounds = array<i64: 1, 96>}, {pipeline_mode = #tpu.pipeline_mode<synchronous>, transform_indices = @transform_5, window_bounds = array<i64: 32, 32>}, {pipeline_mode = #tpu.pipeline_mode<synchronous>, transform_indices = @transform_6, window_bounds = array<i64: 1, 32>}, {pipeline_mode = #tpu.pipeline_mode<synchronous>, transform_indices = @transform_7, window_bounds = array<i64: 1, 32>}, {pipeline_mode = #tpu.pipeline_mode<synchronous>, transform_indices = @transform_8, window_bounds = array<i64: 1, 32>}, {pipeline_mode = #tpu.pipeline_mode<synchronous>, transform_indices = @transform_9, window_bounds = array<i64: 32, 128>}, {pipeline_mode = #tpu.pipeline_mode<synchronous>, transform_indices = @transform_10, window_bounds = array<i64: 1, 128>}, {pipeline_mode = #tpu.pipeline_mode<synchronous>, transform_indices = @transform_11, window_bounds = array<i64: 128, 32>}, {pipeline_mode = #tpu.pipeline_mode<synchronous>, transform_indices = @transform_12, window_bounds = array<i64: 1, 32>}, {transform_indices = @transform_13, window_bounds = array<i64: 1, 17, 32>}]} {
    %c0 = arith.constant 0 : index
    %c0_0 = arith.constant 0 : index
    %c0_1 = arith.constant 0 : index
    %0 = vector.load %arg1[%c0, %c0_0, %c0_1] : memref<1x17x32xf32, #tpu.memory_space<vmem>>, vector<1x17x32xf32>
    %1 = vector.shape_cast %0 : vector<1x17x32xf32> to vector<17x32xf32>
    %c0_2 = arith.constant 0 : index
    %c0_3 = arith.constant 0 : index
    %2 = vector.load %arg2[%c0_2, %c0_3] : memref<1x32xf32, #tpu.memory_space<vmem>>, vector<1x32xf32>
    %c0_4 = arith.constant 0 : index
    %c0_5 = arith.constant 0 : index
    %3 = vector.load %arg3[%c0_4, %c0_5] : memref<1x32xf32, #tpu.memory_space<vmem>>, vector<1x32xf32>
    %cst = arith.constant dense<0.000000e+00> : vector<17xf32>
    %4 = vector.multi_reduction <add>, %1, %cst [1] : vector<17x32xf32> to vector<17xf32>
    %5 = vector.shape_cast %4 : vector<17xf32> to vector<17x1xf32>
    %cst_6 = arith.constant 3.200000e+01 : f32
    %6 = vector.broadcast %cst_6 : f32 to vector<17x1xf32>
    %7 = arith.divf %5, %6 : vector<17x1xf32>
    %8 = vector.broadcast %7 : vector<17x1xf32> to vector<17x32xf32>
    %9 = arith.subf %1, %8 : vector<17x32xf32>
    %10 = arith.mulf %9, %9 : vector<17x32xf32>
    %cst_7 = arith.constant dense<0.000000e+00> : vector<17xf32>
    %11 = vector.multi_reduction <add>, %10, %cst_7 [1] : vector<17x32xf32> to vector<17xf32>
    %12 = vector.shape_cast %11 : vector<17xf32> to vector<17x1xf32>
    %cst_8 = arith.constant 3.200000e+01 : f32
    %13 = vector.broadcast %cst_8 : f32 to vector<17x1xf32>
    %14 = arith.divf %12, %13 : vector<17x1xf32>
    %cst_9 = arith.constant 9.99999974E-6 : f32
    %15 = vector.broadcast %cst_9 : f32 to vector<17x1xf32>
    %16 = arith.addf %14, %15 : vector<17x1xf32>
    %17 = math.rsqrt %16 : vector<17x1xf32>
    %18 = vector.broadcast %17 : vector<17x1xf32> to vector<17x32xf32>
    %19 = arith.mulf %9, %18 : vector<17x32xf32>
    %20 = vector.broadcast %2 : vector<1x32xf32> to vector<17x32xf32>
    %21 = arith.mulf %19, %20 : vector<17x32xf32>
    %22 = vector.broadcast %3 : vector<1x32xf32> to vector<17x32xf32>
    %23 = arith.addf %21, %22 : vector<17x32xf32>
    %c0_10 = arith.constant 0 : index
    %c0_11 = arith.constant 0 : index
    %24 = vector.load %arg4[%c0_10, %c0_11] : memref<32x96xbf16, #tpu.memory_space<vmem>>, vector<32x96xbf16>
    %25 = arith.truncf %23 : vector<17x32xf32> to vector<17x32xbf16>
    %cst_12 = arith.constant dense<0.000000e+00> : vector<17x96xf32>
    %26 = tpu.matmul %25, %24, %cst_12 {dimension_numbers = #tpu.dot_dimension_numbers<[1], [0], [0], [1], [0, 0, 1, 1], [], []>} : vector<17x32xbf16>, vector<32x96xbf16>, vector<17x96xf32> -> vector<17x96xf32>
    %c0_13 = arith.constant 0 : index
    %c0_14 = arith.constant 0 : index
    %27 = vector.load %arg5[%c0_13, %c0_14] : memref<1x96xf32, #tpu.memory_space<vmem>>, vector<1x96xf32>
    %28 = vector.broadcast %27 : vector<1x96xf32> to vector<17x96xf32>
    %29 = arith.addf %26, %28 : vector<17x96xf32>
    %30 = vector.extract_strided_slice %29 {offsets = [0, 0], sizes = [17, 32], strides = [1, 1]} : vector<17x96xf32> to vector<17x32xf32>
    %31 = vector.extract_strided_slice %29 {offsets = [0, 32], sizes = [17, 32], strides = [1, 1]} : vector<17x96xf32> to vector<17x32xf32>
    %32 = vector.extract_strided_slice %29 {offsets = [0, 64], sizes = [17, 32], strides = [1, 1]} : vector<17x96xf32> to vector<17x32xf32>
    %c0_15 = arith.constant 0 : index
    %c0_16 = arith.constant 0 : index
    %33 = vector.load %arg6[%c0_15, %c0_16] : memref<32x32xbf16, #tpu.memory_space<vmem>>, vector<32x32xbf16>
    %34 = vector.extract_strided_slice %30 {offsets = [0, 0], sizes = [17, 8], strides = [1, 1]} : vector<17x32xf32> to vector<17x8xf32>
    %cst_17 = arith.constant 0.353553385 : f32
    %35 = vector.broadcast %cst_17 : f32 to vector<17x8xf32>
    %36 = arith.mulf %34, %35 : vector<17x8xf32>
    %37 = vector.extract_strided_slice %31 {offsets = [0, 0], sizes = [17, 8], strides = [1, 1]} : vector<17x32xf32> to vector<17x8xf32>
    %38 = vector.extract_strided_slice %32 {offsets = [0, 0], sizes = [17, 8], strides = [1, 1]} : vector<17x32xf32> to vector<17x8xf32>
    %39 = arith.truncf %36 : vector<17x8xf32> to vector<17x8xbf16>
    %40 = arith.truncf %37 : vector<17x8xf32> to vector<17x8xbf16>
    %cst_18 = arith.constant dense<0.000000e+00> : vector<17x17xf32>
    %41 = tpu.matmul %39, %40, %cst_18 {dimension_numbers = #tpu.dot_dimension_numbers<[1], [1], [0], [0], [0, 0, 1, 0], [], []>} : vector<17x8xbf16>, vector<17x8xbf16>, vector<17x17xf32> -> vector<17x17xf32>
    %cst_19 = arith.constant dense<0xFF800000> : vector<17xf32>
    %42 = vector.multi_reduction <maximumf>, %41, %cst_19 [1] : vector<17x17xf32> to vector<17xf32>
    %43 = vector.shape_cast %42 : vector<17xf32> to vector<17x1xf32>
    %44 = vector.broadcast %43 : vector<17x1xf32> to vector<17x17xf32>
    %45 = arith.subf %41, %44 : vector<17x17xf32>
    %46 = math.exp %45 : vector<17x17xf32>
    %cst_20 = arith.constant dense<0.000000e+00> : vector<17xf32>
    %47 = vector.multi_reduction <add>, %46, %cst_20 [1] : vector<17x17xf32> to vector<17xf32>
    %48 = vector.shape_cast %47 : vector<17xf32> to vector<17x1xf32>
    %49 = tpu.reciprocal %48 {approx = true} : vector<17x1xf32> -> vector<17x1xf32>
    %50 = arith.truncf %46 : vector<17x17xf32> to vector<17x17xbf16>
    %51 = arith.truncf %38 : vector<17x8xf32> to vector<17x8xbf16>
    %cst_21 = arith.constant dense<0.000000e+00> : vector<17x8xf32>
    %52 = tpu.matmul %50, %51, %cst_21 {dimension_numbers = #tpu.dot_dimension_numbers<[1], [0], [0], [1], [0, 0, 1, 1], [], []>} : vector<17x17xbf16>, vector<17x8xbf16>, vector<17x8xf32> -> vector<17x8xf32>
    %53 = vector.broadcast %49 : vector<17x1xf32> to vector<17x8xf32>
    %54 = arith.mulf %52, %53 : vector<17x8xf32>
    %55 = vector.extract_strided_slice %30 {offsets = [0, 8], sizes = [17, 8], strides = [1, 1]} : vector<17x32xf32> to vector<17x8xf32>
    %cst_22 = arith.constant 0.353553385 : f32
    %56 = vector.broadcast %cst_22 : f32 to vector<17x8xf32>
    %57 = arith.mulf %55, %56 : vector<17x8xf32>
    %58 = vector.extract_strided_slice %31 {offsets = [0, 8], sizes = [17, 8], strides = [1, 1]} : vector<17x32xf32> to vector<17x8xf32>
    %59 = vector.extract_strided_slice %32 {offsets = [0, 8], sizes = [17, 8], strides = [1, 1]} : vector<17x32xf32> to vector<17x8xf32>
    %60 = arith.truncf %57 : vector<17x8xf32> to vector<17x8xbf16>
    %61 = arith.truncf %58 : vector<17x8xf32> to vector<17x8xbf16>
    %cst_23 = arith.constant dense<0.000000e+00> : vector<17x17xf32>
    %62 = tpu.matmul %60, %61, %cst_23 {dimension_numbers = #tpu.dot_dimension_numbers<[1], [1], [0], [0], [0, 0, 1, 0], [], []>} : vector<17x8xbf16>, vector<17x8xbf16>, vector<17x17xf32> -> vector<17x17xf32>
    %cst_24 = arith.constant dense<0xFF800000> : vector<17xf32>
    %63 = vector.multi_reduction <maximumf>, %62, %cst_24 [1] : vector<17x17xf32> to vector<17xf32>
    %64 = vector.shape_cast %63 : vector<17xf32> to vector<17x1xf32>
    %65 = vector.broadcast %64 : vector<17x1xf32> to vector<17x17xf32>
    %66 = arith.subf %62, %65 : vector<17x17xf32>
    %67 = math.exp %66 : vector<17x17xf32>
    %cst_25 = arith.constant dense<0.000000e+00> : vector<17xf32>
    %68 = vector.multi_reduction <add>, %67, %cst_25 [1] : vector<17x17xf32> to vector<17xf32>
    %69 = vector.shape_cast %68 : vector<17xf32> to vector<17x1xf32>
    %70 = tpu.reciprocal %69 {approx = true} : vector<17x1xf32> -> vector<17x1xf32>
    %71 = arith.truncf %67 : vector<17x17xf32> to vector<17x17xbf16>
    %72 = arith.truncf %59 : vector<17x8xf32> to vector<17x8xbf16>
    %cst_26 = arith.constant dense<0.000000e+00> : vector<17x8xf32>
    %73 = tpu.matmul %71, %72, %cst_26 {dimension_numbers = #tpu.dot_dimension_numbers<[1], [0], [0], [1], [0, 0, 1, 1], [], []>} : vector<17x17xbf16>, vector<17x8xbf16>, vector<17x8xf32> -> vector<17x8xf32>
    %74 = vector.broadcast %70 : vector<17x1xf32> to vector<17x8xf32>
    %75 = arith.mulf %73, %74 : vector<17x8xf32>
    %76 = vector.extract_strided_slice %30 {offsets = [0, 16], sizes = [17, 8], strides = [1, 1]} : vector<17x32xf32> to vector<17x8xf32>
    %cst_27 = arith.constant 0.353553385 : f32
    %77 = vector.broadcast %cst_27 : f32 to vector<17x8xf32>
    %78 = arith.mulf %76, %77 : vector<17x8xf32>
    %79 = vector.extract_strided_slice %31 {offsets = [0, 16], sizes = [17, 8], strides = [1, 1]} : vector<17x32xf32> to vector<17x8xf32>
    %80 = vector.extract_strided_slice %32 {offsets = [0, 16], sizes = [17, 8], strides = [1, 1]} : vector<17x32xf32> to vector<17x8xf32>
    %81 = arith.truncf %78 : vector<17x8xf32> to vector<17x8xbf16>
    %82 = arith.truncf %79 : vector<17x8xf32> to vector<17x8xbf16>
    %cst_28 = arith.constant dense<0.000000e+00> : vector<17x17xf32>
    %83 = tpu.matmul %81, %82, %cst_28 {dimension_numbers = #tpu.dot_dimension_numbers<[1], [1], [0], [0], [0, 0, 1, 0], [], []>} : vector<17x8xbf16>, vector<17x8xbf16>, vector<17x17xf32> -> vector<17x17xf32>
    %cst_29 = arith.constant dense<0xFF800000> : vector<17xf32>
    %84 = vector.multi_reduction <maximumf>, %83, %cst_29 [1] : vector<17x17xf32> to vector<17xf32>
    %85 = vector.shape_cast %84 : vector<17xf32> to vector<17x1xf32>
    %86 = vector.broadcast %85 : vector<17x1xf32> to vector<17x17xf32>
    %87 = arith.subf %83, %86 : vector<17x17xf32>
    %88 = math.exp %87 : vector<17x17xf32>
    %cst_30 = arith.constant dense<0.000000e+00> : vector<17xf32>
    %89 = vector.multi_reduction <add>, %88, %cst_30 [1] : vector<17x17xf32> to vector<17xf32>
    %90 = vector.shape_cast %89 : vector<17xf32> to vector<17x1xf32>
    %91 = tpu.reciprocal %90 {approx = true} : vector<17x1xf32> -> vector<17x1xf32>
    %92 = arith.truncf %88 : vector<17x17xf32> to vector<17x17xbf16>
    %93 = arith.truncf %80 : vector<17x8xf32> to vector<17x8xbf16>
    %cst_31 = arith.constant dense<0.000000e+00> : vector<17x8xf32>
    %94 = tpu.matmul %92, %93, %cst_31 {dimension_numbers = #tpu.dot_dimension_numbers<[1], [0], [0], [1], [0, 0, 1, 1], [], []>} : vector<17x17xbf16>, vector<17x8xbf16>, vector<17x8xf32> -> vector<17x8xf32>
    %95 = vector.broadcast %91 : vector<17x1xf32> to vector<17x8xf32>
    %96 = arith.mulf %94, %95 : vector<17x8xf32>
    %97 = vector.extract_strided_slice %30 {offsets = [0, 24], sizes = [17, 8], strides = [1, 1]} : vector<17x32xf32> to vector<17x8xf32>
    %cst_32 = arith.constant 0.353553385 : f32
    %98 = vector.broadcast %cst_32 : f32 to vector<17x8xf32>
    %99 = arith.mulf %97, %98 : vector<17x8xf32>
    %100 = vector.extract_strided_slice %31 {offsets = [0, 24], sizes = [17, 8], strides = [1, 1]} : vector<17x32xf32> to vector<17x8xf32>
    %101 = vector.extract_strided_slice %32 {offsets = [0, 24], sizes = [17, 8], strides = [1, 1]} : vector<17x32xf32> to vector<17x8xf32>
    %102 = arith.truncf %99 : vector<17x8xf32> to vector<17x8xbf16>
    %103 = arith.truncf %100 : vector<17x8xf32> to vector<17x8xbf16>
    %cst_33 = arith.constant dense<0.000000e+00> : vector<17x17xf32>
    %104 = tpu.matmul %102, %103, %cst_33 {dimension_numbers = #tpu.dot_dimension_numbers<[1], [1], [0], [0], [0, 0, 1, 0], [], []>} : vector<17x8xbf16>, vector<17x8xbf16>, vector<17x17xf32> -> vector<17x17xf32>
    %cst_34 = arith.constant dense<0xFF800000> : vector<17xf32>
    %105 = vector.multi_reduction <maximumf>, %104, %cst_34 [1] : vector<17x17xf32> to vector<17xf32>
    %106 = vector.shape_cast %105 : vector<17xf32> to vector<17x1xf32>
    %107 = vector.broadcast %106 : vector<17x1xf32> to vector<17x17xf32>
    %108 = arith.subf %104, %107 : vector<17x17xf32>
    %109 = math.exp %108 : vector<17x17xf32>
    %cst_35 = arith.constant dense<0.000000e+00> : vector<17xf32>
    %110 = vector.multi_reduction <add>, %109, %cst_35 [1] : vector<17x17xf32> to vector<17xf32>
    %111 = vector.shape_cast %110 : vector<17xf32> to vector<17x1xf32>
    %112 = tpu.reciprocal %111 {approx = true} : vector<17x1xf32> -> vector<17x1xf32>
    %113 = arith.truncf %109 : vector<17x17xf32> to vector<17x17xbf16>
    %114 = arith.truncf %101 : vector<17x8xf32> to vector<17x8xbf16>
    %cst_36 = arith.constant dense<0.000000e+00> : vector<17x8xf32>
    %115 = tpu.matmul %113, %114, %cst_36 {dimension_numbers = #tpu.dot_dimension_numbers<[1], [0], [0], [1], [0, 0, 1, 1], [], []>} : vector<17x17xbf16>, vector<17x8xbf16>, vector<17x8xf32> -> vector<17x8xf32>
    %116 = vector.broadcast %112 : vector<17x1xf32> to vector<17x8xf32>
    %117 = arith.mulf %115, %116 : vector<17x8xf32>
    %118 = tpu.concatenate %54, %75, %96, %117 in 1 : vector<17x8xf32>, vector<17x8xf32>, vector<17x8xf32>, vector<17x8xf32> -> vector<17x32xf32>
    %119 = arith.truncf %118 : vector<17x32xf32> to vector<17x32xbf16>
    %cst_37 = arith.constant dense<0.000000e+00> : vector<17x32xf32>
    %120 = tpu.matmul %119, %33, %cst_37 {dimension_numbers = #tpu.dot_dimension_numbers<[1], [0], [0], [1], [0, 0, 1, 1], [], []>} : vector<17x32xbf16>, vector<32x32xbf16>, vector<17x32xf32> -> vector<17x32xf32>
    %121 = arith.addf %1, %120 : vector<17x32xf32>
    %c0_38 = arith.constant 0 : index
    %c0_39 = arith.constant 0 : index
    %122 = vector.load %arg7[%c0_38, %c0_39] : memref<1x32xf32, #tpu.memory_space<vmem>>, vector<1x32xf32>
    %123 = vector.broadcast %122 : vector<1x32xf32> to vector<17x32xf32>
    %124 = arith.addf %121, %123 : vector<17x32xf32>
    %c0_40 = arith.constant 0 : index
    %c0_41 = arith.constant 0 : index
    %125 = vector.load %arg8[%c0_40, %c0_41] : memref<1x32xf32, #tpu.memory_space<vmem>>, vector<1x32xf32>
    %c0_42 = arith.constant 0 : index
    %c0_43 = arith.constant 0 : index
    %126 = vector.load %arg9[%c0_42, %c0_43] : memref<1x32xf32, #tpu.memory_space<vmem>>, vector<1x32xf32>
    %cst_44 = arith.constant dense<0.000000e+00> : vector<17xf32>
    %127 = vector.multi_reduction <add>, %124, %cst_44 [1] : vector<17x32xf32> to vector<17xf32>
    %128 = vector.shape_cast %127 : vector<17xf32> to vector<17x1xf32>
    %cst_45 = arith.constant 3.200000e+01 : f32
    %129 = vector.broadcast %cst_45 : f32 to vector<17x1xf32>
    %130 = arith.divf %128, %129 : vector<17x1xf32>
    %131 = vector.broadcast %130 : vector<17x1xf32> to vector<17x32xf32>
    %132 = arith.subf %124, %131 : vector<17x32xf32>
    %133 = arith.mulf %132, %132 : vector<17x32xf32>
    %cst_46 = arith.constant dense<0.000000e+00> : vector<17xf32>
    %134 = vector.multi_reduction <add>, %133, %cst_46 [1] : vector<17x32xf32> to vector<17xf32>
    %135 = vector.shape_cast %134 : vector<17xf32> to vector<17x1xf32>
    %cst_47 = arith.constant 3.200000e+01 : f32
    %136 = vector.broadcast %cst_47 : f32 to vector<17x1xf32>
    %137 = arith.divf %135, %136 : vector<17x1xf32>
    %cst_48 = arith.constant 9.99999974E-6 : f32
    %138 = vector.broadcast %cst_48 : f32 to vector<17x1xf32>
    %139 = arith.addf %137, %138 : vector<17x1xf32>
    %140 = math.rsqrt %139 : vector<17x1xf32>
    %141 = vector.broadcast %140 : vector<17x1xf32> to vector<17x32xf32>
    %142 = arith.mulf %132, %141 : vector<17x32xf32>
    %143 = vector.broadcast %125 : vector<1x32xf32> to vector<17x32xf32>
    %144 = arith.mulf %142, %143 : vector<17x32xf32>
    %145 = vector.broadcast %126 : vector<1x32xf32> to vector<17x32xf32>
    %146 = arith.addf %144, %145 : vector<17x32xf32>
    %c0_49 = arith.constant 0 : index
    %c0_50 = arith.constant 0 : index
    %147 = vector.load %arg10[%c0_49, %c0_50] : memref<32x128xbf16, #tpu.memory_space<vmem>>, vector<32x128xbf16>
    %148 = arith.truncf %146 : vector<17x32xf32> to vector<17x32xbf16>
    %cst_51 = arith.constant dense<0.000000e+00> : vector<17x128xf32>
    %149 = tpu.matmul %148, %147, %cst_51 {dimension_numbers = #tpu.dot_dimension_numbers<[1], [0], [0], [1], [0, 0, 1, 1], [], []>} : vector<17x32xbf16>, vector<32x128xbf16>, vector<17x128xf32> -> vector<17x128xf32>
    %c0_52 = arith.constant 0 : index
    %c0_53 = arith.constant 0 : index
    %150 = vector.load %arg11[%c0_52, %c0_53] : memref<1x128xf32, #tpu.memory_space<vmem>>, vector<1x128xf32>
    %151 = vector.broadcast %150 : vector<1x128xf32> to vector<17x128xf32>
    %152 = arith.addf %149, %151 : vector<17x128xf32>
    %cst_54 = arith.constant 1.702000e+00 : f32
    %153 = vector.broadcast %cst_54 : f32 to vector<17x128xf32>
    %154 = arith.mulf %153, %152 : vector<17x128xf32>
    %155 = arith.negf %154 : vector<17x128xf32>
    %156 = math.exp %155 : vector<17x128xf32>
    %cst_55 = arith.constant 1.000000e+00 : f32
    %157 = vector.broadcast %cst_55 : f32 to vector<17x128xf32>
    %158 = arith.addf %157, %156 : vector<17x128xf32>
    %159 = arith.divf %157, %158 : vector<17x128xf32>
    %160 = arith.mulf %152, %159 : vector<17x128xf32>
    %c0_56 = arith.constant 0 : index
    %c0_57 = arith.constant 0 : index
    %161 = vector.load %arg12[%c0_56, %c0_57] : memref<128x32xbf16, #tpu.memory_space<vmem>>, vector<128x32xbf16>
    %162 = arith.truncf %160 : vector<17x128xf32> to vector<17x128xbf16>
    %cst_58 = arith.constant dense<0.000000e+00> : vector<17x32xf32>
    %163 = tpu.matmul %162, %161, %cst_58 {dimension_numbers = #tpu.dot_dimension_numbers<[1], [0], [0], [1], [0, 0, 1, 1], [], []>} : vector<17x128xbf16>, vector<128x32xbf16>, vector<17x32xf32> -> vector<17x32xf32>
    %c0_59 = arith.constant 0 : index
    %c0_60 = arith.constant 0 : index
    %164 = vector.load %arg13[%c0_59, %c0_60] : memref<1x32xf32, #tpu.memory_space<vmem>>, vector<1x32xf32>
    %165 = vector.broadcast %164 : vector<1x32xf32> to vector<17x32xf32>
    %166 = arith.addf %163, %165 : vector<17x32xf32>
    %167 = arith.addf %124, %166 : vector<17x32xf32>
    %c0_61 = arith.constant 0 : index
    %c0_62 = arith.constant 0 : index
    %c0_63 = arith.constant 0 : index
    %168 = vector.load %arg14[%c0_61, %c0_62, %c0_63] : memref<1x17x32xf32, #tpu.memory_space<vmem>>, vector<1x17x32xf32>
    %169 = vector.shape_cast %168 : vector<1x17x32xf32> to vector<17x32xf32>
    %170 = vector.shape_cast %167 : vector<17x32xf32> to vector<1x17x32xf32>
    tpu.vector_store %arg14[%c0_61, %c0_62, %c0_63], %170 {strides = array<i32>} : memref<1x17x32xf32, #tpu.memory_space<vmem>>, vector<1x17x32xf32>,
    return
  }
  func.func @transform_0(%arg0: i32) -> (i32, i32, i32) {
    %c0_i32 = arith.constant 0 : i32
    %c0_i32_0 = arith.constant 0 : i32
    %c0_i32_1 = arith.constant 0 : i32
    return %arg0, %c0_i32, %c0_i32_0 : i32, i32, i32
  }
  func.func @transform_1(%arg0: i32) -> (i32, i32) {
    %c0_i32 = arith.constant 0 : i32
    %c0_i32_0 = arith.constant 0 : i32
    %c0_i32_1 = arith.constant 0 : i32
    return %c0_i32, %c0_i32_0 : i32, i32
  }
  func.func @transform_2(%arg0: i32) -> (i32, i32) {
    %c0_i32 = arith.constant 0 : i32
    %c0_i32_0 = arith.constant 0 : i32
    %c0_i32_1 = arith.constant 0 : i32
    return %c0_i32, %c0_i32_0 : i32, i32
  }
  func.func @transform_3(%arg0: i32) -> (i32, i32) {
    %c0_i32 = arith.constant 0 : i32
    %c0_i32_0 = arith.constant 0 : i32
    %c0_i32_1 = arith.constant 0 : i32
    return %c0_i32, %c0_i32_0 : i32, i32
  }
  func.func @transform_4(%arg0: i32) -> (i32, i32) {
    %c0_i32 = arith.constant 0 : i32
    %c0_i32_0 = arith.constant 0 : i32
    %c0_i32_1 = arith.constant 0 : i32
    return %c0_i32, %c0_i32_0 : i32, i32
  }
  func.func @transform_5(%arg0: i32) -> (i32, i32) {
    %c0_i32 = arith.constant 0 : i32
    %c0_i32_0 = arith.constant 0 : i32
    %c0_i32_1 = arith.constant 0 : i32
    return %c0_i32, %c0_i32_0 : i32, i32
  }
  func.func @transform_6(%arg0: i32) -> (i32, i32) {
    %c0_i32 = arith.constant 0 : i32
    %c0_i32_0 = arith.constant 0 : i32
    %c0_i32_1 = arith.constant 0 : i32
    return %c0_i32, %c0_i32_0 : i32, i32
  }
  func.func @transform_7(%arg0: i32) -> (i32, i32) {
    %c0_i32 = arith.constant 0 : i32
    %c0_i32_0 = arith.constant 0 : i32
    %c0_i32_1 = arith.constant 0 : i32
    return %c0_i32, %c0_i32_0 : i32, i32
  }
  func.func @transform_8(%arg0: i32) -> (i32, i32) {
    %c0_i32 = arith.constant 0 : i32
    %c0_i32_0 = arith.constant 0 : i32
    %c0_i32_1 = arith.constant 0 : i32
    return %c0_i32, %c0_i32_0 : i32, i32
  }
  func.func @transform_9(%arg0: i32) -> (i32, i32) {
    %c0_i32 = arith.constant 0 : i32
    %c0_i32_0 = arith.constant 0 : i32
    %c0_i32_1 = arith.constant 0 : i32
    return %c0_i32, %c0_i32_0 : i32, i32
  }
  func.func @transform_10(%arg0: i32) -> (i32, i32) {
    %c0_i32 = arith.constant 0 : i32
    %c0_i32_0 = arith.constant 0 : i32
    %c0_i32_1 = arith.constant 0 : i32
    return %c0_i32, %c0_i32_0 : i32, i32
  }
  func.func @transform_11(%arg0: i32) -> (i32, i32) {
    %c0_i32 = arith.constant 0 : i32
    %c0_i32_0 = arith.constant 0 : i32
    %c0_i32_1 = arith.constant 0 : i32
    return %c0_i32, %c0_i32_0 : i32, i32
  }
  func.func @transform_12(%arg0: i32) -> (i32, i32) {
    %c0_i32 = arith.constant 0 : i32
    %c0_i32_0 = arith.constant 0 : i32
    %c0_i32_1 = arith.constant 0 : i32
    return %c0_i32, %c0_i32_0 : i32, i32
  }
  func.func @transform_13(%arg0: i32) -> (i32, i32, i32) {
    %c0_i32 = arith.constant 0 : i32
    %c0_i32_0 = arith.constant 0 : i32
    %c0_i32_1 = arith.constant 0 : i32
    return %arg0, %c0_i32, %c0_i32_0 : i32, i32, i32
  }
}

module attributes {stable_mosaic.version = 11 : i64} {
  func.func @_ln_kernel(%arg0: i32, %arg1: memref<34x32xf32, #tpu.memory_space<vmem>>, %arg2: memref<1x32xf32, #tpu.memory_space<vmem>>, %arg3: memref<1x32xf32, #tpu.memory_space<vmem>>, %arg4: memref<34x32xf32, #tpu.memory_space<vmem>>) attributes {dimension_semantics = [#tpu.dimension_semantics<arbitrary>], iteration_bounds = array<i64: 1>, scalar_prefetch = 0 : i64, scratch_operands = 0 : i64, tpu.core_type = #tpu.core_type<tc>, window_params = [{pipeline_mode = #tpu.pipeline_mode<synchronous>, transform_indices = @transform_0, window_bounds = array<i64: 34, 32>}, {pipeline_mode = #tpu.pipeline_mode<synchronous>, transform_indices = @transform_1, window_bounds = array<i64: 1, 32>}, {pipeline_mode = #tpu.pipeline_mode<synchronous>, transform_indices = @transform_2, window_bounds = array<i64: 1, 32>}, {pipeline_mode = #tpu.pipeline_mode<synchronous>, transform_indices = @transform_3, window_bounds = array<i64: 34, 32>}]} {
    %c0 = arith.constant 0 : index
    %c0_0 = arith.constant 0 : index
    %0 = vector.load %arg1[%c0, %c0_0] : memref<34x32xf32, #tpu.memory_space<vmem>>, vector<34x32xf32>
    %c0_1 = arith.constant 0 : index
    %c0_2 = arith.constant 0 : index
    %1 = vector.load %arg2[%c0_1, %c0_2] : memref<1x32xf32, #tpu.memory_space<vmem>>, vector<1x32xf32>
    %c0_3 = arith.constant 0 : index
    %c0_4 = arith.constant 0 : index
    %2 = vector.load %arg3[%c0_3, %c0_4] : memref<1x32xf32, #tpu.memory_space<vmem>>, vector<1x32xf32>
    %cst = arith.constant dense<0.000000e+00> : vector<34xf32>
    %3 = vector.multi_reduction <add>, %0, %cst [1] : vector<34x32xf32> to vector<34xf32>
    %4 = vector.shape_cast %3 : vector<34xf32> to vector<34x1xf32>
    %cst_5 = arith.constant 3.200000e+01 : f32
    %5 = vector.broadcast %cst_5 : f32 to vector<34x1xf32>
    %6 = arith.divf %4, %5 : vector<34x1xf32>
    %7 = vector.broadcast %6 : vector<34x1xf32> to vector<34x32xf32>
    %8 = arith.subf %0, %7 : vector<34x32xf32>
    %9 = arith.mulf %8, %8 : vector<34x32xf32>
    %cst_6 = arith.constant dense<0.000000e+00> : vector<34xf32>
    %10 = vector.multi_reduction <add>, %9, %cst_6 [1] : vector<34x32xf32> to vector<34xf32>
    %11 = vector.shape_cast %10 : vector<34xf32> to vector<34x1xf32>
    %cst_7 = arith.constant 3.200000e+01 : f32
    %12 = vector.broadcast %cst_7 : f32 to vector<34x1xf32>
    %13 = arith.divf %11, %12 : vector<34x1xf32>
    %cst_8 = arith.constant 9.99999974E-6 : f32
    %14 = vector.broadcast %cst_8 : f32 to vector<34x1xf32>
    %15 = arith.addf %13, %14 : vector<34x1xf32>
    %16 = math.rsqrt %15 : vector<34x1xf32>
    %17 = vector.broadcast %16 : vector<34x1xf32> to vector<34x32xf32>
    %18 = arith.mulf %8, %17 : vector<34x32xf32>
    %19 = vector.broadcast %1 : vector<1x32xf32> to vector<34x32xf32>
    %20 = arith.mulf %18, %19 : vector<34x32xf32>
    %21 = vector.broadcast %2 : vector<1x32xf32> to vector<34x32xf32>
    %22 = arith.addf %20, %21 : vector<34x32xf32>
    %c0_9 = arith.constant 0 : index
    %c0_10 = arith.constant 0 : index
    %23 = vector.load %arg4[%c0_9, %c0_10] : memref<34x32xf32, #tpu.memory_space<vmem>>, vector<34x32xf32>
    tpu.vector_store %arg4[%c0_9, %c0_10], %22 {strides = array<i32>} : memref<34x32xf32, #tpu.memory_space<vmem>>, vector<34x32xf32>,
    return
  }
  func.func @transform_0(%arg0: i32) -> (i32, i32) {
    %c0_i32 = arith.constant 0 : i32
    %c0_i32_0 = arith.constant 0 : i32
    %c0_i32_1 = arith.constant 0 : i32
    return %c0_i32, %c0_i32_0 : i32, i32
  }
  func.func @transform_1(%arg0: i32) -> (i32, i32) {
    %c0_i32 = arith.constant 0 : i32
    %c0_i32_0 = arith.constant 0 : i32
    %c0_i32_1 = arith.constant 0 : i32
    return %c0_i32, %c0_i32_0 : i32, i32
  }
  func.func @transform_2(%arg0: i32) -> (i32, i32) {
    %c0_i32 = arith.constant 0 : i32
    %c0_i32_0 = arith.constant 0 : i32
    %c0_i32_1 = arith.constant 0 : i32
    return %c0_i32, %c0_i32_0 : i32, i32
  }
  func.func @transform_3(%arg0: i32) -> (i32, i32) {
    %c0_i32 = arith.constant 0 : i32
    %c0_i32_0 = arith.constant 0 : i32
    %c0_i32_1 = arith.constant 0 : i32
    return %c0_i32, %c0_i32_0 : i32, i32
  }
}

module attributes {stable_mosaic.version = 11 : i64} {
  func.func @_linear_kernel(%arg0: i32, %arg1: memref<32x32xf32, #tpu.memory_space<vmem>>, %arg2: memref<32x16xbf16, #tpu.memory_space<vmem>>, %arg3: memref<32x16xf32, #tpu.memory_space<vmem>>) attributes {dimension_semantics = [#tpu.dimension_semantics<arbitrary>], iteration_bounds = array<i64: 1>, scalar_prefetch = 0 : i64, scratch_operands = 0 : i64, tpu.core_type = #tpu.core_type<tc>, window_params = [{pipeline_mode = #tpu.pipeline_mode<synchronous>, transform_indices = @transform_0, window_bounds = array<i64: 32, 32>}, {pipeline_mode = #tpu.pipeline_mode<synchronous>, transform_indices = @transform_1, window_bounds = array<i64: 32, 16>}, {pipeline_mode = #tpu.pipeline_mode<synchronous>, transform_indices = @transform_2, window_bounds = array<i64: 32, 16>}]} {
    %c0 = arith.constant 0 : index
    %c0_0 = arith.constant 0 : index
    %0 = vector.load %arg1[%c0, %c0_0] : memref<32x32xf32, #tpu.memory_space<vmem>>, vector<32x32xf32>
    %c0_1 = arith.constant 0 : index
    %c0_2 = arith.constant 0 : index
    %1 = vector.load %arg2[%c0_1, %c0_2] : memref<32x16xbf16, #tpu.memory_space<vmem>>, vector<32x16xbf16>
    %2 = arith.truncf %0 : vector<32x32xf32> to vector<32x32xbf16>
    %cst = arith.constant dense<0.000000e+00> : vector<32x16xf32>
    %3 = tpu.matmul %2, %1, %cst {dimension_numbers = #tpu.dot_dimension_numbers<[1], [0], [0], [1], [0, 0, 1, 1], [], []>} : vector<32x32xbf16>, vector<32x16xbf16>, vector<32x16xf32> -> vector<32x16xf32>
    %cst_3 = arith.constant 0.000000e+00 : f32
    %4 = vector.broadcast %cst_3 : f32 to vector<32x16xf32>
    %5 = arith.maximumf %3, %4 : vector<32x16xf32>
    %c0_4 = arith.constant 0 : index
    %c0_5 = arith.constant 0 : index
    %6 = vector.load %arg3[%c0_4, %c0_5] : memref<32x16xf32, #tpu.memory_space<vmem>>, vector<32x16xf32>
    tpu.vector_store %arg3[%c0_4, %c0_5], %5 {strides = array<i32>} : memref<32x16xf32, #tpu.memory_space<vmem>>, vector<32x16xf32>,
    return
  }
  func.func @transform_0(%arg0: i32) -> (i32, i32) {
    %c0_i32 = arith.constant 0 : i32
    %c0_i32_0 = arith.constant 0 : i32
    %c0_i32_1 = arith.constant 0 : i32
    return %c0_i32, %c0_i32_0 : i32, i32
  }
  func.func @transform_1(%arg0: i32) -> (i32, i32) {
    %c0_i32 = arith.constant 0 : i32
    %c0_i32_0 = arith.constant 0 : i32
    %c0_i32_1 = arith.constant 0 : i32
    return %c0_i32, %c0_i32_0 : i32, i32
  }
  func.func @transform_2(%arg0: i32) -> (i32, i32) {
    %c0_i32 = arith.constant 0 : i32
    %c0_i32_0 = arith.constant 0 : i32
    %c0_i32_1 = arith.constant 0 : i32
    return %c0_i32, %c0_i32_0 : i32, i32
  }
}

module attributes {stable_mosaic.version = 11 : i64} {
  func.func @_linear_kernel(%arg0: i32, %arg1: memref<16x32xf32, #tpu.memory_space<vmem>>, %arg2: memref<32x16xbf16, #tpu.memory_space<vmem>>, %arg3: memref<1x16xf32, #tpu.memory_space<vmem>>, %arg4: memref<16x16xf32, #tpu.memory_space<vmem>>) attributes {dimension_semantics = [#tpu.dimension_semantics<arbitrary>], iteration_bounds = array<i64: 1>, scalar_prefetch = 0 : i64, scratch_operands = 0 : i64, tpu.core_type = #tpu.core_type<tc>, window_params = [{pipeline_mode = #tpu.pipeline_mode<synchronous>, transform_indices = @transform_0, window_bounds = array<i64: 16, 32>}, {pipeline_mode = #tpu.pipeline_mode<synchronous>, transform_indices = @transform_1, window_bounds = array<i64: 32, 16>}, {pipeline_mode = #tpu.pipeline_mode<synchronous>, transform_indices = @transform_2, window_bounds = array<i64: 1, 16>}, {pipeline_mode = #tpu.pipeline_mode<synchronous>, transform_indices = @transform_3, window_bounds = array<i64: 16, 16>}]} {
    %c0 = arith.constant 0 : index
    %c0_0 = arith.constant 0 : index
    %0 = vector.load %arg1[%c0, %c0_0] : memref<16x32xf32, #tpu.memory_space<vmem>>, vector<16x32xf32>
    %c0_1 = arith.constant 0 : index
    %c0_2 = arith.constant 0 : index
    %1 = vector.load %arg2[%c0_1, %c0_2] : memref<32x16xbf16, #tpu.memory_space<vmem>>, vector<32x16xbf16>
    %2 = arith.truncf %0 : vector<16x32xf32> to vector<16x32xbf16>
    %cst = arith.constant dense<0.000000e+00> : vector<16x16xf32>
    %3 = tpu.matmul %2, %1, %cst {dimension_numbers = #tpu.dot_dimension_numbers<[1], [0], [0], [1], [0, 0, 1, 1], [], []>} : vector<16x32xbf16>, vector<32x16xbf16>, vector<16x16xf32> -> vector<16x16xf32>
    %c0_3 = arith.constant 0 : index
    %c0_4 = arith.constant 0 : index
    %4 = vector.load %arg3[%c0_3, %c0_4] : memref<1x16xf32, #tpu.memory_space<vmem>>, vector<1x16xf32>
    %5 = vector.broadcast %4 : vector<1x16xf32> to vector<16x16xf32>
    %6 = arith.addf %3, %5 : vector<16x16xf32>
    %c0_5 = arith.constant 0 : index
    %c0_6 = arith.constant 0 : index
    %7 = vector.load %arg4[%c0_5, %c0_6] : memref<16x16xf32, #tpu.memory_space<vmem>>, vector<16x16xf32>
    tpu.vector_store %arg4[%c0_5, %c0_6], %6 {strides = array<i32>} : memref<16x16xf32, #tpu.memory_space<vmem>>, vector<16x16xf32>,
    return
  }
  func.func @transform_0(%arg0: i32) -> (i32, i32) {
    %c0_i32 = arith.constant 0 : i32
    %c0_i32_0 = arith.constant 0 : i32
    %c0_i32_1 = arith.constant 0 : i32
    return %c0_i32, %c0_i32_0 : i32, i32
  }
  func.func @transform_1(%arg0: i32) -> (i32, i32) {
    %c0_i32 = arith.constant 0 : i32
    %c0_i32_0 = arith.constant 0 : i32
    %c0_i32_1 = arith.constant 0 : i32
    return %c0_i32, %c0_i32_0 : i32, i32
  }
  func.func @transform_2(%arg0: i32) -> (i32, i32) {
    %c0_i32 = arith.constant 0 : i32
    %c0_i32_0 = arith.constant 0 : i32
    %c0_i32_1 = arith.constant 0 : i32
    return %c0_i32, %c0_i32_0 : i32, i32
  }
  func.func @transform_3(%arg0: i32) -> (i32, i32) {
    %c0_i32 = arith.constant 0 : i32
    %c0_i32_0 = arith.constant 0 : i32
    %c0_i32_1 = arith.constant 0 : i32
    return %c0_i32, %c0_i32_0 : i32, i32
  }
}

module attributes {stable_mosaic.version = 11 : i64} {
  func.func @_block_kernel(%arg0: i32, %arg1: memref<1x8x32xf32, #tpu.memory_space<vmem>>, %arg2: memref<1x32xf32, #tpu.memory_space<vmem>>, %arg3: memref<1x32xf32, #tpu.memory_space<vmem>>, %arg4: memref<32x96xbf16, #tpu.memory_space<vmem>>, %arg5: memref<1x96xf32, #tpu.memory_space<vmem>>, %arg6: memref<32x32xbf16, #tpu.memory_space<vmem>>, %arg7: memref<1x32xf32, #tpu.memory_space<vmem>>, %arg8: memref<1x32xf32, #tpu.memory_space<vmem>>, %arg9: memref<1x32xf32, #tpu.memory_space<vmem>>, %arg10: memref<32x128xbf16, #tpu.memory_space<vmem>>, %arg11: memref<1x128xf32, #tpu.memory_space<vmem>>, %arg12: memref<128x32xbf16, #tpu.memory_space<vmem>>, %arg13: memref<1x32xf32, #tpu.memory_space<vmem>>, %arg14: memref<1x8x32xf32, #tpu.memory_space<vmem>>) attributes {dimension_semantics = [#tpu.dimension_semantics<parallel>], iteration_bounds = array<i64: 2>, scalar_prefetch = 0 : i64, scratch_operands = 0 : i64, tpu.core_type = #tpu.core_type<tc>, window_params = [{transform_indices = @transform_0, window_bounds = array<i64: 1, 8, 32>}, {pipeline_mode = #tpu.pipeline_mode<synchronous>, transform_indices = @transform_1, window_bounds = array<i64: 1, 32>}, {pipeline_mode = #tpu.pipeline_mode<synchronous>, transform_indices = @transform_2, window_bounds = array<i64: 1, 32>}, {pipeline_mode = #tpu.pipeline_mode<synchronous>, transform_indices = @transform_3, window_bounds = array<i64: 32, 96>}, {pipeline_mode = #tpu.pipeline_mode<synchronous>, transform_indices = @transform_4, window_bounds = array<i64: 1, 96>}, {pipeline_mode = #tpu.pipeline_mode<synchronous>, transform_indices = @transform_5, window_bounds = array<i64: 32, 32>}, {pipeline_mode = #tpu.pipeline_mode<synchronous>, transform_indices = @transform_6, window_bounds = array<i64: 1, 32>}, {pipeline_mode = #tpu.pipeline_mode<synchronous>, transform_indices = @transform_7, window_bounds = array<i64: 1, 32>}, {pipeline_mode = #tpu.pipeline_mode<synchronous>, transform_indices = @transform_8, window_bounds = array<i64: 1, 32>}, {pipeline_mode = #tpu.pipeline_mode<synchronous>, transform_indices = @transform_9, window_bounds = array<i64: 32, 128>}, {pipeline_mode = #tpu.pipeline_mode<synchronous>, transform_indices = @transform_10, window_bounds = array<i64: 1, 128>}, {pipeline_mode = #tpu.pipeline_mode<synchronous>, transform_indices = @transform_11, window_bounds = array<i64: 128, 32>}, {pipeline_mode = #tpu.pipeline_mode<synchronous>, transform_indices = @transform_12, window_bounds = array<i64: 1, 32>}, {transform_indices = @transform_13, window_bounds = array<i64: 1, 8, 32>}]} {
    %c0 = arith.constant 0 : index
    %c0_0 = arith.constant 0 : index
    %c0_1 = arith.constant 0 : index
    %0 = vector.load %arg1[%c0, %c0_0, %c0_1] : memref<1x8x32xf32, #tpu.memory_space<vmem>>, vector<1x8x32xf32>
    %1 = vector.shape_cast %0 : vector<1x8x32xf32> to vector<8x32xf32>
    %c0_2 = arith.constant 0 : index
    %c0_3 = arith.constant 0 : index
    %2 = vector.load %arg2[%c0_2, %c0_3] : memref<1x32xf32, #tpu.memory_space<vmem>>, vector<1x32xf32>
    %c0_4 = arith.constant 0 : index
    %c0_5 = arith.constant 0 : index
    %3 = vector.load %arg3[%c0_4, %c0_5] : memref<1x32xf32, #tpu.memory_space<vmem>>, vector<1x32xf32>
    %cst = arith.constant dense<0.000000e+00> : vector<8xf32>
    %4 = vector.multi_reduction <add>, %1, %cst [1] : vector<8x32xf32> to vector<8xf32>
    %5 = vector.shape_cast %4 : vector<8xf32> to vector<8x1xf32>
    %cst_6 = arith.constant 3.200000e+01 : f32
    %6 = vector.broadcast %cst_6 : f32 to vector<8x1xf32>
    %7 = arith.divf %5, %6 : vector<8x1xf32>
    %8 = vector.broadcast %7 : vector<8x1xf32> to vector<8x32xf32>
    %9 = arith.subf %1, %8 : vector<8x32xf32>
    %10 = arith.mulf %9, %9 : vector<8x32xf32>
    %cst_7 = arith.constant dense<0.000000e+00> : vector<8xf32>
    %11 = vector.multi_reduction <add>, %10, %cst_7 [1] : vector<8x32xf32> to vector<8xf32>
    %12 = vector.shape_cast %11 : vector<8xf32> to vector<8x1xf32>
    %cst_8 = arith.constant 3.200000e+01 : f32
    %13 = vector.broadcast %cst_8 : f32 to vector<8x1xf32>
    %14 = arith.divf %12, %13 : vector<8x1xf32>
    %cst_9 = arith.constant 9.99999974E-6 : f32
    %15 = vector.broadcast %cst_9 : f32 to vector<8x1xf32>
    %16 = arith.addf %14, %15 : vector<8x1xf32>
    %17 = math.rsqrt %16 : vector<8x1xf32>
    %18 = vector.broadcast %17 : vector<8x1xf32> to vector<8x32xf32>
    %19 = arith.mulf %9, %18 : vector<8x32xf32>
    %20 = vector.broadcast %2 : vector<1x32xf32> to vector<8x32xf32>
    %21 = arith.mulf %19, %20 : vector<8x32xf32>
    %22 = vector.broadcast %3 : vector<1x32xf32> to vector<8x32xf32>
    %23 = arith.addf %21, %22 : vector<8x32xf32>
    %c0_10 = arith.constant 0 : index
    %c0_11 = arith.constant 0 : index
    %24 = vector.load %arg4[%c0_10, %c0_11] : memref<32x96xbf16, #tpu.memory_space<vmem>>, vector<32x96xbf16>
    %25 = arith.truncf %23 : vector<8x32xf32> to vector<8x32xbf16>
    %cst_12 = arith.constant dense<0.000000e+00> : vector<8x96xf32>
    %26 = tpu.matmul %25, %24, %cst_12 {dimension_numbers = #tpu.dot_dimension_numbers<[1], [0], [0], [1], [0, 0, 1, 1], [], []>} : vector<8x32xbf16>, vector<32x96xbf16>, vector<8x96xf32> -> vector<8x96xf32>
    %c0_13 = arith.constant 0 : index
    %c0_14 = arith.constant 0 : index
    %27 = vector.load %arg5[%c0_13, %c0_14] : memref<1x96xf32, #tpu.memory_space<vmem>>, vector<1x96xf32>
    %28 = vector.broadcast %27 : vector<1x96xf32> to vector<8x96xf32>
    %29 = arith.addf %26, %28 : vector<8x96xf32>
    %30 = vector.extract_strided_slice %29 {offsets = [0, 0], sizes = [8, 32], strides = [1, 1]} : vector<8x96xf32> to vector<8x32xf32>
    %31 = vector.extract_strided_slice %29 {offsets = [0, 32], sizes = [8, 32], strides = [1, 1]} : vector<8x96xf32> to vector<8x32xf32>
    %32 = vector.extract_strided_slice %29 {offsets = [0, 64], sizes = [8, 32], strides = [1, 1]} : vector<8x96xf32> to vector<8x32xf32>
    %c0_15 = arith.constant 0 : index
    %c0_16 = arith.constant 0 : index
    %33 = vector.load %arg6[%c0_15, %c0_16] : memref<32x32xbf16, #tpu.memory_space<vmem>>, vector<32x32xbf16>
    %34 = tpu.iota {dimensions = array<i32: 0>} : vector<8x8xi32>
    %35 = tpu.iota {dimensions = array<i32: 1>} : vector<8x8xi32>
    %36 = arith.cmpi sgt, %35, %34 : vector<8x8xi32>
    %cst_17 = arith.constant -1.000000e+09 : f32
    %cst_18 = arith.constant 0.000000e+00 : f32
    %37 = vector.broadcast %cst_17 : f32 to vector<8x8xf32>
    %38 = vector.broadcast %cst_18 : f32 to vector<8x8xf32>
    %39 = arith.select %36, %37, %38 : vector<8x8xi1>, vector<8x8xf32>
    %40 = vector.extract_strided_slice %30 {offsets = [0, 0], sizes = [8, 8], strides = [1, 1]} : vector<8x32xf32> to vector<8x8xf32>
    %cst_19 = arith.constant 0.353553385 : f32
    %41 = vector.broadcast %cst_19 : f32 to vector<8x8xf32>
    %42 = arith.mulf %40, %41 : vector<8x8xf32>
    %43 = vector.extract_strided_slice %31 {offsets = [0, 0], sizes = [8, 8], strides = [1, 1]} : vector<8x32xf32> to vector<8x8xf32>
    %44 = vector.extract_strided_slice %32 {offsets = [0, 0], sizes = [8, 8], strides = [1, 1]} : vector<8x32xf32> to vector<8x8xf32>
    %45 = arith.truncf %42 : vector<8x8xf32> to vector<8x8xbf16>
    %46 = arith.truncf %43 : vector<8x8xf32> to vector<8x8xbf16>
    %cst_20 = arith.constant dense<0.000000e+00> : vector<8x8xf32>
    %47 = tpu.matmul %45, %46, %cst_20 {dimension_numbers = #tpu.dot_dimension_numbers<[1], [1], [0], [0], [0, 0, 1, 0], [], []>} : vector<8x8xbf16>, vector<8x8xbf16>, vector<8x8xf32> -> vector<8x8xf32>
    %48 = arith.addf %47, %39 : vector<8x8xf32>
    %cst_21 = arith.constant dense<0xFF800000> : vector<8xf32>
    %49 = vector.multi_reduction <maximumf>, %48, %cst_21 [1] : vector<8x8xf32> to vector<8xf32>
    %50 = vector.shape_cast %49 : vector<8xf32> to vector<8x1xf32>
    %51 = vector.broadcast %50 : vector<8x1xf32> to vector<8x8xf32>
    %52 = arith.subf %48, %51 : vector<8x8xf32>
    %53 = math.exp %52 : vector<8x8xf32>
    %cst_22 = arith.constant dense<0.000000e+00> : vector<8xf32>
    %54 = vector.multi_reduction <add>, %53, %cst_22 [1] : vector<8x8xf32> to vector<8xf32>
    %55 = vector.shape_cast %54 : vector<8xf32> to vector<8x1xf32>
    %56 = tpu.reciprocal %55 {approx = true} : vector<8x1xf32> -> vector<8x1xf32>
    %57 = arith.truncf %53 : vector<8x8xf32> to vector<8x8xbf16>
    %58 = arith.truncf %44 : vector<8x8xf32> to vector<8x8xbf16>
    %cst_23 = arith.constant dense<0.000000e+00> : vector<8x8xf32>
    %59 = tpu.matmul %57, %58, %cst_23 {dimension_numbers = #tpu.dot_dimension_numbers<[1], [0], [0], [1], [0, 0, 1, 1], [], []>} : vector<8x8xbf16>, vector<8x8xbf16>, vector<8x8xf32> -> vector<8x8xf32>
    %60 = vector.broadcast %56 : vector<8x1xf32> to vector<8x8xf32>
    %61 = arith.mulf %59, %60 : vector<8x8xf32>
    %62 = vector.extract_strided_slice %30 {offsets = [0, 8], sizes = [8, 8], strides = [1, 1]} : vector<8x32xf32> to vector<8x8xf32>
    %cst_24 = arith.constant 0.353553385 : f32
    %63 = vector.broadcast %cst_24 : f32 to vector<8x8xf32>
    %64 = arith.mulf %62, %63 : vector<8x8xf32>
    %65 = vector.extract_strided_slice %31 {offsets = [0, 8], sizes = [8, 8], strides = [1, 1]} : vector<8x32xf32> to vector<8x8xf32>
    %66 = vector.extract_strided_slice %32 {offsets = [0, 8], sizes = [8, 8], strides = [1, 1]} : vector<8x32xf32> to vector<8x8xf32>
    %67 = arith.truncf %64 : vector<8x8xf32> to vector<8x8xbf16>
    %68 = arith.truncf %65 : vector<8x8xf32> to vector<8x8xbf16>
    %cst_25 = arith.constant dense<0.000000e+00> : vector<8x8xf32>
    %69 = tpu.matmul %67, %68, %cst_25 {dimension_numbers = #tpu.dot_dimension_numbers<[1], [1], [0], [0], [0, 0, 1, 0], [], []>} : vector<8x8xbf16>, vector<8x8xbf16>, vector<8x8xf32> -> vector<8x8xf32>
    %70 = arith.addf %69, %39 : vector<8x8xf32>
    %cst_26 = arith.constant dense<0xFF800000> : vector<8xf32>
    %71 = vector.multi_reduction <maximumf>, %70, %cst_26 [1] : vector<8x8xf32> to vector<8xf32>
    %72 = vector.shape_cast %71 : vector<8xf32> to vector<8x1xf32>
    %73 = vector.broadcast %72 : vector<8x1xf32> to vector<8x8xf32>
    %74 = arith.subf %70, %73 : vector<8x8xf32>
    %75 = math.exp %74 : vector<8x8xf32>
    %cst_27 = arith.constant dense<0.000000e+00> : vector<8xf32>
    %76 = vector.multi_reduction <add>, %75, %cst_27 [1] : vector<8x8xf32> to vector<8xf32>
    %77 = vector.shape_cast %76 : vector<8xf32> to vector<8x1xf32>
    %78 = tpu.reciprocal %77 {approx = true} : vector<8x1xf32> -> vector<8x1xf32>
    %79 = arith.truncf %75 : vector<8x8xf32> to vector<8x8xbf16>
    %80 = arith.truncf %66 : vector<8x8xf32> to vector<8x8xbf16>
    %cst_28 = arith.constant dense<0.000000e+00> : vector<8x8xf32>
    %81 = tpu.matmul %79, %80, %cst_28 {dimension_numbers = #tpu.dot_dimension_numbers<[1], [0], [0], [1], [0, 0, 1, 1], [], []>} : vector<8x8xbf16>, vector<8x8xbf16>, vector<8x8xf32> -> vector<8x8xf32>
    %82 = vector.broadcast %78 : vector<8x1xf32> to vector<8x8xf32>
    %83 = arith.mulf %81, %82 : vector<8x8xf32>
    %84 = vector.extract_strided_slice %30 {offsets = [0, 16], sizes = [8, 8], strides = [1, 1]} : vector<8x32xf32> to vector<8x8xf32>
    %cst_29 = arith.constant 0.353553385 : f32
    %85 = vector.broadcast %cst_29 : f32 to vector<8x8xf32>
    %86 = arith.mulf %84, %85 : vector<8x8xf32>
    %87 = vector.extract_strided_slice %31 {offsets = [0, 16], sizes = [8, 8], strides = [1, 1]} : vector<8x32xf32> to vector<8x8xf32>
    %88 = vector.extract_strided_slice %32 {offsets = [0, 16], sizes = [8, 8], strides = [1, 1]} : vector<8x32xf32> to vector<8x8xf32>
    %89 = arith.truncf %86 : vector<8x8xf32> to vector<8x8xbf16>
    %90 = arith.truncf %87 : vector<8x8xf32> to vector<8x8xbf16>
    %cst_30 = arith.constant dense<0.000000e+00> : vector<8x8xf32>
    %91 = tpu.matmul %89, %90, %cst_30 {dimension_numbers = #tpu.dot_dimension_numbers<[1], [1], [0], [0], [0, 0, 1, 0], [], []>} : vector<8x8xbf16>, vector<8x8xbf16>, vector<8x8xf32> -> vector<8x8xf32>
    %92 = arith.addf %91, %39 : vector<8x8xf32>
    %cst_31 = arith.constant dense<0xFF800000> : vector<8xf32>
    %93 = vector.multi_reduction <maximumf>, %92, %cst_31 [1] : vector<8x8xf32> to vector<8xf32>
    %94 = vector.shape_cast %93 : vector<8xf32> to vector<8x1xf32>
    %95 = vector.broadcast %94 : vector<8x1xf32> to vector<8x8xf32>
    %96 = arith.subf %92, %95 : vector<8x8xf32>
    %97 = math.exp %96 : vector<8x8xf32>
    %cst_32 = arith.constant dense<0.000000e+00> : vector<8xf32>
    %98 = vector.multi_reduction <add>, %97, %cst_32 [1] : vector<8x8xf32> to vector<8xf32>
    %99 = vector.shape_cast %98 : vector<8xf32> to vector<8x1xf32>
    %100 = tpu.reciprocal %99 {approx = true} : vector<8x1xf32> -> vector<8x1xf32>
    %101 = arith.truncf %97 : vector<8x8xf32> to vector<8x8xbf16>
    %102 = arith.truncf %88 : vector<8x8xf32> to vector<8x8xbf16>
    %cst_33 = arith.constant dense<0.000000e+00> : vector<8x8xf32>
    %103 = tpu.matmul %101, %102, %cst_33 {dimension_numbers = #tpu.dot_dimension_numbers<[1], [0], [0], [1], [0, 0, 1, 1], [], []>} : vector<8x8xbf16>, vector<8x8xbf16>, vector<8x8xf32> -> vector<8x8xf32>
    %104 = vector.broadcast %100 : vector<8x1xf32> to vector<8x8xf32>
    %105 = arith.mulf %103, %104 : vector<8x8xf32>
    %106 = vector.extract_strided_slice %30 {offsets = [0, 24], sizes = [8, 8], strides = [1, 1]} : vector<8x32xf32> to vector<8x8xf32>
    %cst_34 = arith.constant 0.353553385 : f32
    %107 = vector.broadcast %cst_34 : f32 to vector<8x8xf32>
    %108 = arith.mulf %106, %107 : vector<8x8xf32>
    %109 = vector.extract_strided_slice %31 {offsets = [0, 24], sizes = [8, 8], strides = [1, 1]} : vector<8x32xf32> to vector<8x8xf32>
    %110 = vector.extract_strided_slice %32 {offsets = [0, 24], sizes = [8, 8], strides = [1, 1]} : vector<8x32xf32> to vector<8x8xf32>
    %111 = arith.truncf %108 : vector<8x8xf32> to vector<8x8xbf16>
    %112 = arith.truncf %109 : vector<8x8xf32> to vector<8x8xbf16>
    %cst_35 = arith.constant dense<0.000000e+00> : vector<8x8xf32>
    %113 = tpu.matmul %111, %112, %cst_35 {dimension_numbers = #tpu.dot_dimension_numbers<[1], [1], [0], [0], [0, 0, 1, 0], [], []>} : vector<8x8xbf16>, vector<8x8xbf16>, vector<8x8xf32> -> vector<8x8xf32>
    %114 = arith.addf %113, %39 : vector<8x8xf32>
    %cst_36 = arith.constant dense<0xFF800000> : vector<8xf32>
    %115 = vector.multi_reduction <maximumf>, %114, %cst_36 [1] : vector<8x8xf32> to vector<8xf32>
    %116 = vector.shape_cast %115 : vector<8xf32> to vector<8x1xf32>
    %117 = vector.broadcast %116 : vector<8x1xf32> to vector<8x8xf32>
    %118 = arith.subf %114, %117 : vector<8x8xf32>
    %119 = math.exp %118 : vector<8x8xf32>
    %cst_37 = arith.constant dense<0.000000e+00> : vector<8xf32>
    %120 = vector.multi_reduction <add>, %119, %cst_37 [1] : vector<8x8xf32> to vector<8xf32>
    %121 = vector.shape_cast %120 : vector<8xf32> to vector<8x1xf32>
    %122 = tpu.reciprocal %121 {approx = true} : vector<8x1xf32> -> vector<8x1xf32>
    %123 = arith.truncf %119 : vector<8x8xf32> to vector<8x8xbf16>
    %124 = arith.truncf %110 : vector<8x8xf32> to vector<8x8xbf16>
    %cst_38 = arith.constant dense<0.000000e+00> : vector<8x8xf32>
    %125 = tpu.matmul %123, %124, %cst_38 {dimension_numbers = #tpu.dot_dimension_numbers<[1], [0], [0], [1], [0, 0, 1, 1], [], []>} : vector<8x8xbf16>, vector<8x8xbf16>, vector<8x8xf32> -> vector<8x8xf32>
    %126 = vector.broadcast %122 : vector<8x1xf32> to vector<8x8xf32>
    %127 = arith.mulf %125, %126 : vector<8x8xf32>
    %128 = tpu.concatenate %61, %83, %105, %127 in 1 : vector<8x8xf32>, vector<8x8xf32>, vector<8x8xf32>, vector<8x8xf32> -> vector<8x32xf32>
    %129 = arith.truncf %128 : vector<8x32xf32> to vector<8x32xbf16>
    %cst_39 = arith.constant dense<0.000000e+00> : vector<8x32xf32>
    %130 = tpu.matmul %129, %33, %cst_39 {dimension_numbers = #tpu.dot_dimension_numbers<[1], [0], [0], [1], [0, 0, 1, 1], [], []>} : vector<8x32xbf16>, vector<32x32xbf16>, vector<8x32xf32> -> vector<8x32xf32>
    %131 = arith.addf %1, %130 : vector<8x32xf32>
    %c0_40 = arith.constant 0 : index
    %c0_41 = arith.constant 0 : index
    %132 = vector.load %arg7[%c0_40, %c0_41] : memref<1x32xf32, #tpu.memory_space<vmem>>, vector<1x32xf32>
    %133 = vector.broadcast %132 : vector<1x32xf32> to vector<8x32xf32>
    %134 = arith.addf %131, %133 : vector<8x32xf32>
    %c0_42 = arith.constant 0 : index
    %c0_43 = arith.constant 0 : index
    %135 = vector.load %arg8[%c0_42, %c0_43] : memref<1x32xf32, #tpu.memory_space<vmem>>, vector<1x32xf32>
    %c0_44 = arith.constant 0 : index
    %c0_45 = arith.constant 0 : index
    %136 = vector.load %arg9[%c0_44, %c0_45] : memref<1x32xf32, #tpu.memory_space<vmem>>, vector<1x32xf32>
    %cst_46 = arith.constant dense<0.000000e+00> : vector<8xf32>
    %137 = vector.multi_reduction <add>, %134, %cst_46 [1] : vector<8x32xf32> to vector<8xf32>
    %138 = vector.shape_cast %137 : vector<8xf32> to vector<8x1xf32>
    %cst_47 = arith.constant 3.200000e+01 : f32
    %139 = vector.broadcast %cst_47 : f32 to vector<8x1xf32>
    %140 = arith.divf %138, %139 : vector<8x1xf32>
    %141 = vector.broadcast %140 : vector<8x1xf32> to vector<8x32xf32>
    %142 = arith.subf %134, %141 : vector<8x32xf32>
    %143 = arith.mulf %142, %142 : vector<8x32xf32>
    %cst_48 = arith.constant dense<0.000000e+00> : vector<8xf32>
    %144 = vector.multi_reduction <add>, %143, %cst_48 [1] : vector<8x32xf32> to vector<8xf32>
    %145 = vector.shape_cast %144 : vector<8xf32> to vector<8x1xf32>
    %cst_49 = arith.constant 3.200000e+01 : f32
    %146 = vector.broadcast %cst_49 : f32 to vector<8x1xf32>
    %147 = arith.divf %145, %146 : vector<8x1xf32>
    %cst_50 = arith.constant 9.99999974E-6 : f32
    %148 = vector.broadcast %cst_50 : f32 to vector<8x1xf32>
    %149 = arith.addf %147, %148 : vector<8x1xf32>
    %150 = math.rsqrt %149 : vector<8x1xf32>
    %151 = vector.broadcast %150 : vector<8x1xf32> to vector<8x32xf32>
    %152 = arith.mulf %142, %151 : vector<8x32xf32>
    %153 = vector.broadcast %135 : vector<1x32xf32> to vector<8x32xf32>
    %154 = arith.mulf %152, %153 : vector<8x32xf32>
    %155 = vector.broadcast %136 : vector<1x32xf32> to vector<8x32xf32>
    %156 = arith.addf %154, %155 : vector<8x32xf32>
    %c0_51 = arith.constant 0 : index
    %c0_52 = arith.constant 0 : index
    %157 = vector.load %arg10[%c0_51, %c0_52] : memref<32x128xbf16, #tpu.memory_space<vmem>>, vector<32x128xbf16>
    %158 = arith.truncf %156 : vector<8x32xf32> to vector<8x32xbf16>
    %cst_53 = arith.constant dense<0.000000e+00> : vector<8x128xf32>
    %159 = tpu.matmul %158, %157, %cst_53 {dimension_numbers = #tpu.dot_dimension_numbers<[1], [0], [0], [1], [0, 0, 1, 1], [], []>} : vector<8x32xbf16>, vector<32x128xbf16>, vector<8x128xf32> -> vector<8x128xf32>
    %c0_54 = arith.constant 0 : index
    %c0_55 = arith.constant 0 : index
    %160 = vector.load %arg11[%c0_54, %c0_55] : memref<1x128xf32, #tpu.memory_space<vmem>>, vector<1x128xf32>
    %161 = vector.broadcast %160 : vector<1x128xf32> to vector<8x128xf32>
    %162 = arith.addf %159, %161 : vector<8x128xf32>
    %cst_56 = arith.constant 1.702000e+00 : f32
    %163 = vector.broadcast %cst_56 : f32 to vector<8x128xf32>
    %164 = arith.mulf %163, %162 : vector<8x128xf32>
    %165 = arith.negf %164 : vector<8x128xf32>
    %166 = math.exp %165 : vector<8x128xf32>
    %cst_57 = arith.constant 1.000000e+00 : f32
    %167 = vector.broadcast %cst_57 : f32 to vector<8x128xf32>
    %168 = arith.addf %167, %166 : vector<8x128xf32>
    %169 = arith.divf %167, %168 : vector<8x128xf32>
    %170 = arith.mulf %162, %169 : vector<8x128xf32>
    %c0_58 = arith.constant 0 : index
    %c0_59 = arith.constant 0 : index
    %171 = vector.load %arg12[%c0_58, %c0_59] : memref<128x32xbf16, #tpu.memory_space<vmem>>, vector<128x32xbf16>
    %172 = arith.truncf %170 : vector<8x128xf32> to vector<8x128xbf16>
    %cst_60 = arith.constant dense<0.000000e+00> : vector<8x32xf32>
    %173 = tpu.matmul %172, %171, %cst_60 {dimension_numbers = #tpu.dot_dimension_numbers<[1], [0], [0], [1], [0, 0, 1, 1], [], []>} : vector<8x128xbf16>, vector<128x32xbf16>, vector<8x32xf32> -> vector<8x32xf32>
    %c0_61 = arith.constant 0 : index
    %c0_62 = arith.constant 0 : index
    %174 = vector.load %arg13[%c0_61, %c0_62] : memref<1x32xf32, #tpu.memory_space<vmem>>, vector<1x32xf32>
    %175 = vector.broadcast %174 : vector<1x32xf32> to vector<8x32xf32>
    %176 = arith.addf %173, %175 : vector<8x32xf32>
    %177 = arith.addf %134, %176 : vector<8x32xf32>
    %c0_63 = arith.constant 0 : index
    %c0_64 = arith.constant 0 : index
    %c0_65 = arith.constant 0 : index
    %178 = vector.load %arg14[%c0_63, %c0_64, %c0_65] : memref<1x8x32xf32, #tpu.memory_space<vmem>>, vector<1x8x32xf32>
    %179 = vector.shape_cast %178 : vector<1x8x32xf32> to vector<8x32xf32>
    %180 = vector.shape_cast %177 : vector<8x32xf32> to vector<1x8x32xf32>
    tpu.vector_store %arg14[%c0_63, %c0_64, %c0_65], %180 {strides = array<i32>} : memref<1x8x32xf32, #tpu.memory_space<vmem>>, vector<1x8x32xf32>,
    return
  }
  func.func @transform_0(%arg0: i32) -> (i32, i32, i32) {
    %c0_i32 = arith.constant 0 : i32
    %c0_i32_0 = arith.constant 0 : i32
    %c0_i32_1 = arith.constant 0 : i32
    return %arg0, %c0_i32, %c0_i32_0 : i32, i32, i32
  }
  func.func @transform_1(%arg0: i32) -> (i32, i32) {
    %c0_i32 = arith.constant 0 : i32
    %c0_i32_0 = arith.constant 0 : i32
    %c0_i32_1 = arith.constant 0 : i32
    return %c0_i32, %c0_i32_0 : i32, i32
  }
  func.func @transform_2(%arg0: i32) -> (i32, i32) {
    %c0_i32 = arith.constant 0 : i32
    %c0_i32_0 = arith.constant 0 : i32
    %c0_i32_1 = arith.constant 0 : i32
    return %c0_i32, %c0_i32_0 : i32, i32
  }
  func.func @transform_3(%arg0: i32) -> (i32, i32) {
    %c0_i32 = arith.constant 0 : i32
    %c0_i32_0 = arith.constant 0 : i32
    %c0_i32_1 = arith.constant 0 : i32
    return %c0_i32, %c0_i32_0 : i32, i32
  }
  func.func @transform_4(%arg0: i32) -> (i32, i32) {
    %c0_i32 = arith.constant 0 : i32
    %c0_i32_0 = arith.constant 0 : i32
    %c0_i32_1 = arith.constant 0 : i32
    return %c0_i32, %c0_i32_0 : i32, i32
  }
  func.func @transform_5(%arg0: i32) -> (i32, i32) {
    %c0_i32 = arith.constant 0 : i32
    %c0_i32_0 = arith.constant 0 : i32
    %c0_i32_1 = arith.constant 0 : i32
    return %c0_i32, %c0_i32_0 : i32, i32
  }
  func.func @transform_6(%arg0: i32) -> (i32, i32) {
    %c0_i32 = arith.constant 0 : i32
    %c0_i32_0 = arith.constant 0 : i32
    %c0_i32_1 = arith.constant 0 : i32
    return %c0_i32, %c0_i32_0 : i32, i32
  }
  func.func @transform_7(%arg0: i32) -> (i32, i32) {
    %c0_i32 = arith.constant 0 : i32
    %c0_i32_0 = arith.constant 0 : i32
    %c0_i32_1 = arith.constant 0 : i32
    return %c0_i32, %c0_i32_0 : i32, i32
  }
  func.func @transform_8(%arg0: i32) -> (i32, i32) {
    %c0_i32 = arith.constant 0 : i32
    %c0_i32_0 = arith.constant 0 : i32
    %c0_i32_1 = arith.constant 0 : i32
    return %c0_i32, %c0_i32_0 : i32, i32
  }
  func.func @transform_9(%arg0: i32) -> (i32, i32) {
    %c0_i32 = arith.constant 0 : i32
    %c0_i32_0 = arith.constant 0 : i32
    %c0_i32_1 = arith.constant 0 : i32
    return %c0_i32, %c0_i32_0 : i32, i32
  }
  func.func @transform_10(%arg0: i32) -> (i32, i32) {
    %c0_i32 = arith.constant 0 : i32
    %c0_i32_0 = arith.constant 0 : i32
    %c0_i32_1 = arith.constant 0 : i32
    return %c0_i32, %c0_i32_0 : i32, i32
  }
  func.func @transform_11(%arg0: i32) -> (i32, i32) {
    %c0_i32 = arith.constant 0 : i32
    %c0_i32_0 = arith.constant 0 : i32
    %c0_i32_1 = arith.constant 0 : i32
    return %c0_i32, %c0_i32_0 : i32, i32
  }
  func.func @transform_12(%arg0: i32) -> (i32, i32) {
    %c0_i32 = arith.constant 0 : i32
    %c0_i32_0 = arith.constant 0 : i32
    %c0_i32_1 = arith.constant 0 : i32
    return %c0_i32, %c0_i32_0 : i32, i32
  }
  func.func @transform_13(%arg0: i32) -> (i32, i32, i32) {
    %c0_i32 = arith.constant 0 : i32
    %c0_i32_0 = arith.constant 0 : i32
    %c0_i32_1 = arith.constant 0 : i32
    return %arg0, %c0_i32, %c0_i32_0 : i32, i32, i32
  }
}

module attributes {stable_mosaic.version = 11 : i64} {
  func.func @_interactor_kernel(%arg0: i32, %arg1: memref<1x16x16xf32, #tpu.memory_space<vmem>>, %arg2: memref<1x8x16xf32, #tpu.memory_space<vmem>>, %arg3: memref<1x16xf32, #tpu.memory_space<vmem>>, %arg4: memref<1x16xf32, #tpu.memory_space<vmem>>, %arg5: memref<1x16xf32, #tpu.memory_space<vmem>>, %arg6: memref<1x16xf32, #tpu.memory_space<vmem>>, %arg7: memref<16x16xbf16, #tpu.memory_space<vmem>>, %arg8: memref<1x16xf32, #tpu.memory_space<vmem>>, %arg9: memref<16x32xbf16, #tpu.memory_space<vmem>>, %arg10: memref<1x32xf32, #tpu.memory_space<vmem>>, %arg11: memref<16x16xbf16, #tpu.memory_space<vmem>>, %arg12: memref<1x16xf32, #tpu.memory_space<vmem>>, %arg13: memref<1x16xf32, #tpu.memory_space<vmem>>, %arg14: memref<1x16xf32, #tpu.memory_space<vmem>>, %arg15: memref<16x64xbf16, #tpu.memory_space<vmem>>, %arg16: memref<1x64xf32, #tpu.memory_space<vmem>>, %arg17: memref<64x16xbf16, #tpu.memory_space<vmem>>, %arg18: memref<1x16xf32, #tpu.memory_space<vmem>>, %arg19: memref<1x16x16xf32, #tpu.memory_space<vmem>>) attributes {dimension_semantics = [#tpu.dimension_semantics<parallel>], iteration_bounds = array<i64: 2>, scalar_prefetch = 0 : i64, scratch_operands = 0 : i64, tpu.core_type = #tpu.core_type<tc>, window_params = [{transform_indices = @transform_0, window_bounds = array<i64: 1, 16, 16>}, {transform_indices = @transform_1, window_bounds = array<i64: 1, 8, 16>}, {pipeline_mode = #tpu.pipeline_mode<synchronous>, transform_indices = @transform_2, window_bounds = array<i64: 1, 16>}, {pipeline_mode = #tpu.pipeline_mode<synchronous>, transform_indices = @transform_3, window_bounds = array<i64: 1, 16>}, {pipeline_mode = #tpu.pipeline_mode<synchronous>, transform_indices = @transform_4, window_bounds = array<i64: 1, 16>}, {pipeline_mode = #tpu.pipeline_mode<synchronous>, transform_indices = @transform_5, window_bounds = array<i64: 1, 16>}, {pipeline_mode = #tpu.pipeline_mode<synchronous>, transform_indices = @transform_6, window_bounds = array<i64: 16, 16>}, {pipeline_mode = #tpu.pipeline_mode<synchronous>, transform_indices = @transform_7, window_bounds = array<i64: 1, 16>}, {pipeline_mode = #tpu.pipeline_mode<synchronous>, transform_indices = @transform_8, window_bounds = array<i64: 16, 32>}, {pipeline_mode = #tpu.pipeline_mode<synchronous>, transform_indices = @transform_9, window_bounds = array<i64: 1, 32>}, {pipeline_mode = #tpu.pipeline_mode<synchronous>, transform_indices = @transform_10, window_bounds = array<i64: 16, 16>}, {pipeline_mode = #tpu.pipeline_mode<synchronous>, transform_indices = @transform_11, window_bounds = array<i64: 1, 16>}, {pipeline_mode = #tpu.pipeline_mode<synchronous>, transform_indices = @transform_12, window_bounds = array<i64: 1, 16>}, {pipeline_mode = #tpu.pipeline_mode<synchronous>, transform_indices = @transform_13, window_bounds = array<i64: 1, 16>}, {pipeline_mode = #tpu.pipeline_mode<synchronous>, transform_indices = @transform_14, window_bounds = array<i64: 16, 64>}, {pipeline_mode = #tpu.pipeline_mode<synchronous>, transform_indices = @transform_15, window_bounds = array<i64: 1, 64>}, {pipeline_mode = #tpu.pipeline_mode<synchronous>, transform_indices = @transform_16, window_bounds = array<i64: 64, 16>}, {pipeline_mode = #tpu.pipeline_mode<synchronous>, transform_indices = @transform_17, window_bounds = array<i64: 1, 16>}, {transform_indices = @transform_18, window_bounds = array<i64: 1, 16, 16>}]} {
    %c0 = arith.constant 0 : index
    %c0_0 = arith.constant 0 : index
    %c0_1 = arith.constant 0 : index
    %0 = vector.load %arg1[%c0, %c0_0, %c0_1] : memref<1x16x16xf32, #tpu.memory_space<vmem>>, vector<1x16x16xf32>
    %1 = vector.shape_cast %0 : vector<1x16x16xf32> to vector<16x16xf32>
    %c0_2 = arith.constant 0 : index
    %c0_3 = arith.constant 0 : index
    %c0_4 = arith.constant 0 : index
    %2 = vector.load %arg2[%c0_2, %c0_3, %c0_4] : memref<1x8x16xf32, #tpu.memory_space<vmem>>, vector<1x8x16xf32>
    %3 = vector.shape_cast %2 : vector<1x8x16xf32> to vector<8x16xf32>
    %c0_5 = arith.constant 0 : index
    %c0_6 = arith.constant 0 : index
    %4 = vector.load %arg3[%c0_5, %c0_6] : memref<1x16xf32, #tpu.memory_space<vmem>>, vector<1x16xf32>
    %c0_7 = arith.constant 0 : index
    %c0_8 = arith.constant 0 : index
    %5 = vector.load %arg4[%c0_7, %c0_8] : memref<1x16xf32, #tpu.memory_space<vmem>>, vector<1x16xf32>
    %cst = arith.constant dense<0.000000e+00> : vector<16xf32>
    %6 = vector.multi_reduction <add>, %1, %cst [1] : vector<16x16xf32> to vector<16xf32>
    %7 = vector.shape_cast %6 : vector<16xf32> to vector<16x1xf32>
    %cst_9 = arith.constant 1.600000e+01 : f32
    %8 = vector.broadcast %cst_9 : f32 to vector<16x1xf32>
    %9 = arith.divf %7, %8 : vector<16x1xf32>
    %10 = vector.broadcast %9 : vector<16x1xf32> to vector<16x16xf32>
    %11 = arith.subf %1, %10 : vector<16x16xf32>
    %12 = arith.mulf %11, %11 : vector<16x16xf32>
    %cst_10 = arith.constant dense<0.000000e+00> : vector<16xf32>
    %13 = vector.multi_reduction <add>, %12, %cst_10 [1] : vector<16x16xf32> to vector<16xf32>
    %14 = vector.shape_cast %13 : vector<16xf32> to vector<16x1xf32>
    %cst_11 = arith.constant 1.600000e+01 : f32
    %15 = vector.broadcast %cst_11 : f32 to vector<16x1xf32>
    %16 = arith.divf %14, %15 : vector<16x1xf32>
    %cst_12 = arith.constant 9.99999974E-6 : f32
    %17 = vector.broadcast %cst_12 : f32 to vector<16x1xf32>
    %18 = arith.addf %16, %17 : vector<16x1xf32>
    %19 = math.rsqrt %18 : vector<16x1xf32>
    %20 = vector.broadcast %19 : vector<16x1xf32> to vector<16x16xf32>
    %21 = arith.mulf %11, %20 : vector<16x16xf32>
    %22 = vector.broadcast %4 : vector<1x16xf32> to vector<16x16xf32>
    %23 = arith.mulf %21, %22 : vector<16x16xf32>
    %24 = vector.broadcast %5 : vector<1x16xf32> to vector<16x16xf32>
    %25 = arith.addf %23, %24 : vector<16x16xf32>
    %c0_13 = arith.constant 0 : index
    %c0_14 = arith.constant 0 : index
    %26 = vector.load %arg5[%c0_13, %c0_14] : memref<1x16xf32, #tpu.memory_space<vmem>>, vector<1x16xf32>
    %c0_15 = arith.constant 0 : index
    %c0_16 = arith.constant 0 : index
    %27 = vector.load %arg6[%c0_15, %c0_16] : memref<1x16xf32, #tpu.memory_space<vmem>>, vector<1x16xf32>
    %cst_17 = arith.constant dense<0.000000e+00> : vector<8xf32>
    %28 = vector.multi_reduction <add>, %3, %cst_17 [1] : vector<8x16xf32> to vector<8xf32>
    %29 = vector.shape_cast %28 : vector<8xf32> to vector<8x1xf32>
    %cst_18 = arith.constant 1.600000e+01 : f32
    %30 = vector.broadcast %cst_18 : f32 to vector<8x1xf32>
    %31 = arith.divf %29, %30 : vector<8x1xf32>
    %32 = vector.broadcast %31 : vector<8x1xf32> to vector<8x16xf32>
    %33 = arith.subf %3, %32 : vector<8x16xf32>
    %34 = arith.mulf %33, %33 : vector<8x16xf32>
    %cst_19 = arith.constant dense<0.000000e+00> : vector<8xf32>
    %35 = vector.multi_reduction <add>, %34, %cst_19 [1] : vector<8x16xf32> to vector<8xf32>
    %36 = vector.shape_cast %35 : vector<8xf32> to vector<8x1xf32>
    %cst_20 = arith.constant 1.600000e+01 : f32
    %37 = vector.broadcast %cst_20 : f32 to vector<8x1xf32>
    %38 = arith.divf %36, %37 : vector<8x1xf32>
    %cst_21 = arith.constant 9.99999974E-6 : f32
    %39 = vector.broadcast %cst_21 : f32 to vector<8x1xf32>
    %40 = arith.addf %38, %39 : vector<8x1xf32>
    %41 = math.rsqrt %40 : vector<8x1xf32>
    %42 = vector.broadcast %41 : vector<8x1xf32> to vector<8x16xf32>
    %43 = arith.mulf %33, %42 : vector<8x16xf32>
    %44 = vector.broadcast %26 : vector<1x16xf32> to vector<8x16xf32>
    %45 = arith.mulf %43, %44 : vector<8x16xf32>
    %46 = vector.broadcast %27 : vector<1x16xf32> to vector<8x16xf32>
    %47 = arith.addf %45, %46 : vector<8x16xf32>
    %c0_22 = arith.constant 0 : index
    %c0_23 = arith.constant 0 : index
    %48 = vector.load %arg7[%c0_22, %c0_23] : memref<16x16xbf16, #tpu.memory_space<vmem>>, vector<16x16xbf16>
    %49 = arith.truncf %25 : vector<16x16xf32> to vector<16x16xbf16>
    %cst_24 = arith.constant dense<0.000000e+00> : vector<16x16xf32>
    %50 = tpu.matmul %49, %48, %cst_24 {dimension_numbers = #tpu.dot_dimension_numbers<[1], [0], [0], [1], [0, 0, 1, 1], [], []>} : vector<16x16xbf16>, vector<16x16xbf16>, vector<16x16xf32> -> vector<16x16xf32>
    %c0_25 = arith.constant 0 : index
    %c0_26 = arith.constant 0 : index
    %51 = vector.load %arg8[%c0_25, %c0_26] : memref<1x16xf32, #tpu.memory_space<vmem>>, vector<1x16xf32>
    %52 = vector.broadcast %51 : vector<1x16xf32> to vector<16x16xf32>
    %53 = arith.addf %50, %52 : vector<16x16xf32>
    %c0_27 = arith.constant 0 : index
    %c0_28 = arith.constant 0 : index
    %54 = vector.load %arg9[%c0_27, %c0_28] : memref<16x32xbf16, #tpu.memory_space<vmem>>, vector<16x32xbf16>
    %55 = arith.truncf %47 : vector<8x16xf32> to vector<8x16xbf16>
    %cst_29 = arith.constant dense<0.000000e+00> : vector<8x32xf32>
    %56 = tpu.matmul %55, %54, %cst_29 {dimension_numbers = #tpu.dot_dimension_numbers<[1], [0], [0], [1], [0, 0, 1, 1], [], []>} : vector<8x16xbf16>, vector<16x32xbf16>, vector<8x32xf32> -> vector<8x32xf32>
    %c0_30 = arith.constant 0 : index
    %c0_31 = arith.constant 0 : index
    %57 = vector.load %arg10[%c0_30, %c0_31] : memref<1x32xf32, #tpu.memory_space<vmem>>, vector<1x32xf32>
    %58 = vector.broadcast %57 : vector<1x32xf32> to vector<8x32xf32>
    %59 = arith.addf %56, %58 : vector<8x32xf32>
    %60 = vector.extract_strided_slice %59 {offsets = [0, 0], sizes = [8, 16], strides = [1, 1]} : vector<8x32xf32> to vector<8x16xf32>
    %61 = vector.extract_strided_slice %59 {offsets = [0, 16], sizes = [8, 16], strides = [1, 1]} : vector<8x32xf32> to vector<8x16xf32>
    %c0_32 = arith.constant 0 : index
    %c0_33 = arith.constant 0 : index
    %62 = vector.load %arg11[%c0_32, %c0_33] : memref<16x16xbf16, #tpu.memory_space<vmem>>, vector<16x16xbf16>
    %63 = vector.extract_strided_slice %53 {offsets = [0, 0], sizes = [16, 4], strides = [1, 1]} : vector<16x16xf32> to vector<16x4xf32>
    %cst_34 = arith.constant 5.000000e-01 : f32
    %64 = vector.broadcast %cst_34 : f32 to vector<16x4xf32>
    %65 = arith.mulf %63, %64 : vector<16x4xf32>
    %66 = vector.extract_strided_slice %60 {offsets = [0, 0], sizes = [8, 4], strides = [1, 1]} : vector<8x16xf32> to vector<8x4xf32>
    %67 = vector.extract_strided_slice %61 {offsets = [0, 0], sizes = [8, 4], strides = [1, 1]} : vector<8x16xf32> to vector<8x4xf32>
    %68 = arith.truncf %65 : vector<16x4xf32> to vector<16x4xbf16>
    %69 = arith.truncf %66 : vector<8x4xf32> to vector<8x4xbf16>
    %cst_35 = arith.constant dense<0.000000e+00> : vector<16x8xf32>
    %70 = tpu.matmul %68, %69, %cst_35 {dimension_numbers = #tpu.dot_dimension_numbers<[1], [1], [0], [0], [0, 0, 1, 0], [], []>} : vector<16x4xbf16>, vector<8x4xbf16>, vector<16x8xf32> -> vector<16x8xf32>
    %cst_36 = arith.constant dense<0xFF800000> : vector<16xf32>
    %71 = vector.multi_reduction <maximumf>, %70, %cst_36 [1] : vector<16x8xf32> to vector<16xf32>
    %72 = vector.shape_cast %71 : vector<16xf32> to vector<16x1xf32>
    %73 = vector.broadcast %72 : vector<16x1xf32> to vector<16x8xf32>
    %74 = arith.subf %70, %73 : vector<16x8xf32>
    %75 = math.exp %74 : vector<16x8xf32>
    %cst_37 = arith.constant dense<0.000000e+00> : vector<16xf32>
    %76 = vector.multi_reduction <add>, %75, %cst_37 [1] : vector<16x8xf32> to vector<16xf32>
    %77 = vector.shape_cast %76 : vector<16xf32> to vector<16x1xf32>
    %78 = tpu.reciprocal %77 {approx = true} : vector<16x1xf32> -> vector<16x1xf32>
    %79 = arith.truncf %75 : vector<16x8xf32> to vector<16x8xbf16>
    %80 = arith.truncf %67 : vector<8x4xf32> to vector<8x4xbf16>
    %cst_38 = arith.constant dense<0.000000e+00> : vector<16x4xf32>
    %81 = tpu.matmul %79, %80, %cst_38 {dimension_numbers = #tpu.dot_dimension_numbers<[1], [0], [0], [1], [0, 0, 1, 1], [], []>} : vector<16x8xbf16>, vector<8x4xbf16>, vector<16x4xf32> -> vector<16x4xf32>
    %82 = vector.broadcast %78 : vector<16x1xf32> to vector<16x4xf32>
    %83 = arith.mulf %81, %82 : vector<16x4xf32>
    %84 = vector.extract_strided_slice %53 {offsets = [0, 4], sizes = [16, 4], strides = [1, 1]} : vector<16x16xf32> to vector<16x4xf32>
    %cst_39 = arith.constant 5.000000e-01 : f32
    %85 = vector.broadcast %cst_39 : f32 to vector<16x4xf32>
    %86 = arith.mulf %84, %85 : vector<16x4xf32>
    %87 = vector.extract_strided_slice %60 {offsets = [0, 4], sizes = [8, 4], strides = [1, 1]} : vector<8x16xf32> to vector<8x4xf32>
    %88 = vector.extract_strided_slice %61 {offsets = [0, 4], sizes = [8, 4], strides = [1, 1]} : vector<8x16xf32> to vector<8x4xf32>
    %89 = arith.truncf %86 : vector<16x4xf32> to vector<16x4xbf16>
    %90 = arith.truncf %87 : vector<8x4xf32> to vector<8x4xbf16>
    %cst_40 = arith.constant dense<0.000000e+00> : vector<16x8xf32>
    %91 = tpu.matmul %89, %90, %cst_40 {dimension_numbers = #tpu.dot_dimension_numbers<[1], [1], [0], [0], [0, 0, 1, 0], [], []>} : vector<16x4xbf16>, vector<8x4xbf16>, vector<16x8xf32> -> vector<16x8xf32>
    %cst_41 = arith.constant dense<0xFF800000> : vector<16xf32>
    %92 = vector.multi_reduction <maximumf>, %91, %cst_41 [1] : vector<16x8xf32> to vector<16xf32>
    %93 = vector.shape_cast %92 : vector<16xf32> to vector<16x1xf32>
    %94 = vector.broadcast %93 : vector<16x1xf32> to vector<16x8xf32>
    %95 = arith.subf %91, %94 : vector<16x8xf32>
    %96 = math.exp %95 : vector<16x8xf32>
    %cst_42 = arith.constant dense<0.000000e+00> : vector<16xf32>
    %97 = vector.multi_reduction <add>, %96, %cst_42 [1] : vector<16x8xf32> to vector<16xf32>
    %98 = vector.shape_cast %97 : vector<16xf32> to vector<16x1xf32>
    %99 = tpu.reciprocal %98 {approx = true} : vector<16x1xf32> -> vector<16x1xf32>
    %100 = arith.truncf %96 : vector<16x8xf32> to vector<16x8xbf16>
    %101 = arith.truncf %88 : vector<8x4xf32> to vector<8x4xbf16>
    %cst_43 = arith.constant dense<0.000000e+00> : vector<16x4xf32>
    %102 = tpu.matmul %100, %101, %cst_43 {dimension_numbers = #tpu.dot_dimension_numbers<[1], [0], [0], [1], [0, 0, 1, 1], [], []>} : vector<16x8xbf16>, vector<8x4xbf16>, vector<16x4xf32> -> vector<16x4xf32>
    %103 = vector.broadcast %99 : vector<16x1xf32> to vector<16x4xf32>
    %104 = arith.mulf %102, %103 : vector<16x4xf32>
    %105 = vector.extract_strided_slice %53 {offsets = [0, 8], sizes = [16, 4], strides = [1, 1]} : vector<16x16xf32> to vector<16x4xf32>
    %cst_44 = arith.constant 5.000000e-01 : f32
    %106 = vector.broadcast %cst_44 : f32 to vector<16x4xf32>
    %107 = arith.mulf %105, %106 : vector<16x4xf32>
    %108 = vector.extract_strided_slice %60 {offsets = [0, 8], sizes = [8, 4], strides = [1, 1]} : vector<8x16xf32> to vector<8x4xf32>
    %109 = vector.extract_strided_slice %61 {offsets = [0, 8], sizes = [8, 4], strides = [1, 1]} : vector<8x16xf32> to vector<8x4xf32>
    %110 = arith.truncf %107 : vector<16x4xf32> to vector<16x4xbf16>
    %111 = arith.truncf %108 : vector<8x4xf32> to vector<8x4xbf16>
    %cst_45 = arith.constant dense<0.000000e+00> : vector<16x8xf32>
    %112 = tpu.matmul %110, %111, %cst_45 {dimension_numbers = #tpu.dot_dimension_numbers<[1], [1], [0], [0], [0, 0, 1, 0], [], []>} : vector<16x4xbf16>, vector<8x4xbf16>, vector<16x8xf32> -> vector<16x8xf32>
    %cst_46 = arith.constant dense<0xFF800000> : vector<16xf32>
    %113 = vector.multi_reduction <maximumf>, %112, %cst_46 [1] : vector<16x8xf32> to vector<16xf32>
    %114 = vector.shape_cast %113 : vector<16xf32> to vector<16x1xf32>
    %115 = vector.broadcast %114 : vector<16x1xf32> to vector<16x8xf32>
    %116 = arith.subf %112, %115 : vector<16x8xf32>
    %117 = math.exp %116 : vector<16x8xf32>
    %cst_47 = arith.constant dense<0.000000e+00> : vector<16xf32>
    %118 = vector.multi_reduction <add>, %117, %cst_47 [1] : vector<16x8xf32> to vector<16xf32>
    %119 = vector.shape_cast %118 : vector<16xf32> to vector<16x1xf32>
    %120 = tpu.reciprocal %119 {approx = true} : vector<16x1xf32> -> vector<16x1xf32>
    %121 = arith.truncf %117 : vector<16x8xf32> to vector<16x8xbf16>
    %122 = arith.truncf %109 : vector<8x4xf32> to vector<8x4xbf16>
    %cst_48 = arith.constant dense<0.000000e+00> : vector<16x4xf32>
    %123 = tpu.matmul %121, %122, %cst_48 {dimension_numbers = #tpu.dot_dimension_numbers<[1], [0], [0], [1], [0, 0, 1, 1], [], []>} : vector<16x8xbf16>, vector<8x4xbf16>, vector<16x4xf32> -> vector<16x4xf32>
    %124 = vector.broadcast %120 : vector<16x1xf32> to vector<16x4xf32>
    %125 = arith.mulf %123, %124 : vector<16x4xf32>
    %126 = vector.extract_strided_slice %53 {offsets = [0, 12], sizes = [16, 4], strides = [1, 1]} : vector<16x16xf32> to vector<16x4xf32>
    %cst_49 = arith.constant 5.000000e-01 : f32
    %127 = vector.broadcast %cst_49 : f32 to vector<16x4xf32>
    %128 = arith.mulf %126, %127 : vector<16x4xf32>
    %129 = vector.extract_strided_slice %60 {offsets = [0, 12], sizes = [8, 4], strides = [1, 1]} : vector<8x16xf32> to vector<8x4xf32>
    %130 = vector.extract_strided_slice %61 {offsets = [0, 12], sizes = [8, 4], strides = [1, 1]} : vector<8x16xf32> to vector<8x4xf32>
    %131 = arith.truncf %128 : vector<16x4xf32> to vector<16x4xbf16>
    %132 = arith.truncf %129 : vector<8x4xf32> to vector<8x4xbf16>
    %cst_50 = arith.constant dense<0.000000e+00> : vector<16x8xf32>
    %133 = tpu.matmul %131, %132, %cst_50 {dimension_numbers = #tpu.dot_dimension_numbers<[1], [1], [0], [0], [0, 0, 1, 0], [], []>} : vector<16x4xbf16>, vector<8x4xbf16>, vector<16x8xf32> -> vector<16x8xf32>
    %cst_51 = arith.constant dense<0xFF800000> : vector<16xf32>
    %134 = vector.multi_reduction <maximumf>, %133, %cst_51 [1] : vector<16x8xf32> to vector<16xf32>
    %135 = vector.shape_cast %134 : vector<16xf32> to vector<16x1xf32>
    %136 = vector.broadcast %135 : vector<16x1xf32> to vector<16x8xf32>
    %137 = arith.subf %133, %136 : vector<16x8xf32>
    %138 = math.exp %137 : vector<16x8xf32>
    %cst_52 = arith.constant dense<0.000000e+00> : vector<16xf32>
    %139 = vector.multi_reduction <add>, %138, %cst_52 [1] : vector<16x8xf32> to vector<16xf32>
    %140 = vector.shape_cast %139 : vector<16xf32> to vector<16x1xf32>
    %141 = tpu.reciprocal %140 {approx = true} : vector<16x1xf32> -> vector<16x1xf32>
    %142 = arith.truncf %138 : vector<16x8xf32> to vector<16x8xbf16>
    %143 = arith.truncf %130 : vector<8x4xf32> to vector<8x4xbf16>
    %cst_53 = arith.constant dense<0.000000e+00> : vector<16x4xf32>
    %144 = tpu.matmul %142, %143, %cst_53 {dimension_numbers = #tpu.dot_dimension_numbers<[1], [0], [0], [1], [0, 0, 1, 1], [], []>} : vector<16x8xbf16>, vector<8x4xbf16>, vector<16x4xf32> -> vector<16x4xf32>
    %145 = vector.broadcast %141 : vector<16x1xf32> to vector<16x4xf32>
    %146 = arith.mulf %144, %145 : vector<16x4xf32>
    %147 = tpu.concatenate %83, %104, %125, %146 in 1 : vector<16x4xf32>, vector<16x4xf32>, vector<16x4xf32>, vector<16x4xf32> -> vector<16x16xf32>
    %148 = arith.truncf %147 : vector<16x16xf32> to vector<16x16xbf16>
    %cst_54 = arith.constant dense<0.000000e+00> : vector<16x16xf32>
    %149 = tpu.matmul %148, %62, %cst_54 {dimension_numbers = #tpu.dot_dimension_numbers<[1], [0], [0], [1], [0, 0, 1, 1], [], []>} : vector<16x16xbf16>, vector<16x16xbf16>, vector<16x16xf32> -> vector<16x16xf32>
    %150 = arith.addf %1, %149 : vector<16x16xf32>
    %c0_55 = arith.constant 0 : index
    %c0_56 = arith.constant 0 : index
    %151 = vector.load %arg12[%c0_55, %c0_56] : memref<1x16xf32, #tpu.memory_space<vmem>>, vector<1x16xf32>
    %152 = vector.broadcast %151 : vector<1x16xf32> to vector<16x16xf32>
    %153 = arith.addf %150, %152 : vector<16x16xf32>
    %c0_57 = arith.constant 0 : index
    %c0_58 = arith.constant 0 : index
    %154 = vector.load %arg13[%c0_57, %c0_58] : memref<1x16xf32, #tpu.memory_space<vmem>>, vector<1x16xf32>
    %c0_59 = arith.constant 0 : index
    %c0_60 = arith.constant 0 : index
    %155 = vector.load %arg14[%c0_59, %c0_60] : memref<1x16xf32, #tpu.memory_space<vmem>>, vector<1x16xf32>
    %cst_61 = arith.constant dense<0.000000e+00> : vector<16xf32>
    %156 = vector.multi_reduction <add>, %153, %cst_61 [1] : vector<16x16xf32> to vector<16xf32>
    %157 = vector.shape_cast %156 : vector<16xf32> to vector<16x1xf32>
    %cst_62 = arith.constant 1.600000e+01 : f32
    %158 = vector.broadcast %cst_62 : f32 to vector<16x1xf32>
    %159 = arith.divf %157, %158 : vector<16x1xf32>
    %160 = vector.broadcast %159 : vector<16x1xf32> to vector<16x16xf32>
    %161 = arith.subf %153, %160 : vector<16x16xf32>
    %162 = arith.mulf %161, %161 : vector<16x16xf32>
    %cst_63 = arith.constant dense<0.000000e+00> : vector<16xf32>
    %163 = vector.multi_reduction <add>, %162, %cst_63 [1] : vector<16x16xf32> to vector<16xf32>
    %164 = vector.shape_cast %163 : vector<16xf32> to vector<16x1xf32>
    %cst_64 = arith.constant 1.600000e+01 : f32
    %165 = vector.broadcast %cst_64 : f32 to vector<16x1xf32>
    %166 = arith.divf %164, %165 : vector<16x1xf32>
    %cst_65 = arith.constant 9.99999974E-6 : f32
    %167 = vector.broadcast %cst_65 : f32 to vector<16x1xf32>
    %168 = arith.addf %166, %167 : vector<16x1xf32>
    %169 = math.rsqrt %168 : vector<16x1xf32>
    %170 = vector.broadcast %169 : vector<16x1xf32> to vector<16x16xf32>
    %171 = arith.mulf %161, %170 : vector<16x16xf32>
    %172 = vector.broadcast %154 : vector<1x16xf32> to vector<16x16xf32>
    %173 = arith.mulf %171, %172 : vector<16x16xf32>
    %174 = vector.broadcast %155 : vector<1x16xf32> to vector<16x16xf32>
    %175 = arith.addf %173, %174 : vector<16x16xf32>
    %c0_66 = arith.constant 0 : index
    %c0_67 = arith.constant 0 : index
    %176 = vector.load %arg15[%c0_66, %c0_67] : memref<16x64xbf16, #tpu.memory_space<vmem>>, vector<16x64xbf16>
    %177 = arith.truncf %175 : vector<16x16xf32> to vector<16x16xbf16>
    %cst_68 = arith.constant dense<0.000000e+00> : vector<16x64xf32>
    %178 = tpu.matmul %177, %176, %cst_68 {dimension_numbers = #tpu.dot_dimension_numbers<[1], [0], [0], [1], [0, 0, 1, 1], [], []>} : vector<16x16xbf16>, vector<16x64xbf16>, vector<16x64xf32> -> vector<16x64xf32>
    %c0_69 = arith.constant 0 : index
    %c0_70 = arith.constant 0 : index
    %179 = vector.load %arg16[%c0_69, %c0_70] : memref<1x64xf32, #tpu.memory_space<vmem>>, vector<1x64xf32>
    %180 = vector.broadcast %179 : vector<1x64xf32> to vector<16x64xf32>
    %181 = arith.addf %178, %180 : vector<16x64xf32>
    %cst_71 = arith.constant 1.702000e+00 : f32
    %182 = vector.broadcast %cst_71 : f32 to vector<16x64xf32>
    %183 = arith.mulf %182, %181 : vector<16x64xf32>
    %184 = arith.negf %183 : vector<16x64xf32>
    %185 = math.exp %184 : vector<16x64xf32>
    %cst_72 = arith.constant 1.000000e+00 : f32
    %186 = vector.broadcast %cst_72 : f32 to vector<16x64xf32>
    %187 = arith.addf %186, %185 : vector<16x64xf32>
    %188 = arith.divf %186, %187 : vector<16x64xf32>
    %189 = arith.mulf %181, %188 : vector<16x64xf32>
    %c0_73 = arith.constant 0 : index
    %c0_74 = arith.constant 0 : index
    %190 = vector.load %arg17[%c0_73, %c0_74] : memref<64x16xbf16, #tpu.memory_space<vmem>>, vector<64x16xbf16>
    %191 = arith.truncf %189 : vector<16x64xf32> to vector<16x64xbf16>
    %cst_75 = arith.constant dense<0.000000e+00> : vector<16x16xf32>
    %192 = tpu.matmul %191, %190, %cst_75 {dimension_numbers = #tpu.dot_dimension_numbers<[1], [0], [0], [1], [0, 0, 1, 1], [], []>} : vector<16x64xbf16>, vector<64x16xbf16>, vector<16x16xf32> -> vector<16x16xf32>
    %c0_76 = arith.constant 0 : index
    %c0_77 = arith.constant 0 : index
    %193 = vector.load %arg18[%c0_76, %c0_77] : memref<1x16xf32, #tpu.memory_space<vmem>>, vector<1x16xf32>
    %194 = vector.broadcast %193 : vector<1x16xf32> to vector<16x16xf32>
    %195 = arith.addf %192, %194 : vector<16x16xf32>
    %196 = arith.addf %153, %195 : vector<16x16xf32>
    %c0_78 = arith.constant 0 : index
    %c0_79 = arith.constant 0 : index
    %c0_80 = arith.constant 0 : index
    %197 = vector.load %arg19[%c0_78, %c0_79, %c0_80] : memref<1x16x16xf32, #tpu.memory_space<vmem>>, vector<1x16x16xf32>
    %198 = vector.shape_cast %197 : vector<1x16x16xf32> to vector<16x16xf32>
    %199 = vector.shape_cast %196 : vector<16x16xf32> to vector<1x16x16xf32>
    tpu.vector_store %arg19[%c0_78, %c0_79, %c0_80], %199 {strides = array<i32>} : memref<1x16x16xf32, #tpu.memory_space<vmem>>, vector<1x16x16xf32>,
    return
  }
  func.func @transform_0(%arg0: i32) -> (i32, i32, i32) {
    %c0_i32 = arith.constant 0 : i32
    %c0_i32_0 = arith.constant 0 : i32
    %c0_i32_1 = arith.constant 0 : i32
    return %arg0, %c0_i32, %c0_i32_0 : i32, i32, i32
  }
  func.func @transform_1(%arg0: i32) -> (i32, i32, i32) {
    %c0_i32 = arith.constant 0 : i32
    %c0_i32_0 = arith.constant 0 : i32
    %c0_i32_1 = arith.constant 0 : i32
    return %arg0, %c0_i32, %c0_i32_0 : i32, i32, i32
  }
  func.func @transform_2(%arg0: i32) -> (i32, i32) {
    %c0_i32 = arith.constant 0 : i32
    %c0_i32_0 = arith.constant 0 : i32
    %c0_i32_1 = arith.constant 0 : i32
    return %c0_i32, %c0_i32_0 : i32, i32
  }
  func.func @transform_3(%arg0: i32) -> (i32, i32) {
    %c0_i32 = arith.constant 0 : i32
    %c0_i32_0 = arith.constant 0 : i32
    %c0_i32_1 = arith.constant 0 : i32
    return %c0_i32, %c0_i32_0 : i32, i32
  }
  func.func @transform_4(%arg0: i32) -> (i32, i32) {
    %c0_i32 = arith.constant 0 : i32
    %c0_i32_0 = arith.constant 0 : i32
    %c0_i32_1 = arith.constant 0 : i32
    return %c0_i32, %c0_i32_0 : i32, i32
  }
  func.func @transform_5(%arg0: i32) -> (i32, i32) {
    %c0_i32 = arith.constant 0 : i32
    %c0_i32_0 = arith.constant 0 : i32
    %c0_i32_1 = arith.constant 0 : i32
    return %c0_i32, %c0_i32_0 : i32, i32
  }
  func.func @transform_6(%arg0: i32) -> (i32, i32) {
    %c0_i32 = arith.constant 0 : i32
    %c0_i32_0 = arith.constant 0 : i32
    %c0_i32_1 = arith.constant 0 : i32
    return %c0_i32, %c0_i32_0 : i32, i32
  }
  func.func @transform_7(%arg0: i32) -> (i32, i32) {
    %c0_i32 = arith.constant 0 : i32
    %c0_i32_0 = arith.constant 0 : i32
    %c0_i32_1 = arith.constant 0 : i32
    return %c0_i32, %c0_i32_0 : i32, i32
  }
  func.func @transform_8(%arg0: i32) -> (i32, i32) {
    %c0_i32 = arith.constant 0 : i32
    %c0_i32_0 = arith.constant 0 : i32
    %c0_i32_1 = arith.constant 0 : i32
    return %c0_i32, %c0_i32_0 : i32, i32
  }
  func.func @transform_9(%arg0: i32) -> (i32, i32) {
    %c0_i32 = arith.constant 0 : i32
    %c0_i32_0 = arith.constant 0 : i32
    %c0_i32_1 = arith.constant 0 : i32
    return %c0_i32, %c0_i32_0 : i32, i32
  }
  func.func @transform_10(%arg0: i32) -> (i32, i32) {
    %c0_i32 = arith.constant 0 : i32
    %c0_i32_0 = arith.constant 0 : i32
    %c0_i32_1 = arith.constant 0 : i32
    return %c0_i32, %c0_i32_0 : i32, i32
  }
  func.func @transform_11(%arg0: i32) -> (i32, i32) {
    %c0_i32 = arith.constant 0 : i32
    %c0_i32_0 = arith.constant 0 : i32
    %c0_i32_1 = arith.constant 0 : i32
    return %c0_i32, %c0_i32_0 : i32, i32
  }
  func.func @transform_12(%arg0: i32) -> (i32, i32) {
    %c0_i32 = arith.constant 0 : i32
    %c0_i32_0 = arith.constant 0 : i32
    %c0_i32_1 = arith.constant 0 : i32
    return %c0_i32, %c0_i32_0 : i32, i32
  }
  func.func @transform_13(%arg0: i32) -> (i32, i32) {
    %c0_i32 = arith.constant 0 : i32
    %c0_i32_0 = arith.constant 0 : i32
    %c0_i32_1 = arith.constant 0 : i32
    return %c0_i32, %c0_i32_0 : i32, i32
  }
  func.func @transform_14(%arg0: i32) -> (i32, i32) {
    %c0_i32 = arith.constant 0 : i32
    %c0_i32_0 = arith.constant 0 : i32
    %c0_i32_1 = arith.constant 0 : i32
    return %c0_i32, %c0_i32_0 : i32, i32
  }
  func.func @transform_15(%arg0: i32) -> (i32, i32) {
    %c0_i32 = arith.constant 0 : i32
    %c0_i32_0 = arith.constant 0 : i32
    %c0_i32_1 = arith.constant 0 : i32
    return %c0_i32, %c0_i32_0 : i32, i32
  }
  func.func @transform_16(%arg0: i32) -> (i32, i32) {
    %c0_i32 = arith.constant 0 : i32
    %c0_i32_0 = arith.constant 0 : i32
    %c0_i32_1 = arith.constant 0 : i32
    return %c0_i32, %c0_i32_0 : i32, i32
  }
  func.func @transform_17(%arg0: i32) -> (i32, i32) {
    %c0_i32 = arith.constant 0 : i32
    %c0_i32_0 = arith.constant 0 : i32
    %c0_i32_1 = arith.constant 0 : i32
    return %c0_i32, %c0_i32_0 : i32, i32
  }
  func.func @transform_18(%arg0: i32) -> (i32, i32, i32) {
    %c0_i32 = arith.constant 0 : i32
    %c0_i32_0 = arith.constant 0 : i32
    %c0_i32_1 = arith.constant 0 : i32
    return %arg0, %c0_i32, %c0_i32_0 : i32, i32, i32
  }
}

module attributes {stable_mosaic.version = 11 : i64} {
  func.func @_linear_kernel(%arg0: i32, %arg1: memref<32x16xf32, #tpu.memory_space<vmem>>, %arg2: memref<16x32xbf16, #tpu.memory_space<vmem>>, %arg3: memref<32x32xf32, #tpu.memory_space<vmem>>) attributes {dimension_semantics = [#tpu.dimension_semantics<arbitrary>], iteration_bounds = array<i64: 1>, scalar_prefetch = 0 : i64, scratch_operands = 0 : i64, tpu.core_type = #tpu.core_type<tc>, window_params = [{pipeline_mode = #tpu.pipeline_mode<synchronous>, transform_indices = @transform_0, window_bounds = array<i64: 32, 16>}, {pipeline_mode = #tpu.pipeline_mode<synchronous>, transform_indices = @transform_1, window_bounds = array<i64: 16, 32>}, {pipeline_mode = #tpu.pipeline_mode<synchronous>, transform_indices = @transform_2, window_bounds = array<i64: 32, 32>}]} {
    %c0 = arith.constant 0 : index
    %c0_0 = arith.constant 0 : index
    %0 = vector.load %arg1[%c0, %c0_0] : memref<32x16xf32, #tpu.memory_space<vmem>>, vector<32x16xf32>
    %c0_1 = arith.constant 0 : index
    %c0_2 = arith.constant 0 : index
    %1 = vector.load %arg2[%c0_1, %c0_2] : memref<16x32xbf16, #tpu.memory_space<vmem>>, vector<16x32xbf16>
    %2 = arith.truncf %0 : vector<32x16xf32> to vector<32x16xbf16>
    %cst = arith.constant dense<0.000000e+00> : vector<32x32xf32>
    %3 = tpu.matmul %2, %1, %cst {dimension_numbers = #tpu.dot_dimension_numbers<[1], [0], [0], [1], [0, 0, 1, 1], [], []>} : vector<32x16xbf16>, vector<16x32xbf16>, vector<32x32xf32> -> vector<32x32xf32>
    %cst_3 = arith.constant 0.000000e+00 : f32
    %4 = vector.broadcast %cst_3 : f32 to vector<32x32xf32>
    %5 = arith.maximumf %3, %4 : vector<32x32xf32>
    %c0_4 = arith.constant 0 : index
    %c0_5 = arith.constant 0 : index
    %6 = vector.load %arg3[%c0_4, %c0_5] : memref<32x32xf32, #tpu.memory_space<vmem>>, vector<32x32xf32>
    tpu.vector_store %arg3[%c0_4, %c0_5], %5 {strides = array<i32>} : memref<32x32xf32, #tpu.memory_space<vmem>>, vector<32x32xf32>,
    return
  }
  func.func @transform_0(%arg0: i32) -> (i32, i32) {
    %c0_i32 = arith.constant 0 : i32
    %c0_i32_0 = arith.constant 0 : i32
    %c0_i32_1 = arith.constant 0 : i32
    return %c0_i32, %c0_i32_0 : i32, i32
  }
  func.func @transform_1(%arg0: i32) -> (i32, i32) {
    %c0_i32 = arith.constant 0 : i32
    %c0_i32_0 = arith.constant 0 : i32
    %c0_i32_1 = arith.constant 0 : i32
    return %c0_i32, %c0_i32_0 : i32, i32
  }
  func.func @transform_2(%arg0: i32) -> (i32, i32) {
    %c0_i32 = arith.constant 0 : i32
    %c0_i32_0 = arith.constant 0 : i32
    %c0_i32_1 = arith.constant 0 : i32
    return %c0_i32, %c0_i32_0 : i32, i32
  }
}

module attributes {stable_mosaic.version = 11 : i64} {
  func.func @_ln_kernel(%arg0: i32, %arg1: memref<32x16xf32, #tpu.memory_space<vmem>>, %arg2: memref<1x16xf32, #tpu.memory_space<vmem>>, %arg3: memref<1x16xf32, #tpu.memory_space<vmem>>, %arg4: memref<32x16xf32, #tpu.memory_space<vmem>>) attributes {dimension_semantics = [#tpu.dimension_semantics<arbitrary>], iteration_bounds = array<i64: 1>, scalar_prefetch = 0 : i64, scratch_operands = 0 : i64, tpu.core_type = #tpu.core_type<tc>, window_params = [{pipeline_mode = #tpu.pipeline_mode<synchronous>, transform_indices = @transform_0, window_bounds = array<i64: 32, 16>}, {pipeline_mode = #tpu.pipeline_mode<synchronous>, transform_indices = @transform_1, window_bounds = array<i64: 1, 16>}, {pipeline_mode = #tpu.pipeline_mode<synchronous>, transform_indices = @transform_2, window_bounds = array<i64: 1, 16>}, {pipeline_mode = #tpu.pipeline_mode<synchronous>, transform_indices = @transform_3, window_bounds = array<i64: 32, 16>}]} {
    %c0 = arith.constant 0 : index
    %c0_0 = arith.constant 0 : index
    %0 = vector.load %arg1[%c0, %c0_0] : memref<32x16xf32, #tpu.memory_space<vmem>>, vector<32x16xf32>
    %c0_1 = arith.constant 0 : index
    %c0_2 = arith.constant 0 : index
    %1 = vector.load %arg2[%c0_1, %c0_2] : memref<1x16xf32, #tpu.memory_space<vmem>>, vector<1x16xf32>
    %c0_3 = arith.constant 0 : index
    %c0_4 = arith.constant 0 : index
    %2 = vector.load %arg3[%c0_3, %c0_4] : memref<1x16xf32, #tpu.memory_space<vmem>>, vector<1x16xf32>
    %cst = arith.constant dense<0.000000e+00> : vector<32xf32>
    %3 = vector.multi_reduction <add>, %0, %cst [1] : vector<32x16xf32> to vector<32xf32>
    %4 = vector.shape_cast %3 : vector<32xf32> to vector<32x1xf32>
    %cst_5 = arith.constant 1.600000e+01 : f32
    %5 = vector.broadcast %cst_5 : f32 to vector<32x1xf32>
    %6 = arith.divf %4, %5 : vector<32x1xf32>
    %7 = vector.broadcast %6 : vector<32x1xf32> to vector<32x16xf32>
    %8 = arith.subf %0, %7 : vector<32x16xf32>
    %9 = arith.mulf %8, %8 : vector<32x16xf32>
    %cst_6 = arith.constant dense<0.000000e+00> : vector<32xf32>
    %10 = vector.multi_reduction <add>, %9, %cst_6 [1] : vector<32x16xf32> to vector<32xf32>
    %11 = vector.shape_cast %10 : vector<32xf32> to vector<32x1xf32>
    %cst_7 = arith.constant 1.600000e+01 : f32
    %12 = vector.broadcast %cst_7 : f32 to vector<32x1xf32>
    %13 = arith.divf %11, %12 : vector<32x1xf32>
    %cst_8 = arith.constant 9.99999974E-6 : f32
    %14 = vector.broadcast %cst_8 : f32 to vector<32x1xf32>
    %15 = arith.addf %13, %14 : vector<32x1xf32>
    %16 = math.rsqrt %15 : vector<32x1xf32>
    %17 = vector.broadcast %16 : vector<32x1xf32> to vector<32x16xf32>
    %18 = arith.mulf %8, %17 : vector<32x16xf32>
    %19 = vector.broadcast %1 : vector<1x16xf32> to vector<32x16xf32>
    %20 = arith.mulf %18, %19 : vector<32x16xf32>
    %21 = vector.broadcast %2 : vector<1x16xf32> to vector<32x16xf32>
    %22 = arith.addf %20, %21 : vector<32x16xf32>
    %c0_9 = arith.constant 0 : index
    %c0_10 = arith.constant 0 : index
    %23 = vector.load %arg4[%c0_9, %c0_10] : memref<32x16xf32, #tpu.memory_space<vmem>>, vector<32x16xf32>
    tpu.vector_store %arg4[%c0_9, %c0_10], %22 {strides = array<i32>} : memref<32x16xf32, #tpu.memory_space<vmem>>, vector<32x16xf32>,
    return
  }
  func.func @transform_0(%arg0: i32) -> (i32, i32) {
    %c0_i32 = arith.constant 0 : i32
    %c0_i32_0 = arith.constant 0 : i32
    %c0_i32_1 = arith.constant 0 : i32
    return %c0_i32, %c0_i32_0 : i32, i32
  }
  func.func @transform_1(%arg0: i32) -> (i32, i32) {
    %c0_i32 = arith.constant 0 : i32
    %c0_i32_0 = arith.constant 0 : i32
    %c0_i32_1 = arith.constant 0 : i32
    return %c0_i32, %c0_i32_0 : i32, i32
  }
  func.func @transform_2(%arg0: i32) -> (i32, i32) {
    %c0_i32 = arith.constant 0 : i32
    %c0_i32_0 = arith.constant 0 : i32
    %c0_i32_1 = arith.constant 0 : i32
    return %c0_i32, %c0_i32_0 : i32, i32
  }
  func.func @transform_3(%arg0: i32) -> (i32, i32) {
    %c0_i32 = arith.constant 0 : i32
    %c0_i32_0 = arith.constant 0 : i32
    %c0_i32_1 = arith.constant 0 : i32
    return %c0_i32, %c0_i32_0 : i32, i32
  }
}

module attributes {stable_mosaic.version = 11 : i64} {
  func.func @_interactor_kernel(%arg0: i32, %arg1: memref<1x8x16xf32, #tpu.memory_space<vmem>>, %arg2: memref<1x16x16xf32, #tpu.memory_space<vmem>>, %arg3: memref<1x16xf32, #tpu.memory_space<vmem>>, %arg4: memref<1x16xf32, #tpu.memory_space<vmem>>, %arg5: memref<1x16xf32, #tpu.memory_space<vmem>>, %arg6: memref<1x16xf32, #tpu.memory_space<vmem>>, %arg7: memref<16x16xbf16, #tpu.memory_space<vmem>>, %arg8: memref<1x16xf32, #tpu.memory_space<vmem>>, %arg9: memref<16x32xbf16, #tpu.memory_space<vmem>>, %arg10: memref<1x32xf32, #tpu.memory_space<vmem>>, %arg11: memref<16x16xbf16, #tpu.memory_space<vmem>>, %arg12: memref<1x16xf32, #tpu.memory_space<vmem>>, %arg13: memref<1x16xf32, #tpu.memory_space<vmem>>, %arg14: memref<1x16xf32, #tpu.memory_space<vmem>>, %arg15: memref<16x64xbf16, #tpu.memory_space<vmem>>, %arg16: memref<1x64xf32, #tpu.memory_space<vmem>>, %arg17: memref<64x16xbf16, #tpu.memory_space<vmem>>, %arg18: memref<1x16xf32, #tpu.memory_space<vmem>>, %arg19: memref<1x8x16xf32, #tpu.memory_space<vmem>>) attributes {dimension_semantics = [#tpu.dimension_semantics<parallel>], iteration_bounds = array<i64: 2>, scalar_prefetch = 0 : i64, scratch_operands = 0 : i64, tpu.core_type = #tpu.core_type<tc>, window_params = [{transform_indices = @transform_0, window_bounds = array<i64: 1, 8, 16>}, {transform_indices = @transform_1, window_bounds = array<i64: 1, 16, 16>}, {pipeline_mode = #tpu.pipeline_mode<synchronous>, transform_indices = @transform_2, window_bounds = array<i64: 1, 16>}, {pipeline_mode = #tpu.pipeline_mode<synchronous>, transform_indices = @transform_3, window_bounds = array<i64: 1, 16>}, {pipeline_mode = #tpu.pipeline_mode<synchronous>, transform_indices = @transform_4, window_bounds = array<i64: 1, 16>}, {pipeline_mode = #tpu.pipeline_mode<synchronous>, transform_indices = @transform_5, window_bounds = array<i64: 1, 16>}, {pipeline_mode = #tpu.pipeline_mode<synchronous>, transform_indices = @transform_6, window_bounds = array<i64: 16, 16>}, {pipeline_mode = #tpu.pipeline_mode<synchronous>, transform_indices = @transform_7, window_bounds = array<i64: 1, 16>}, {pipeline_mode = #tpu.pipeline_mode<synchronous>, transform_indices = @transform_8, window_bounds = array<i64: 16, 32>}, {pipeline_mode = #tpu.pipeline_mode<synchronous>, transform_indices = @transform_9, window_bounds = array<i64: 1, 32>}, {pipeline_mode = #tpu.pipeline_mode<synchronous>, transform_indices = @transform_10, window_bounds = array<i64: 16, 16>}, {pipeline_mode = #tpu.pipeline_mode<synchronous>, transform_indices = @transform_11, window_bounds = array<i64: 1, 16>}, {pipeline_mode = #tpu.pipeline_mode<synchronous>, transform_indices = @transform_12, window_bounds = array<i64: 1, 16>}, {pipeline_mode = #tpu.pipeline_mode<synchronous>, transform_indices = @transform_13, window_bounds = array<i64: 1, 16>}, {pipeline_mode = #tpu.pipeline_mode<synchronous>, transform_indices = @transform_14, window_bounds = array<i64: 16, 64>}, {pipeline_mode = #tpu.pipeline_mode<synchronous>, transform_indices = @transform_15, window_bounds = array<i64: 1, 64>}, {pipeline_mode = #tpu.pipeline_mode<synchronous>, transform_indices = @transform_16, window_bounds = array<i64: 64, 16>}, {pipeline_mode = #tpu.pipeline_mode<synchronous>, transform_indices = @transform_17, window_bounds = array<i64: 1, 16>}, {transform_indices = @transform_18, window_bounds = array<i64: 1, 8, 16>}]} {
    %c0 = arith.constant 0 : index
    %c0_0 = arith.constant 0 : index
    %c0_1 = arith.constant 0 : index
    %0 = vector.load %arg1[%c0, %c0_0, %c0_1] : memref<1x8x16xf32, #tpu.memory_space<vmem>>, vector<1x8x16xf32>
    %1 = vector.shape_cast %0 : vector<1x8x16xf32> to vector<8x16xf32>
    %c0_2 = arith.constant 0 : index
    %c0_3 = arith.constant 0 : index
    %c0_4 = arith.constant 0 : index
    %2 = vector.load %arg2[%c0_2, %c0_3, %c0_4] : memref<1x16x16xf32, #tpu.memory_space<vmem>>, vector<1x16x16xf32>
    %3 = vector.shape_cast %2 : vector<1x16x16xf32> to vector<16x16xf32>
    %c0_5 = arith.constant 0 : index
    %c0_6 = arith.constant 0 : index
    %4 = vector.load %arg3[%c0_5, %c0_6] : memref<1x16xf32, #tpu.memory_space<vmem>>, vector<1x16xf32>
    %c0_7 = arith.constant 0 : index
    %c0_8 = arith.constant 0 : index
    %5 = vector.load %arg4[%c0_7, %c0_8] : memref<1x16xf32, #tpu.memory_space<vmem>>, vector<1x16xf32>
    %cst = arith.constant dense<0.000000e+00> : vector<8xf32>
    %6 = vector.multi_reduction <add>, %1, %cst [1] : vector<8x16xf32> to vector<8xf32>
    %7 = vector.shape_cast %6 : vector<8xf32> to vector<8x1xf32>
    %cst_9 = arith.constant 1.600000e+01 : f32
    %8 = vector.broadcast %cst_9 : f32 to vector<8x1xf32>
    %9 = arith.divf %7, %8 : vector<8x1xf32>
    %10 = vector.broadcast %9 : vector<8x1xf32> to vector<8x16xf32>
    %11 = arith.subf %1, %10 : vector<8x16xf32>
    %12 = arith.mulf %11, %11 : vector<8x16xf32>
    %cst_10 = arith.constant dense<0.000000e+00> : vector<8xf32>
    %13 = vector.multi_reduction <add>, %12, %cst_10 [1] : vector<8x16xf32> to vector<8xf32>
    %14 = vector.shape_cast %13 : vector<8xf32> to vector<8x1xf32>
    %cst_11 = arith.constant 1.600000e+01 : f32
    %15 = vector.broadcast %cst_11 : f32 to vector<8x1xf32>
    %16 = arith.divf %14, %15 : vector<8x1xf32>
    %cst_12 = arith.constant 9.99999974E-6 : f32
    %17 = vector.broadcast %cst_12 : f32 to vector<8x1xf32>
    %18 = arith.addf %16, %17 : vector<8x1xf32>
    %19 = math.rsqrt %18 : vector<8x1xf32>
    %20 = vector.broadcast %19 : vector<8x1xf32> to vector<8x16xf32>
    %21 = arith.mulf %11, %20 : vector<8x16xf32>
    %22 = vector.broadcast %4 : vector<1x16xf32> to vector<8x16xf32>
    %23 = arith.mulf %21, %22 : vector<8x16xf32>
    %24 = vector.broadcast %5 : vector<1x16xf32> to vector<8x16xf32>
    %25 = arith.addf %23, %24 : vector<8x16xf32>
    %c0_13 = arith.constant 0 : index
    %c0_14 = arith.constant 0 : index
    %26 = vector.load %arg5[%c0_13, %c0_14] : memref<1x16xf32, #tpu.memory_space<vmem>>, vector<1x16xf32>
    %c0_15 = arith.constant 0 : index
    %c0_16 = arith.constant 0 : index
    %27 = vector.load %arg6[%c0_15, %c0_16] : memref<1x16xf32, #tpu.memory_space<vmem>>, vector<1x16xf32>
    %cst_17 = arith.constant dense<0.000000e+00> : vector<16xf32>
    %28 = vector.multi_reduction <add>, %3, %cst_17 [1] : vector<16x16xf32> to vector<16xf32>
    %29 = vector.shape_cast %28 : vector<16xf32> to vector<16x1xf32>
    %cst_18 = arith.constant 1.600000e+01 : f32
    %30 = vector.broadcast %cst_18 : f32 to vector<16x1xf32>
    %31 = arith.divf %29, %30 : vector<16x1xf32>
    %32 = vector.broadcast %31 : vector<16x1xf32> to vector<16x16xf32>
    %33 = arith.subf %3, %32 : vector<16x16xf32>
    %34 = arith.mulf %33, %33 : vector<16x16xf32>
    %cst_19 = arith.constant dense<0.000000e+00> : vector<16xf32>
    %35 = vector.multi_reduction <add>, %34, %cst_19 [1] : vector<16x16xf32> to vector<16xf32>
    %36 = vector.shape_cast %35 : vector<16xf32> to vector<16x1xf32>
    %cst_20 = arith.constant 1.600000e+01 : f32
    %37 = vector.broadcast %cst_20 : f32 to vector<16x1xf32>
    %38 = arith.divf %36, %37 : vector<16x1xf32>
    %cst_21 = arith.constant 9.99999974E-6 : f32
    %39 = vector.broadcast %cst_21 : f32 to vector<16x1xf32>
    %40 = arith.addf %38, %39 : vector<16x1xf32>
    %41 = math.rsqrt %40 : vector<16x1xf32>
    %42 = vector.broadcast %41 : vector<16x1xf32> to vector<16x16xf32>
    %43 = arith.mulf %33, %42 : vector<16x16xf32>
    %44 = vector.broadcast %26 : vector<1x16xf32> to vector<16x16xf32>
    %45 = arith.mulf %43, %44 : vector<16x16xf32>
    %46 = vector.broadcast %27 : vector<1x16xf32> to vector<16x16xf32>
    %47 = arith.addf %45, %46 : vector<16x16xf32>
    %c0_22 = arith.constant 0 : index
    %c0_23 = arith.constant 0 : index
    %48 = vector.load %arg7[%c0_22, %c0_23] : memref<16x16xbf16, #tpu.memory_space<vmem>>, vector<16x16xbf16>
    %49 = arith.truncf %25 : vector<8x16xf32> to vector<8x16xbf16>
    %cst_24 = arith.constant dense<0.000000e+00> : vector<8x16xf32>
    %50 = tpu.matmul %49, %48, %cst_24 {dimension_numbers = #tpu.dot_dimension_numbers<[1], [0], [0], [1], [0, 0, 1, 1], [], []>} : vector<8x16xbf16>, vector<16x16xbf16>, vector<8x16xf32> -> vector<8x16xf32>
    %c0_25 = arith.constant 0 : index
    %c0_26 = arith.constant 0 : index
    %51 = vector.load %arg8[%c0_25, %c0_26] : memref<1x16xf32, #tpu.memory_space<vmem>>, vector<1x16xf32>
    %52 = vector.broadcast %51 : vector<1x16xf32> to vector<8x16xf32>
    %53 = arith.addf %50, %52 : vector<8x16xf32>
    %c0_27 = arith.constant 0 : index
    %c0_28 = arith.constant 0 : index
    %54 = vector.load %arg9[%c0_27, %c0_28] : memref<16x32xbf16, #tpu.memory_space<vmem>>, vector<16x32xbf16>
    %55 = arith.truncf %47 : vector<16x16xf32> to vector<16x16xbf16>
    %cst_29 = arith.constant dense<0.000000e+00> : vector<16x32xf32>
    %56 = tpu.matmul %55, %54, %cst_29 {dimension_numbers = #tpu.dot_dimension_numbers<[1], [0], [0], [1], [0, 0, 1, 1], [], []>} : vector<16x16xbf16>, vector<16x32xbf16>, vector<16x32xf32> -> vector<16x32xf32>
    %c0_30 = arith.constant 0 : index
    %c0_31 = arith.constant 0 : index
    %57 = vector.load %arg10[%c0_30, %c0_31] : memref<1x32xf32, #tpu.memory_space<vmem>>, vector<1x32xf32>
    %58 = vector.broadcast %57 : vector<1x32xf32> to vector<16x32xf32>
    %59 = arith.addf %56, %58 : vector<16x32xf32>
    %60 = vector.extract_strided_slice %59 {offsets = [0, 0], sizes = [16, 16], strides = [1, 1]} : vector<16x32xf32> to vector<16x16xf32>
    %61 = vector.extract_strided_slice %59 {offsets = [0, 16], sizes = [16, 16], strides = [1, 1]} : vector<16x32xf32> to vector<16x16xf32>
    %c0_32 = arith.constant 0 : index
    %c0_33 = arith.constant 0 : index
    %62 = vector.load %arg11[%c0_32, %c0_33] : memref<16x16xbf16, #tpu.memory_space<vmem>>, vector<16x16xbf16>
    %63 = vector.extract_strided_slice %53 {offsets = [0, 0], sizes = [8, 4], strides = [1, 1]} : vector<8x16xf32> to vector<8x4xf32>
    %cst_34 = arith.constant 5.000000e-01 : f32
    %64 = vector.broadcast %cst_34 : f32 to vector<8x4xf32>
    %65 = arith.mulf %63, %64 : vector<8x4xf32>
    %66 = vector.extract_strided_slice %60 {offsets = [0, 0], sizes = [16, 4], strides = [1, 1]} : vector<16x16xf32> to vector<16x4xf32>
    %67 = vector.extract_strided_slice %61 {offsets = [0, 0], sizes = [16, 4], strides = [1, 1]} : vector<16x16xf32> to vector<16x4xf32>
    %68 = arith.truncf %65 : vector<8x4xf32> to vector<8x4xbf16>
    %69 = arith.truncf %66 : vector<16x4xf32> to vector<16x4xbf16>
    %cst_35 = arith.constant dense<0.000000e+00> : vector<8x16xf32>
    %70 = tpu.matmul %68, %69, %cst_35 {dimension_numbers = #tpu.dot_dimension_numbers<[1], [1], [0], [0], [0, 0, 1, 0], [], []>} : vector<8x4xbf16>, vector<16x4xbf16>, vector<8x16xf32> -> vector<8x16xf32>
    %cst_36 = arith.constant dense<0xFF800000> : vector<8xf32>
    %71 = vector.multi_reduction <maximumf>, %70, %cst_36 [1] : vector<8x16xf32> to vector<8xf32>
    %72 = vector.shape_cast %71 : vector<8xf32> to vector<8x1xf32>
    %73 = vector.broadcast %72 : vector<8x1xf32> to vector<8x16xf32>
    %74 = arith.subf %70, %73 : vector<8x16xf32>
    %75 = math.exp %74 : vector<8x16xf32>
    %cst_37 = arith.constant dense<0.000000e+00> : vector<8xf32>
    %76 = vector.multi_reduction <add>, %75, %cst_37 [1] : vector<8x16xf32> to vector<8xf32>
    %77 = vector.shape_cast %76 : vector<8xf32> to vector<8x1xf32>
    %78 = tpu.reciprocal %77 {approx = true} : vector<8x1xf32> -> vector<8x1xf32>
    %79 = arith.truncf %75 : vector<8x16xf32> to vector<8x16xbf16>
    %80 = arith.truncf %67 : vector<16x4xf32> to vector<16x4xbf16>
    %cst_38 = arith.constant dense<0.000000e+00> : vector<8x4xf32>
    %81 = tpu.matmul %79, %80, %cst_38 {dimension_numbers = #tpu.dot_dimension_numbers<[1], [0], [0], [1], [0, 0, 1, 1], [], []>} : vector<8x16xbf16>, vector<16x4xbf16>, vector<8x4xf32> -> vector<8x4xf32>
    %82 = vector.broadcast %78 : vector<8x1xf32> to vector<8x4xf32>
    %83 = arith.mulf %81, %82 : vector<8x4xf32>
    %84 = vector.extract_strided_slice %53 {offsets = [0, 4], sizes = [8, 4], strides = [1, 1]} : vector<8x16xf32> to vector<8x4xf32>
    %cst_39 = arith.constant 5.000000e-01 : f32
    %85 = vector.broadcast %cst_39 : f32 to vector<8x4xf32>
    %86 = arith.mulf %84, %85 : vector<8x4xf32>
    %87 = vector.extract_strided_slice %60 {offsets = [0, 4], sizes = [16, 4], strides = [1, 1]} : vector<16x16xf32> to vector<16x4xf32>
    %88 = vector.extract_strided_slice %61 {offsets = [0, 4], sizes = [16, 4], strides = [1, 1]} : vector<16x16xf32> to vector<16x4xf32>
    %89 = arith.truncf %86 : vector<8x4xf32> to vector<8x4xbf16>
    %90 = arith.truncf %87 : vector<16x4xf32> to vector<16x4xbf16>
    %cst_40 = arith.constant dense<0.000000e+00> : vector<8x16xf32>
    %91 = tpu.matmul %89, %90, %cst_40 {dimension_numbers = #tpu.dot_dimension_numbers<[1], [1], [0], [0], [0, 0, 1, 0], [], []>} : vector<8x4xbf16>, vector<16x4xbf16>, vector<8x16xf32> -> vector<8x16xf32>
    %cst_41 = arith.constant dense<0xFF800000> : vector<8xf32>
    %92 = vector.multi_reduction <maximumf>, %91, %cst_41 [1] : vector<8x16xf32> to vector<8xf32>
    %93 = vector.shape_cast %92 : vector<8xf32> to vector<8x1xf32>
    %94 = vector.broadcast %93 : vector<8x1xf32> to vector<8x16xf32>
    %95 = arith.subf %91, %94 : vector<8x16xf32>
    %96 = math.exp %95 : vector<8x16xf32>
    %cst_42 = arith.constant dense<0.000000e+00> : vector<8xf32>
    %97 = vector.multi_reduction <add>, %96, %cst_42 [1] : vector<8x16xf32> to vector<8xf32>
    %98 = vector.shape_cast %97 : vector<8xf32> to vector<8x1xf32>
    %99 = tpu.reciprocal %98 {approx = true} : vector<8x1xf32> -> vector<8x1xf32>
    %100 = arith.truncf %96 : vector<8x16xf32> to vector<8x16xbf16>
    %101 = arith.truncf %88 : vector<16x4xf32> to vector<16x4xbf16>
    %cst_43 = arith.constant dense<0.000000e+00> : vector<8x4xf32>
    %102 = tpu.matmul %100, %101, %cst_43 {dimension_numbers = #tpu.dot_dimension_numbers<[1], [0], [0], [1], [0, 0, 1, 1], [], []>} : vector<8x16xbf16>, vector<16x4xbf16>, vector<8x4xf32> -> vector<8x4xf32>
    %103 = vector.broadcast %99 : vector<8x1xf32> to vector<8x4xf32>
    %104 = arith.mulf %102, %103 : vector<8x4xf32>
    %105 = vector.extract_strided_slice %53 {offsets = [0, 8], sizes = [8, 4], strides = [1, 1]} : vector<8x16xf32> to vector<8x4xf32>
    %cst_44 = arith.constant 5.000000e-01 : f32
    %106 = vector.broadcast %cst_44 : f32 to vector<8x4xf32>
    %107 = arith.mulf %105, %106 : vector<8x4xf32>
    %108 = vector.extract_strided_slice %60 {offsets = [0, 8], sizes = [16, 4], strides = [1, 1]} : vector<16x16xf32> to vector<16x4xf32>
    %109 = vector.extract_strided_slice %61 {offsets = [0, 8], sizes = [16, 4], strides = [1, 1]} : vector<16x16xf32> to vector<16x4xf32>
    %110 = arith.truncf %107 : vector<8x4xf32> to vector<8x4xbf16>
    %111 = arith.truncf %108 : vector<16x4xf32> to vector<16x4xbf16>
    %cst_45 = arith.constant dense<0.000000e+00> : vector<8x16xf32>
    %112 = tpu.matmul %110, %111, %cst_45 {dimension_numbers = #tpu.dot_dimension_numbers<[1], [1], [0], [0], [0, 0, 1, 0], [], []>} : vector<8x4xbf16>, vector<16x4xbf16>, vector<8x16xf32> -> vector<8x16xf32>
    %cst_46 = arith.constant dense<0xFF800000> : vector<8xf32>
    %113 = vector.multi_reduction <maximumf>, %112, %cst_46 [1] : vector<8x16xf32> to vector<8xf32>
    %114 = vector.shape_cast %113 : vector<8xf32> to vector<8x1xf32>
    %115 = vector.broadcast %114 : vector<8x1xf32> to vector<8x16xf32>
    %116 = arith.subf %112, %115 : vector<8x16xf32>
    %117 = math.exp %116 : vector<8x16xf32>
    %cst_47 = arith.constant dense<0.000000e+00> : vector<8xf32>
    %118 = vector.multi_reduction <add>, %117, %cst_47 [1] : vector<8x16xf32> to vector<8xf32>
    %119 = vector.shape_cast %118 : vector<8xf32> to vector<8x1xf32>
    %120 = tpu.reciprocal %119 {approx = true} : vector<8x1xf32> -> vector<8x1xf32>
    %121 = arith.truncf %117 : vector<8x16xf32> to vector<8x16xbf16>
    %122 = arith.truncf %109 : vector<16x4xf32> to vector<16x4xbf16>
    %cst_48 = arith.constant dense<0.000000e+00> : vector<8x4xf32>
    %123 = tpu.matmul %121, %122, %cst_48 {dimension_numbers = #tpu.dot_dimension_numbers<[1], [0], [0], [1], [0, 0, 1, 1], [], []>} : vector<8x16xbf16>, vector<16x4xbf16>, vector<8x4xf32> -> vector<8x4xf32>
    %124 = vector.broadcast %120 : vector<8x1xf32> to vector<8x4xf32>
    %125 = arith.mulf %123, %124 : vector<8x4xf32>
    %126 = vector.extract_strided_slice %53 {offsets = [0, 12], sizes = [8, 4], strides = [1, 1]} : vector<8x16xf32> to vector<8x4xf32>
    %cst_49 = arith.constant 5.000000e-01 : f32
    %127 = vector.broadcast %cst_49 : f32 to vector<8x4xf32>
    %128 = arith.mulf %126, %127 : vector<8x4xf32>
    %129 = vector.extract_strided_slice %60 {offsets = [0, 12], sizes = [16, 4], strides = [1, 1]} : vector<16x16xf32> to vector<16x4xf32>
    %130 = vector.extract_strided_slice %61 {offsets = [0, 12], sizes = [16, 4], strides = [1, 1]} : vector<16x16xf32> to vector<16x4xf32>
    %131 = arith.truncf %128 : vector<8x4xf32> to vector<8x4xbf16>
    %132 = arith.truncf %129 : vector<16x4xf32> to vector<16x4xbf16>
    %cst_50 = arith.constant dense<0.000000e+00> : vector<8x16xf32>
    %133 = tpu.matmul %131, %132, %cst_50 {dimension_numbers = #tpu.dot_dimension_numbers<[1], [1], [0], [0], [0, 0, 1, 0], [], []>} : vector<8x4xbf16>, vector<16x4xbf16>, vector<8x16xf32> -> vector<8x16xf32>
    %cst_51 = arith.constant dense<0xFF800000> : vector<8xf32>
    %134 = vector.multi_reduction <maximumf>, %133, %cst_51 [1] : vector<8x16xf32> to vector<8xf32>
    %135 = vector.shape_cast %134 : vector<8xf32> to vector<8x1xf32>
    %136 = vector.broadcast %135 : vector<8x1xf32> to vector<8x16xf32>
    %137 = arith.subf %133, %136 : vector<8x16xf32>
    %138 = math.exp %137 : vector<8x16xf32>
    %cst_52 = arith.constant dense<0.000000e+00> : vector<8xf32>
    %139 = vector.multi_reduction <add>, %138, %cst_52 [1] : vector<8x16xf32> to vector<8xf32>
    %140 = vector.shape_cast %139 : vector<8xf32> to vector<8x1xf32>
    %141 = tpu.reciprocal %140 {approx = true} : vector<8x1xf32> -> vector<8x1xf32>
    %142 = arith.truncf %138 : vector<8x16xf32> to vector<8x16xbf16>
    %143 = arith.truncf %130 : vector<16x4xf32> to vector<16x4xbf16>
    %cst_53 = arith.constant dense<0.000000e+00> : vector<8x4xf32>
    %144 = tpu.matmul %142, %143, %cst_53 {dimension_numbers = #tpu.dot_dimension_numbers<[1], [0], [0], [1], [0, 0, 1, 1], [], []>} : vector<8x16xbf16>, vector<16x4xbf16>, vector<8x4xf32> -> vector<8x4xf32>
    %145 = vector.broadcast %141 : vector<8x1xf32> to vector<8x4xf32>
    %146 = arith.mulf %144, %145 : vector<8x4xf32>
    %147 = tpu.concatenate %83, %104, %125, %146 in 1 : vector<8x4xf32>, vector<8x4xf32>, vector<8x4xf32>, vector<8x4xf32> -> vector<8x16xf32>
    %148 = arith.truncf %147 : vector<8x16xf32> to vector<8x16xbf16>
    %cst_54 = arith.constant dense<0.000000e+00> : vector<8x16xf32>
    %149 = tpu.matmul %148, %62, %cst_54 {dimension_numbers = #tpu.dot_dimension_numbers<[1], [0], [0], [1], [0, 0, 1, 1], [], []>} : vector<8x16xbf16>, vector<16x16xbf16>, vector<8x16xf32> -> vector<8x16xf32>
    %150 = arith.addf %1, %149 : vector<8x16xf32>
    %c0_55 = arith.constant 0 : index
    %c0_56 = arith.constant 0 : index
    %151 = vector.load %arg12[%c0_55, %c0_56] : memref<1x16xf32, #tpu.memory_space<vmem>>, vector<1x16xf32>
    %152 = vector.broadcast %151 : vector<1x16xf32> to vector<8x16xf32>
    %153 = arith.addf %150, %152 : vector<8x16xf32>
    %c0_57 = arith.constant 0 : index
    %c0_58 = arith.constant 0 : index
    %154 = vector.load %arg13[%c0_57, %c0_58] : memref<1x16xf32, #tpu.memory_space<vmem>>, vector<1x16xf32>
    %c0_59 = arith.constant 0 : index
    %c0_60 = arith.constant 0 : index
    %155 = vector.load %arg14[%c0_59, %c0_60] : memref<1x16xf32, #tpu.memory_space<vmem>>, vector<1x16xf32>
    %cst_61 = arith.constant dense<0.000000e+00> : vector<8xf32>
    %156 = vector.multi_reduction <add>, %153, %cst_61 [1] : vector<8x16xf32> to vector<8xf32>
    %157 = vector.shape_cast %156 : vector<8xf32> to vector<8x1xf32>
    %cst_62 = arith.constant 1.600000e+01 : f32
    %158 = vector.broadcast %cst_62 : f32 to vector<8x1xf32>
    %159 = arith.divf %157, %158 : vector<8x1xf32>
    %160 = vector.broadcast %159 : vector<8x1xf32> to vector<8x16xf32>
    %161 = arith.subf %153, %160 : vector<8x16xf32>
    %162 = arith.mulf %161, %161 : vector<8x16xf32>
    %cst_63 = arith.constant dense<0.000000e+00> : vector<8xf32>
    %163 = vector.multi_reduction <add>, %162, %cst_63 [1] : vector<8x16xf32> to vector<8xf32>
    %164 = vector.shape_cast %163 : vector<8xf32> to vector<8x1xf32>
    %cst_64 = arith.constant 1.600000e+01 : f32
    %165 = vector.broadcast %cst_64 : f32 to vector<8x1xf32>
    %166 = arith.divf %164, %165 : vector<8x1xf32>
    %cst_65 = arith.constant 9.99999974E-6 : f32
    %167 = vector.broadcast %cst_65 : f32 to vector<8x1xf32>
    %168 = arith.addf %166, %167 : vector<8x1xf32>
    %169 = math.rsqrt %168 : vector<8x1xf32>
    %170 = vector.broadcast %169 : vector<8x1xf32> to vector<8x16xf32>
    %171 = arith.mulf %161, %170 : vector<8x16xf32>
    %172 = vector.broadcast %154 : vector<1x16xf32> to vector<8x16xf32>
    %173 = arith.mulf %171, %172 : vector<8x16xf32>
    %174 = vector.broadcast %155 : vector<1x16xf32> to vector<8x16xf32>
    %175 = arith.addf %173, %174 : vector<8x16xf32>
    %c0_66 = arith.constant 0 : index
    %c0_67 = arith.constant 0 : index
    %176 = vector.load %arg15[%c0_66, %c0_67] : memref<16x64xbf16, #tpu.memory_space<vmem>>, vector<16x64xbf16>
    %177 = arith.truncf %175 : vector<8x16xf32> to vector<8x16xbf16>
    %cst_68 = arith.constant dense<0.000000e+00> : vector<8x64xf32>
    %178 = tpu.matmul %177, %176, %cst_68 {dimension_numbers = #tpu.dot_dimension_numbers<[1], [0], [0], [1], [0, 0, 1, 1], [], []>} : vector<8x16xbf16>, vector<16x64xbf16>, vector<8x64xf32> -> vector<8x64xf32>
    %c0_69 = arith.constant 0 : index
    %c0_70 = arith.constant 0 : index
    %179 = vector.load %arg16[%c0_69, %c0_70] : memref<1x64xf32, #tpu.memory_space<vmem>>, vector<1x64xf32>
    %180 = vector.broadcast %179 : vector<1x64xf32> to vector<8x64xf32>
    %181 = arith.addf %178, %180 : vector<8x64xf32>
    %cst_71 = arith.constant 1.702000e+00 : f32
    %182 = vector.broadcast %cst_71 : f32 to vector<8x64xf32>
    %183 = arith.mulf %182, %181 : vector<8x64xf32>
    %184 = arith.negf %183 : vector<8x64xf32>
    %185 = math.exp %184 : vector<8x64xf32>
    %cst_72 = arith.constant 1.000000e+00 : f32
    %186 = vector.broadcast %cst_72 : f32 to vector<8x64xf32>
    %187 = arith.addf %186, %185 : vector<8x64xf32>
    %188 = arith.divf %186, %187 : vector<8x64xf32>
    %189 = arith.mulf %181, %188 : vector<8x64xf32>
    %c0_73 = arith.constant 0 : index
    %c0_74 = arith.constant 0 : index
    %190 = vector.load %arg17[%c0_73, %c0_74] : memref<64x16xbf16, #tpu.memory_space<vmem>>, vector<64x16xbf16>
    %191 = arith.truncf %189 : vector<8x64xf32> to vector<8x64xbf16>
    %cst_75 = arith.constant dense<0.000000e+00> : vector<8x16xf32>
    %192 = tpu.matmul %191, %190, %cst_75 {dimension_numbers = #tpu.dot_dimension_numbers<[1], [0], [0], [1], [0, 0, 1, 1], [], []>} : vector<8x64xbf16>, vector<64x16xbf16>, vector<8x16xf32> -> vector<8x16xf32>
    %c0_76 = arith.constant 0 : index
    %c0_77 = arith.constant 0 : index
    %193 = vector.load %arg18[%c0_76, %c0_77] : memref<1x16xf32, #tpu.memory_space<vmem>>, vector<1x16xf32>
    %194 = vector.broadcast %193 : vector<1x16xf32> to vector<8x16xf32>
    %195 = arith.addf %192, %194 : vector<8x16xf32>
    %196 = arith.addf %153, %195 : vector<8x16xf32>
    %c0_78 = arith.constant 0 : index
    %c0_79 = arith.constant 0 : index
    %c0_80 = arith.constant 0 : index
    %197 = vector.load %arg19[%c0_78, %c0_79, %c0_80] : memref<1x8x16xf32, #tpu.memory_space<vmem>>, vector<1x8x16xf32>
    %198 = vector.shape_cast %197 : vector<1x8x16xf32> to vector<8x16xf32>
    %199 = vector.shape_cast %196 : vector<8x16xf32> to vector<1x8x16xf32>
    tpu.vector_store %arg19[%c0_78, %c0_79, %c0_80], %199 {strides = array<i32>} : memref<1x8x16xf32, #tpu.memory_space<vmem>>, vector<1x8x16xf32>,
    return
  }
  func.func @transform_0(%arg0: i32) -> (i32, i32, i32) {
    %c0_i32 = arith.constant 0 : i32
    %c0_i32_0 = arith.constant 0 : i32
    %c0_i32_1 = arith.constant 0 : i32
    return %arg0, %c0_i32, %c0_i32_0 : i32, i32, i32
  }
  func.func @transform_1(%arg0: i32) -> (i32, i32, i32) {
    %c0_i32 = arith.constant 0 : i32
    %c0_i32_0 = arith.constant 0 : i32
    %c0_i32_1 = arith.constant 0 : i32
    return %arg0, %c0_i32, %c0_i32_0 : i32, i32, i32
  }
  func.func @transform_2(%arg0: i32) -> (i32, i32) {
    %c0_i32 = arith.constant 0 : i32
    %c0_i32_0 = arith.constant 0 : i32
    %c0_i32_1 = arith.constant 0 : i32
    return %c0_i32, %c0_i32_0 : i32, i32
  }
  func.func @transform_3(%arg0: i32) -> (i32, i32) {
    %c0_i32 = arith.constant 0 : i32
    %c0_i32_0 = arith.constant 0 : i32
    %c0_i32_1 = arith.constant 0 : i32
    return %c0_i32, %c0_i32_0 : i32, i32
  }
  func.func @transform_4(%arg0: i32) -> (i32, i32) {
    %c0_i32 = arith.constant 0 : i32
    %c0_i32_0 = arith.constant 0 : i32
    %c0_i32_1 = arith.constant 0 : i32
    return %c0_i32, %c0_i32_0 : i32, i32
  }
  func.func @transform_5(%arg0: i32) -> (i32, i32) {
    %c0_i32 = arith.constant 0 : i32
    %c0_i32_0 = arith.constant 0 : i32
    %c0_i32_1 = arith.constant 0 : i32
    return %c0_i32, %c0_i32_0 : i32, i32
  }
  func.func @transform_6(%arg0: i32) -> (i32, i32) {
    %c0_i32 = arith.constant 0 : i32
    %c0_i32_0 = arith.constant 0 : i32
    %c0_i32_1 = arith.constant 0 : i32
    return %c0_i32, %c0_i32_0 : i32, i32
  }
  func.func @transform_7(%arg0: i32) -> (i32, i32) {
    %c0_i32 = arith.constant 0 : i32
    %c0_i32_0 = arith.constant 0 : i32
    %c0_i32_1 = arith.constant 0 : i32
    return %c0_i32, %c0_i32_0 : i32, i32
  }
  func.func @transform_8(%arg0: i32) -> (i32, i32) {
    %c0_i32 = arith.constant 0 : i32
    %c0_i32_0 = arith.constant 0 : i32
    %c0_i32_1 = arith.constant 0 : i32
    return %c0_i32, %c0_i32_0 : i32, i32
  }
  func.func @transform_9(%arg0: i32) -> (i32, i32) {
    %c0_i32 = arith.constant 0 : i32
    %c0_i32_0 = arith.constant 0 : i32
    %c0_i32_1 = arith.constant 0 : i32
    return %c0_i32, %c0_i32_0 : i32, i32
  }
  func.func @transform_10(%arg0: i32) -> (i32, i32) {
    %c0_i32 = arith.constant 0 : i32
    %c0_i32_0 = arith.constant 0 : i32
    %c0_i32_1 = arith.constant 0 : i32
    return %c0_i32, %c0_i32_0 : i32, i32
  }
  func.func @transform_11(%arg0: i32) -> (i32, i32) {
    %c0_i32 = arith.constant 0 : i32
    %c0_i32_0 = arith.constant 0 : i32
    %c0_i32_1 = arith.constant 0 : i32
    return %c0_i32, %c0_i32_0 : i32, i32
  }
  func.func @transform_12(%arg0: i32) -> (i32, i32) {
    %c0_i32 = arith.constant 0 : i32
    %c0_i32_0 = arith.constant 0 : i32
    %c0_i32_1 = arith.constant 0 : i32
    return %c0_i32, %c0_i32_0 : i32, i32
  }
  func.func @transform_13(%arg0: i32) -> (i32, i32) {
    %c0_i32 = arith.constant 0 : i32
    %c0_i32_0 = arith.constant 0 : i32
    %c0_i32_1 = arith.constant 0 : i32
    return %c0_i32, %c0_i32_0 : i32, i32
  }
  func.func @transform_14(%arg0: i32) -> (i32, i32) {
    %c0_i32 = arith.constant 0 : i32
    %c0_i32_0 = arith.constant 0 : i32
    %c0_i32_1 = arith.constant 0 : i32
    return %c0_i32, %c0_i32_0 : i32, i32
  }
  func.func @transform_15(%arg0: i32) -> (i32, i32) {
    %c0_i32 = arith.constant 0 : i32
    %c0_i32_0 = arith.constant 0 : i32
    %c0_i32_1 = arith.constant 0 : i32
    return %c0_i32, %c0_i32_0 : i32, i32
  }
  func.func @transform_16(%arg0: i32) -> (i32, i32) {
    %c0_i32 = arith.constant 0 : i32
    %c0_i32_0 = arith.constant 0 : i32
    %c0_i32_1 = arith.constant 0 : i32
    return %c0_i32, %c0_i32_0 : i32, i32
  }
  func.func @transform_17(%arg0: i32) -> (i32, i32) {
    %c0_i32 = arith.constant 0 : i32
    %c0_i32_0 = arith.constant 0 : i32
    %c0_i32_1 = arith.constant 0 : i32
    return %c0_i32, %c0_i32_0 : i32, i32
  }
  func.func @transform_18(%arg0: i32) -> (i32, i32, i32) {
    %c0_i32 = arith.constant 0 : i32
    %c0_i32_0 = arith.constant 0 : i32
    %c0_i32_1 = arith.constant 0 : i32
    return %arg0, %c0_i32, %c0_i32_0 : i32, i32, i32
  }
}

module attributes {stable_mosaic.version = 11 : i64} {
  func.func @_linear_kernel(%arg0: i32, %arg1: memref<16x16xf32, #tpu.memory_space<vmem>>, %arg2: memref<16x32xbf16, #tpu.memory_space<vmem>>, %arg3: memref<1x32xf32, #tpu.memory_space<vmem>>, %arg4: memref<16x32xf32, #tpu.memory_space<vmem>>) attributes {dimension_semantics = [#tpu.dimension_semantics<arbitrary>], iteration_bounds = array<i64: 1>, scalar_prefetch = 0 : i64, scratch_operands = 0 : i64, tpu.core_type = #tpu.core_type<tc>, window_params = [{pipeline_mode = #tpu.pipeline_mode<synchronous>, transform_indices = @transform_0, window_bounds = array<i64: 16, 16>}, {pipeline_mode = #tpu.pipeline_mode<synchronous>, transform_indices = @transform_1, window_bounds = array<i64: 16, 32>}, {pipeline_mode = #tpu.pipeline_mode<synchronous>, transform_indices = @transform_2, window_bounds = array<i64: 1, 32>}, {pipeline_mode = #tpu.pipeline_mode<synchronous>, transform_indices = @transform_3, window_bounds = array<i64: 16, 32>}]} {
    %c0 = arith.constant 0 : index
    %c0_0 = arith.constant 0 : index
    %0 = vector.load %arg1[%c0, %c0_0] : memref<16x16xf32, #tpu.memory_space<vmem>>, vector<16x16xf32>
    %c0_1 = arith.constant 0 : index
    %c0_2 = arith.constant 0 : index
    %1 = vector.load %arg2[%c0_1, %c0_2] : memref<16x32xbf16, #tpu.memory_space<vmem>>, vector<16x32xbf16>
    %2 = arith.truncf %0 : vector<16x16xf32> to vector<16x16xbf16>
    %cst = arith.constant dense<0.000000e+00> : vector<16x32xf32>
    %3 = tpu.matmul %2, %1, %cst {dimension_numbers = #tpu.dot_dimension_numbers<[1], [0], [0], [1], [0, 0, 1, 1], [], []>} : vector<16x16xbf16>, vector<16x32xbf16>, vector<16x32xf32> -> vector<16x32xf32>
    %c0_3 = arith.constant 0 : index
    %c0_4 = arith.constant 0 : index
    %4 = vector.load %arg3[%c0_3, %c0_4] : memref<1x32xf32, #tpu.memory_space<vmem>>, vector<1x32xf32>
    %5 = vector.broadcast %4 : vector<1x32xf32> to vector<16x32xf32>
    %6 = arith.addf %3, %5 : vector<16x32xf32>
    %c0_5 = arith.constant 0 : index
    %c0_6 = arith.constant 0 : index
    %7 = vector.load %arg4[%c0_5, %c0_6] : memref<16x32xf32, #tpu.memory_space<vmem>>, vector<16x32xf32>
    tpu.vector_store %arg4[%c0_5, %c0_6], %6 {strides = array<i32>} : memref<16x32xf32, #tpu.memory_space<vmem>>, vector<16x32xf32>,
    return
  }
  func.func @transform_0(%arg0: i32) -> (i32, i32) {
    %c0_i32 = arith.constant 0 : i32
    %c0_i32_0 = arith.constant 0 : i32
    %c0_i32_1 = arith.constant 0 : i32
    return %c0_i32, %c0_i32_0 : i32, i32
  }
  func.func @transform_1(%arg0: i32) -> (i32, i32) {
    %c0_i32 = arith.constant 0 : i32
    %c0_i32_0 = arith.constant 0 : i32
    %c0_i32_1 = arith.constant 0 : i32
    return %c0_i32, %c0_i32_0 : i32, i32
  }
  func.func @transform_2(%arg0: i32) -> (i32, i32) {
    %c0_i32 = arith.constant 0 : i32
    %c0_i32_0 = arith.constant 0 : i32
    %c0_i32_1 = arith.constant 0 : i32
    return %c0_i32, %c0_i32_0 : i32, i32
  }
  func.func @transform_3(%arg0: i32) -> (i32, i32) {
    %c0_i32 = arith.constant 0 : i32
    %c0_i32_0 = arith.constant 0 : i32
    %c0_i32_1 = arith.constant 0 : i32
    return %c0_i32, %c0_i32_0 : i32, i32
  }
}

module attributes {stable_mosaic.version = 11 : i64} {
  func.func @_ln_kernel(%arg0: i32, %arg1: memref<32x32xf32, #tpu.memory_space<vmem>>, %arg2: memref<1x32xf32, #tpu.memory_space<vmem>>, %arg3: memref<1x32xf32, #tpu.memory_space<vmem>>, %arg4: memref<32x32xf32, #tpu.memory_space<vmem>>) attributes {dimension_semantics = [#tpu.dimension_semantics<arbitrary>], iteration_bounds = array<i64: 1>, scalar_prefetch = 0 : i64, scratch_operands = 0 : i64, tpu.core_type = #tpu.core_type<tc>, window_params = [{pipeline_mode = #tpu.pipeline_mode<synchronous>, transform_indices = @transform_0, window_bounds = array<i64: 32, 32>}, {pipeline_mode = #tpu.pipeline_mode<synchronous>, transform_indices = @transform_1, window_bounds = array<i64: 1, 32>}, {pipeline_mode = #tpu.pipeline_mode<synchronous>, transform_indices = @transform_2, window_bounds = array<i64: 1, 32>}, {pipeline_mode = #tpu.pipeline_mode<synchronous>, transform_indices = @transform_3, window_bounds = array<i64: 32, 32>}]} {
    %c0 = arith.constant 0 : index
    %c0_0 = arith.constant 0 : index
    %0 = vector.load %arg1[%c0, %c0_0] : memref<32x32xf32, #tpu.memory_space<vmem>>, vector<32x32xf32>
    %c0_1 = arith.constant 0 : index
    %c0_2 = arith.constant 0 : index
    %1 = vector.load %arg2[%c0_1, %c0_2] : memref<1x32xf32, #tpu.memory_space<vmem>>, vector<1x32xf32>
    %c0_3 = arith.constant 0 : index
    %c0_4 = arith.constant 0 : index
    %2 = vector.load %arg3[%c0_3, %c0_4] : memref<1x32xf32, #tpu.memory_space<vmem>>, vector<1x32xf32>
    %cst = arith.constant dense<0.000000e+00> : vector<32xf32>
    %3 = vector.multi_reduction <add>, %0, %cst [1] : vector<32x32xf32> to vector<32xf32>
    %4 = vector.shape_cast %3 : vector<32xf32> to vector<32x1xf32>
    %cst_5 = arith.constant 3.200000e+01 : f32
    %5 = vector.broadcast %cst_5 : f32 to vector<32x1xf32>
    %6 = arith.divf %4, %5 : vector<32x1xf32>
    %7 = vector.broadcast %6 : vector<32x1xf32> to vector<32x32xf32>
    %8 = arith.subf %0, %7 : vector<32x32xf32>
    %9 = arith.mulf %8, %8 : vector<32x32xf32>
    %cst_6 = arith.constant dense<0.000000e+00> : vector<32xf32>
    %10 = vector.multi_reduction <add>, %9, %cst_6 [1] : vector<32x32xf32> to vector<32xf32>
    %11 = vector.shape_cast %10 : vector<32xf32> to vector<32x1xf32>
    %cst_7 = arith.constant 3.200000e+01 : f32
    %12 = vector.broadcast %cst_7 : f32 to vector<32x1xf32>
    %13 = arith.divf %11, %12 : vector<32x1xf32>
    %cst_8 = arith.constant 9.99999974E-6 : f32
    %14 = vector.broadcast %cst_8 : f32 to vector<32x1xf32>
    %15 = arith.addf %13, %14 : vector<32x1xf32>
    %16 = math.rsqrt %15 : vector<32x1xf32>
    %17 = vector.broadcast %16 : vector<32x1xf32> to vector<32x32xf32>
    %18 = arith.mulf %8, %17 : vector<32x32xf32>
    %19 = vector.broadcast %1 : vector<1x32xf32> to vector<32x32xf32>
    %20 = arith.mulf %18, %19 : vector<32x32xf32>
    %21 = vector.broadcast %2 : vector<1x32xf32> to vector<32x32xf32>
    %22 = arith.addf %20, %21 : vector<32x32xf32>
    %c0_9 = arith.constant 0 : index
    %c0_10 = arith.constant 0 : index
    %23 = vector.load %arg4[%c0_9, %c0_10] : memref<32x32xf32, #tpu.memory_space<vmem>>, vector<32x32xf32>
    tpu.vector_store %arg4[%c0_9, %c0_10], %22 {strides = array<i32>} : memref<32x32xf32, #tpu.memory_space<vmem>>, vector<32x32xf32>,
    return
  }
  func.func @transform_0(%arg0: i32) -> (i32, i32) {
    %c0_i32 = arith.constant 0 : i32
    %c0_i32_0 = arith.constant 0 : i32
    %c0_i32_1 = arith.constant 0 : i32
    return %c0_i32, %c0_i32_0 : i32, i32
  }
  func.func @transform_1(%arg0: i32) -> (i32, i32) {
    %c0_i32 = arith.constant 0 : i32
    %c0_i32_0 = arith.constant 0 : i32
    %c0_i32_1 = arith.constant 0 : i32
    return %c0_i32, %c0_i32_0 : i32, i32
  }
  func.func @transform_2(%arg0: i32) -> (i32, i32) {
    %c0_i32 = arith.constant 0 : i32
    %c0_i32_0 = arith.constant 0 : i32
    %c0_i32_1 = arith.constant 0 : i32
    return %c0_i32, %c0_i32_0 : i32, i32
  }
  func.func @transform_3(%arg0: i32) -> (i32, i32) {
    %c0_i32 = arith.constant 0 : i32
    %c0_i32_0 = arith.constant 0 : i32
    %c0_i32_1 = arith.constant 0 : i32
    return %c0_i32, %c0_i32_0 : i32, i32
  }
}

module attributes {stable_mosaic.version = 11 : i64} {
  func.func @_ln_kernel(%arg0: i32, %arg1: memref<16x16xf32, #tpu.memory_space<vmem>>, %arg2: memref<1x16xf32, #tpu.memory_space<vmem>>, %arg3: memref<1x16xf32, #tpu.memory_space<vmem>>, %arg4: memref<16x16xf32, #tpu.memory_space<vmem>>) attributes {dimension_semantics = [#tpu.dimension_semantics<arbitrary>], iteration_bounds = array<i64: 1>, scalar_prefetch = 0 : i64, scratch_operands = 0 : i64, tpu.core_type = #tpu.core_type<tc>, window_params = [{pipeline_mode = #tpu.pipeline_mode<synchronous>, transform_indices = @transform_0, window_bounds = array<i64: 16, 16>}, {pipeline_mode = #tpu.pipeline_mode<synchronous>, transform_indices = @transform_1, window_bounds = array<i64: 1, 16>}, {pipeline_mode = #tpu.pipeline_mode<synchronous>, transform_indices = @transform_2, window_bounds = array<i64: 1, 16>}, {pipeline_mode = #tpu.pipeline_mode<synchronous>, transform_indices = @transform_3, window_bounds = array<i64: 16, 16>}]} {
    %c0 = arith.constant 0 : index
    %c0_0 = arith.constant 0 : index
    %0 = vector.load %arg1[%c0, %c0_0] : memref<16x16xf32, #tpu.memory_space<vmem>>, vector<16x16xf32>
    %c0_1 = arith.constant 0 : index
    %c0_2 = arith.constant 0 : index
    %1 = vector.load %arg2[%c0_1, %c0_2] : memref<1x16xf32, #tpu.memory_space<vmem>>, vector<1x16xf32>
    %c0_3 = arith.constant 0 : index
    %c0_4 = arith.constant 0 : index
    %2 = vector.load %arg3[%c0_3, %c0_4] : memref<1x16xf32, #tpu.memory_space<vmem>>, vector<1x16xf32>
    %cst = arith.constant dense<0.000000e+00> : vector<16xf32>
    %3 = vector.multi_reduction <add>, %0, %cst [1] : vector<16x16xf32> to vector<16xf32>
    %4 = vector.shape_cast %3 : vector<16xf32> to vector<16x1xf32>
    %cst_5 = arith.constant 1.600000e+01 : f32
    %5 = vector.broadcast %cst_5 : f32 to vector<16x1xf32>
    %6 = arith.divf %4, %5 : vector<16x1xf32>
    %7 = vector.broadcast %6 : vector<16x1xf32> to vector<16x16xf32>
    %8 = arith.subf %0, %7 : vector<16x16xf32>
    %9 = arith.mulf %8, %8 : vector<16x16xf32>
    %cst_6 = arith.constant dense<0.000000e+00> : vector<16xf32>
    %10 = vector.multi_reduction <add>, %9, %cst_6 [1] : vector<16x16xf32> to vector<16xf32>
    %11 = vector.shape_cast %10 : vector<16xf32> to vector<16x1xf32>
    %cst_7 = arith.constant 1.600000e+01 : f32
    %12 = vector.broadcast %cst_7 : f32 to vector<16x1xf32>
    %13 = arith.divf %11, %12 : vector<16x1xf32>
    %cst_8 = arith.constant 9.99999974E-6 : f32
    %14 = vector.broadcast %cst_8 : f32 to vector<16x1xf32>
    %15 = arith.addf %13, %14 : vector<16x1xf32>
    %16 = math.rsqrt %15 : vector<16x1xf32>
    %17 = vector.broadcast %16 : vector<16x1xf32> to vector<16x16xf32>
    %18 = arith.mulf %8, %17 : vector<16x16xf32>
    %19 = vector.broadcast %1 : vector<1x16xf32> to vector<16x16xf32>
    %20 = arith.mulf %18, %19 : vector<16x16xf32>
    %21 = vector.broadcast %2 : vector<1x16xf32> to vector<16x16xf32>
    %22 = arith.addf %20, %21 : vector<16x16xf32>
    %c0_9 = arith.constant 0 : index
    %c0_10 = arith.constant 0 : index
    %23 = vector.load %arg4[%c0_9, %c0_10] : memref<16x16xf32, #tpu.memory_space<vmem>>, vector<16x16xf32>
    tpu.vector_store %arg4[%c0_9, %c0_10], %22 {strides = array<i32>} : memref<16x16xf32, #tpu.memory_space<vmem>>, vector<16x16xf32>,
    return
  }
  func.func @transform_0(%arg0: i32) -> (i32, i32) {
    %c0_i32 = arith.constant 0 : i32
    %c0_i32_0 = arith.constant 0 : i32
    %c0_i32_1 = arith.constant 0 : i32
    return %c0_i32, %c0_i32_0 : i32, i32
  }
  func.func @transform_1(%arg0: i32) -> (i32, i32) {
    %c0_i32 = arith.constant 0 : i32
    %c0_i32_0 = arith.constant 0 : i32
    %c0_i32_1 = arith.constant 0 : i32
    return %c0_i32, %c0_i32_0 : i32, i32
  }
  func.func @transform_2(%arg0: i32) -> (i32, i32) {
    %c0_i32 = arith.constant 0 : i32
    %c0_i32_0 = arith.constant 0 : i32
    %c0_i32_1 = arith.constant 0 : i32
    return %c0_i32, %c0_i32_0 : i32, i32
  }
  func.func @transform_3(%arg0: i32) -> (i32, i32) {
    %c0_i32 = arith.constant 0 : i32
    %c0_i32_0 = arith.constant 0 : i32
    %c0_i32_1 = arith.constant 0 : i32
    return %c0_i32, %c0_i32_0 : i32, i32
  }
}

module attributes {stable_mosaic.version = 11 : i64} {
  func.func @_linear_kernel(%arg0: i32, %arg1: memref<32x32xf32, #tpu.memory_space<vmem>>, %arg2: memref<32x32xbf16, #tpu.memory_space<vmem>>, %arg3: memref<32x32xf32, #tpu.memory_space<vmem>>) attributes {dimension_semantics = [#tpu.dimension_semantics<arbitrary>], iteration_bounds = array<i64: 1>, scalar_prefetch = 0 : i64, scratch_operands = 0 : i64, tpu.core_type = #tpu.core_type<tc>, window_params = [{pipeline_mode = #tpu.pipeline_mode<synchronous>, transform_indices = @transform_0, window_bounds = array<i64: 32, 32>}, {pipeline_mode = #tpu.pipeline_mode<synchronous>, transform_indices = @transform_1, window_bounds = array<i64: 32, 32>}, {pipeline_mode = #tpu.pipeline_mode<synchronous>, transform_indices = @transform_2, window_bounds = array<i64: 32, 32>}]} {
    %c0 = arith.constant 0 : index
    %c0_0 = arith.constant 0 : index
    %0 = vector.load %arg1[%c0, %c0_0] : memref<32x32xf32, #tpu.memory_space<vmem>>, vector<32x32xf32>
    %c0_1 = arith.constant 0 : index
    %c0_2 = arith.constant 0 : index
    %1 = vector.load %arg2[%c0_1, %c0_2] : memref<32x32xbf16, #tpu.memory_space<vmem>>, vector<32x32xbf16>
    %2 = arith.truncf %0 : vector<32x32xf32> to vector<32x32xbf16>
    %cst = arith.constant dense<0.000000e+00> : vector<32x32xf32>
    %3 = tpu.matmul %2, %1, %cst {dimension_numbers = #tpu.dot_dimension_numbers<[1], [0], [0], [1], [0, 0, 1, 1], [], []>} : vector<32x32xbf16>, vector<32x32xbf16>, vector<32x32xf32> -> vector<32x32xf32>
    %c0_3 = arith.constant 0 : index
    %c0_4 = arith.constant 0 : index
    %4 = vector.load %arg3[%c0_3, %c0_4] : memref<32x32xf32, #tpu.memory_space<vmem>>, vector<32x32xf32>
    tpu.vector_store %arg3[%c0_3, %c0_4], %3 {strides = array<i32>} : memref<32x32xf32, #tpu.memory_space<vmem>>, vector<32x32xf32>,
    return
  }
  func.func @transform_0(%arg0: i32) -> (i32, i32) {
    %c0_i32 = arith.constant 0 : i32
    %c0_i32_0 = arith.constant 0 : i32
    %c0_i32_1 = arith.constant 0 : i32
    return %c0_i32, %c0_i32_0 : i32, i32
  }
  func.func @transform_1(%arg0: i32) -> (i32, i32) {
    %c0_i32 = arith.constant 0 : i32
    %c0_i32_0 = arith.constant 0 : i32
    %c0_i32_1 = arith.constant 0 : i32
    return %c0_i32, %c0_i32_0 : i32, i32
  }
  func.func @transform_2(%arg0: i32) -> (i32, i32) {
    %c0_i32 = arith.constant 0 : i32
    %c0_i32_0 = arith.constant 0 : i32
    %c0_i32_1 = arith.constant 0 : i32
    return %c0_i32, %c0_i32_0 : i32, i32
  }
}

module attributes {stable_mosaic.version = 11 : i64} {
  func.func @_ln_kernel(%arg0: i32, %arg1: memref<16x32xf32, #tpu.memory_space<vmem>>, %arg2: memref<1x32xf32, #tpu.memory_space<vmem>>, %arg3: memref<1x32xf32, #tpu.memory_space<vmem>>, %arg4: memref<16x32xf32, #tpu.memory_space<vmem>>) attributes {dimension_semantics = [#tpu.dimension_semantics<arbitrary>], iteration_bounds = array<i64: 1>, scalar_prefetch = 0 : i64, scratch_operands = 0 : i64, tpu.core_type = #tpu.core_type<tc>, window_params = [{pipeline_mode = #tpu.pipeline_mode<synchronous>, transform_indices = @transform_0, window_bounds = array<i64: 16, 32>}, {pipeline_mode = #tpu.pipeline_mode<synchronous>, transform_indices = @transform_1, window_bounds = array<i64: 1, 32>}, {pipeline_mode = #tpu.pipeline_mode<synchronous>, transform_indices = @transform_2, window_bounds = array<i64: 1, 32>}, {pipeline_mode = #tpu.pipeline_mode<synchronous>, transform_indices = @transform_3, window_bounds = array<i64: 16, 32>}]} {
    %c0 = arith.constant 0 : index
    %c0_0 = arith.constant 0 : index
    %0 = vector.load %arg1[%c0, %c0_0] : memref<16x32xf32, #tpu.memory_space<vmem>>, vector<16x32xf32>
    %c0_1 = arith.constant 0 : index
    %c0_2 = arith.constant 0 : index
    %1 = vector.load %arg2[%c0_1, %c0_2] : memref<1x32xf32, #tpu.memory_space<vmem>>, vector<1x32xf32>
    %c0_3 = arith.constant 0 : index
    %c0_4 = arith.constant 0 : index
    %2 = vector.load %arg3[%c0_3, %c0_4] : memref<1x32xf32, #tpu.memory_space<vmem>>, vector<1x32xf32>
    %cst = arith.constant dense<0.000000e+00> : vector<16xf32>
    %3 = vector.multi_reduction <add>, %0, %cst [1] : vector<16x32xf32> to vector<16xf32>
    %4 = vector.shape_cast %3 : vector<16xf32> to vector<16x1xf32>
    %cst_5 = arith.constant 3.200000e+01 : f32
    %5 = vector.broadcast %cst_5 : f32 to vector<16x1xf32>
    %6 = arith.divf %4, %5 : vector<16x1xf32>
    %7 = vector.broadcast %6 : vector<16x1xf32> to vector<16x32xf32>
    %8 = arith.subf %0, %7 : vector<16x32xf32>
    %9 = arith.mulf %8, %8 : vector<16x32xf32>
    %cst_6 = arith.constant dense<0.000000e+00> : vector<16xf32>
    %10 = vector.multi_reduction <add>, %9, %cst_6 [1] : vector<16x32xf32> to vector<16xf32>
    %11 = vector.shape_cast %10 : vector<16xf32> to vector<16x1xf32>
    %cst_7 = arith.constant 3.200000e+01 : f32
    %12 = vector.broadcast %cst_7 : f32 to vector<16x1xf32>
    %13 = arith.divf %11, %12 : vector<16x1xf32>
    %cst_8 = arith.constant 9.99999974E-6 : f32
    %14 = vector.broadcast %cst_8 : f32 to vector<16x1xf32>
    %15 = arith.addf %13, %14 : vector<16x1xf32>
    %16 = math.rsqrt %15 : vector<16x1xf32>
    %17 = vector.broadcast %16 : vector<16x1xf32> to vector<16x32xf32>
    %18 = arith.mulf %8, %17 : vector<16x32xf32>
    %19 = vector.broadcast %1 : vector<1x32xf32> to vector<16x32xf32>
    %20 = arith.mulf %18, %19 : vector<16x32xf32>
    %21 = vector.broadcast %2 : vector<1x32xf32> to vector<16x32xf32>
    %22 = arith.addf %20, %21 : vector<16x32xf32>
    %c0_9 = arith.constant 0 : index
    %c0_10 = arith.constant 0 : index
    %23 = vector.load %arg4[%c0_9, %c0_10] : memref<16x32xf32, #tpu.memory_space<vmem>>, vector<16x32xf32>
    tpu.vector_store %arg4[%c0_9, %c0_10], %22 {strides = array<i32>} : memref<16x32xf32, #tpu.memory_space<vmem>>, vector<16x32xf32>,
    return
  }
  func.func @transform_0(%arg0: i32) -> (i32, i32) {
    %c0_i32 = arith.constant 0 : i32
    %c0_i32_0 = arith.constant 0 : i32
    %c0_i32_1 = arith.constant 0 : i32
    return %c0_i32, %c0_i32_0 : i32, i32
  }
  func.func @transform_1(%arg0: i32) -> (i32, i32) {
    %c0_i32 = arith.constant 0 : i32
    %c0_i32_0 = arith.constant 0 : i32
    %c0_i32_1 = arith.constant 0 : i32
    return %c0_i32, %c0_i32_0 : i32, i32
  }
  func.func @transform_2(%arg0: i32) -> (i32, i32) {
    %c0_i32 = arith.constant 0 : i32
    %c0_i32_0 = arith.constant 0 : i32
    %c0_i32_1 = arith.constant 0 : i32
    return %c0_i32, %c0_i32_0 : i32, i32
  }
  func.func @transform_3(%arg0: i32) -> (i32, i32) {
    %c0_i32 = arith.constant 0 : i32
    %c0_i32_0 = arith.constant 0 : i32
    %c0_i32_1 = arith.constant 0 : i32
    return %c0_i32, %c0_i32_0 : i32, i32
  }
}

module attributes {stable_mosaic.version = 11 : i64} {
  func.func @_linear_kernel(%arg0: i32, %arg1: memref<2x32xf32, #tpu.memory_space<vmem>>, %arg2: memref<32x32xbf16, #tpu.memory_space<vmem>>, %arg3: memref<2x32xf32, #tpu.memory_space<vmem>>) attributes {dimension_semantics = [#tpu.dimension_semantics<arbitrary>], iteration_bounds = array<i64: 1>, scalar_prefetch = 0 : i64, scratch_operands = 0 : i64, tpu.core_type = #tpu.core_type<tc>, window_params = [{pipeline_mode = #tpu.pipeline_mode<synchronous>, transform_indices = @transform_0, window_bounds = array<i64: 2, 32>}, {pipeline_mode = #tpu.pipeline_mode<synchronous>, transform_indices = @transform_1, window_bounds = array<i64: 32, 32>}, {pipeline_mode = #tpu.pipeline_mode<synchronous>, transform_indices = @transform_2, window_bounds = array<i64: 2, 32>}]} {
    %c0 = arith.constant 0 : index
    %c0_0 = arith.constant 0 : index
    %0 = vector.load %arg1[%c0, %c0_0] : memref<2x32xf32, #tpu.memory_space<vmem>>, vector<2x32xf32>
    %c0_1 = arith.constant 0 : index
    %c0_2 = arith.constant 0 : index
    %1 = vector.load %arg2[%c0_1, %c0_2] : memref<32x32xbf16, #tpu.memory_space<vmem>>, vector<32x32xbf16>
    %2 = arith.truncf %0 : vector<2x32xf32> to vector<2x32xbf16>
    %cst = arith.constant dense<0.000000e+00> : vector<2x32xf32>
    %3 = tpu.matmul %2, %1, %cst {dimension_numbers = #tpu.dot_dimension_numbers<[1], [0], [0], [1], [0, 0, 1, 1], [], []>} : vector<2x32xbf16>, vector<32x32xbf16>, vector<2x32xf32> -> vector<2x32xf32>
    %c0_3 = arith.constant 0 : index
    %c0_4 = arith.constant 0 : index
    %4 = vector.load %arg3[%c0_3, %c0_4] : memref<2x32xf32, #tpu.memory_space<vmem>>, vector<2x32xf32>
    tpu.vector_store %arg3[%c0_3, %c0_4], %3 {strides = array<i32>} : memref<2x32xf32, #tpu.memory_space<vmem>>, vector<2x32xf32>,
    return
  }
  func.func @transform_0(%arg0: i32) -> (i32, i32) {
    %c0_i32 = arith.constant 0 : i32
    %c0_i32_0 = arith.constant 0 : i32
    %c0_i32_1 = arith.constant 0 : i32
    return %c0_i32, %c0_i32_0 : i32, i32
  }
  func.func @transform_1(%arg0: i32) -> (i32, i32) {
    %c0_i32 = arith.constant 0 : i32
    %c0_i32_0 = arith.constant 0 : i32
    %c0_i32_1 = arith.constant 0 : i32
    return %c0_i32, %c0_i32_0 : i32, i32
  }
  func.func @transform_2(%arg0: i32) -> (i32, i32) {
    %c0_i32 = arith.constant 0 : i32
    %c0_i32_0 = arith.constant 0 : i32
    %c0_i32_1 = arith.constant 0 : i32
    return %c0_i32, %c0_i32_0 : i32, i32
  }
}

</mosaic_0001>

<bundles_post_ra>
// kernel: bridger_vit_forward.52
= control target key start
LH: loop header
LB: loop body
LE: loop exit
PB: predicated region body
PF: predicated region fallthrough
CT: control target
= control target key end

     0   :  { %vm42_vm0 = vcmask 392192   ;;  %vm98_vm1 = vcmask 261120   ;;  %s178_s1 = inlined_call_operand.vmem [shape: bf16[48,32], index: 1, kind: input, shape index: {}]   ;;  %s179_s0 = inlined_call_operand.vmem [shape: f32[32,48], index: 0, kind: input, shape index: {}]   ;;  %s180_s2 = inlined_call_operand.vmem [shape: f32[32,32], index: 2, kind: output, shape index: {}]  }
   0x1   :  { %v127_v0 = vld [vmem:[%s178_s1] sm:$0xff]   ;;  %v128_v1 = vld [vmem:[%s178_s1 + $0x8] sm:$0xff]   ;;  %v129_v4 = vld [vmem:[%s178_s1 + $0x10] sm:$0xff]  }
   0x2   :  { %117 = vmatprep.subr.bf16.mxu0 %v127_v0  ;;  %v12_v2 = vld [vmem:[%s179_s0] sm:$0xff]  ;;  %v13_v3 = vld [vmem:[%s179_s0 + $0x8] sm:$0xff]  ;;  %v14_v6 = vld [vmem:[%s179_s0 + $0x10] sm:$0xff] }
   0x3   :  { %118 = vmatpush3.bf16.msra.mxu0 %v127_v0  ;;  %v22_v5 = vpack.c.bf16 %v13_v3, %v12_v2  ;;  %v15_v7 = vld [vmem:[%s179_s0 + $0x18] sm:$0xff] }
   0x4   :  { %119 = vmatprep.subr.bf16.mxu0 %v128_v1  ;;  %v23_v8 = vpack.c.bf16 %v15_v7, %v14_v6 }
   0x5   :  { %123 = vmatprep.mubr.msk.bf16.mxu0 %vm42_vm0, %v22_v5 }
   0x7   :  { %120 = vmatpush3.bf16.msra.mxu0 %v128_v1 }
   0x8   :  { %121 = vmatprep.subr.bf16.mxu0 %v129_v4 }
   0xb   :  { %122 = vmatpush3.bf16.msra.mxu0 %v129_v4 }
   0xe   :  { %124 = vmatmul.mubr.msk.bf16.vlgmr.msra.gmra.mrb[0].mxu0 %vm42_vm0, %v23_v8 }
  0xe1   :  { %v125_v9 = vpop.f32.mrb[0].mxu0 }
  0xe2   :  { %101 = vst.msk [vmem:[%s180_s2 + $0x10] sm:$0xff] %vm98_vm1, %v125_v9  ;;  %v83_v10 = vpop.f32.mrb[1].mxu0 }
  0xe3   :  { %99 = vst.msk [vmem:[%s180_s2] sm:$0xff] %vm98_vm1, %v83_v10  ;;  %v126_v11 = vpop.f32.mrb[2].mxu0 }
  0xe4   :  { %102 = vst.msk [vmem:[%s180_s2 + $0x18] sm:$0xff] %vm98_vm1, %v126_v11  ;;  %v86_v12 = vpop.f32.mrb[3].mxu0 }
  0xe5   :  { %100 = vst.msk [vmem:[%s180_s2 + $0x8] sm:$0xff] %vm98_vm1, %v86_v12 }

// kernel: bridger_vit_forward.53
= control target key start
LH: loop header
LB: loop body
LE: loop exit
PB: predicated region body
PF: predicated region fallthrough
CT: control target
= control target key end

     0   :  { %vm21_vm0 = vcmask 261120   ;;  %vm34_vm1 = vcmask 254976   ;;  %s203_s0 = inlined_call_operand.vmem [shape: f32[34,32], index: 0, kind: input, shape index: {}]   ;;  %s204_s1 = inlined_call_operand.vmem [shape: f32[1,32], index: 1, kind: input, shape index: {}]   ;;  %s205_s2 = inlined_call_operand.vmem [shape: f32[1,32], index: 2, kind: input, shape index: {}]   ;;  %s206_s3 = inlined_call_operand.vmem [shape: f32[34,32], index: 3, kind: output, shape index: {}]  }
   0x1   :  { %v14_v0 = vld [vmem:[%s203_s0] sm:$0xff]  ;;  %v16_v1 = vld [vmem:[%s203_s0 + $0x10] sm:$0xff]  ;;  %v15_v2 = vld [vmem:[%s203_s0 + $0x8] sm:$0xff] }
   0x2   :  { %v22_v3 = vsel %vm21_vm0, %v14_v0, 0.0  ;;  %v28_v4 = vsel %vm21_vm0, %v16_v1, 0.0  ;;  %v17_v5 = vld [vmem:[%s203_s0 + $0x18] sm:$0xff]  ;;  %v25_v6 = vsel %vm21_vm0, %v15_v2, 0.0  ;;  %v18_v8 = vld [vmem:[%s203_s0 + $0x20] sm:$0x3] }
   0x3   :  { %23 = vadd.xlane.f32.xlu0 %v22_v3  ;;  %29 = vadd.xlane.f32.xlu1 %v28_v4  ;;  %v31_v7 = vsel %vm21_vm0, %v17_v5, 0.0  ;;  %v35_v9 = vsel %vm34_vm1, %v18_v8, 0.0  ;;  %v120_v51 = vld [vmem:[%s204_s1] ss:$0 sm:$0xff] }
   0x4   :  { %v121_v53 = vld [vmem:[%s205_s2] ss:$0 sm:$0xff] }
   0x7   :  { %26 = vadd.xlane.f32.xlu0 %v25_v6  ;;  %32 = vadd.xlane.f32.xlu1 %v31_v7 }
   0xb   :  { %36 = vadd.xlane.f32.xlu0 %v35_v9 }
  0x90   :  { %v24_v10 = vpop.xlane.xlu0 %23  ;;  %v30_v11 = vpop.xlane.xlu1 %29 }
  0x91   :  { %v39_v12 = vmul.f32 0.03125, %v24_v10  ;;  %v41_v13 = vmul.f32 0.03125, %v30_v11 }
  0x93   :  { %v44_v14 = vsub.f32 %v14_v0, %v39_v12  ;;  %v46_v15 = vsub.f32 %v16_v1, %v41_v13 }
  0x94   :  { %v27_v16 = vpop.xlane.xlu0 %26  ;;  %v33_v17 = vpop.xlane.xlu1 %32 }
  0x95   :  { %v40_v18 = vmul.f32 0.03125, %v27_v16  ;;  %v42_v19 = vmul.f32 0.03125, %v33_v17  ;;  %v49_v20 = vmul.f32 %v44_v14, %v44_v14  ;;  %v51_v21 = vmul.f32 %v46_v15, %v46_v15 }
  0x97   :  { %v45_v22 = vsub.f32 %v15_v2, %v40_v18  ;;  %v47_v23 = vsub.f32 %v17_v5, %v42_v19  ;;  %v54_v24 = vsel %vm21_vm0, %v49_v20, 0.0  ;;  %v60_v27 = vsel %vm21_vm0, %v51_v21, 0.0 }
  0x98   :  { %55 = vadd.xlane.f32.xlu1 %v54_v24  ;;  %v37_v25 = vpop.xlane.xlu0 %36 }
  0x99   :  { %v43_v26 = vmul.f32 0.03125, %v37_v25  ;;  %v50_v28 = vmul.f32 %v45_v22, %v45_v22  ;;  %v52_v29 = vmul.f32 %v47_v23, %v47_v23 }
  0x9b   :  { %v48_v30 = vsub.f32 %v18_v8, %v43_v26  ;;  %v57_v31 = vsel %vm21_vm0, %v50_v28, 0.0  ;;  %v63_v32 = vsel %vm21_vm0, %v52_v29, 0.0 }
  0x9c   :  { %61 = vadd.xlane.f32.xlu1 %v60_v27  ;;  %58 = vadd.xlane.f32.xlu0 %v57_v31 }
  0x9d   :  { %v53_v33 = vmul.f32 %v48_v30, %v48_v30 }
  0x9f   :  { %v66_v34 = vsel %vm34_vm1, %v53_v33, 0.0 }
  0xa0   :  { %64 = vadd.xlane.f32.xlu0 %v63_v32  ;;  %67 = vadd.xlane.f32.xlu1 %v66_v34 }
 0x125   :  { %v56_v35 = vpop.xlane.xlu1 %55 }
 0x126   :  { %v69_v36 = vmul.f32 0.03125, %v56_v35 }
 0x128   :  { %v74_v37 = vadd.f32 1e-05, %v69_v36 }
 0x129   :  { %v62_v38 = vpop.xlane.xlu1 %61  ;;  %v59_v39 = vpop.xlane.xlu0 %58 }
 0x12a   :  { %122 = vrsqrt.f32 %v74_v37  ;;  %v71_v40 = vmul.f32 0.03125, %v62_v38  ;;  %v70_v41 = vmul.f32 0.03125, %v59_v39 }
 0x12c   :  { %v76_v42 = vadd.f32 1e-05, %v71_v40  ;;  %v75_v43 = vadd.f32 1e-05, %v70_v41 }
 0x12d   :  { %v68_v44 = vpop.xlane.xlu1 %67  ;;  %v65_v45 = vpop.xlane.xlu0 %64 }
 0x12e   :  { %124 = vrsqrt.f32 %v76_v42  ;;  %v73_v46 = vmul.f32 0.03125, %v68_v44  ;;  %v72_v47 = vmul.f32 0.03125, %v65_v45 }
 0x12f   :  { %126 = vrsqrt.f32 %v75_v43 }
 0x130   :  { %v78_v48 = vadd.f32 1e-05, %v73_v46  ;;  %v77_v49 = vadd.f32 1e-05, %v72_v47 }
 0x132   :  { %128 = vrsqrt.f32 %v78_v48 }
 0x133   :  { %130 = vrsqrt.f32 %v77_v49 }
 0x134   :  { %v123_v50 = vpop.eup %122 }
 0x135   :  { %v84_v52 = vmul.f32 %v123_v50, %v44_v14 }
 0x137   :  { %v95_v54 = vmul.f32 %v120_v51, %v84_v52 }
 0x138   :  { %v125_v55 = vpop.eup %124 }
 0x139   :  { %v127_v56 = vpop.eup %126  ;;  %v106_v57 = vadd.f32 %v121_v53, %v95_v54  ;;  %v86_v58 = vmul.f32 %v125_v55, %v46_v15 }
 0x13a   :  { %v85_v59 = vmul.f32 %v127_v56, %v45_v22 }
 0x13b   :  { %111 = vst.msk [vmem:[%s206_s3] sm:$0xff] %vm21_vm0, %v106_v57  ;;  %v97_v60 = vmul.f32 %v120_v51, %v86_v58 }
 0x13c   :  { %v129_v61 = vpop.eup %128  ;;  %v96_v62 = vmul.f32 %v120_v51, %v85_v59 }
 0x13d   :  { %v131_v63 = vpop.eup %130  ;;  %v108_v0 = vadd.f32 %v121_v53, %v97_v60  ;;  %v88_v1 = vmul.f32 %v129_v61, %v48_v30 }
 0x13e   :  { %v107_v2 = vadd.f32 %v121_v53, %v96_v62  ;;  %v87_v3 = vmul.f32 %v131_v63, %v47_v23 }
 0x13f   :  { %113 = vst.msk [vmem:[%s206_s3 + $0x10] sm:$0xff] %vm21_vm0, %v108_v0  ;;  %v99_v4 = vmul.f32 %v120_v51, %v88_v1 }
 0x140   :  { %112 = vst.msk [vmem:[%s206_s3 + $0x8] sm:$0xff] %vm21_vm0, %v107_v2  ;;  %v98_v5 = vmul.f32 %v120_v51, %v87_v3 }
 0x141   :  { %v110_v6 = vadd.f32 %v121_v53, %v99_v4 }
 0x142   :  { %v109_v7 = vadd.f32 %v121_v53, %v98_v5 }
 0x143   :  { %115 = vst.msk [vmem:[%s206_s3 + $0x20] sm:$0x3] %vm34_vm1, %v110_v6 }
 0x144   :  { %114 = vst.msk [vmem:[%s206_s3 + $0x18] sm:$0xff] %vm21_vm0, %v109_v7 }

// kernel: bridger_vit_forward.62
= control target key start
LH: loop header
LB: loop body
LE: loop exit
PB: predicated region body
PF: predicated region fallthrough
CT: control target
= control target key end

     0   :  { %vm34_vm0 = vcmask 261120   ;;  %vm94_vm1 = vcmask 130048   ;;  %s166_s1 = inlined_call_operand.vmem [shape: bf16[32,16], index: 1, kind: input, shape index: {}]   ;;  %s167_s0 = inlined_call_operand.vmem [shape: f32[32,32], index: 0, kind: input, shape index: {}]   ;;  %s168_s2 = inlined_call_operand.vmem [shape: f32[32,16], index: 2, kind: output, shape index: {}]  }
   0x1   :  { %v119_v0 = vld [vmem:[%s166_s1] sm:$0xff]   ;;  %v120_v1 = vld [vmem:[%s166_s1 + $0x8] sm:$0xff]   ;;  %v14_v5 = vld [vmem:[%s167_s0 + $0x10] sm:$0xff] }
   0x2   :  { %111 = vmatprep.subr.bf16.mxu0 %v119_v0  ;;  %v12_v2 = vld [vmem:[%s167_s0] sm:$0xff]  ;;  %v13_v3 = vld [vmem:[%s167_s0 + $0x8] sm:$0xff]  ;;  %v15_v6 = vld [vmem:[%s167_s0 + $0x18] sm:$0xff] }
   0x3   :  { %112 = vmatpush3.bf16.msra.mxu0 %v119_v0  ;;  %v20_v4 = vpack.c.bf16 %v13_v3, %v12_v2  ;;  %v21_v7 = vpack.c.bf16 %v15_v6, %v14_v5 }
   0x4   :  { %113 = vmatprep.subr.bf16.mxu0 %v120_v1 }
   0x5   :  { %115 = vmatprep.mubr.msk.bf16.mxu0 %vm34_vm0, %v20_v4 }
   0x7   :  { %114 = vmatpush3.bf16.msra.mxu0 %v120_v1 }
   0xa   :  { %116 = vmatmul.mubr.msk.bf16.vlgmr.msra.gmra.mrb[0].mxu0 %vm34_vm0, %v21_v7 }
  0xdd   :  { %v117_v8 = vpop.f32.mrb[0].mxu0 }
  0xde   :  { %v92_v9 = vmax.f32 %v117_v8, 0.0  ;;  %v75_v10 = vpop.f32.mrb[1].mxu0 }
  0xdf   :  { %v90_v11 = vmax.f32 %v75_v10, 0.0  ;;  %v118_v12 = vpop.f32.mrb[2].mxu0 }
  0xe0   :  { %97 = vst.msk [vmem:[%s168_s2 + $0x10] sm:$0xff] %vm94_vm1, %v92_v9  ;;  %v93_v13 = vmax.f32 %v118_v12, 0.0  ;;  %v78_v14 = vpop.f32.mrb[3].mxu0 }
  0xe1   :  { %95 = vst.msk [vmem:[%s168_s2] sm:$0xff] %vm94_vm1, %v90_v11  ;;  %v91_v15 = vmax.f32 %v78_v14, 0.0 }
  0xe2   :  { %98 = vst.msk [vmem:[%s168_s2 + $0x18] sm:$0xff] %vm94_vm1, %v93_v13 }
  0xe3   :  { %96 = vst.msk [vmem:[%s168_s2 + $0x8] sm:$0xff] %vm94_vm1, %v91_v15 }

// kernel: bridger_vit_forward.54
= control target key start
LH: loop header
LB: loop body
LE: loop exit
PB: predicated region body
PF: predicated region fallthrough
CT: control target
= control target key end

     0   :  { %s2179_s25 = smov 0   ;;  %s2474_s0 = inlined_call_operand.vmem [shape: f32[2,17,32], index: 0, kind: input, shape index: {}]   ;;  %s2475_s1 = inlined_call_operand.vmem [shape: f32[1,32], index: 1, kind: input, shape index: {}]   ;;  %s2476_s2 = inlined_call_operand.vmem [shape: f32[1,32], index: 2, kind: input, shape index: {}]   ;;  %s2477_s3 = inlined_call_operand.vmem [shape: bf16[32,96], index: 3, kind: input, shape index: {}]   ;;  %s2478_s4 = inlined_call_operand.vmem [shape: f32[1,96], index: 4, kind: input, shape index: {}]   ;;  %s2479_s5 = inlined_call_operand.vmem [shape: bf16[32,32], index: 5, kind: input, shape index: {}]   ;;  %s2480_s6 = inlined_call_operand.vmem [shape: f32[1,32], index: 6, kind: input, shape index: {}]   ;;  %s2481_s7 = inlined_call_operand.vmem [shape: f32[1,32], index: 7, kind: input, shape index: {}]   ;;  %s2482_s8 = inlined_call_operand.vmem [shape: f32[1,32], index: 8, kind: input, shape index: {}]   ;;  %s2483_s9 = inlined_call_operand.vmem [shape: bf16[32,128], index: 9, kind: input, shape index: {}]   ;;  %s2484_s10 = inlined_call_operand.vmem [shape: f32[1,128], index: 10, kind: input, shape index: {}]   ;;  %s2485_s11 = inlined_call_operand.vmem [shape: bf16[128,32], index: 11, kind: input, shape index: {}]   ;;  %s2486_s12 = inlined_call_operand.vmem [shape: f32[1,32], index: 12, kind: input, shape index: {}]   ;;  %s2487_s13 = inlined_call_operand.vmem [shape: f32[2,17,32], index: 13, kind: output, shape index: {}]  }
   0x1 LB: > { %s1735_s26 = sadd.s32 4294967295, %s2092_s25   ;;  %p1739_p0 = scmp.ge.s32.totalorder %s2092_s25, 1  ;;  %s2092_s25 = sphi %s2179_s25, %s23_s25  }
   0x2   : > { %p387_p1 = scmp.lt.s32.totalorder %s2092_s25, 3 }
   0x4   : > { %p388_p2 = pnand %p1739_p0, %p387_p1 }
   0x5   : > { %p431_p3 = scmp.lt.s32.totalorder (!%p388_p2), %s1735_s26, 1  ;;  %vm447_vm0 = vcmask (!%p388_p2), 261120   ;;  %vm454_vm1 = vcmask (!%p388_p2), 253952   ;;  %v2000_v21 = vld [vmem:[%s2477_s3] sm:$0xff] (!%p388_p2)   ;;  %v2001_v22 = vld [vmem:[%s2477_s3 + $0x8] sm:$0xff] (!%p388_p2)   ;;  %s2094_s24 = smov (!%p388_p2), 96  }
   0x6   : > { %391 = sbr.rel (%p388_p2) target bundleno = 3592 (0xe08), region = 72  ;;  %1845 = vmatprep.subr.bf16.mxu0 (!%p388_p2), %v2000_v21  ;;  %v1742_v34 = vld [vmem:[%s2475_s1] ss:$0 sm:$0xff] (!%p388_p2)  ;;  %vm603_vm2 = vcmask (!%p388_p2), 64512   ;;  %s2095_s28 = smov (!%p388_p2), 64   ;;  %vm671_vm3 = vcmask (!%p388_p2), 131072  }
   0x7   : > { %1846 = vmatpush3.bf16.msra.mxu0 (!%p388_p2), %v2000_v21  ;;  %v1743_v40 = vld [vmem:[%s2476_s2] ss:$0 sm:$0xff] (!%p388_p2)  ;;  %vm664_vm4 = vcmask (!%p388_p2), 138240   ;;  %s2096_s29 = smov (!%p388_p2), 88   ;;  %vm709_vm5 = vcmask (!%p388_p2), 1040384   ;;  %s2099_s14 = smov (!%p388_p2), 56  }
   0x8   : > { %1847 = vmatprep.subr.bf16.mxu0 (!%p388_p2), %v2001_v22  ;;  %v1744_v48 = vld [vmem:[%s2478_s4] ss:$0 sm:$0xff] (!%p388_p2)  ;;  %s2100_s15 = smov (!%p388_p2), 80   ;;  %s2101_s16 = smov (!%p388_p2), 112   ;;  %vm1302_vm6 = vcmask (!%p388_p2), 130048   ;;  %vm1306_vm7 = vcmask (!%p388_p2), 195584  }
   0x9   : > { %s2102_s17 = smov (!%p388_p2), 48   ;;  %s2103_s18 = smov (!%p388_p2), 72  }
   0xa   : > { %s2104_s19 = smov (!%p388_p2), 104   ;;  %s2105_s20 = smov (!%p388_p2), 40  }
   0xb   : > { %1848 = vmatpush3.bf16.msra.mxu0 (!%p388_p2), %v2001_v22  ;;  %v2098_v22 = vmov (!%p388_p2), 0   ;;  %s2106_s21 = smov (!%p388_p2), 8   ;;  %s2107_s22 = smov (!%p388_p2), 16  }
   0xd   : > { %s2489_s26 = smov (!%p431_p3, %s1735_s26), 1 }
   0xe   : > { %s1961_s27 = smul.u32 24, %s2489_s26 }
  0x10   : > { %s435_s30 = scalar_lea.vmem %s2474_s0, %s1961_s27 }
  0x11   : > { %v2195_v0 = vld [vmem:[%s435_s30] sm:$0xff]  ;;  %v2197_v1 = vld [vmem:[%s435_s30 + $0x10] sm:$0x1]  ;;  %v2199_v2 = vld [vmem:[%s435_s30 + $0x8] sm:$0xff]  ;;  %s2097_s30 = smov 120  }
  0x12   : > { %v448_v3 = vsel %vm447_vm0, %v2195_v0, 0.0  ;;  %v455_v4 = vsel %vm454_vm1, %v2197_v1, 0.0  ;;  %v451_v5 = vsel %vm447_vm0, %v2199_v2, 0.0 }
  0x13   : > { %449 = vadd.xlane.f32.xlu0 %v448_v3  ;;  %456 = vadd.xlane.f32.xlu1 %v455_v4 }
  0x17   : > { %452 = vadd.xlane.f32.xlu0 %v451_v5 }
  0xa0   : > { %v450_v6 = vpop.xlane.xlu0 %449  ;;  %v457_v7 = vpop.xlane.xlu1 %456 }
  0xa1   : > { %v459_v8 = vmul.f32 0.03125, %v450_v6  ;;  %v461_v9 = vmul.f32 0.03125, %v457_v7 }
  0xa3   : > { %v462_v10 = vsub.f32 %v2195_v0, %v459_v8  ;;  %v464_v11 = vsub.f32 %v2197_v1, %v461_v9 }
  0xa4   : > { %v453_v12 = vpop.xlane.xlu0 %452 }
  0xa5   : > { %v460_v13 = vmul.f32 0.03125, %v453_v12  ;;  %v465_v14 = vmul.f32 %v462_v10, %v462_v10  ;;  %v467_v15 = vmul.f32 %v464_v11, %v464_v11 }
  0xa7   : > { %v463_v16 = vsub.f32 %v2199_v2, %v460_v13  ;;  %v468_v17 = vsel %vm447_vm0, %v465_v14, 0.0  ;;  %v474_v18 = vsel %vm454_vm1, %v467_v15, 0.0 }
  0xa8   : > { %469 = vadd.xlane.f32.xlu1 %v468_v17 }
  0xa9   : > { %v466_v19 = vmul.f32 %v463_v16, %v463_v16 }
  0xab   : > { %v471_v20 = vsel %vm447_vm0, %v466_v19, 0.0 }
  0xac   : > { %475 = vadd.xlane.f32.xlu1 %v474_v18  ;;  %472 = vadd.xlane.f32.xlu0 %v471_v20 }
 0x135   : > { %v470_v23 = vpop.xlane.xlu1 %469 }
 0x136   : > { %v477_v24 = vmul.f32 0.03125, %v470_v23  ;;  %v2259_v23 = vsel %vm709_vm5, 65535, %v2098_v22 }
 0x138   : > { %v480_v25 = vadd.f32 1e-05, %v477_v24 }
 0x139   : > { %v476_v26 = vpop.xlane.xlu1 %475  ;;  %v473_v27 = vpop.xlane.xlu0 %472 }
 0x13a   : > { %2014 = vrsqrt.f32 %v480_v25  ;;  %v479_v28 = vmul.f32 0.03125, %v476_v26  ;;  %v478_v29 = vmul.f32 0.03125, %v473_v27 }
 0x13c   : > { %v482_v30 = vadd.f32 1e-05, %v479_v28  ;;  %v481_v31 = vadd.f32 1e-05, %v478_v29 }
 0x13e   : > { %2016 = vrsqrt.f32 %v482_v30 }
 0x13f   : > { %2018 = vrsqrt.f32 %v481_v31 }
 0x144   : > { %v2015_v32 = vpop.eup %2014 }
 0x145   : > { %v486_v33 = vmul.f32 %v2015_v32, %v462_v10 }
 0x147   : > { %v495_v39 = vmul.f32 %v1742_v34, %v486_v33 }
 0x148   : > { %v2017_v35 = vpop.eup %2016 }
 0x149   : > { %v2019_v36 = vpop.eup %2018  ;;  %v488_v37 = vmul.f32 %v2017_v35, %v464_v11  ;;  %v504_v44 = vadd.f32 %v1743_v40, %v495_v39 }
 0x14a   : > { %v487_v38 = vmul.f32 %v2019_v36, %v463_v16 }
 0x14b   : > { %v497_v41 = vmul.f32 %v1742_v34, %v488_v37 }
 0x14c   : > { %v496_v42 = vmul.f32 %v1742_v34, %v487_v38 }
 0x14d   : > { %v506_v43 = vadd.f32 %v1743_v40, %v497_v41 }
 0x14e   : > { %v505_v45 = vadd.f32 %v1743_v40, %v496_v42 }
 0x14f   : > { %v512_v46 = vpack.c.bf16 %v506_v43, %v506_v43 }
 0x150   : > { %v511_v47 = vpack.c.bf16 %v505_v45, %v504_v44 }
 0x152   : > { %1849 = vmatprep.mubr.msk.bf16.mxu0 %vm447_vm0, %v511_v47 }
 0x153   : > { %1850 = vmatmul.mubr.msk.bf16.vlgmr.msra.gmra.mrb[0].mxu0 %vm447_vm0, %v512_v46 }
 0x226   : > { %v1851_v49 = vpop.f32.mrb[0].mxu0 }
 0x227   : > { %v581_v50 = vadd.f32 %v1851_v49, %v1744_v48  ;;  %v572_v51 = vpop.f32.mrb[1].mxu0 }
 0x228   : > { %v573_v52 = vadd.f32 %v1744_v48, %v572_v51  ;;  %v1852_v53 = vpop.f32.mrb[2].mxu0 }
 0x229   : > { %v2230_v54 = vpack.c.bf16 %v581_v50, %v581_v50  ;;  %v575_v55 = vpop.f32.mrb[3].mxu0  ;;  %v592_v5 = vmul.f32 0.35355338, %v581_v50 }
 0x22a   : > { %v576_v56 = vadd.f32 %v1744_v48, %v575_v55  ;;  %v590_v57 = vmul.f32 0.35355338, %v573_v52 }
 0x22b   : > { %601 = vrot.lane.b32.xlu1 %v2230_v54, %s2094_s24  ;;  %v2246_v6 = vpack.c.bf16 %v592_v5, %v592_v5 }
 0x22c   : > { %v591_v58 = vmul.f32 0.35355338, %v576_v56  ;;  %v2233_v59 = vpack.c.bf16 %v576_v56, %v573_v52 }
 0x22e   : > { %v2235_v60 = vpack.c.bf16 %v591_v58, %v590_v57  ;;  %599 = vrot.lane.b32.xlu0 %v2233_v59, %s2094_s24 }
 0x22f   : > { %698 = vrot.lane.b32.xlu1 %v2233_v59, %s2095_s28 }
 0x230   : > { %1857 = vmatprep.mubr.msk.bf16.mxu0 %vm603_vm2, %v2235_v60 }
 0x29d   : > { %v602_v63 = vpop.permute.xlu1 %601 }
 0x29e   : > { %v614_v3 = vsel %vm603_vm2, %v602_v63, 0 }
 0x2a0   : > { %v600_v61 = vpop.permute.xlu0 %599 }
 0x2a1   : > { %v611_v62 = vsel %vm603_vm2, %v600_v61, 0  ;;  %1953 = vmatprep.subr.msk.bf16.mxu0 %vm603_vm2, %v600_v61  ;;  %v699_v4 = vpop.permute.xlu1 %698 }
 0x2a2   : > { %1854 = vmatpush3.bf16.xpose.msra.mxu0 %v611_v62 }
 0x2a3   : > { %1954 = vmatprep.subr.msk.bf16.mxu0 %vm603_vm2, %v602_v63 }
 0x2aa   : > { %1856 = vmatpush3.bf16.xpose.msra.mxu0 %v614_v3 }
 0x2ab   : > { %1861 = vmatprep.subr.bf16.mxu0 %v699_v4 }
 0x2b1   : > { %1858 = vmatmul.mubr.msk.bf16.vlgmr.msra.gmra.mrb[4].mxu0 %vm603_vm2, %v2246_v6 }
 0x2b2   : > { %1862 = vmatpush3.bf16.msra.mxu0 %v699_v4 }
 0x384   : > { %v1859_v7 = vpop.f32.mrb[4].mxu0 }
 0x385   : > { %v650_v8 = vpop.f32.mrb[5].mxu0  ;;  %v672_v9 = vsel %vm671_vm3, %v1859_v7, -inf }
 0x386   : > { %673 = vmax.xlane.f32.xlu0 %v672_v9  ;;  %v1860_v10 = vpop.f32.mrb[6].mxu0  ;;  %v665_v11 = vsel %vm664_vm4, %v650_v8, -inf }
 0x387   : > { %666 = vmax.xlane.f32.xlu1 %v665_v11  ;;  %v653_v12 = vpop.f32.mrb[7].mxu0 }
 0x388   : > { %v668_v13 = vsel %vm664_vm4, %v653_v12, -inf }
 0x38a   : > { %669 = vmax.xlane.f32.xlu0 %v668_v13 }
 0x398   : > { %772 = vrot.lane.b32.xlu1 %v2233_v59, %s2096_s29 }
 0x39c   : > { %774 = vrot.lane.b32.xlu1 %v2230_v54, %s2096_s29 }
 0x3a0   : > { %768 = vrot.lane.b32.xlu1 %v2235_v60, %s2097_s30  ;;  %700 = vrot.lane.b32.xlu0 %v2230_v54, %s2095_s28 }
 0x3a4   : > { %770 = vrot.lane.b32.xlu0 %v2246_v6, %s2097_s30  ;;  %s2108_s30 = smov 24  }
 0x413   : > { %v674_v14 = vpop.xlane.xlu0 %673 }
 0x414   : > { %v677_v15 = vsub.f32 %v1859_v7, %v674_v14  ;;  %v667_v16 = vpop.xlane.xlu1 %666 }
 0x415   : > { %v675_v17 = vsub.f32 %v650_v8, %v667_v16 }
 0x416   : > { %v682_v18 = vmul.f32 1.442695, %v677_v15 }
 0x417   : > { %v678_v19 = vmul.f32 1.442695, %v675_v17  ;;  %v670_v20 = vpop.xlane.xlu0 %669 }
 0x418   : > { %v676_v21 = vsub.f32 %v653_v12, %v670_v20  ;;  %2020 = vpow2.f32 %v682_v18  ;;  %v773_v27 = vpop.permute.xlu1 %772 }
 0x419   : > { %2022 = vpow2.f32 %v678_v19  ;;  %v783_v34 = vsel %vm603_vm2, %v773_v27, 0 }
 0x41a   : > { %v680_v24 = vmul.f32 1.442695, %v676_v21 }
 0x41b   : > { %v701_v25 = vpop.permute.xlu0 %700 }
 0x41c   : > { %2024 = vpow2.f32 %v680_v24  ;;  %v713_v26 = vand.u32 %v2259_v23, %v701_v25  ;;  %v775_v29 = vpop.permute.xlu1 %774 }
 0x41d   : > { %v786_v36 = vsel %vm603_vm2, %v775_v29, 0 }
 0x41e   : > { %1863 = vmatprep.subr.bf16.mxu0 %v713_v26 }
 0x41f   : > { %1864 = vmatpush3.bf16.msra.mxu0 %v713_v26  ;;  %v771_v37 = vpop.permute.xlu0 %770 }
 0x420   : > { %1955 = vmatprep.subr.msk.bf16.mxu0 %vm603_vm2, %v773_v27  ;;  %v769_v35 = vpop.permute.xlu1 %768 }
 0x422   : > { %v2263_v28 = vpop.eup %2020 }
 0x423   : > { %v2265_v30 = vpop.eup %2022  ;;  %v697_v33 = vpack.c.bf16 %v2263_v28, %v2263_v28 }
 0x426   : > { %v2267_v31 = vpop.eup %2024 }
 0x427   : > { %v696_v32 = vpack.c.bf16 %v2267_v31, %v2265_v30 }
 0x429   : > { %1865 = vmatprep.mubr.msk.bf16.mxu0 %vm664_vm4, %v696_v32 }
 0x42a   : > { %1866 = vmatmul.mubr.msk.bf16.vlgmr.msra.gmra.mrb[8].mxu0 %vm664_vm4, %v697_v33 }
 0x42b   : > { %1870 = vmatpush3.bf16.xpose.msra.mxu0 %v783_v34  ;;  %1873 = vmatprep.mubr.msk.bf16.mxu0 %vm603_vm2, %v769_v35 }
 0x42c   : > { %1956 = vmatprep.subr.msk.bf16.mxu0 %vm603_vm2, %v775_v29 }
 0x433   : > { %1872 = vmatpush3.bf16.xpose.msra.mxu0 %v786_v36 }
 0x43a   : > { %1874 = vmatmul.mubr.msk.bf16.vlgmr.msra.gmra.mrb[12].mxu0 %vm603_vm2, %v771_v37 }
 0x4fd   : > { %v2280_v38 = vpop.f32.mrb[8].mxu0 }
 0x4fe   : > { %v2282_v39 = vpop.f32.mrb[9].mxu0 }
 0x4ff   : > { %v1868_v40 = vpop.f32.mrb[10].mxu0 }
 0x500   : > { %v2284_v41 = vpop.f32.mrb[11].mxu0 }
 0x50d   : > { %v1875_v42 = vpop.f32.mrb[12].mxu0 }
 0x50e   : > { %v822_v43 = vpop.f32.mrb[13].mxu0  ;;  %v842_v44 = vsel %vm671_vm3, %v1875_v42, -inf }
 0x50f   : > { %843 = vmax.xlane.f32.xlu0 %v842_v44  ;;  %v1876_v45 = vpop.f32.mrb[14].mxu0  ;;  %v836_v46 = vsel %vm664_vm4, %v822_v43, -inf }
 0x510   : > { %837 = vmax.xlane.f32.xlu1 %v836_v46  ;;  %v825_v47 = vpop.f32.mrb[15].mxu0 }
 0x511   : > { %v839_v48 = vsel %vm664_vm4, %v825_v47, -inf }
 0x513   : > { %840 = vmax.xlane.f32.xlu0 %v839_v48 }
 0x521   : > { %870 = vrot.lane.b32.xlu1 %v2230_v54, %s2099_s14 }
 0x525   : > { %937 = vrot.lane.b32.xlu1 %v2233_v59, %s2100_s15 }
 0x529   : > { %939 = vrot.lane.b32.xlu1 %v2230_v54, %s2100_s15  ;;  %868 = vrot.lane.b32.xlu0 %v2233_v59, %s2099_s14 }
 0x52d   : > { %935 = vrot.lane.b32.xlu1 %v2246_v6, %s2101_s16  ;;  %933 = vrot.lane.b32.xlu0 %v2235_v60, %s2101_s16 }
 0x531   : > { %1035 = vrot.lane.b32.xlu1 %v2230_v54, %s2102_s17 }
 0x59c   : > { %v844_v49 = vpop.xlane.xlu0 %843 }
 0x59d   : > { %v847_v50 = vsub.f32 %v1875_v42, %v844_v49  ;;  %v838_v51 = vpop.xlane.xlu1 %837 }
 0x59e   : > { %v845_v52 = vsub.f32 %v822_v43, %v838_v51 }
 0x59f   : > { %v852_v53 = vmul.f32 1.442695, %v847_v50 }
 0x5a0   : > { %v848_v55 = vmul.f32 1.442695, %v845_v52  ;;  %v841_v56 = vpop.xlane.xlu0 %840 }
 0x5a1   : > { %v846_v57 = vsub.f32 %v825_v47, %v841_v56  ;;  %v871_v58 = vpop.permute.xlu1 %870  ;;  %2026 = vpow2.f32 %v852_v53 }
 0x5a2   : > { %2028 = vpow2.f32 %v848_v55  ;;  %v880_v63 = vand.u32 %v871_v58, %v2259_v23 }
 0x5a3   : > { %v850_v61 = vmul.f32 1.442695, %v846_v57 }
 0x5a4   : > { %v869_v62 = vpop.permute.xlu0 %868 }
 0x5a5   : > { %2030 = vpow2.f32 %v850_v61  ;;  %1877 = vmatprep.subr.bf16.mxu1 %v869_v62  ;;  %v938_v3 = vpop.permute.xlu1 %937 }
 0x5a6   : > { %1878 = vmatpush3.bf16.msra.mxu1 %v869_v62  ;;  %v948_v10 = vsel %vm603_vm2, %v938_v3, 0 }
 0x5a7   : > { %1879 = vmatprep.subr.bf16.mxu1 %v880_v63 }
 0x5a8   : > { %v934_v11 = vpop.permute.xlu0 %933 }
 0x5a9   : > { %v940_v12 = vpop.permute.xlu1 %939 }
 0x5aa   : > { %1880 = vmatpush3.bf16.msra.mxu1 %v880_v63  ;;  %v951_v13 = vsel %vm603_vm2, %v940_v12, 0 }
 0x5ab   : > { %1957 = vmatprep.subr.msk.bf16.mxu1 %vm603_vm2, %v938_v3  ;;  %v2299_v4 = vpop.eup %2026 }
 0x5ac   : > { %v2301_v5 = vpop.eup %2028  ;;  %v867_v9 = vpack.c.bf16 %v2299_v4, %v2299_v4 }
 0x5ad   : > { %v936_v14 = vpop.permute.xlu1 %935 }
 0x5af   : > { %v2303_v7 = vpop.eup %2030 }
 0x5b0   : > { %v866_v8 = vpack.c.bf16 %v2303_v7, %v2301_v5 }
 0x5b1   : > { %v1036_v27 = vpop.permute.xlu1 %1035 }
 0x5b2   : > { %1881 = vmatprep.mubr.msk.bf16.mxu1 %vm664_vm4, %v866_v8  ;;  %v1045_v43 = vand.u32 %v1036_v27, %v2259_v23 }
 0x5b3   : > { %1882 = vmatmul.mubr.msk.bf16.vlgmr.msra.gmra.mrb[0].mxu1 %vm664_vm4, %v867_v9 }
 0x5b4   : > { %1886 = vmatpush3.bf16.xpose.msra.mxu1 %v948_v10  ;;  %1889 = vmatprep.mubr.msk.bf16.mxu1 %vm603_vm2, %v934_v11  ;;  %v854_v11 = vsel %vm664_vm4, %v2301_v5, 0.0 }
 0x5b5   : > { %1958 = vmatprep.subr.msk.bf16.mxu1 %vm603_vm2, %v940_v12  ;;  %v857_v12 = vsel %vm664_vm4, %v2303_v7, 0.0 }
 0x5bc   : > { %1888 = vmatpush3.bf16.xpose.msra.mxu1 %v951_v13 }
 0x5c3   : > { %1890 = vmatmul.mubr.msk.bf16.vlgmr.msra.gmra.mrb[4].mxu1 %vm603_vm2, %v936_v14  ;;  %v860_v14 = vsel %vm671_vm3, %v2299_v4, 0.0 }
 0x686   : > { %v2316_v15 = vpop.f32.mrb[0].mxu1 }
 0x687   : > { %v2318_v16 = vpop.f32.mrb[1].mxu1 }
 0x688   : > { %v1884_v17 = vpop.f32.mrb[2].mxu1 }
 0x689   : > { %v2320_v18 = vpop.f32.mrb[3].mxu1 }
 0x696   : > { %v1891_v19 = vpop.f32.mrb[4].mxu1 }
 0x697   : > { %v987_v20 = vpop.f32.mrb[5].mxu1  ;;  %v1007_v21 = vsel %vm671_vm3, %v1891_v19, -inf }
 0x698   : > { %1008 = vmax.xlane.f32.xlu0 %v1007_v21  ;;  %v1892_v22 = vpop.f32.mrb[6].mxu1  ;;  %v1001_v26 = vsel %vm664_vm4, %v987_v20, -inf }
 0x699   : > { %v990_v24 = vpop.f32.mrb[7].mxu1 }
 0x69a   : > { %v1004_v25 = vsel %vm664_vm4, %v990_v24, -inf }
 0x69b   : > { %1005 = vmax.xlane.f32.xlu1 %v1004_v25 }
 0x69c   : > { %1002 = vmax.xlane.f32.xlu0 %v1001_v26 }
 0x6ac   : > { %1102 = vrot.lane.b32.xlu1 %v2233_v59, %s2103_s18 }
 0x6b0   : > { %1098 = vrot.lane.b32.xlu1 %v2235_v60, %s2104_s19 }
 0x6b2   : > { %1033 = vrot.lane.b32.xlu0 %v2233_v59, %s2102_s17 }
 0x6b6   : > { %1104 = vrot.lane.b32.xlu0 %v2230_v54, %s2103_s18  ;;  %s440_s18 = scalar_lea.vmem %s2487_s13, %s1961_s27 }
 0x6ba   : > { %1100 = vrot.lane.b32.xlu0 %v2246_v6, %s2104_s19 }
 0x725   : > { %v1009_v29 = vpop.xlane.xlu0 %1008 }
 0x726   : > { %v1012_v32 = vsub.f32 %v1891_v19, %v1009_v29 }
 0x728   : > { %v1017_v33 = vmul.f32 1.442695, %v1012_v32  ;;  %v1006_v34 = vpop.xlane.xlu1 %1005 }
 0x729   : > { %v1011_v35 = vsub.f32 %v990_v24, %v1006_v34  ;;  %v1003_v36 = vpop.xlane.xlu0 %1002 }
 0x72a   : > { %v1010_v37 = vsub.f32 %v987_v20, %v1003_v36  ;;  %2032 = vpow2.f32 %v1017_v33 }
 0x72b   : > { %v1015_v40 = vmul.f32 1.442695, %v1011_v35 }
 0x72c   : > { %v1013_v42 = vmul.f32 1.442695, %v1010_v37  ;;  %v1103_v6 = vpop.permute.xlu1 %1102 }
 0x72d   : > { %2034 = vpow2.f32 %v1015_v40  ;;  %v1034_v60 = vpop.permute.xlu0 %1033  ;;  %v1113_v49 = vsel %vm603_vm2, %v1103_v6, 0 }
 0x72e   : > { %2036 = vpow2.f32 %v1013_v42  ;;  %1893 = vmatprep.subr.bf16.mxu0 %v1034_v60  ;;  %v687_v42 = vsel %vm664_vm4, %v2267_v31, 0.0 }
 0x72f   : > { %1894 = vmatpush3.bf16.msra.mxu0 %v1034_v60  ;;  %v690_v60 = vsel %vm671_vm3, %v2263_v28, 0.0 }
 0x730   : > { %1895 = vmatprep.subr.bf16.mxu0 %v1045_v43  ;;  %v1099_v50 = vpop.permute.xlu1 %1098 }
 0x731   : > { %v1105_v51 = vpop.permute.xlu0 %1104 }
 0x732   : > { %v1116_v52 = vsel %vm603_vm2, %v1105_v51, 0 }
 0x733   : > { %1896 = vmatpush3.bf16.msra.mxu0 %v1045_v43 }
 0x734   : > { %1959 = vmatprep.subr.msk.bf16.mxu0 %vm603_vm2, %v1103_v6  ;;  %v2033_v44 = vpop.eup %2032 }
 0x735   : > { %v1032_v48 = vpack.c.bf16 %v2033_v44, %v2033_v44  ;;  %v1101_v53 = vpop.permute.xlu0 %1100  ;;  %v1025_v17 = vsel %vm671_vm3, %v2033_v44, 0.0 }
 0x737   : > { %v2035_v45 = vpop.eup %2034 }
 0x738   : > { %v2037_v46 = vpop.eup %2036 }
 0x739   : > { %v1031_v47 = vpack.c.bf16 %v2035_v45, %v2037_v46  ;;  %v1019_v13 = vsel %vm664_vm4, %v2037_v46, 0.0 }
 0x73b   : > { %1897 = vmatprep.mubr.msk.bf16.mxu0 %vm664_vm4, %v1031_v47 }
 0x73c   : > { %1898 = vmatmul.mubr.msk.bf16.vlgmr.msra.gmra.mrb[16].mxu0 %vm664_vm4, %v1032_v48 }
 0x73d   : > { %1902 = vmatpush3.bf16.xpose.msra.mxu0 %v1113_v49  ;;  %1905 = vmatprep.mubr.msk.bf16.mxu0 %vm603_vm2, %v1099_v50 }
 0x73e   : > { %1960 = vmatprep.subr.msk.bf16.mxu0 %vm603_vm2, %v1105_v51 }
 0x745   : > { %1904 = vmatpush3.bf16.xpose.msra.mxu0 %v1116_v52 }
 0x74c   : > { %1906 = vmatmul.mubr.msk.bf16.vlgmr.msra.gmra.mrb[20].mxu0 %vm603_vm2, %v1101_v53 }
 0x80f   : > { %v2340_v55 = vpop.f32.mrb[16].mxu0 }
 0x810   : > { %v2342_v56 = vpop.f32.mrb[17].mxu0 }
 0x811   : > { %v1900_v57 = vpop.f32.mrb[18].mxu0 }
 0x812   : > { %v2344_v58 = vpop.f32.mrb[19].mxu0 }
 0x81f   : > { %v1907_v61 = vpop.f32.mrb[20].mxu0 }
 0x820   : > { %v1152_v62 = vpop.f32.mrb[21].mxu0  ;;  %v1172_v63 = vsel %vm671_vm3, %v1907_v61, -inf }
 0x821   : > { %1173 = vmax.xlane.f32.xlu0 %v1172_v63  ;;  %v1908_v3 = vpop.f32.mrb[22].mxu0  ;;  %v1166_v8 = vsel %vm664_vm4, %v1152_v62, -inf }
 0x822   : > { %1167 = vmax.xlane.f32.xlu1 %v1166_v8  ;;  %v1155_v9 = vpop.f32.mrb[23].mxu0 }
 0x823   : > { %v1169_v10 = vsel %vm664_vm4, %v1155_v9, -inf }
 0x825   : > { %1170 = vmax.xlane.f32.xlu0 %v1169_v10 }
 0x833   : > { %1200 = vrot.lane.b32.xlu1 %v2230_v54, %s2105_s20  ;;  %v1022_v54 = vsel %vm664_vm4, %v2035_v45, 0.0 }
 0x83b   : > { %1198 = vrot.lane.b32.xlu0 %v2233_v59, %s2105_s20 }
 0x857   : > { %855 = vadd.xlane.f32.xlu1 %v854_v11 }
 0x85a   : > { %858 = vadd.xlane.f32.xlu0 %v857_v12 }
 0x85b   : > { %1020 = vadd.xlane.f32.xlu1 %v1019_v13 }
 0x85e   : > { %861 = vadd.xlane.f32.xlu0 %v860_v14 }
 0x85f   : > { %1026 = vadd.xlane.f32.xlu1 %v1025_v17 }
 0x862   : > { %1023 = vadd.xlane.f32.xlu0 %v1022_v54 }
 0x8ae   : > { %v1174_v59 = vpop.xlane.xlu0 %1173 }
 0x8af   : > { %v1177_v5 = vsub.f32 %v1907_v61, %v1174_v59  ;;  %v1168_v19 = vpop.xlane.xlu1 %1167 }
 0x8b0   : > { %v1175_v20 = vsub.f32 %v1152_v62, %v1168_v19 }
 0x8b1   : > { %v1182_v21 = vmul.f32 1.442695, %v1177_v5 }
 0x8b2   : > { %v1178_v7 = vmul.f32 1.442695, %v1175_v20  ;;  %v1171_v22 = vpop.xlane.xlu0 %1170 }
 0x8b3   : > { %v1176_v24 = vsub.f32 %v1155_v9, %v1171_v22  ;;  %v1201_v25 = vpop.permute.xlu1 %1200 }
 0x8b4   : > { %2038 = vpow2.f32 %v1178_v7  ;;  %v1210_v27 = vand.u32 %v1201_v25, %v2259_v23  ;;  %v684_v23 = vsel %vm664_vm4, %v2265_v30, 0.0 }
 0x8b5   : > { %v1180_v26 = vmul.f32 1.442695, %v1176_v24  ;;  %2040 = vpow2.f32 %v1182_v21 }
 0x8b6   : > { %v1199_v4 = vpop.permute.xlu0 %1198 }
 0x8b7   : > { %2042 = vpow2.f32 %v1180_v26  ;;  %1909 = vmatprep.subr.bf16.mxu1 %v1199_v4 }
 0x8b8   : > { %1910 = vmatpush3.bf16.msra.mxu1 %v1199_v4 }
 0x8b9   : > { %1911 = vmatprep.subr.bf16.mxu1 %v1210_v27 }
 0x8bc   : > { %1912 = vmatpush3.bf16.msra.mxu1 %v1210_v27 }
 0x8be   : > { %v2039_v29 = vpop.eup %2038 }
 0x8bf   : > { %v1184_v32 = vsel %vm664_vm4, %v2039_v29, 0.0  ;;  %v2041_v33 = vpop.eup %2040 }
 0x8c0   : > { %1185 = vadd.xlane.f32.xlu0 %v1184_v32  ;;  %v1190_v37 = vsel %vm671_vm3, %v2041_v33, 0.0  ;;  %v1197_v40 = vpack.c.bf16 %v2041_v33, %v2041_v33 }
 0x8c1   : > { %v2043_v34 = vpop.eup %2042 }
 0x8c2   : > { %v1187_v35 = vsel %vm664_vm4, %v2043_v34, 0.0  ;;  %v1196_v36 = vpack.c.bf16 %v2043_v34, %v2039_v29 }
 0x8c3   : > { %1188 = vadd.xlane.f32.xlu1 %v1187_v35 }
 0x8c4   : > { %1191 = vadd.xlane.f32.xlu0 %v1190_v37  ;;  %1913 = vmatprep.mubr.msk.bf16.mxu1 %vm664_vm4, %v1196_v36 }
 0x8c5   : > { %1914 = vmatmul.mubr.msk.bf16.vlgmr.msra.gmra.mrb[8].mxu1 %vm664_vm4, %v1197_v40 }
 0x8c7   : > { %685 = vadd.xlane.f32.xlu1 %v684_v23 }
 0x8c8   : > { %688 = vadd.xlane.f32.xlu0 %v687_v42 }
 0x8cb   : > { %691 = vadd.xlane.f32.xlu1 %v690_v60 }
 0x8e4   : > { %v856_v43 = vpop.xlane.xlu1 %855 }
 0x8e5   : > { %2044 = vrcp.f32 %v856_v43 }
 0x8e7   : > { %v859_v6 = vpop.xlane.xlu0 %858 }
 0x8e8   : > { %2046 = vrcp.f32 %v859_v6  ;;  %v1021_v44 = vpop.xlane.xlu1 %1020 }
 0x8eb   : > { %v862_v45 = vpop.xlane.xlu0 %861 }
 0x8ec   : > { %2048 = vrcp.f32 %v862_v45  ;;  %v1027_v30 = vpop.xlane.xlu1 %1026 }
 0x8ed   : > { %2050 = vrcp.f32 %v1021_v44 }
 0x8ef   : > { %v1024_v46 = vpop.xlane.xlu0 %1023  ;;  %v2045_v47 = vpop.eup %2044 }
 0x8f0   : > { %2052 = vrcp.f32 %v1024_v46  ;;  %v930_v31 = vmul.f32 %v2045_v47, %v2318_v16 }
 0x8f1   : > { %2054 = vrcp.f32 %v1027_v30 }
 0x8f2   : > { %v2047_v48 = vpop.eup %2046 }
 0x8f3   : > { %v931_v49 = vmul.f32 %v2047_v48, %v2320_v18 }
 0x8f5   : > { %v1985_v28 = vpack.i.bf16 %v931_v49, %v930_v31  ;;  %v1769_v31 = vld [vmem:[%s2480_s6] ss:$0 sm:$0xff] }
 0x8f6   : > { %v2049_v50 = vpop.eup %2048 }
 0x8f7   : > { %1986 = vrot.lane.b32.xlu0 %v1985_v28, %s2106_s21  ;;  %v932_v51 = vmul.f32 %v2049_v50, %v2316_v15  ;;  %v2051_v52 = vpop.eup %2050  ;;  %v2002_v15 = vld [vmem:[%s2479_s5] sm:$0xff]  }
 0x8f8   : > { %v1095_v57 = vmul.f32 %v2051_v52, %v2342_v56  ;;  %1917 = vmatprep.subr.bf16.mxu1 %v2002_v15  ;;  %v2003_v56 = vld [vmem:[%s2479_s5 + $0x8] sm:$0xff]  }
 0x8f9   : > { %1270 = vrot.lane.b32.xlu1 %v932_v51, %s2106_s21  ;;  %1918 = vmatpush3.bf16.msra.mxu1 %v2002_v15 }
 0x8fa   : > { %v2053_v53 = vpop.eup %2052  ;;  %1919 = vmatprep.subr.bf16.mxu1 %v2003_v56 }
 0x8fb   : > { %v1096_v61 = vmul.f32 %v2053_v53, %v2344_v58  ;;  %v2055_v63 = vpop.eup %2054 }
 0x8fc   : > { %v1097_v16 = vmul.f32 %v2055_v63, %v2340_v55 }
 0x8fd   : > { %v1990_v62 = vpack.i.bf16 %v1096_v61, %v1095_v57  ;;  %1920 = vmatpush3.bf16.msra.mxu1 %v2003_v56 }
 0x8ff   : > { %1991 = vrot.lane.b32.xlu1 %v1990_v62, %s2107_s22 }
 0x903   : > { %1282 = vrot.lane.b32.xlu1 %v1097_v16, %s2107_s22 }
 0x94d   : > { %v1186_v18 = vpop.xlane.xlu0 %1185 }
 0x950   : > { %v1189_v8 = vpop.xlane.xlu1 %1188 }
 0x951   : > { %v1192_v3 = vpop.xlane.xlu0 %1191 }
 0x952   : > { %2056 = vrcp.f32 %v1192_v3 }
 0x953   : > { %2058 = vrcp.f32 %v1186_v18 }
 0x954   : > { %2060 = vrcp.f32 %v1189_v8  ;;  %v686_v5 = vpop.xlane.xlu1 %685 }
 0x955   : > { %v689_v19 = vpop.xlane.xlu0 %688 }
 0x956   : > { %2062 = vrcp.f32 %v689_v19 }
 0x958   : > { %v692_v20 = vpop.xlane.xlu1 %691 }
 0x959   : > { %2064 = vrcp.f32 %v692_v20 }
 0x95a   : > { %2066 = vrcp.f32 %v686_v5 }
 0x95c   : > { %v2057_v55 = vpop.eup %2056 }
 0x95d   : > { %v2059_v11 = vpop.eup %2058 }
 0x95e   : > { %v2061_v13 = vpop.eup %2060 }
 0x960   : > { %v2063_v24 = vpop.eup %2062 }
 0x961   : > { %v764_v32 = vmul.f32 %v2063_v24, %v2284_v41 }
 0x963   : > { %v2065_v25 = vpop.eup %2064 }
 0x964   : > { %v2067_v4 = vpop.eup %2066  ;;  %v765_v33 = vmul.f32 %v2065_v25, %v2280_v38 }
 0x965   : > { %v763_v36 = vmul.f32 %v2067_v4, %v2282_v39 }
 0x969   : > { %v1987_v22 = vpop.permute.xlu0 %1986 }
 0x96a   : > { %v1989_v27 = vunpack.i.h.bf16 %v1987_v22  ;;  %v1988_v29 = vunpack.i.l.bf16 %v1987_v22 }
 0x96b   : > { %v1271_v21 = vpop.permute.xlu1 %1270 }
 0x96c   : > { %v1300_v40 = vsel %vm603_vm2, %v764_v32, %v1989_v27  ;;  %v1301_v23 = vsel %vm603_vm2, %v765_v33, %v1271_v21  ;;  %v1299_v60 = vsel %vm603_vm2, %v763_v36, %v1988_v29  ;;  %v1770_v27 = vld [vmem:[%s2481_s7] ss:$0 sm:$0xff] }
 0x96d   : > { %v1771_v36 = vld [vmem:[%s2482_s8] ss:$0 sm:$0xff] }
 0x971   : > { %v1992_v7 = vpop.permute.xlu1 %1991 }
 0x972   : > { %v1994_v34 = vunpack.i.h.bf16 %v1992_v7  ;;  %v1993_v35 = vunpack.i.l.bf16 %v1992_v7 }
 0x974   : > { %v1303_v41 = vsel %vm1302_vm6, %v1299_v60, %v1993_v35  ;;  %v1304_v45 = vsel %vm1302_vm6, %v1300_v40, %v1994_v34 }
 0x975   : > { %v1283_v26 = vpop.permute.xlu1 %1282 }
 0x976   : > { %v1305_v43 = vsel %vm1302_vm6, %v1301_v23, %v1283_v26 }
 0x998   : > { %v1915_v58 = vpop.f32.mrb[8].mxu1 }
 0x999   : > { %v1262_v9 = vmul.f32 %v2057_v55, %v1915_v58  ;;  %v1246_v10 = vpop.f32.mrb[9].mxu1 }
 0x99a   : > { %v1916_v12 = vpop.f32.mrb[10].mxu1  ;;  %v1260_v17 = vmul.f32 %v2059_v11, %v1246_v10 }
 0x99b   : > { %v1249_v14 = vpop.f32.mrb[11].mxu1  ;;  %1294 = vrot.lane.b32.xlu1 %v1262_v9, %s2108_s30 }
 0x99c   : > { %v1261_v54 = vmul.f32 %v2061_v13, %v1249_v14 }
 0x99e   : > { %v1995_v59 = vpack.i.bf16 %v1261_v54, %v1260_v17  ;;  %v2004_v17 = vld [vmem:[%s2483_s9] sm:$0xff]   ;;  %v2005_v54 = vld [vmem:[%s2483_s9 + $0x8] sm:$0xff]  }
 0x99f   : > { %1925 = vmatprep.subr.bf16.mxu0 %v2004_v17 }
 0x9a0   : > { %1996 = vrot.lane.b32.xlu0 %v1995_v59, %s2108_s30  ;;  %1926 = vmatpush3.bf16.msra.mxu0 %v2004_v17 }
 0x9a1   : > { %1927 = vmatprep.subr.bf16.mxu0 %v2005_v54 }
 0x9a4   : > { %1928 = vmatpush3.bf16.msra.mxu0 %v2005_v54 }
 0xa0d   : > { %v1295_v37 = vpop.permute.xlu1 %1294 }
 0xa0e   : > { %v1309_v38 = vsel %vm1306_vm7, %v1305_v43, %v1295_v37 }
 0xa0f   : > { %v1311_v39 = vpack.c.bf16 %v1309_v38, %v1309_v38  ;;  %v2009_v38 = vld [vmem:[%s2485_s11 + $0x18] sm:$0xff]  }
 0xa12   : > { %v1997_v42 = vpop.permute.xlu0 %1996 }
 0xa13   : > { %v1999_v6 = vunpack.i.h.bf16 %v1997_v42  ;;  %v1998_v44 = vunpack.i.l.bf16 %v1997_v42 }
 0xa15   : > { %v1307_v46 = vsel %vm1306_vm7, %v1303_v41, %v1998_v44  ;;  %v1308_v47 = vsel %vm1306_vm7, %v1304_v45, %v1999_v6  ;;  %v2006_v44 = vld [vmem:[%s2485_s11] sm:$0xff]   ;;  %v2007_v41 = vld [vmem:[%s2485_s11 + $0x8] sm:$0xff]   ;;  %v2008_v45 = vld [vmem:[%s2485_s11 + $0x10] sm:$0xff]  }
 0xa16   : > { %v1310_v30 = vpack.c.bf16 %v1308_v47, %v1307_v46  ;;  %1933 = vmatprep.subr.bf16.mxu1 %v2006_v44  ;;  %v2010_v46 = vld [vmem:[%s2485_s11 + $0x20] sm:$0xff]   ;;  %v2011_v47 = vld [vmem:[%s2485_s11 + $0x28] sm:$0xff]  }
 0xa18   : > { %1921 = vmatprep.mubr.msk.bf16.mxu1 %vm447_vm0, %v1310_v30  ;;  %v2012_v30 = vld [vmem:[%s2485_s11 + $0x30] sm:$0xff]  }
 0xa19   : > { %1922 = vmatmul.mubr.msk.bf16.vlgmr.msra.gmra.mrb[12].mxu1 %vm447_vm0, %v1311_v39  ;;  %v2013_v39 = vld [vmem:[%s2485_s11 + $0x38] sm:$0xff]  }
 0xa1a   : > { %1934 = vmatpush3.bf16.msra.mxu1 %v2006_v44 }
 0xa1b   : > { %1935 = vmatprep.subr.bf16.mxu1 %v2007_v41 }
 0xa1e   : > { %1936 = vmatpush3.bf16.msra.mxu1 %v2007_v41 }
 0xa1f   : > { %1937 = vmatprep.subr.bf16.mxu1 %v2008_v45 }
 0xa22   : > { %1938 = vmatpush3.bf16.msra.mxu1 %v2008_v45 }
 0xa23   : > { %1939 = vmatprep.subr.bf16.mxu1 %v2009_v38 }
 0xa26   : > { %1940 = vmatpush3.bf16.msra.mxu1 %v2009_v38 }
 0xa27   : > { %1941 = vmatprep.subr.bf16.mxu1 %v2010_v46 }
 0xa2a   : > { %1942 = vmatpush3.bf16.msra.mxu1 %v2010_v46 }
 0xa2b   : > { %1943 = vmatprep.subr.bf16.mxu1 %v2011_v47 }
 0xa2e   : > { %1944 = vmatpush3.bf16.msra.mxu1 %v2011_v47 }
 0xa2f   : > { %1945 = vmatprep.subr.bf16.mxu1 %v2012_v30 }
 0xa32   : > { %1946 = vmatpush3.bf16.msra.mxu1 %v2012_v30 }
 0xa33   : > { %1947 = vmatprep.subr.bf16.mxu1 %v2013_v39 }
 0xa36   : > { %1948 = vmatpush3.bf16.msra.mxu1 %v2013_v39 }
 0xaec   : > { %v1923_v48 = vpop.f32.mrb[12].mxu1 }
 0xaed   : > { %v1364_v49 = vpop.f32.mrb[13].mxu1  ;;  %v1380_v28 = vadd.f32 %v1923_v48, %v2197_v1  ;;  %v1772_v48 = vld [vmem:[%s2484_s10] ss:$0 sm:$0xff] }
 0xaee   : > { %v1378_v50 = vadd.f32 %v1364_v49, %v2195_v0  ;;  %v1924_v51 = vpop.f32.mrb[14].mxu1 }
 0xaef   : > { %v1367_v52 = vpop.f32.mrb[15].mxu1  ;;  %v2400_v61 = vadd.f32 %v1769_v31, %v1380_v28 }
 0xaf0   : > { %v2397_v53 = vadd.f32 %v1769_v31, %v1378_v50  ;;  %v1379_v57 = vadd.f32 %v1367_v52, %v2199_v2 }
 0xaf1   : > { %v1399_v0 = vsel %vm454_vm1, %v2400_v61, 0.0 }
 0xaf2   : > { %v2402_v62 = vadd.f32 %v1769_v31, %v1379_v57  ;;  %v1393_v63 = vsel %vm447_vm0, %v2397_v53, 0.0 }
 0xaf3   : > { %1394 = vadd.xlane.f32.xlu0 %v1393_v63 }
 0xaf4   : > { %v1396_v16 = vsel %vm447_vm0, %v2402_v62, 0.0 }
 0xaf5   : > { %1397 = vadd.xlane.f32.xlu1 %v1396_v16 }
 0xaf7   : > { %1400 = vadd.xlane.f32.xlu0 %v1399_v0 }
 0xb80   : > { %v1395_v1 = vpop.xlane.xlu0 %1394 }
 0xb81   : > { %v1402_v18 = vmul.f32 0.03125, %v1395_v1 }
 0xb82   : > { %v1398_v3 = vpop.xlane.xlu1 %1397 }
 0xb83   : > { %v1405_v2 = vsub.f32 %v2397_v53, %v1402_v18  ;;  %v1403_v8 = vmul.f32 0.03125, %v1398_v3 }
 0xb84   : > { %v1401_v15 = vpop.xlane.xlu0 %1400 }
 0xb85   : > { %v1406_v56 = vsub.f32 %v2402_v62, %v1403_v8  ;;  %v1404_v55 = vmul.f32 0.03125, %v1401_v15  ;;  %v1408_v58 = vmul.f32 %v1405_v2, %v1405_v2 }
 0xb87   : > { %v1407_v9 = vsub.f32 %v2400_v61, %v1404_v55  ;;  %v1411_v10 = vsel %vm447_vm0, %v1408_v58, 0.0  ;;  %v1409_v11 = vmul.f32 %v1406_v56, %v1406_v56 }
 0xb88   : > { %1412 = vadd.xlane.f32.xlu0 %v1411_v10 }
 0xb89   : > { %v1410_v12 = vmul.f32 %v1407_v9, %v1407_v9  ;;  %v1414_v14 = vsel %vm447_vm0, %v1409_v11, 0.0 }
 0xb8b   : > { %v1417_v13 = vsel %vm454_vm1, %v1410_v12, 0.0 }
 0xb8c   : > { %1418 = vadd.xlane.f32.xlu1 %v1417_v13  ;;  %1415 = vadd.xlane.f32.xlu0 %v1414_v14 }
 0xc15   : > { %v1413_v59 = vpop.xlane.xlu0 %1412 }
 0xc16   : > { %v1420_v5 = vmul.f32 0.03125, %v1413_v59  ;;  %v1780_v59 = vld [vmem:[%s2486_s12] ss:$0 sm:$0xff] }
 0xc18   : > { %v1423_v19 = vadd.f32 1e-05, %v1420_v5 }
 0xc19   : > { %v1416_v20 = vpop.xlane.xlu0 %1415  ;;  %v1419_v21 = vpop.xlane.xlu1 %1418 }
 0xc1a   : > { %2068 = vrsqrt.f32 %v1423_v19  ;;  %v1421_v7 = vmul.f32 0.03125, %v1416_v20  ;;  %v1422_v22 = vmul.f32 0.03125, %v1419_v21 }
 0xc1c   : > { %v1424_v24 = vadd.f32 1e-05, %v1421_v7  ;;  %v1425_v25 = vadd.f32 1e-05, %v1422_v22 }
 0xc1e   : > { %2070 = vrsqrt.f32 %v1424_v24 }
 0xc1f   : > { %2072 = vrsqrt.f32 %v1425_v25 }
 0xc24   : > { %v2069_v26 = vpop.eup %2068 }
 0xc25   : > { %v1429_v4 = vmul.f32 %v2069_v26, %v1405_v2 }
 0xc27   : > { %v1438_v34 = vmul.f32 %v1770_v27, %v1429_v4 }
 0xc28   : > { %v2071_v29 = vpop.eup %2070 }
 0xc29   : > { %v2073_v32 = vpop.eup %2072  ;;  %v1430_v33 = vmul.f32 %v2071_v29, %v1406_v56  ;;  %v1447_v23 = vadd.f32 %v1771_v36, %v1438_v34 }
 0xc2a   : > { %v1431_v35 = vmul.f32 %v2073_v32, %v1407_v9 }
 0xc2b   : > { %v1439_v37 = vmul.f32 %v1770_v27, %v1430_v33 }
 0xc2c   : > { %v1440_v40 = vmul.f32 %v1770_v27, %v1431_v35 }
 0xc2d   : > { %v1448_v42 = vadd.f32 %v1771_v36, %v1439_v37 }
 0xc2e   : > { %v1449_v60 = vadd.f32 %v1771_v36, %v1440_v40 }
 0xc2f   : > { %v1454_v43 = vpack.c.bf16 %v1448_v42, %v1447_v23 }
 0xc30   : > { %v1455_v6 = vpack.c.bf16 %v1449_v60, %v1449_v60 }
 0xc31   : > { %1929 = vmatprep.mubr.msk.bf16.mxu0 %vm447_vm0, %v1454_v43 }
 0xc32   : > { %1930 = vmatmul.mubr.msk.bf16.vlgmr.msra.gmra.mrb[24].mxu0 %vm447_vm0, %v1455_v6 }
 0xd05   : > { %v1931_v31 = vpop.f32.mrb[24].mxu0 }
 0xd06   : > { %v1524_v49 = vadd.f32 %v1931_v31, %v1772_v48  ;;  %v1515_v28 = vpop.f32.mrb[25].mxu0 }
 0xd07   : > { %v1516_v50 = vadd.f32 %v1772_v48, %v1515_v28  ;;  %v1932_v51 = vpop.f32.mrb[26].mxu0 }
 0xd08   : > { %v1779_v52 = vmul.f32 -1.702, %v1524_v49  ;;  %v1518_v57 = vpop.f32.mrb[27].mxu0 }
 0xd09   : > { %v1777_v63 = vmul.f32 -1.702, %v1516_v50  ;;  %v1519_v16 = vadd.f32 %v1772_v48, %v1518_v57 }
 0xd0a   : > { %v1539_v0 = vmul.f32 1.442695, %v1779_v52 }
 0xd0b   : > { %v1535_v1 = vmul.f32 1.442695, %v1777_v63  ;;  %v1778_v18 = vmul.f32 -1.702, %v1519_v16 }
 0xd0c   : > { %2074 = vpow2.f32 %v1539_v0 }
 0xd0d   : > { %2076 = vpow2.f32 %v1535_v1  ;;  %v1537_v3 = vmul.f32 1.442695, %v1778_v18 }
 0xd0f   : > { %2078 = vpow2.f32 %v1537_v3 }
 0xd16   : > { %v2075_v2 = vpop.eup %2074 }
 0xd17   : > { %v2077_v8 = vpop.eup %2076  ;;  %v1543_v15 = vadd.f32 1.0, %v2075_v2 }
 0xd18   : > { %v1541_v56 = vadd.f32 1.0, %v2077_v8 }
 0xd19   : > { %v2079_v55 = vpop.eup %2078  ;;  %2080 = vrcp.f32 %v1543_v15 }
 0xd1a   : > { %2082 = vrcp.f32 %v1541_v56  ;;  %v1542_v58 = vadd.f32 1.0, %v2079_v55 }
 0xd1c   : > { %2084 = vrcp.f32 %v1542_v58 }
 0xd23   : > { %v2081_v9 = vpop.eup %2080 }
 0xd24   : > { %v2083_v10 = vpop.eup %2082  ;;  %v1552_v12 = vmul.f32 %v2081_v9, %v1524_v49 }
 0xd25   : > { %v1550_v13 = vmul.f32 %v2083_v10, %v1516_v50 }
 0xd26   : > { %v2085_v11 = vpop.eup %2084  ;;  %v1570_v54 = vpack.c.bf16 %v1552_v12, %v1552_v12 }
 0xd27   : > { %v1551_v14 = vmul.f32 %v2085_v11, %v1519_v16 }
 0xd29   : > { %v1569_v17 = vpack.c.bf16 %v1551_v14, %v1550_v13 }
 0xd2b   : > { %1949 = vmatprep.mubr.bf16.mxu1 %v1569_v17 }
 0xd2c   : > { %1950 = vmatmul.mubr.bf16.vlgmr.msra.gmra.mrb[16].mxu1 %v1570_v54 }
 0xdff   : > { %v1951_v5 = vpop.f32.mrb[16].mxu1 }
 0xe00   : > { %v1669_v19 = vadd.f32 %v1951_v5, %v1780_v59  ;;  %v1660_v20 = vpop.f32.mrb[17].mxu1 }
 0xe01   : > { %v1661_v21 = vadd.f32 %v1780_v59, %v1660_v20  ;;  %v1952_v7 = vpop.f32.mrb[18].mxu1 }
 0xe02   : > { %v1676_v22 = vadd.f32 %v1669_v19, %v2400_v61  ;;  %v1663_v24 = vpop.f32.mrb[19].mxu1 }
 0xe03   : > { %v1674_v25 = vadd.f32 %v1661_v21, %v2397_v53  ;;  %v1664_v26 = vadd.f32 %v1780_v59, %v1663_v24 }
 0xe04   : > { %1679 = vst.msk [vmem:[%s440_s18 + $0x10] sm:$0x1] %vm454_vm1, %v1676_v22 }
 0xe05   : > { %1677 = vst.msk [vmem:[%s440_s18] sm:$0xff] %vm447_vm0, %v1674_v25  ;;  %v1675_v4 = vadd.f32 %v1664_v26, %v2402_v62 }
 0xe07   : > { %1678 = vst.msk [vmem:[%s440_s18 + $0x8] sm:$0xff] %vm447_vm0, %v1675_v4 }
 0xe08 PF: > { %s23_s25 = sadd.s32 1, %s2092_s25  }
 0xe09   : > { %p20_p4 = scmp.ge.s32.totalorder %s23_s25, 4  }
 0xe0b   :  { %22 = sbr.rel (!%p20_p4) target bundleno = 1 (0x1), region = 102 }

// kernel: bridger_vit_forward.63
= control target key start
LH: loop header
LB: loop body
LE: loop exit
PB: predicated region body
PF: predicated region fallthrough
CT: control target
= control target key end

     0   :  { %v112_v0 = vmov 0.0   ;;  %vm113_vm0 = vmmov 0   ;;  %vm41_vm1 = vcmask 261120   ;;  %vm86_vm2 = vcmask 130048   ;;  %s155_s1 = inlined_call_operand.vmem [shape: bf16[32,16], index: 1, kind: input, shape index: {}]   ;;  %s156_s0 = inlined_call_operand.vmem [shape: f32[16,32], index: 0, kind: input, shape index: {}]   ;;  %s157_s2 = inlined_call_operand.vmem [shape: f32[1,16], index: 2, kind: input, shape index: {}]   ;;  %s158_s3 = inlined_call_operand.vmem [shape: f32[16,16], index: 3, kind: output, shape index: {}]  }
   0x1   :  { %100 = vmatprep.subr.bf16.mxu0 %v112_v0  ;;  %v110_v1 = vld [vmem:[%s155_s1] sm:$0xff]   ;;  %104 = vmatprep.mubr.msk.bf16.mxu0 %vm113_vm0, %v112_v0  ;;  %v111_v2 = vld [vmem:[%s155_s1 + $0x8] sm:$0xff]  }
   0x2   :  { %101 = vmatpush3.bf16.msra.mxu0 %v110_v1  ;;  %v15_v3 = vld [vmem:[%s156_s0] sm:$0xff]  ;;  %v16_v4 = vld [vmem:[%s156_s0 + $0x8] sm:$0xff] }
   0x3   :  { %102 = vmatprep.subr.bf16.mxu0 %v112_v0  ;;  %v21_v5 = vpack.c.bf16 %v16_v4, %v15_v3  ;;  %v93_v6 = vld [vmem:[%s157_s2] ss:$0 sm:$0xff] }
   0x6   :  { %103 = vmatpush3.bf16.msra.mxu0 %v111_v2 }
   0x9   :  { %105 = vmatmul.mubr.msk.bf16.vlgmr.msra.gmra.mrb[0].mxu0 %vm41_vm1, %v21_v5 }
  0xdc   :  { %v79_v7 = vpop.f32.mrb[0].mxu0 }
  0xdd   :  { %v80_v8 = vadd.f32 %v93_v6, %v79_v7  ;;  %v106_v9 = vpop.f32.mrb[1].mxu0 }
  0xde   :  { %v82_v10 = vpop.f32.mrb[2].mxu0 }
  0xdf   :  { %87 = vst.msk [vmem:[%s158_s3] sm:$0xff] %vm86_vm2, %v80_v8  ;;  %v83_v11 = vadd.f32 %v93_v6, %v82_v10  ;;  %v107_v12 = vpop.f32.mrb[3].mxu0 }
  0xe1   :  { %88 = vst.msk [vmem:[%s158_s3 + $0x8] sm:$0xff] %vm86_vm2, %v83_v11 }

// kernel: bridger_vit_forward.66
= control target key start
LH: loop header
LB: loop body
LE: loop exit
PB: predicated region body
PF: predicated region fallthrough
CT: control target
= control target key end

     0   :  { %vm26_vm0 = vcmask 130048   ;;  %vm86_vm1 = vcmask 261120   ;;  %s150_s1 = inlined_call_operand.vmem [shape: bf16[16,32], index: 1, kind: input, shape index: {}]   ;;  %s151_s0 = inlined_call_operand.vmem [shape: f32[32,16], index: 0, kind: input, shape index: {}]   ;;  %s152_s2 = inlined_call_operand.vmem [shape: f32[32,32], index: 2, kind: output, shape index: {}]  }
   0x1   :  { %v107_v0 = vld [vmem:[%s150_s1] sm:$0xff]   ;;  %v13_v2 = vld [vmem:[%s151_s0 + $0x8] sm:$0xff]  ;;  %v14_v3 = vld [vmem:[%s151_s0 + $0x10] sm:$0xff] }
   0x2   :  { %v12_v1 = vld [vmem:[%s151_s0] sm:$0xff]  ;;  %101 = vmatprep.subr.bf16.mxu0 %v107_v0  ;;  %v15_v5 = vld [vmem:[%s151_s0 + $0x18] sm:$0xff] }
   0x3   :  { %v18_v4 = vpack.c.bf16 %v13_v2, %v12_v1  ;;  %102 = vmatpush3.bf16.msra.mxu0 %v107_v0  ;;  %v19_v6 = vpack.c.bf16 %v15_v5, %v14_v3 }
   0x5   :  { %103 = vmatprep.mubr.msk.bf16.mxu0 %vm26_vm0, %v18_v4 }
   0x6   :  { %104 = vmatmul.mubr.msk.bf16.vlgmr.msra.gmra.mrb[0].mxu0 %vm26_vm0, %v19_v6 }
  0xd9   :  { %v105_v7 = vpop.f32.mrb[0].mxu0 }
  0xda   :  { %v84_v8 = vmax.f32 %v105_v7, 0.0  ;;  %v67_v9 = vpop.f32.mrb[1].mxu0 }
  0xdb   :  { %v82_v10 = vmax.f32 %v67_v9, 0.0  ;;  %v106_v11 = vpop.f32.mrb[2].mxu0 }
  0xdc   :  { %89 = vst.msk [vmem:[%s152_s2 + $0x10] sm:$0xff] %vm86_vm1, %v84_v8  ;;  %v85_v12 = vmax.f32 %v106_v11, 0.0  ;;  %v70_v13 = vpop.f32.mrb[3].mxu0 }
  0xdd   :  { %87 = vst.msk [vmem:[%s152_s2] sm:$0xff] %vm86_vm1, %v82_v10  ;;  %v83_v14 = vmax.f32 %v70_v13, 0.0 }
  0xde   :  { %90 = vst.msk [vmem:[%s152_s2 + $0x18] sm:$0xff] %vm86_vm1, %v85_v12 }
  0xdf   :  { %88 = vst.msk [vmem:[%s152_s2 + $0x8] sm:$0xff] %vm86_vm1, %v83_v14 }

// kernel: bridger_vit_forward.55
= control target key start
LH: loop header
LB: loop body
LE: loop exit
PB: predicated region body
PF: predicated region fallthrough
CT: control target
= control target key end

     0   :  { %s1669_s25 = smov 0   ;;  %s1859_s0 = inlined_call_operand.vmem [shape: f32[2,8,32], index: 0, kind: input, shape index: {}]   ;;  %s1860_s1 = inlined_call_operand.vmem [shape: f32[1,32], index: 1, kind: input, shape index: {}]   ;;  %s1861_s2 = inlined_call_operand.vmem [shape: f32[1,32], index: 2, kind: input, shape index: {}]   ;;  %s1862_s3 = inlined_call_operand.vmem [shape: bf16[32,96], index: 3, kind: input, shape index: {}]   ;;  %s1863_s4 = inlined_call_operand.vmem [shape: f32[1,96], index: 4, kind: input, shape index: {}]   ;;  %s1864_s5 = inlined_call_operand.vmem [shape: bf16[32,32], index: 5, kind: input, shape index: {}]   ;;  %s1865_s6 = inlined_call_operand.vmem [shape: f32[1,32], index: 6, kind: input, shape index: {}]   ;;  %s1866_s7 = inlined_call_operand.vmem [shape: f32[1,32], index: 7, kind: input, shape index: {}]   ;;  %s1867_s8 = inlined_call_operand.vmem [shape: f32[1,32], index: 8, kind: input, shape index: {}]   ;;  %s1868_s9 = inlined_call_operand.vmem [shape: bf16[32,128], index: 9, kind: input, shape index: {}]   ;;  %s1869_s10 = inlined_call_operand.vmem [shape: f32[1,128], index: 10, kind: input, shape index: {}]   ;;  %s1870_s11 = inlined_call_operand.vmem [shape: bf16[128,32], index: 11, kind: input, shape index: {}]   ;;  %s1871_s12 = inlined_call_operand.vmem [shape: f32[1,32], index: 12, kind: input, shape index: {}]   ;;  %s1872_s13 = inlined_call_operand.vmem [shape: f32[2,8,32], index: 13, kind: output, shape index: {}]  }
   0x1 LB: > { %s1344_s26 = sadd.s32 4294967295, %s1581_s25   ;;  %p1348_p0 = scmp.ge.s32.totalorder %s1581_s25, 1  ;;  %s1581_s25 = sphi %s1669_s25, %s23_s25  }
   0x2   : > { %p386_p1 = scmp.lt.s32.totalorder %s1581_s25, 3 }
   0x4   : > { %p387_p2 = pnand %p1348_p0, %p386_p1 }
   0x5   : > { %p428_p3 = scmp.lt.s32.totalorder (!%p387_p2), %s1344_s26, 1  ;;  %vm440_vm0 = vcmask (!%p387_p2), 261120   ;;  %v1537_v7 = vld [vmem:[%s1862_s3] sm:$0xff] (!%p387_p2)   ;;  %v1583_v8 = vmov (!%p387_p2), 0.0   ;;  %vm1584_vm1 = vmmov (!%p387_p2), 0   ;;  %v1538_v9 = vld [vmem:[%s1862_s3 + $0x8] sm:$0xff] (!%p387_p2)   ;;  %v540_v40 = vlaneseq (!%p387_p2) }
   0x6   : > { %390 = sbr.rel (%p387_p2) target bundleno = 2432 (0x980), region = 72  ;;  %1421 = vmatprep.subr.bf16.mxu0 (!%p387_p2), %v1583_v8  ;;  %1425 = vmatprep.mubr.msk.bf16.mxu0 (!%p387_p2), %vm1584_vm1, %v1583_v8  ;;  %v1351_v14 = vld [vmem:[%s1860_s1] ss:$0 sm:$0xff] (!%p387_p2)  ;;  %s1585_s24 = smov (!%p387_p2), 96   ;;  %vm552_vm2 = vcmask (!%p387_p2), 64512   ;;  %vm615_vm4 = vcmask (!%p387_p2), 1043456  }
   0x7   : > { %1422 = vmatpush3.bf16.msra.mxu0 (!%p387_p2), %v1537_v7  ;;  %1441 = vmatprep.subr.bf16.mxu1 (!%p387_p2), %v1583_v8  ;;  %v1352_v16 = vld [vmem:[%s1861_s2] ss:$0 sm:$0xff] (!%p387_p2)  ;;  %s1586_s28 = smov (!%p387_p2), 120   ;;  %s1587_s29 = smov (!%p387_p2), 88   ;;  %v541_v41 = vshrl.u32 (!%p387_p2), %v540_v40, 7  ;;  %v543_v42 = vand.u32 (!%p387_p2), 127, %v540_v40 }
   0x8   : > { %1423 = vmatprep.subr.bf16.mxu0 (!%p387_p2), %v1583_v8  ;;  %1443 = vmatprep.mubr.msk.bf16.mxu1 (!%p387_p2), %vm1584_vm1, %v1583_v8  ;;  %v1353_v20 = vld [vmem:[%s1863_s4] ss:$0 sm:$0xff] (!%p387_p2)  ;;  %s1589_s14 = smov (!%p387_p2), 112   ;;  %s1590_s15 = smov (!%p387_p2), 72   ;;  %vm1004_vm5 = vcmask (!%p387_p2), 130048   ;;  %vm1006_vm6 = vcmask (!%p387_p2), 195584  }
   0x9   : > { %s1591_s16 = smov (!%p387_p2), 104   ;;  %vm544_vm3 = vcmp.gt.s32.totalorder (!%p387_p2), %v543_v42, %v541_v41  ;;  %s1592_s17 = smov (!%p387_p2), 64  }
   0xa   : > { %v545_v43 = vsel (!%p387_p2), %vm544_vm3, -1e+09, %v1583_v8  ;;  %s1593_s18 = smov (!%p387_p2), 56   ;;  %s1594_s19 = smov (!%p387_p2), 48  }
   0xb   : > { %1424 = vmatpush3.bf16.msra.mxu0 (!%p387_p2), %v1538_v9  ;;  %s1595_s20 = smov (!%p387_p2), 40   ;;  %s1596_s21 = smov (!%p387_p2), 8  }
   0xc   : > { %1429 = vmatprep.subr.bf16.mxu0 (!%p387_p2), %v1583_v8 }
   0xd   : > { %s1874_s26 = smov (!%p428_p3, %s1344_s26), 1 }
   0xe   : > { %s1349_s27 = sshll.u32 %s1874_s26, 3 }
   0xf   : > { %s431_s30 = scalar_lea.vmem %s1859_s0, %s1349_s27 }
  0x10   : > { %v1685_v0 = vld [vmem:[%s431_s30] sm:$0xff]  ;;  %s1588_s30 = smov 80  }
  0x11   : > { %v441_v1 = vsel %vm440_vm0, %v1685_v0, 0.0 }
  0x12   : > { %442 = vadd.xlane.f32.xlu0 %v441_v1 }
  0x9f   : > { %v443_v2 = vpop.xlane.xlu0 %442 }
  0xa0   : > { %v445_v3 = vmul.f32 0.03125, %v443_v2 }
  0xa2   : > { %v446_v4 = vsub.f32 %v1685_v0, %v445_v3 }
  0xa4   : > { %v447_v5 = vmul.f32 %v446_v4, %v446_v4 }
  0xa6   : > { %v448_v6 = vsel %vm440_vm0, %v447_v5, 0.0 }
  0xa7   : > { %449 = vadd.xlane.f32.xlu0 %v448_v6 }
 0x134   : > { %v450_v10 = vpop.xlane.xlu0 %449 }
 0x135   : > { %v451_v11 = vmul.f32 0.03125, %v450_v10 }
 0x137   : > { %v452_v12 = vadd.f32 1e-05, %v451_v11 }
 0x139   : > { %1551 = vrsqrt.f32 %v452_v12 }
 0x143   : > { %v1552_v13 = vpop.eup %1551 }
 0x144   : > { %v454_v15 = vmul.f32 %v1552_v13, %v446_v4 }
 0x146   : > { %v461_v17 = vmul.f32 %v1351_v14, %v454_v15 }
 0x148   : > { %v468_v18 = vadd.f32 %v1352_v16, %v461_v17 }
 0x14a   : > { %v473_v19 = vpack.c.bf16 %v468_v18, %v468_v18 }
 0x14c   : > { %1426 = vmatmul.mubr.msk.bf16.vlgmr.msra.gmra.mrb[0].mxu0 %vm440_vm0, %v473_v19 }
 0x14d   : > { %1431 = vmatprep.mubr.msk.bf16.mxu0 %vm1584_vm1, %v1583_v8 }
 0x21f   : > { %v530_v21 = vpop.f32.mrb[0].mxu0 }
 0x220   : > { %v531_v22 = vadd.f32 %v1353_v20, %v530_v21  ;;  %v1427_v23 = vpop.f32.mrb[1].mxu0 }
 0x221   : > { %v533_v24 = vpop.f32.mrb[2].mxu0 }
 0x222   : > { %v546_v25 = vmul.f32 0.35355338, %v531_v22  ;;  %v1717_v26 = vpack.c.bf16 %v531_v22, %v531_v22  ;;  %v1428_v27 = vpop.f32.mrb[3].mxu0 }
 0x224   : > { %v547_v28 = vpack.c.bf16 %v546_v25, %v546_v25  ;;  %550 = vrot.lane.b32.xlu1 %v1717_v26, %s1585_s24 }
 0x226   : > { %661 = vrot.lane.b32.xlu0 %v547_v28, %s1586_s28 }
 0x228   : > { %663 = vrot.lane.b32.xlu1 %v1717_v26, %s1587_s29  ;;  %s1597_s29 = smov 16  }
 0x22c   : > { %773 = vrot.lane.b32.xlu1 %v1717_v26, %s1588_s30  ;;  %s1598_s30 = smov 24  }
 0x230   : > { %771 = vrot.lane.b32.xlu1 %v547_v28, %s1589_s14 }
 0x234   : > { %883 = vrot.lane.b32.xlu1 %v1717_v26, %s1590_s15 }
 0x238   : > { %881 = vrot.lane.b32.xlu1 %v547_v28, %s1591_s16 }
 0x296   : > { %v551_v29 = vpop.permute.xlu1 %550 }
 0x297   : > { %v557_v30 = vsel %vm552_vm2, %v551_v29, 0 }
 0x298   : > { %1430 = vmatpush3.bf16.xpose.msra.mxu0 %v557_v30  ;;  %v662_v34 = vpop.permute.xlu0 %661 }
 0x299   : > { %1435 = vmatprep.subr.bf16.mxu0 %v1583_v8 }
 0x29a   : > { %v664_v31 = vpop.permute.xlu1 %663 }
 0x29b   : > { %v669_v32 = vsel %vm552_vm2, %v664_v31, 0 }
 0x29c   : > { %1442 = vmatpush3.bf16.xpose.msra.mxu1 %v669_v32 }
 0x29d   : > { %1453 = vmatprep.subr.bf16.mxu1 %v1583_v8 }
 0x29e   : > { %v774_v33 = vpop.permute.xlu1 %773 }
 0x29f   : > { %1432 = vmatmul.mubr.msk.bf16.vlgmr.msra.gmra.mrb[4].mxu0 %vm552_vm2, %v547_v28  ;;  %v779_v36 = vsel %vm552_vm2, %v774_v33, 0 }
 0x2a0   : > { %1437 = vmatprep.mubr.msk.bf16.mxu0 %vm1584_vm1, %v1583_v8 }
 0x2a2   : > { %v772_v35 = vpop.permute.xlu1 %771 }
 0x2a3   : > { %1444 = vmatmul.mubr.msk.bf16.vlgmr.msra.gmra.mrb[0].mxu1 %vm552_vm2, %v662_v34 }
 0x2a4   : > { %1454 = vmatpush3.bf16.xpose.msra.mxu1 %v779_v36  ;;  %1455 = vmatprep.mubr.msk.bf16.mxu1 %vm1584_vm1, %v1583_v8 }
 0x2a5   : > { %1465 = vmatprep.subr.bf16.mxu1 %v1583_v8 }
 0x2a6   : > { %v884_v37 = vpop.permute.xlu1 %883 }
 0x2a7   : > { %v889_v38 = vsel %vm552_vm2, %v884_v37, 0 }
 0x2aa   : > { %v882_v39 = vpop.permute.xlu1 %881 }
 0x2ab   : > { %1456 = vmatmul.mubr.msk.bf16.vlgmr.msra.gmra.mrb[4].mxu1 %vm552_vm2, %v772_v35 }
 0x2ac   : > { %1466 = vmatpush3.bf16.xpose.msra.mxu1 %v889_v38  ;;  %1467 = vmatprep.mubr.msk.bf16.mxu1 %vm1584_vm1, %v1583_v8 }
 0x2ad   : > { %1477 = vmatprep.subr.bf16.mxu1 %v1583_v8 }
 0x2b3   : > { %1468 = vmatmul.mubr.msk.bf16.vlgmr.msra.gmra.mrb[8].mxu1 %vm552_vm2, %v882_v39 }
 0x2b4   : > { %1481 = vmatprep.mubr.msk.bf16.mxu1 %vm1584_vm1, %v1583_v8 }
 0x372   : > { %v593_v44 = vpop.f32.mrb[4].mxu0 }
 0x373   : > { %v594_v45 = vadd.f32 %v593_v44, %v545_v43  ;;  %v1433_v46 = vpop.f32.mrb[5].mxu0 }
 0x374   : > { %v596_v47 = vpop.f32.mrb[6].mxu0 }
 0x375   : > { %v1434_v48 = vpop.f32.mrb[7].mxu0  ;;  %v599_v49 = vsel %vm552_vm2, %v594_v45, -inf }
 0x376   : > { %v705_v50 = vpop.f32.mrb[0].mxu1  ;;  %600 = vmax.xlane.f32.xlu1 %v599_v49 }
 0x377   : > { %v706_v51 = vadd.f32 %v705_v50, %v545_v43  ;;  %v1445_v52 = vpop.f32.mrb[1].mxu1  ;;  %v1539_v50 = vld [vmem:[%s1864_s5] sm:$0xff]  }
 0x378   : > { %v708_v53 = vpop.f32.mrb[2].mxu1  ;;  %1478 = vmatpush3.bf16.msra.mxu1 %v1539_v50  ;;  %v1540_v52 = vld [vmem:[%s1864_s5 + $0x8] sm:$0xff]  }
 0x379   : > { %v1446_v54 = vpop.f32.mrb[3].mxu1  ;;  %v711_v55 = vsel %vm552_vm2, %v706_v51, -inf  ;;  %1479 = vmatprep.subr.bf16.mxu1 %v1583_v8 }
 0x37a   : > { %712 = vmax.xlane.f32.xlu0 %v711_v55 }
 0x37c   : > { %1480 = vmatpush3.bf16.msra.mxu1 %v1540_v52 }
 0x37d   : > { %1493 = vmatprep.subr.bf16.mxu1 %v1583_v8 }
 0x37e   : > { %v815_v56 = vpop.f32.mrb[4].mxu1 }
 0x37f   : > { %v1457_v57 = vpop.f32.mrb[5].mxu1  ;;  %v816_v3 = vadd.f32 %v815_v56, %v545_v43 }
 0x380   : > { %v818_v58 = vpop.f32.mrb[6].mxu1 }
 0x381   : > { %v1458_v59 = vpop.f32.mrb[7].mxu1  ;;  %v821_v4 = vsel %vm552_vm2, %v816_v3, -inf }
 0x386   : > { %v925_v60 = vpop.f32.mrb[8].mxu1 }
 0x387   : > { %v926_v61 = vadd.f32 %v925_v60, %v545_v43  ;;  %v1469_v62 = vpop.f32.mrb[9].mxu1  ;;  %610 = vrot.lane.b32.xlu1 %v1717_v26, %s1592_s17 }
 0x388   : > { %v928_v63 = vpop.f32.mrb[10].mxu1 }
 0x389   : > { %v1470_v1 = vpop.f32.mrb[11].mxu1  ;;  %v931_v2 = vsel %vm552_vm2, %v926_v61, -inf }
 0x38a   : > { %932 = vmax.xlane.f32.xlu0 %v931_v2 }
 0x3a0   : > { %722 = vrot.lane.b32.xlu0 %v1717_v26, %s1593_s18  ;;  %s435_s18 = scalar_lea.vmem %s1872_s13, %s1349_s27 }
 0x3ab   : > { %822 = vmax.xlane.f32.xlu1 %v821_v4 }
 0x3bc   : > { %832 = vrot.lane.b32.xlu1 %v1717_v26, %s1594_s19 }
 0x3c0   : > { %942 = vrot.lane.b32.xlu1 %v1717_v26, %s1595_s20 }
 0x403   : > { %v601_v5 = vpop.xlane.xlu1 %600 }
 0x404   : > { %v602_v6 = vsub.f32 %v594_v45, %v601_v5 }
 0x406   : > { %v603_v7 = vmul.f32 1.442695, %v602_v6 }
 0x407   : > { %v713_v9 = vpop.xlane.xlu0 %712  ;;  %v611_v10 = vpop.permute.xlu1 %610 }
 0x408   : > { %1553 = vpow2.f32 %v603_v7  ;;  %v714_v11 = vsub.f32 %v706_v51, %v713_v9  ;;  %v617_v12 = vsel %vm615_vm4, %v611_v10, 0 }
 0x409   : > { %1436 = vmatpush3.bf16.msra.mxu0 %v617_v12 }
 0x40a   : > { %v715_v13 = vmul.f32 1.442695, %v714_v11  ;;  %1447 = vmatprep.subr.bf16.mxu0 %v1583_v8 }
 0x40c   : > { %1555 = vpow2.f32 %v715_v13 }
 0x412   : > { %v1554_v14 = vpop.eup %1553 }
 0x413   : > { %v609_v15 = vpack.c.bf16 %v1554_v14, %v1554_v14  ;;  %v605_v26 = vsel %vm552_vm2, %v1554_v14, 0.0  ;;  %v1368_v14 = vld [vmem:[%s1865_s6] ss:$0 sm:$0xff] }
 0x415   : > { %1438 = vmatmul.mubr.msk.bf16.vlgmr.msra.gmra.mrb[8].mxu0 %vm552_vm2, %v609_v15 }
 0x416   : > { %v1556_v16 = vpop.eup %1555  ;;  %1449 = vmatprep.mubr.msk.bf16.mxu0 %vm1584_vm1, %v1583_v8 }
 0x417   : > { %v933_v17 = vpop.xlane.xlu0 %932  ;;  %v717_v18 = vsel %vm552_vm2, %v1556_v16, 0.0  ;;  %v721_v23 = vpack.c.bf16 %v1556_v16, %v1556_v16 }
 0x418   : > { %v934_v19 = vsub.f32 %v926_v61, %v933_v17  ;;  %718 = vadd.xlane.f32.xlu0 %v717_v18 }
 0x41a   : > { %v935_v20 = vmul.f32 1.442695, %v934_v19 }
 0x41b   : > { %v723_v21 = vpop.permute.xlu0 %722 }
 0x41c   : > { %1557 = vpow2.f32 %v935_v20  ;;  %v728_v22 = vsel %vm615_vm4, %v723_v21, 0 }
 0x41d   : > { %1448 = vmatpush3.bf16.msra.mxu0 %v728_v22 }
 0x41e   : > { %1459 = vmatprep.subr.bf16.mxu0 %v1583_v8 }
 0x420   : > { %1450 = vmatmul.mubr.msk.bf16.vlgmr.msra.gmra.mrb[12].mxu0 %vm552_vm2, %v721_v23 }
 0x421   : > { %1461 = vmatprep.mubr.msk.bf16.mxu0 %vm1584_vm1, %v1583_v8 }
 0x426   : > { %v1558_v24 = vpop.eup %1557 }
 0x427   : > { %v937_v25 = vsel %vm552_vm2, %v1558_v24, 0.0  ;;  %v941_v37 = vpack.c.bf16 %v1558_v24, %v1558_v24 }
 0x428   : > { %938 = vadd.xlane.f32.xlu0 %v937_v25 }
 0x42c   : > { %606 = vadd.xlane.f32.xlu0 %v605_v26  ;;  %v1542_v26 = vld [vmem:[%s1868_s9 + $0x8] sm:$0xff]  }
 0x438   : > { %v823_v27 = vpop.xlane.xlu1 %822 }
 0x439   : > { %v824_v28 = vsub.f32 %v816_v3, %v823_v27 }
 0x43b   : > { %v825_v29 = vmul.f32 1.442695, %v824_v28 }
 0x43c   : > { %v833_v30 = vpop.permute.xlu1 %832 }
 0x43d   : > { %1559 = vpow2.f32 %v825_v29  ;;  %v838_v31 = vsel %vm615_vm4, %v833_v30, 0 }
 0x43e   : > { %1460 = vmatpush3.bf16.msra.mxu0 %v838_v31  ;;  %v1369_v31 = vld [vmem:[%s1866_s7] ss:$0 sm:$0xff] }
 0x43f   : > { %1471 = vmatprep.subr.bf16.mxu0 %v1583_v8 }
 0x440   : > { %v943_v33 = vpop.permute.xlu1 %942 }
 0x441   : > { %v948_v36 = vsel %vm615_vm4, %v943_v33, 0  ;;  %v1370_v33 = vld [vmem:[%s1867_s8] ss:$0 sm:$0xff] }
 0x447   : > { %v1560_v32 = vpop.eup %1559 }
 0x448   : > { %v827_v34 = vsel %vm552_vm2, %v1560_v32, 0.0  ;;  %v831_v35 = vpack.c.bf16 %v1560_v32, %v1560_v32 }
 0x449   : > { %828 = vadd.xlane.f32.xlu1 %v827_v34 }
 0x44a   : > { %1462 = vmatmul.mubr.msk.bf16.vlgmr.msra.gmra.mrb[16].mxu0 %vm552_vm2, %v831_v35 }
 0x44b   : > { %1472 = vmatpush3.bf16.msra.mxu0 %v948_v36  ;;  %1473 = vmatprep.mubr.msk.bf16.mxu0 %vm1584_vm1, %v1583_v8 }
 0x44c   : > { %1485 = vmatprep.subr.bf16.mxu0 %v1583_v8 }
 0x452   : > { %1474 = vmatmul.mubr.msk.bf16.vlgmr.msra.gmra.mrb[20].mxu0 %vm552_vm2, %v941_v37  ;;  %v1543_v37 = vld [vmem:[%s1870_s11] sm:$0xff]  }
 0x453   : > { %1489 = vmatprep.mubr.msk.bf16.mxu0 %vm1584_vm1, %v1583_v8 }
 0x4a5   : > { %v719_v38 = vpop.xlane.xlu0 %718 }
 0x4a6   : > { %1561 = vrcp.f32 %v719_v38  ;;  %v1544_v38 = vld [vmem:[%s1870_s11 + $0x8] sm:$0xff]  }
 0x4b0   : > { %v1562_v43 = vpop.eup %1561 }
 0x4b5   : > { %v939_v51 = vpop.xlane.xlu0 %938 }
 0x4b9   : > { %v607_v2 = vpop.xlane.xlu0 %606 }
 0x4d6   : > { %v829_v49 = vpop.xlane.xlu1 %828 }
 0x4d7   : > { %1563 = vrcp.f32 %v829_v49 }
 0x4d8   : > { %1565 = vrcp.f32 %v939_v51 }
 0x4d9   : > { %1567 = vrcp.f32 %v607_v2 }
 0x4e1   : > { %v1564_v53 = vpop.eup %1563 }
 0x4e2   : > { %v1566_v59 = vpop.eup %1565 }
 0x4e3   : > { %v1568_v3 = vpop.eup %1567 }
 0x4e8   : > { %v653_v39 = vpop.f32.mrb[8].mxu0 }
 0x4e9   : > { %v1439_v40 = vpop.f32.mrb[9].mxu0  ;;  %v659_v5 = vmul.f32 %v1568_v3, %v653_v39  ;;  %v1545_v39 = vld [vmem:[%s1870_s11 + $0x10] sm:$0xff]  }
 0x4ea   : > { %v656_v41 = vpop.f32.mrb[10].mxu0  ;;  %v1546_v40 = vld [vmem:[%s1870_s11 + $0x18] sm:$0xff]  }
 0x4eb   : > { %v1440_v42 = vpop.f32.mrb[11].mxu0  ;;  %v1547_v41 = vld [vmem:[%s1870_s11 + $0x20] sm:$0xff]  }
 0x4ec   : > { %v1548_v42 = vld [vmem:[%s1870_s11 + $0x28] sm:$0xff]  }
 0x4f3   : > { %v764_v44 = vpop.f32.mrb[12].mxu0 }
 0x4f4   : > { %v770_v45 = vmul.f32 %v1562_v43, %v764_v44  ;;  %v1451_v46 = vpop.f32.mrb[13].mxu0  ;;  %v1549_v43 = vld [vmem:[%s1870_s11 + $0x30] sm:$0xff]   ;;  %v1550_v44 = vld [vmem:[%s1870_s11 + $0x38] sm:$0xff]  }
 0x4f5   : > { %v767_v47 = vpop.f32.mrb[14].mxu0 }
 0x4f6   : > { %992 = vrot.lane.b32.xlu1 %v770_v45, %s1596_s21  ;;  %v1452_v48 = vpop.f32.mrb[15].mxu0  ;;  %v1371_v45 = vld [vmem:[%s1869_s10] ss:$0 sm:$0xff] }
 0x51d   : > { %v874_v54 = vpop.f32.mrb[16].mxu0 }
 0x51e   : > { %v880_v55 = vmul.f32 %v1564_v53, %v874_v54  ;;  %v1463_v56 = vpop.f32.mrb[17].mxu0 }
 0x51f   : > { %v877_v57 = vpop.f32.mrb[18].mxu0 }
 0x520   : > { %996 = vrot.lane.b32.xlu0 %v880_v55, %s1597_s29  ;;  %v1464_v58 = vpop.f32.mrb[19].mxu0  ;;  %v1376_v57 = vld [vmem:[%s1871_s12] ss:$0 sm:$0xff] }
 0x525   : > { %v984_v60 = vpop.f32.mrb[20].mxu0 }
 0x526   : > { %v990_v61 = vmul.f32 %v1566_v59, %v984_v60  ;;  %v1475_v62 = vpop.f32.mrb[21].mxu0 }
 0x527   : > { %v987_v63 = vpop.f32.mrb[22].mxu0 }
 0x528   : > { %1000 = vrot.lane.b32.xlu1 %v990_v61, %s1598_s30  ;;  %v1476_v1 = vpop.f32.mrb[23].mxu0 }
 0x568   : > { %v993_v4 = vpop.permute.xlu1 %992 }
 0x569   : > { %v1003_v7 = vsel %vm552_vm2, %v659_v5, %v993_v4 }
 0x592   : > { %v997_v6 = vpop.permute.xlu0 %996 }
 0x593   : > { %v1005_v9 = vsel %vm1004_vm5, %v1003_v7, %v997_v6 }
 0x59a   : > { %v1001_v10 = vpop.permute.xlu1 %1000 }
 0x59b   : > { %v1007_v11 = vsel %vm1006_vm6, %v1005_v9, %v1001_v10 }
 0x59c   : > { %v1008_v12 = vpack.c.bf16 %v1007_v11, %v1007_v11 }
 0x59e   : > { %1482 = vmatmul.mubr.msk.bf16.vlgmr.msra.gmra.mrb[12].mxu1 %vm440_vm0, %v1008_v12 }
 0x59f   : > { %1509 = vmatprep.mubr.msk.bf16.mxu1 %vm1584_vm1, %v1583_v8  ;;  %1494 = vmatpush3.bf16.msra.mxu1 %v1543_v37 }
 0x5a0   : > { %1495 = vmatprep.subr.bf16.mxu1 %v1583_v8 }
 0x5a3   : > { %1496 = vmatpush3.bf16.msra.mxu1 %v1544_v38 }
 0x5a4   : > { %1497 = vmatprep.subr.bf16.mxu1 %v1583_v8 }
 0x5a7   : > { %1498 = vmatpush3.bf16.msra.mxu1 %v1545_v39 }
 0x5a8   : > { %1499 = vmatprep.subr.bf16.mxu1 %v1583_v8 }
 0x5ab   : > { %1500 = vmatpush3.bf16.msra.mxu1 %v1546_v40 }
 0x5ac   : > { %1501 = vmatprep.subr.bf16.mxu1 %v1583_v8 }
 0x5af   : > { %1502 = vmatpush3.bf16.msra.mxu1 %v1547_v41 }
 0x5b0   : > { %1503 = vmatprep.subr.bf16.mxu1 %v1583_v8 }
 0x5b3   : > { %1504 = vmatpush3.bf16.msra.mxu1 %v1548_v42 }
 0x5b4   : > { %1505 = vmatprep.subr.bf16.mxu1 %v1583_v8 }
 0x5b7   : > { %1506 = vmatpush3.bf16.msra.mxu1 %v1549_v43 }
 0x5b8   : > { %1507 = vmatprep.subr.bf16.mxu1 %v1583_v8 }
 0x5bb   : > { %1508 = vmatpush3.bf16.msra.mxu1 %v1550_v44 }
 0x671   : > { %v1058_v13 = vpop.f32.mrb[12].mxu1 }
 0x672   : > { %v1064_v15 = vadd.f32 %v1058_v13, %v1685_v0  ;;  %v1483_v16 = vpop.f32.mrb[13].mxu1  ;;  %v1541_v0 = vld [vmem:[%s1868_s9] sm:$0xff]  }
 0x673   : > { %v1061_v17 = vpop.f32.mrb[14].mxu1  ;;  %1486 = vmatpush3.bf16.msra.mxu0 %v1541_v0 }
 0x674   : > { %v1792_v18 = vadd.f32 %v1368_v14, %v1064_v15  ;;  %v1484_v19 = vpop.f32.mrb[15].mxu1  ;;  %1487 = vmatprep.subr.bf16.mxu0 %v1583_v8 }
 0x676   : > { %v1075_v20 = vsel %vm440_vm0, %v1792_v18, 0.0 }
 0x677   : > { %1076 = vadd.xlane.f32.xlu1 %v1075_v20  ;;  %1488 = vmatpush3.bf16.msra.mxu0 %v1542_v26 }
 0x704   : > { %v1077_v21 = vpop.xlane.xlu1 %1076 }
 0x705   : > { %v1078_v22 = vmul.f32 0.03125, %v1077_v21 }
 0x707   : > { %v1079_v23 = vsub.f32 %v1792_v18, %v1078_v22 }
 0x709   : > { %v1080_v24 = vmul.f32 %v1079_v23, %v1079_v23 }
 0x70b   : > { %v1081_v25 = vsel %vm440_vm0, %v1080_v24, 0.0 }
 0x70c   : > { %1082 = vadd.xlane.f32.xlu0 %v1081_v25 }
 0x799   : > { %v1083_v27 = vpop.xlane.xlu0 %1082 }
 0x79a   : > { %v1084_v28 = vmul.f32 0.03125, %v1083_v27 }
 0x79c   : > { %v1085_v29 = vadd.f32 1e-05, %v1084_v28 }
 0x79e   : > { %1569 = vrsqrt.f32 %v1085_v29 }
 0x7a8   : > { %v1570_v30 = vpop.eup %1569 }
 0x7a9   : > { %v1087_v32 = vmul.f32 %v1570_v30, %v1079_v23 }
 0x7ab   : > { %v1094_v34 = vmul.f32 %v1369_v31, %v1087_v32 }
 0x7ad   : > { %v1101_v35 = vadd.f32 %v1370_v33, %v1094_v34 }
 0x7af   : > { %v1106_v36 = vpack.c.bf16 %v1101_v35, %v1101_v35 }
 0x7b1   : > { %1490 = vmatmul.mubr.msk.bf16.vlgmr.msra.gmra.mrb[24].mxu0 %vm440_vm0, %v1106_v36 }
 0x884   : > { %v1163_v46 = vpop.f32.mrb[24].mxu0 }
 0x885   : > { %v1164_v47 = vadd.f32 %v1371_v45, %v1163_v46  ;;  %v1491_v48 = vpop.f32.mrb[25].mxu0 }
 0x886   : > { %v1166_v49 = vpop.f32.mrb[26].mxu0 }
 0x887   : > { %v1375_v50 = vmul.f32 -1.702, %v1164_v47  ;;  %v1492_v51 = vpop.f32.mrb[27].mxu0 }
 0x889   : > { %v1171_v52 = vmul.f32 1.442695, %v1375_v50 }
 0x88b   : > { %1571 = vpow2.f32 %v1171_v52 }
 0x895   : > { %v1572_v53 = vpop.eup %1571 }
 0x896   : > { %v1173_v8 = vadd.f32 1.0, %v1572_v53 }
 0x898   : > { %1573 = vrcp.f32 %v1173_v8 }
 0x8a2   : > { %v1574_v54 = vpop.eup %1573 }
 0x8a3   : > { %v1176_v55 = vmul.f32 %v1574_v54, %v1164_v47 }
 0x8a5   : > { %v1193_v56 = vpack.c.bf16 %v1176_v55, %v1176_v55 }
 0x8a7   : > { %1510 = vmatmul.mubr.bf16.vlgmr.msra.gmra.mrb[16].mxu1 %v1193_v56 }
 0x97a   : > { %v1283_v58 = vpop.f32.mrb[16].mxu1 }
 0x97b   : > { %v1284_v59 = vadd.f32 %v1376_v57, %v1283_v58  ;;  %v1511_v60 = vpop.f32.mrb[17].mxu1 }
 0x97c   : > { %v1286_v61 = vpop.f32.mrb[18].mxu1 }
 0x97d   : > { %v1289_v62 = vadd.f32 %v1284_v59, %v1792_v18  ;;  %v1512_v63 = vpop.f32.mrb[19].mxu1 }
 0x97f   : > { %1290 = vst.msk [vmem:[%s435_s18] sm:$0xff] %vm440_vm0, %v1289_v62 }
 0x980 PF: > { %s23_s25 = sadd.s32 1, %s1581_s25  }
 0x981   : > { %p20_p4 = scmp.ge.s32.totalorder %s23_s25, 4  }
 0x983   :  { %22 = sbr.rel (!%p20_p4) target bundleno = 1 (0x1), region = 102 }

// kernel: bridger_vit_forward.64
= control target key start
LH: loop header
LB: loop body
LE: loop exit
PB: predicated region body
PF: predicated region fallthrough
CT: control target
= control target key end

     0   :  { %s2028_s27 = smov 0   ;;  %s2249_s0 = inlined_call_operand.vmem [shape: f32[2,16,16], index: 0, kind: input, shape index: {}]   ;;  %s2250_s1 = inlined_call_operand.vmem [shape: f32[2,8,16], index: 1, kind: input, shape index: {}]   ;;  %s2251_s2 = inlined_call_operand.vmem [shape: f32[1,16], index: 2, kind: input, shape index: {}]   ;;  %s2252_s3 = inlined_call_operand.vmem [shape: f32[1,16], index: 3, kind: input, shape index: {}]   ;;  %s2253_s4 = inlined_call_operand.vmem [shape: f32[1,16], index: 4, kind: input, shape index: {}]   ;;  %s2254_s5 = inlined_call_operand.vmem [shape: f32[1,16], index: 5, kind: input, shape index: {}]   ;;  %s2255_s6 = inlined_call_operand.vmem [shape: bf16[16,16], index: 6, kind: input, shape index: {}]   ;;  %s2256_s7 = inlined_call_operand.vmem [shape: f32[1,16], index: 7, kind: input, shape index: {}]   ;;  %s2257_s8 = inlined_call_operand.vmem [shape: bf16[16,32], index: 8, kind: input, shape index: {}]   ;;  %s2258_s9 = inlined_call_operand.vmem [shape: f32[1,32], index: 9, kind: input, shape index: {}]   ;;  %s2259_s10 = inlined_call_operand.vmem [shape: bf16[16,16], index: 10, kind: input, shape index: {}]   ;;  %s2260_s11 = inlined_call_operand.vmem [shape: f32[1,16], index: 11, kind: input, shape index: {}]   ;;  %s2261_s12 = inlined_call_operand.vmem [shape: f32[1,16], index: 12, kind: input, shape index: {}]   ;;  %s2262_s13 = inlined_call_operand.vmem [shape: f32[1,16], index: 13, kind: input, shape index: {}]   ;;  %s2263_s14 = inlined_call_operand.vmem [shape: bf16[16,64], index: 14, kind: input, shape index: {}]   ;;  %s2264_s15 = inlined_call_operand.vmem [shape: f32[1,64], index: 15, kind: input, shape index: {}]   ;;  %s2265_s16 = inlined_call_operand.vmem [shape: bf16[64,16], index: 16, kind: input, shape index: {}]   ;;  %s2266_s17 = inlined_call_operand.vmem [shape: f32[1,16], index: 17, kind: input, shape index: {}]   ;;  %s2267_s18 = inlined_call_operand.vmem [shape: f32[2,16,16], index: 18, kind: output, shape index: {}]  }
   0x1   :  { %2268 = sst [smem:[#allocation2_spill]] %s2249_s0 }
   0x2   :  { %2269 = sst [smem:[#allocation3_spill]] %s2250_s1 }
   0x3   :  { %2270 = sst [smem:[#allocation4_spill]] %s2251_s2 }
   0x4 LB: > { %s1659_s28 = sadd.s32 4294967295, %s1919_s27   ;;  %p1663_p0 = scmp.ge.s32.totalorder %s1919_s27, 1  ;;  %s1919_s27 = sphi %s2028_s27, %s28_s27  }
   0x5   : > { %p521_p1 = scmp.lt.s32.totalorder %s1919_s27, 3 }
   0x7   : > { %p522_p2 = pnand %p1663_p0, %p521_p1 }
   0x8   : > { %p579_p3 = scmp.lt.s32.totalorder (!%p522_p2), %s1659_s28, 1  ;;  %vm599_vm0 = vcmask (!%p522_p2), 130048   ;;  %s2271_s1 = sld [smem:[#allocation3_spill]] (!%p522_p2)  ;;  %v1855_v21 = vld [vmem:[%s2257_s8] sm:$0xff] (!%p522_p2)   ;;  %v1921_v22 = vmov (!%p522_p2), 0.0   ;;  %vm1922_vm1 = vmmov (!%p522_p2), 0  }
   0x9   : > { %525 = sbr.rel (%p522_p2) target bundleno = 2458 (0x99a), region = 92  ;;  %s2272_s2 = sld [smem:[#allocation2_spill]] (!%p522_p2)  ;;  %1742 = vmatprep.subr.bf16.mxu1 (!%p522_p2), %v1921_v22  ;;  %1736 = vmatprep.subr.bf16.mxu0 (!%p522_p2), %v1921_v22  ;;  %v1856_v23 = vld [vmem:[%s2255_s6] sm:$0xff] (!%p522_p2)   ;;  %vm797_vm2 = vcmask (!%p522_p2), 31744   ;;  %vm845_vm3 = vcmask (!%p522_p2), 64512   ;;  %vm873_vm4 = vcmask (!%p522_p2), 1043456  }
   0xa   : > { %1743 = vmatpush3.bf16.msra.mxu1 (!%p522_p2), %v1855_v21  ;;  %1744 = vmatprep.mubr.msk.bf16.mxu1 (!%p522_p2), %vm1922_vm1, %v1921_v22  ;;  %v1671_v34 = vld [vmem:[%s2253_s4] ss:$0 sm:$0xff] (!%p522_p2)  ;;  %s1923_s19 = smov (!%p522_p2), 124   ;;  %s1926_s21 = smov (!%p522_p2), 108   ;;  %vm1318_vm5 = vcmask (!%p522_p2), 97280   ;;  %vm1543_vm6 = vcmask (!%p522_p2), 523264  }
   0xb   : > { %1738 = vmatprep.mubr.msk.bf16.mxu0 (!%p522_p2), %vm1922_vm1, %v1921_v22  ;;  %1748 = vmatprep.subr.bf16.mxu1 (!%p522_p2), %v1921_v22  ;;  %v1672_v36 = vld [vmem:[%s2254_s5] ss:$0 sm:$0xff] (!%p522_p2)  ;;  %s1927_s22 = smov (!%p522_p2), 104   ;;  %s1930_s26 = smov (!%p522_p2), 4  }
   0xc   : > { %1737 = vmatpush3.bf16.msra.mxu0 (!%p522_p2), %v1856_v23  ;;  %v1670_v44 = vld [vmem:[%s2252_s3] ss:$0 sm:$0xff] (!%p522_p2)  ;;  %s1932_s0 = smov (!%p522_p2), 12  }
   0xd   : > { %1760 = vmatprep.subr.bf16.mxu0 (!%p522_p2), %v1921_v22  ;;  %v1676_v51 = vld [vmem:[%s2258_s9] ss:$0 sm:$0xff] (!%p522_p2) }
   0xe   : > { %v1673_v58 = vld [vmem:[%s2256_s7] ss:$0 sm:$0xff] (!%p522_p2) }
  0x10   : > { %s2275_s28 = smov (!%p579_p3, %s1659_s28), 1 }
  0x11   : > { %s1666_s29 = sshll.u32 %s2275_s28, 3  ;;  %s1705_s30 = sshll.u32 %s2275_s28, 4 }
  0x12   : > { %s587_s20 = scalar_lea.vmem %s2271_s1, %s1666_s29  ;;  %s583_s23 = scalar_lea.vmem %s2272_s2, %s1705_s30 }
  0x13   : > { %v596_v0 = vld [vmem:[%s587_s20] sm:$0xff]  ;;  %v2048_v1 = vld [vmem:[%s583_s23 + $0x8] sm:$0xff]  ;;  %s2273_s2 = sld [smem:[#allocation4_spill]]  ;;  %s1924_s1 = smov 116  }
  0x14   : > { %v2050_v2 = vld [vmem:[%s583_s23] sm:$0xff]  ;;  %v645_v3 = vsel %vm599_vm0, %v596_v0, 0.0  ;;  %v603_v4 = vsel %vm599_vm0, %v2048_v1, 0.0  ;;  %s1925_s20 = smov 120   ;;  %s1929_s23 = smov 100  }
  0x15   : > { %646 = vadd.xlane.f32.xlu0 %v645_v3  ;;  %604 = vadd.xlane.f32.xlu1 %v603_v4  ;;  %v600_v5 = vsel %vm599_vm0, %v2050_v2, 0.0  ;;  %s1931_s29 = smov 8  }
  0x19   : > { %601 = vadd.xlane.f32.xlu0 %v600_v5  ;;  %v1669_v39 = vld [vmem:[%s2273_s2] ss:$0 sm:$0xff]  ;;  %s1928_s2 = smov 112  }
  0xa2   : > { %v647_v6 = vpop.xlane.xlu0 %646  ;;  %v605_v7 = vpop.xlane.xlu1 %604 }
  0xa3   : > { %v648_v8 = vmul.f32 0.0625, %v647_v6  ;;  %v608_v9 = vmul.f32 0.0625, %v605_v7 }
  0xa5   : > { %v649_v10 = vsub.f32 %v596_v0, %v648_v8  ;;  %v610_v11 = vsub.f32 %v2048_v1, %v608_v9 }
  0xa6   : > { %v602_v12 = vpop.xlane.xlu0 %601 }
  0xa7   : > { %v607_v13 = vmul.f32 0.0625, %v602_v12  ;;  %v650_v14 = vmul.f32 %v649_v10, %v649_v10  ;;  %v612_v15 = vmul.f32 %v610_v11, %v610_v11 }
  0xa9   : > { %v609_v16 = vsub.f32 %v2050_v2, %v607_v13  ;;  %v651_v17 = vsel %vm599_vm0, %v650_v14, 0.0  ;;  %v616_v18 = vsel %vm599_vm0, %v612_v15, 0.0 }
  0xaa   : > { %652 = vadd.xlane.f32.xlu1 %v651_v17 }
  0xab   : > { %v611_v19 = vmul.f32 %v609_v16, %v609_v16 }
  0xad   : > { %v613_v20 = vsel %vm599_vm0, %v611_v19, 0.0 }
  0xae   : > { %617 = vadd.xlane.f32.xlu1 %v616_v18  ;;  %614 = vadd.xlane.f32.xlu0 %v613_v20 }
 0x137   : > { %v653_v24 = vpop.xlane.xlu1 %652 }
 0x138   : > { %v654_v25 = vmul.f32 0.0625, %v653_v24 }
 0x13a   : > { %v655_v26 = vadd.f32 1e-05, %v654_v25 }
 0x13b   : > { %v618_v27 = vpop.xlane.xlu1 %617  ;;  %v615_v28 = vpop.xlane.xlu0 %614 }
 0x13c   : > { %1863 = vrsqrt.f32 %v655_v26  ;;  %v620_v29 = vmul.f32 0.0625, %v618_v27  ;;  %v619_v30 = vmul.f32 0.0625, %v615_v28 }
 0x13e   : > { %v622_v31 = vadd.f32 1e-05, %v620_v29  ;;  %v621_v32 = vadd.f32 1e-05, %v619_v30 }
 0x140   : > { %1865 = vrsqrt.f32 %v622_v31 }
 0x141   : > { %1867 = vrsqrt.f32 %v621_v32 }
 0x146   : > { %v1864_v33 = vpop.eup %1863 }
 0x147   : > { %v657_v35 = vmul.f32 %v1864_v33, %v649_v10 }
 0x149   : > { %v664_v37 = vmul.f32 %v1671_v34, %v657_v35 }
 0x14a   : > { %v1866_v38 = vpop.eup %1865 }
 0x14b   : > { %v1868_v40 = vpop.eup %1867  ;;  %v626_v41 = vmul.f32 %v1866_v38, %v610_v11  ;;  %v671_v42 = vadd.f32 %v1672_v36, %v664_v37 }
 0x14c   : > { %v625_v43 = vmul.f32 %v1868_v40, %v609_v16 }
 0x14d   : > { %v734_v45 = vpack.c.bf16 %v671_v42, %v671_v42  ;;  %v634_v46 = vmul.f32 %v1669_v39, %v626_v41 }
 0x14e   : > { %v633_v47 = vmul.f32 %v1669_v39, %v625_v43 }
 0x14f   : > { %1745 = vmatmul.mubr.msk.bf16.vlgmr.msra.gmra.mrb[0].mxu1 %vm599_vm0, %v734_v45  ;;  %v642_v48 = vadd.f32 %v1670_v44, %v634_v46 }
 0x150   : > { %v641_v49 = vadd.f32 %v1670_v44, %v633_v47  ;;  %1750 = vmatprep.mubr.msk.bf16.mxu1 %vm1922_vm1, %v1921_v22 }
 0x152   : > { %v674_v50 = vpack.c.bf16 %v642_v48, %v641_v49 }
 0x154   : > { %1739 = vmatmul.mubr.msk.bf16.vlgmr.msra.gmra.mrb[0].mxu0 %vm599_vm0, %v674_v50 }
 0x155   : > { %1762 = vmatprep.mubr.msk.bf16.mxu0 %vm1922_vm1, %v1921_v22 }
 0x222   : > { %v785_v52 = vpop.f32.mrb[0].mxu1 }
 0x223   : > { %v786_v53 = vadd.f32 %v1676_v51, %v785_v52  ;;  %v1746_v54 = vpop.f32.mrb[1].mxu1 }
 0x224   : > { %v788_v55 = vpop.f32.mrb[2].mxu1 }
 0x225   : > { %v2097_v56 = vpack.c.bf16 %v786_v53, %v786_v53  ;;  %v1747_v57 = vpop.f32.mrb[3].mxu1 }
 0x227   : > { %v725_v59 = vpop.f32.mrb[0].mxu0  ;;  %923 = vrot.lane.b32.xlu0 %v2097_v56, %s1923_s19  ;;  %v802_v60 = vsel %vm797_vm2, %v2097_v56, 0 }
 0x228   : > { %v726_v61 = vadd.f32 %v1673_v58, %v725_v59  ;;  %v1740_v62 = vpop.f32.mrb[1].mxu0  ;;  %1749 = vmatpush3.bf16.xpose.msra.mxu1 %v802_v60 }
 0x229   : > { %v728_v63 = vpop.f32.mrb[2].mxu0  ;;  %1754 = vmatprep.subr.bf16.mxu1 %v1921_v22 }
 0x22a   : > { %v729_v0 = vadd.f32 %v1673_v58, %v728_v63  ;;  %v1741_v3 = vpop.f32.mrb[3].mxu0  ;;  %v793_v4 = vmul.f32 0.5, %v726_v61 }
 0x22b   : > { %1169 = vrot.lane.b32.xlu0 %v2097_v56, %s1924_s1 }
 0x22c   : > { %v794_v5 = vmul.f32 0.5, %v729_v0 }
 0x22e   : > { %v795_v6 = vpack.c.bf16 %v794_v5, %v793_v4 }
 0x230   : > { %921 = vrot.lane.b32.xlu1 %v795_v6, %s1923_s19  ;;  %1751 = vmatmul.mubr.msk.bf16.vlgmr.msra.gmra.mrb[4].mxu1 %vm797_vm2, %v795_v6 }
 0x231   : > { %1756 = vmatprep.mubr.msk.bf16.mxu1 %vm1922_vm1, %v1921_v22 }
 0x234   : > { %1046 = vrot.lane.b32.xlu1 %v2097_v56, %s1925_s20 }
 0x238   : > { %1044 = vrot.lane.b32.xlu1 %v795_v6, %s1925_s20 }
 0x23c   : > { %1167 = vrot.lane.b32.xlu1 %v795_v6, %s1924_s1 }
 0x299   : > { %v924_v7 = vpop.permute.xlu0 %923 }
 0x29a   : > { %v929_v8 = vsel %vm797_vm2, %v924_v7, 0 }
 0x29b   : > { %1761 = vmatpush3.bf16.xpose.msra.mxu0 %v929_v8 }
 0x29c   : > { %1772 = vmatprep.subr.bf16.mxu0 %v1921_v22 }
 0x29d   : > { %v1170_v12 = vpop.permute.xlu0 %1169 }
 0x29e   : > { %v1175_v14 = vsel %vm797_vm2, %v1170_v12, 0 }
 0x2a2   : > { %v922_v9 = vpop.permute.xlu1 %921 }
 0x2a3   : > { %1763 = vmatmul.mubr.msk.bf16.vlgmr.msra.gmra.mrb[4].mxu0 %vm797_vm2, %v922_v9 }
 0x2a4   : > { %1774 = vmatprep.mubr.msk.bf16.mxu0 %vm1922_vm1, %v1921_v22 }
 0x2a6   : > { %v1047_v10 = vpop.permute.xlu1 %1046 }
 0x2a7   : > { %v1052_v11 = vsel %vm797_vm2, %v1047_v10, 0 }
 0x2a8   : > { %1773 = vmatpush3.bf16.xpose.msra.mxu0 %v1052_v11 }
 0x2a9   : > { %1784 = vmatprep.subr.bf16.mxu0 %v1921_v22 }
 0x2aa   : > { %v1045_v13 = vpop.permute.xlu1 %1044 }
 0x2ae   : > { %v1168_v15 = vpop.permute.xlu1 %1167 }
 0x2af   : > { %1775 = vmatmul.mubr.msk.bf16.vlgmr.msra.gmra.mrb[8].mxu0 %vm797_vm2, %v1045_v13 }
 0x2b0   : > { %1785 = vmatpush3.bf16.xpose.msra.mxu0 %v1175_v14  ;;  %1786 = vmatprep.mubr.msk.bf16.mxu0 %vm1922_vm1, %v1921_v22 }
 0x2b1   : > { %1796 = vmatprep.subr.bf16.mxu0 %v1921_v22 }
 0x2b7   : > { %1787 = vmatmul.mubr.msk.bf16.vlgmr.msra.gmra.mrb[12].mxu0 %vm797_vm2, %v1168_v15 }
 0x2b8   : > { %1798 = vmatprep.mubr.msk.bf16.mxu0 %vm1922_vm1, %v1921_v22 }
 0x303   : > { %v838_v16 = vpop.f32.mrb[4].mxu1 }
 0x304   : > { %v1752_v17 = vpop.f32.mrb[5].mxu1  ;;  %v846_v18 = vsel %vm845_vm3, %v838_v16, -inf }
 0x305   : > { %847 = vmax.xlane.f32.xlu0 %v846_v18  ;;  %v841_v19 = vpop.f32.mrb[6].mxu1 }
 0x306   : > { %v1753_v20 = vpop.f32.mrb[7].mxu1  ;;  %v849_v21 = vsel %vm845_vm3, %v841_v19, -inf }
 0x307   : > { %850 = vmax.xlane.f32.xlu1 %v849_v21 }
 0x376   : > { %v965_v23 = vpop.f32.mrb[4].mxu0 }
 0x377   : > { %v1764_v24 = vpop.f32.mrb[5].mxu0  ;;  %v972_v25 = vsel %vm845_vm3, %v965_v23, -inf }
 0x378   : > { %973 = vmax.xlane.f32.xlu0 %v972_v25  ;;  %v968_v26 = vpop.f32.mrb[6].mxu0 }
 0x379   : > { %v1765_v27 = vpop.f32.mrb[7].mxu0  ;;  %v975_v28 = vsel %vm845_vm3, %v968_v26, -inf }
 0x37c   : > { %976 = vmax.xlane.f32.xlu0 %v975_v28 }
 0x382   : > { %v1088_v29 = vpop.f32.mrb[8].mxu0 }
 0x383   : > { %v1776_v30 = vpop.f32.mrb[9].mxu0  ;;  %v1095_v31 = vsel %vm845_vm3, %v1088_v29, -inf }
 0x384   : > { %1096 = vmax.xlane.f32.xlu0 %v1095_v31  ;;  %v1091_v32 = vpop.f32.mrb[10].mxu0 }
 0x385   : > { %v1777_v33 = vpop.f32.mrb[11].mxu0  ;;  %v1098_v34 = vsel %vm845_vm3, %v1091_v32, -inf }
 0x386   : > { %1099 = vmax.xlane.f32.xlu1 %v1098_v34 }
 0x38a   : > { %v1211_v35 = vpop.f32.mrb[12].mxu0 }
 0x38b   : > { %v1788_v36 = vpop.f32.mrb[13].mxu0  ;;  %v1218_v37 = vsel %vm845_vm3, %v1211_v35, -inf }
 0x38c   : > { %1219 = vmax.xlane.f32.xlu0 %v1218_v37  ;;  %v2133_v38 = vpop.f32.mrb[14].mxu0 }
 0x38d   : > { %v1789_v39 = vpop.f32.mrb[15].mxu0  ;;  %v1221_v49 = vsel %vm845_vm3, %v2133_v38, -inf }
 0x392   : > { %v848_v40 = vpop.xlane.xlu0 %847 }
 0x393   : > { %v852_v41 = vsub.f32 %v838_v16, %v848_v40 }
 0x394   : > { %v851_v42 = vpop.xlane.xlu1 %850 }
 0x395   : > { %v854_v43 = vmul.f32 1.442695, %v852_v41  ;;  %v853_v44 = vsub.f32 %v841_v19, %v851_v42 }
 0x397   : > { %v856_v45 = vmul.f32 1.442695, %v853_v44  ;;  %993 = vrot.lane.b32.xlu1 %v2097_v56, %s1926_s21  ;;  %1869 = vpow2.f32 %v854_v43 }
 0x399   : > { %1871 = vpow2.f32 %v856_v45 }
 0x39b   : > { %1116 = vrot.lane.b32.xlu1 %v2097_v56, %s1927_s22 }
 0x3a1   : > { %v2137_v46 = vpop.eup %1869 }
 0x3a2   : > { %868 = vrot.lane.b32.xlu0 %v2097_v56, %s1928_s2  ;;  %v858_v21 = vsel %vm845_vm3, %v2137_v46, 0.0 }
 0x3a3   : > { %v2140_v47 = vpop.eup %1871 }
 0x3a4   : > { %v866_v48 = vpack.c.bf16 %v2140_v47, %v2137_v46  ;;  %v861_v31 = vsel %vm845_vm3, %v2140_v47, 0.0 }
 0x3bf   : > { %1222 = vmax.xlane.f32.xlu1 %v1221_v49 }
 0x3d0   : > { %1239 = vrot.lane.b32.xlu1 %v2097_v56, %s1929_s23 }
 0x405   : > { %v974_v50 = vpop.xlane.xlu0 %973 }
 0x406   : > { %v978_v51 = vsub.f32 %v965_v23, %v974_v50 }
 0x408   : > { %v980_v52 = vmul.f32 1.442695, %v978_v51 }
 0x409   : > { %v977_v53 = vpop.xlane.xlu0 %976 }
 0x40a   : > { %1873 = vpow2.f32 %v980_v52  ;;  %v979_v54 = vsub.f32 %v968_v26, %v977_v53 }
 0x40c   : > { %v982_v55 = vmul.f32 1.442695, %v979_v54 }
 0x40e   : > { %1875 = vpow2.f32 %v982_v55 }
 0x411   : > { %v1097_v57 = vpop.xlane.xlu0 %1096 }
 0x412   : > { %v1101_v58 = vsub.f32 %v1088_v29, %v1097_v57 }
 0x413   : > { %v1100_v59 = vpop.xlane.xlu1 %1099 }
 0x414   : > { %v1874_v60 = vpop.eup %1873  ;;  %v1103_v61 = vmul.f32 1.442695, %v1101_v58  ;;  %v1102_v62 = vsub.f32 %v1091_v32, %v1100_v59 }
 0x415   : > { %v984_v63 = vsel %vm845_vm3, %v1874_v60, 0.0 }
 0x416   : > { %1877 = vpow2.f32 %v1103_v61  ;;  %v1105_v0 = vmul.f32 1.442695, %v1102_v62  ;;  %985 = vadd.xlane.f32.xlu0 %v984_v63 }
 0x417   : > { %v994_v10 = vpop.permute.xlu1 %993 }
 0x418   : > { %v1876_v56 = vpop.eup %1875  ;;  %1879 = vpow2.f32 %v1105_v0  ;;  %v999_v14 = vsel %vm873_vm4, %v994_v10, 0 }
 0x419   : > { %v1220_v3 = vpop.xlane.xlu0 %1219  ;;  %v987_v4 = vsel %vm845_vm3, %v1876_v56, 0.0  ;;  %v992_v5 = vpack.c.bf16 %v1876_v56, %v1874_v60 }
 0x41a   : > { %v1224_v6 = vsub.f32 %v1211_v35, %v1220_v3  ;;  %988 = vadd.xlane.f32.xlu1 %v987_v4 }
 0x41b   : > { %v1117_v17 = vpop.permute.xlu1 %1116 }
 0x41c   : > { %v1226_v7 = vmul.f32 1.442695, %v1224_v6  ;;  %v1122_v20 = vsel %vm873_vm4, %v1117_v17, 0 }
 0x41d   : > { %v869_v8 = vpop.permute.xlu0 %868 }
 0x41e   : > { %1881 = vpow2.f32 %v1226_v7  ;;  %v875_v9 = vsel %vm873_vm4, %v869_v8, 0 }
 0x41f   : > { %1755 = vmatpush3.bf16.msra.mxu1 %v875_v9 }
 0x420   : > { %v1878_v11 = vpop.eup %1877  ;;  %1766 = vmatprep.subr.bf16.mxu1 %v1921_v22 }
 0x421   : > { %v1107_v12 = vsel %vm845_vm3, %v1878_v11, 0.0 }
 0x422   : > { %v1880_v13 = vpop.eup %1879  ;;  %1108 = vadd.xlane.f32.xlu0 %v1107_v12  ;;  %1757 = vmatmul.mubr.msk.bf16.vlgmr.msra.gmra.mrb[8].mxu1 %vm845_vm3, %v866_v48  ;;  %v1857_v48 = vld [vmem:[%s2259_s10] sm:$0xff]  }
 0x423   : > { %1767 = vmatpush3.bf16.msra.mxu1 %v999_v14  ;;  %1768 = vmatprep.mubr.msk.bf16.mxu1 %vm1922_vm1, %v1921_v22  ;;  %v1115_v15 = vpack.c.bf16 %v1880_v13, %v1878_v11  ;;  %v1110_v16 = vsel %vm845_vm3, %v1880_v13, 0.0 }
 0x424   : > { %1778 = vmatprep.subr.bf16.mxu1 %v1921_v22  ;;  %1797 = vmatpush3.bf16.msra.mxu0 %v1857_v48 }
 0x425   : > { %1808 = vmatprep.subr.bf16.mxu0 %v1921_v22 }
 0x426   : > { %1111 = vadd.xlane.f32.xlu0 %v1110_v16 }
 0x428   : > { %v1882_v18 = vpop.eup %1881 }
 0x429   : > { %v1230_v19 = vsel %vm845_vm3, %v1882_v18, 0.0 }
 0x42a   : > { %1231 = vadd.xlane.f32.xlu0 %v1230_v19  ;;  %1769 = vmatmul.mubr.msk.bf16.vlgmr.msra.gmra.mrb[12].mxu1 %vm845_vm3, %v992_v5 }
 0x42b   : > { %1779 = vmatpush3.bf16.msra.mxu1 %v1122_v20  ;;  %1780 = vmatprep.mubr.msk.bf16.mxu1 %vm1922_vm1, %v1921_v22 }
 0x42c   : > { %1790 = vmatprep.subr.bf16.mxu1 %v1921_v22 }
 0x42e   : > { %859 = vadd.xlane.f32.xlu0 %v858_v21 }
 0x432   : > { %1781 = vmatmul.mubr.msk.bf16.vlgmr.msra.gmra.mrb[16].mxu1 %vm845_vm3, %v1115_v15 }
 0x433   : > { %1792 = vmatprep.mubr.msk.bf16.mxu1 %vm1922_vm1, %v1921_v22 }
 0x44c   : > { %v1223_v23 = vpop.xlane.xlu1 %1222 }
 0x44d   : > { %v1225_v24 = vsub.f32 %v2133_v38, %v1223_v23 }
 0x44f   : > { %v1228_v25 = vmul.f32 1.442695, %v1225_v24 }
 0x450   : > { %v1240_v26 = vpop.permute.xlu1 %1239 }
 0x451   : > { %1883 = vpow2.f32 %v1228_v25  ;;  %v1245_v27 = vsel %vm873_vm4, %v1240_v26, 0 }
 0x452   : > { %1791 = vmatpush3.bf16.msra.mxu1 %v1245_v27 }
 0x453   : > { %1802 = vmatprep.subr.bf16.mxu1 %v1921_v22 }
 0x45b   : > { %v1884_v28 = vpop.eup %1883 }
 0x45c   : > { %v1233_v29 = vsel %vm845_vm3, %v1884_v28, 0.0  ;;  %v1238_v30 = vpack.c.bf16 %v1884_v28, %v1882_v18 }
 0x45d   : > { %1234 = vadd.xlane.f32.xlu1 %v1233_v29 }
 0x45e   : > { %1793 = vmatmul.mubr.msk.bf16.vlgmr.msra.gmra.mrb[20].mxu1 %vm845_vm3, %v1238_v30 }
 0x45f   : > { %1804 = vmatprep.mubr.msk.bf16.mxu1 %vm1922_vm1, %v1921_v22 }
 0x461   : > { %862 = vadd.xlane.f32.xlu1 %v861_v31 }
 0x4a3   : > { %v986_v32 = vpop.xlane.xlu0 %985 }
 0x4a4   : > { %1885 = vrcp.f32 %v986_v32  ;;  %v1689_v32 = vld [vmem:[%s2260_s11] ss:$0 sm:$0xff] }
 0x4a7   : > { %v989_v33 = vpop.xlane.xlu1 %988 }
 0x4a8   : > { %1887 = vrcp.f32 %v989_v33 }
 0x4ae   : > { %v1886_v41 = vpop.eup %1885 }
 0x4af   : > { %v1109_v34 = vpop.xlane.xlu0 %1108 }
 0x4b0   : > { %1889 = vrcp.f32 %v1109_v34 }
 0x4b2   : > { %v1888_v43 = vpop.eup %1887 }
 0x4b3   : > { %v1112_v39 = vpop.xlane.xlu0 %1111 }
 0x4b4   : > { %1891 = vrcp.f32 %v1112_v39 }
 0x4b7   : > { %v1232_v60 = vpop.xlane.xlu0 %1231 }
 0x4b8   : > { %1893 = vrcp.f32 %v1232_v60  ;;  %v1690_v60 = vld [vmem:[%s2261_s12] ss:$0 sm:$0xff] }
 0x4ba   : > { %v1890_v51 = vpop.eup %1889 }
 0x4bb   : > { %v860_v9 = vpop.xlane.xlu0 %859 }
 0x4be   : > { %v1892_v53 = vpop.eup %1891 }
 0x4c2   : > { %v1894_v63 = vpop.eup %1893 }
 0x4ea   : > { %v1235_v61 = vpop.xlane.xlu1 %1234 }
 0x4eb   : > { %1895 = vrcp.f32 %v1235_v61 }
 0x4ee   : > { %v863_v8 = vpop.xlane.xlu1 %862 }
 0x4ef   : > { %1897 = vrcp.f32 %v863_v8  ;;  %v1861_v8 = vld [vmem:[%s2265_s16 + $0x10] sm:$0xff]  }
 0x4f0   : > { %1899 = vrcp.f32 %v860_v9  ;;  %v1862_v9 = vld [vmem:[%s2265_s16 + $0x18] sm:$0xff]  }
 0x4f5   : > { %v911_v35 = vpop.f32.mrb[8].mxu1  ;;  %v1896_v56 = vpop.eup %1895 }
 0x4f6   : > { %v1758_v36 = vpop.f32.mrb[9].mxu1 }
 0x4f7   : > { %v914_v37 = vpop.f32.mrb[10].mxu1 }
 0x4f8   : > { %v1759_v38 = vpop.f32.mrb[11].mxu1 }
 0x4f9   : > { %v1898_v12 = vpop.eup %1897 }
 0x4fa   : > { %v1900_v15 = vpop.eup %1899  ;;  %v919_v19 = vmul.f32 %v1898_v12, %v914_v37 }
 0x4fb   : > { %v918_v18 = vmul.f32 %v1900_v15, %v911_v35 }
 0x4fd   : > { %v1035_v40 = vpop.f32.mrb[12].mxu1 }
 0x4fe   : > { %v1770_v42 = vpop.f32.mrb[13].mxu1  ;;  %v1042_v45 = vmul.f32 %v1886_v41, %v1035_v40 }
 0x4ff   : > { %v1038_v44 = vpop.f32.mrb[14].mxu1 }
 0x500   : > { %v1043_v46 = vmul.f32 %v1888_v43, %v1038_v44  ;;  %v1771_v47 = vpop.f32.mrb[15].mxu1 }
 0x502   : > { %v1840_v49 = vpack.i.bf16 %v1043_v46, %v1042_v45 }
 0x504   : > { %1841 = vrot.lane.b32.xlu0 %v1840_v49, %s1930_s26 }
 0x505   : > { %v1158_v50 = vpop.f32.mrb[16].mxu1 }
 0x506   : > { %v1782_v52 = vpop.f32.mrb[17].mxu1  ;;  %v1165_v55 = vmul.f32 %v1890_v51, %v1158_v50  ;;  %v1858_v50 = vld [vmem:[%s2263_s14] sm:$0xff]  }
 0x507   : > { %v1161_v54 = vpop.f32.mrb[18].mxu1  ;;  %1803 = vmatpush3.bf16.msra.mxu1 %v1858_v50 }
 0x508   : > { %v1166_v57 = vmul.f32 %v1892_v53, %v1161_v54  ;;  %v1783_v58 = vpop.f32.mrb[19].mxu1 }
 0x50a   : > { %v1845_v59 = vpack.i.bf16 %v1166_v57, %v1165_v55 }
 0x50c   : > { %1846 = vrot.lane.b32.xlu1 %v1845_v59, %s1931_s29  ;;  %s592_s29 = scalar_lea.vmem %s2267_s18, %s1705_s30 }
 0x531   : > { %v1281_v62 = vpop.f32.mrb[20].mxu1 }
 0x532   : > { %v1794_v0 = vpop.f32.mrb[21].mxu1  ;;  %v1288_v4 = vmul.f32 %v1894_v63, %v1281_v62 }
 0x533   : > { %v1284_v3 = vpop.f32.mrb[22].mxu1  ;;  %v1691_v0 = vld [vmem:[%s2262_s13] ss:$0 sm:$0xff] }
 0x534   : > { %v1289_v5 = vmul.f32 %v1896_v56, %v1284_v3  ;;  %v1795_v6 = vpop.f32.mrb[23].mxu1 }
 0x535   : > { %v1859_v6 = vld [vmem:[%s2265_s16] sm:$0xff]  }
 0x536   : > { %v1850_v7 = vpack.i.bf16 %v1289_v5, %v1288_v4 }
 0x538   : > { %1851 = vrot.lane.b32.xlu1 %v1850_v7, %s1932_s0  ;;  %v1860_v7 = vld [vmem:[%s2265_s16 + $0x8] sm:$0xff]  }
 0x576   : > { %v1842_v10 = vpop.permute.xlu0 %1841 }
 0x577   : > { %v1844_v13 = vunpack.i.h.bf16 %v1842_v10  ;;  %v1843_v14 = vunpack.i.l.bf16 %v1842_v10  ;;  %v1692_v10 = vld [vmem:[%s2264_s15] ss:$0 sm:$0xff] }
 0x579   : > { %v1315_v21 = vsel %vm797_vm2, %v919_v19, %v1844_v13  ;;  %v1314_v23 = vsel %vm797_vm2, %v918_v18, %v1843_v14 }
 0x57e   : > { %v1847_v11 = vpop.permute.xlu1 %1846 }
 0x57f   : > { %v1849_v16 = vunpack.i.h.bf16 %v1847_v11  ;;  %v1848_v17 = vunpack.i.l.bf16 %v1847_v11 }
 0x581   : > { %v1316_v26 = vsel %vm845_vm3, %v1314_v23, %v1848_v17  ;;  %v1317_v27 = vsel %vm845_vm3, %v1315_v21, %v1849_v16 }
 0x5aa   : > { %v1852_v20 = vpop.permute.xlu1 %1851 }
 0x5ab   : > { %v1854_v24 = vunpack.i.h.bf16 %v1852_v20  ;;  %v1853_v25 = vunpack.i.l.bf16 %v1852_v20 }
 0x5ad   : > { %v1319_v28 = vsel %vm1318_vm5, %v1316_v26, %v1853_v25  ;;  %v1320_v29 = vsel %vm1318_vm5, %v1317_v27, %v1854_v24 }
 0x5ae   : > { %v1321_v30 = vpack.c.bf16 %v1320_v29, %v1319_v28 }
 0x5b0   : > { %1799 = vmatmul.mubr.msk.bf16.vlgmr.msra.gmra.mrb[16].mxu0 %vm599_vm0, %v1321_v30  ;;  %v1697_v30 = vld [vmem:[%s2266_s17] ss:$0 sm:$0xff] }
 0x5b1   : > { %1816 = vmatprep.mubr.msk.bf16.mxu0 %vm1922_vm1, %v1921_v22  ;;  %1809 = vmatpush3.bf16.msra.mxu0 %v1859_v6 }
 0x5b2   : > { %1810 = vmatprep.subr.bf16.mxu0 %v1921_v22 }
 0x5b5   : > { %1811 = vmatpush3.bf16.msra.mxu0 %v1860_v7 }
 0x5b6   : > { %1812 = vmatprep.subr.bf16.mxu0 %v1921_v22 }
 0x5b9   : > { %1813 = vmatpush3.bf16.msra.mxu0 %v1861_v8 }
 0x5ba   : > { %1814 = vmatprep.subr.bf16.mxu0 %v1921_v22 }
 0x5bd   : > { %1815 = vmatpush3.bf16.msra.mxu0 %v1862_v9 }
 0x683   : > { %v1365_v31 = vpop.f32.mrb[16].mxu0 }
 0x684   : > { %v1372_v33 = vadd.f32 %v1365_v31, %v2050_v2  ;;  %v1800_v34 = vpop.f32.mrb[17].mxu0 }
 0x685   : > { %v1368_v35 = vpop.f32.mrb[18].mxu0 }
 0x686   : > { %v2193_v36 = vadd.f32 %v1689_v32, %v1372_v33  ;;  %v1373_v37 = vadd.f32 %v1368_v35, %v2048_v1  ;;  %v1801_v38 = vpop.f32.mrb[19].mxu0 }
 0x688   : > { %v2196_v39 = vadd.f32 %v1689_v32, %v1373_v37  ;;  %v1385_v40 = vsel %vm599_vm0, %v2193_v36, 0.0 }
 0x689   : > { %1386 = vadd.xlane.f32.xlu1 %v1385_v40 }
 0x68a   : > { %v1388_v41 = vsel %vm599_vm0, %v2196_v39, 0.0 }
 0x68b   : > { %1389 = vadd.xlane.f32.xlu0 %v1388_v41 }
 0x716   : > { %v1387_v42 = vpop.xlane.xlu1 %1386 }
 0x717   : > { %v1391_v43 = vmul.f32 0.0625, %v1387_v42 }
 0x718   : > { %v1390_v2 = vpop.xlane.xlu0 %1389 }
 0x719   : > { %v1393_v44 = vsub.f32 %v2193_v36, %v1391_v43  ;;  %v1392_v45 = vmul.f32 0.0625, %v1390_v2 }
 0x71b   : > { %v1394_v46 = vsub.f32 %v2196_v39, %v1392_v45  ;;  %v1395_v1 = vmul.f32 %v1393_v44, %v1393_v44 }
 0x71d   : > { %v1397_v47 = vsel %vm599_vm0, %v1395_v1, 0.0  ;;  %v1396_v48 = vmul.f32 %v1394_v46, %v1394_v46 }
 0x71e   : > { %1398 = vadd.xlane.f32.xlu0 %v1397_v47 }
 0x71f   : > { %v1400_v49 = vsel %vm599_vm0, %v1396_v48, 0.0 }
 0x722   : > { %1401 = vadd.xlane.f32.xlu0 %v1400_v49 }
 0x7ab   : > { %v1399_v51 = vpop.xlane.xlu0 %1398 }
 0x7ac   : > { %v1403_v52 = vmul.f32 0.0625, %v1399_v51 }
 0x7ae   : > { %v1405_v53 = vadd.f32 1e-05, %v1403_v52 }
 0x7af   : > { %v1402_v54 = vpop.xlane.xlu0 %1401 }
 0x7b0   : > { %1901 = vrsqrt.f32 %v1405_v53  ;;  %v1404_v55 = vmul.f32 0.0625, %v1402_v54 }
 0x7b2   : > { %v1406_v57 = vadd.f32 1e-05, %v1404_v55 }
 0x7b4   : > { %1903 = vrsqrt.f32 %v1406_v57 }
 0x7ba   : > { %v1902_v58 = vpop.eup %1901 }
 0x7bb   : > { %v1409_v59 = vmul.f32 %v1902_v58, %v1393_v44 }
 0x7bd   : > { %v1417_v62 = vmul.f32 %v1690_v60, %v1409_v59 }
 0x7be   : > { %v1904_v61 = vpop.eup %1903 }
 0x7bf   : > { %v1410_v63 = vmul.f32 %v1904_v61, %v1394_v46  ;;  %v1425_v3 = vadd.f32 %v1691_v0, %v1417_v62 }
 0x7c1   : > { %v1418_v56 = vmul.f32 %v1690_v60, %v1410_v63 }
 0x7c3   : > { %v1426_v4 = vadd.f32 %v1691_v0, %v1418_v56 }
 0x7c5   : > { %v1429_v5 = vpack.c.bf16 %v1426_v4, %v1425_v3 }
 0x7c7   : > { %1805 = vmatmul.mubr.msk.bf16.vlgmr.msra.gmra.mrb[24].mxu1 %vm599_vm0, %v1429_v5 }
 0x89a   : > { %v1480_v11 = vpop.f32.mrb[24].mxu1 }
 0x89b   : > { %v1481_v12 = vadd.f32 %v1692_v10, %v1480_v11  ;;  %v1806_v13 = vpop.f32.mrb[25].mxu1 }
 0x89c   : > { %v1483_v14 = vpop.f32.mrb[26].mxu1 }
 0x89d   : > { %v1695_v15 = vmul.f32 -1.702, %v1481_v12  ;;  %v1484_v16 = vadd.f32 %v1692_v10, %v1483_v14  ;;  %v1807_v17 = vpop.f32.mrb[27].mxu1 }
 0x89f   : > { %v1491_v18 = vmul.f32 1.442695, %v1695_v15  ;;  %v1696_v19 = vmul.f32 -1.702, %v1484_v16 }
 0x8a1   : > { %1905 = vpow2.f32 %v1491_v18  ;;  %v1493_v22 = vmul.f32 1.442695, %v1696_v19 }
 0x8a3   : > { %1907 = vpow2.f32 %v1493_v22 }
 0x8ab   : > { %v1906_v20 = vpop.eup %1905 }
 0x8ac   : > { %v1495_v21 = vadd.f32 1.0, %v1906_v20 }
 0x8ad   : > { %v1908_v23 = vpop.eup %1907 }
 0x8ae   : > { %1909 = vrcp.f32 %v1495_v21  ;;  %v1496_v24 = vadd.f32 1.0, %v1908_v23 }
 0x8b0   : > { %1911 = vrcp.f32 %v1496_v24 }
 0x8b8   : > { %v1910_v25 = vpop.eup %1909 }
 0x8b9   : > { %v1501_v27 = vmul.f32 %v1910_v25, %v1481_v12 }
 0x8ba   : > { %v1912_v26 = vpop.eup %1911 }
 0x8bb   : > { %v1502_v28 = vmul.f32 %v1912_v26, %v1484_v16 }
 0x8bd   : > { %v1511_v29 = vpack.c.bf16 %v1502_v28, %v1501_v27 }
 0x8bf   : > { %1817 = vmatmul.mubr.msk.bf16.vlgmr.msra.gmra.mrb[20].mxu0 %vm1543_vm6, %v1511_v29 }
 0x992   : > { %v1581_v31 = vpop.f32.mrb[20].mxu0 }
 0x993   : > { %v1582_v32 = vadd.f32 %v1697_v30, %v1581_v31  ;;  %v1818_v33 = vpop.f32.mrb[21].mxu0 }
 0x994   : > { %v1584_v34 = vpop.f32.mrb[22].mxu0 }
 0x995   : > { %v1588_v35 = vadd.f32 %v1582_v32, %v2193_v36  ;;  %v1585_v37 = vadd.f32 %v1697_v30, %v1584_v34  ;;  %v1819_v38 = vpop.f32.mrb[23].mxu0 }
 0x997   : > { %1590 = vst.msk [vmem:[%s592_s29] sm:$0xff] %vm599_vm0, %v1588_v35  ;;  %v1589_v40 = vadd.f32 %v1585_v37, %v2196_v39 }
 0x999   : > { %1591 = vst.msk [vmem:[%s592_s29 + $0x8] sm:$0xff] %vm599_vm0, %v1589_v40 }
 0x99a PF: > { %s28_s27 = sadd.s32 1, %s1919_s27  }
 0x99b   : > { %p25_p4 = scmp.ge.s32.totalorder %s28_s27, 4  }
 0x99d   :  { %27 = sbr.rel (!%p25_p4) target bundleno = 4 (0x4), region = 125 }

// kernel: bridger_vit_forward.78
= control target key start
LH: loop header
LB: loop body
LE: loop exit
PB: predicated region body
PF: predicated region fallthrough
CT: control target
= control target key end

     0   :  { %vm20_vm0 = vcmask 130048   ;;  %s174_s0 = inlined_call_operand.vmem [shape: f32[32,16], index: 0, kind: input, shape index: {}]   ;;  %s175_s1 = inlined_call_operand.vmem [shape: f32[1,16], index: 1, kind: input, shape index: {}]   ;;  %s176_s2 = inlined_call_operand.vmem [shape: f32[1,16], index: 2, kind: input, shape index: {}]   ;;  %s177_s3 = inlined_call_operand.vmem [shape: f32[32,16], index: 3, kind: output, shape index: {}]  }
   0x1   :  { %v14_v0 = vld [vmem:[%s174_s0] sm:$0xff]  ;;  %v16_v1 = vld [vmem:[%s174_s0 + $0x10] sm:$0xff]  ;;  %v15_v2 = vld [vmem:[%s174_s0 + $0x8] sm:$0xff] }
   0x2   :  { %v21_v3 = vsel %vm20_vm0, %v14_v0, 0.0  ;;  %v27_v4 = vsel %vm20_vm0, %v16_v1, 0.0  ;;  %v17_v5 = vld [vmem:[%s174_s0 + $0x18] sm:$0xff]  ;;  %v24_v6 = vsel %vm20_vm0, %v15_v2, 0.0  ;;  %v102_v41 = vld [vmem:[%s175_s1] ss:$0 sm:$0xff] }
   0x3   :  { %22 = vadd.xlane.f32.xlu0 %v21_v3  ;;  %28 = vadd.xlane.f32.xlu1 %v27_v4  ;;  %v30_v7 = vsel %vm20_vm0, %v17_v5, 0.0  ;;  %v103_v43 = vld [vmem:[%s176_s2] ss:$0 sm:$0xff] }
   0x7   :  { %25 = vadd.xlane.f32.xlu0 %v24_v6  ;;  %31 = vadd.xlane.f32.xlu1 %v30_v7 }
  0x90   :  { %v23_v8 = vpop.xlane.xlu0 %22  ;;  %v29_v9 = vpop.xlane.xlu1 %28 }
  0x91   :  { %v34_v10 = vmul.f32 0.0625, %v23_v8  ;;  %v36_v11 = vmul.f32 0.0625, %v29_v9 }
  0x93   :  { %v38_v12 = vsub.f32 %v14_v0, %v34_v10  ;;  %v40_v13 = vsub.f32 %v16_v1, %v36_v11 }
  0x94   :  { %v26_v14 = vpop.xlane.xlu0 %25  ;;  %v32_v15 = vpop.xlane.xlu1 %31 }
  0x95   :  { %v35_v16 = vmul.f32 0.0625, %v26_v14  ;;  %v37_v17 = vmul.f32 0.0625, %v32_v15  ;;  %v42_v18 = vmul.f32 %v38_v12, %v38_v12  ;;  %v44_v19 = vmul.f32 %v40_v13, %v40_v13 }
  0x97   :  { %v39_v20 = vsub.f32 %v15_v2, %v35_v16  ;;  %v41_v21 = vsub.f32 %v17_v5, %v37_v17  ;;  %v46_v22 = vsel %vm20_vm0, %v42_v18, 0.0  ;;  %v52_v23 = vsel %vm20_vm0, %v44_v19, 0.0 }
  0x98   :  { %47 = vadd.xlane.f32.xlu0 %v46_v22 }
  0x99   :  { %v43_v24 = vmul.f32 %v39_v20, %v39_v20  ;;  %v45_v25 = vmul.f32 %v41_v21, %v41_v21 }
  0x9b   :  { %v49_v26 = vsel %vm20_vm0, %v43_v24, 0.0  ;;  %v55_v27 = vsel %vm20_vm0, %v45_v25, 0.0 }
  0x9c   :  { %53 = vadd.xlane.f32.xlu0 %v52_v23  ;;  %50 = vadd.xlane.f32.xlu1 %v49_v26 }
  0xa0   :  { %56 = vadd.xlane.f32.xlu1 %v55_v27 }
 0x125   :  { %v48_v28 = vpop.xlane.xlu0 %47 }
 0x126   :  { %v58_v29 = vmul.f32 0.0625, %v48_v28 }
 0x128   :  { %v62_v30 = vadd.f32 1e-05, %v58_v29 }
 0x129   :  { %v51_v31 = vpop.xlane.xlu1 %50  ;;  %v54_v32 = vpop.xlane.xlu0 %53 }
 0x12a   :  { %104 = vrsqrt.f32 %v62_v30  ;;  %v59_v33 = vmul.f32 0.0625, %v51_v31  ;;  %v60_v34 = vmul.f32 0.0625, %v54_v32 }
 0x12c   :  { %v63_v35 = vadd.f32 1e-05, %v59_v33  ;;  %v64_v36 = vadd.f32 1e-05, %v60_v34 }
 0x12d   :  { %v57_v37 = vpop.xlane.xlu1 %56 }
 0x12e   :  { %106 = vrsqrt.f32 %v63_v35  ;;  %v61_v38 = vmul.f32 0.0625, %v57_v37 }
 0x12f   :  { %108 = vrsqrt.f32 %v64_v36 }
 0x130   :  { %v65_v39 = vadd.f32 1e-05, %v61_v38 }
 0x132   :  { %110 = vrsqrt.f32 %v65_v39 }
 0x134   :  { %v105_v40 = vpop.eup %104 }
 0x135   :  { %v70_v42 = vmul.f32 %v105_v40, %v38_v12 }
 0x137   :  { %v80_v44 = vmul.f32 %v102_v41, %v70_v42 }
 0x138   :  { %v107_v45 = vpop.eup %106 }
 0x139   :  { %v109_v46 = vpop.eup %108  ;;  %v90_v47 = vadd.f32 %v103_v43, %v80_v44  ;;  %v71_v48 = vmul.f32 %v107_v45, %v39_v20 }
 0x13a   :  { %v72_v49 = vmul.f32 %v109_v46, %v40_v13 }
 0x13b   :  { %94 = vst.msk [vmem:[%s177_s3] sm:$0xff] %vm20_vm0, %v90_v47  ;;  %v81_v50 = vmul.f32 %v102_v41, %v71_v48 }
 0x13c   :  { %v111_v51 = vpop.eup %110  ;;  %v82_v52 = vmul.f32 %v102_v41, %v72_v49 }
 0x13d   :  { %v91_v53 = vadd.f32 %v103_v43, %v81_v50  ;;  %v73_v54 = vmul.f32 %v111_v51, %v41_v21 }
 0x13e   :  { %v92_v55 = vadd.f32 %v103_v43, %v82_v52 }
 0x13f   :  { %95 = vst.msk [vmem:[%s177_s3 + $0x8] sm:$0xff] %vm20_vm0, %v91_v53  ;;  %v83_v56 = vmul.f32 %v102_v41, %v73_v54 }
 0x140   :  { %96 = vst.msk [vmem:[%s177_s3 + $0x10] sm:$0xff] %vm20_vm0, %v92_v55 }
 0x141   :  { %v93_v57 = vadd.f32 %v103_v43, %v83_v56 }
 0x143   :  { %97 = vst.msk [vmem:[%s177_s3 + $0x18] sm:$0xff] %vm20_vm0, %v93_v57 }

// kernel: bridger_vit_forward.67
= control target key start
LH: loop header
LB: loop body
LE: loop exit
PB: predicated region body
PF: predicated region fallthrough
CT: control target
= control target key end

     0   :  { %v99_v0 = vmov 0.0   ;;  %vm100_vm0 = vmmov 0   ;;  %vm33_vm1 = vcmask 130048   ;;  %vm78_vm2 = vcmask 261120   ;;  %s139_s1 = inlined_call_operand.vmem [shape: bf16[16,32], index: 1, kind: input, shape index: {}]   ;;  %s140_s0 = inlined_call_operand.vmem [shape: f32[16,16], index: 0, kind: input, shape index: {}]   ;;  %s141_s2 = inlined_call_operand.vmem [shape: f32[1,32], index: 2, kind: input, shape index: {}]   ;;  %s142_s3 = inlined_call_operand.vmem [shape: f32[16,32], index: 3, kind: output, shape index: {}]  }
   0x1   :  { %90 = vmatprep.subr.bf16.mxu0 %v99_v0  ;;  %v98_v1 = vld [vmem:[%s139_s1] sm:$0xff]   ;;  %92 = vmatprep.mubr.msk.bf16.mxu0 %vm100_vm0, %v99_v0  ;;  %v16_v3 = vld [vmem:[%s140_s0 + $0x8] sm:$0xff] }
   0x2   :  { %v15_v2 = vld [vmem:[%s140_s0] sm:$0xff]  ;;  %91 = vmatpush3.bf16.msra.mxu0 %v98_v1 }
   0x3   :  { %v19_v4 = vpack.c.bf16 %v16_v3, %v15_v2  ;;  %v85_v5 = vld [vmem:[%s141_s2] ss:$0 sm:$0xff] }
   0x5   :  { %93 = vmatmul.mubr.msk.bf16.vlgmr.msra.gmra.mrb[0].mxu0 %vm33_vm1, %v19_v4 }
  0xd8   :  { %v71_v6 = vpop.f32.mrb[0].mxu0 }
  0xd9   :  { %v72_v7 = vadd.f32 %v85_v5, %v71_v6  ;;  %v94_v8 = vpop.f32.mrb[1].mxu0 }
  0xda   :  { %v74_v9 = vpop.f32.mrb[2].mxu0 }
  0xdb   :  { %79 = vst.msk [vmem:[%s142_s3] sm:$0xff] %vm78_vm2, %v72_v7  ;;  %v75_v10 = vadd.f32 %v85_v5, %v74_v9  ;;  %v95_v11 = vpop.f32.mrb[3].mxu0 }
  0xdd   :  { %80 = vst.msk [vmem:[%s142_s3 + $0x8] sm:$0xff] %vm78_vm2, %v75_v10 }

// kernel: bridger_vit_forward.100
= control target key start
LH: loop header
LB: loop body
LE: loop exit
PB: predicated region body
PF: predicated region fallthrough
CT: control target
= control target key end

     0   :  { %vm20_vm0 = vcmask 261120   ;;  %s174_s0 = inlined_call_operand.vmem [shape: f32[32,32], index: 0, kind: input, shape index: {}]   ;;  %s175_s1 = inlined_call_operand.vmem [shape: f32[1,32], index: 1, kind: input, shape index: {}]   ;;  %s176_s2 = inlined_call_operand.vmem [shape: f32[1,32], index: 2, kind: input, shape index: {}]   ;;  %s177_s3 = inlined_call_operand.vmem [shape: f32[32,32], index: 3, kind: output, shape index: {}]  }
   0x1   :  { %v14_v0 = vld [vmem:[%s174_s0] sm:$0xff]  ;;  %v16_v1 = vld [vmem:[%s174_s0 + $0x10] sm:$0xff]  ;;  %v15_v2 = vld [vmem:[%s174_s0 + $0x8] sm:$0xff] }
   0x2   :  { %v21_v3 = vsel %vm20_vm0, %v14_v0, 0.0  ;;  %v27_v4 = vsel %vm20_vm0, %v16_v1, 0.0  ;;  %v17_v5 = vld [vmem:[%s174_s0 + $0x18] sm:$0xff]  ;;  %v24_v6 = vsel %vm20_vm0, %v15_v2, 0.0  ;;  %v102_v41 = vld [vmem:[%s175_s1] ss:$0 sm:$0xff] }
   0x3   :  { %22 = vadd.xlane.f32.xlu0 %v21_v3  ;;  %28 = vadd.xlane.f32.xlu1 %v27_v4  ;;  %v30_v7 = vsel %vm20_vm0, %v17_v5, 0.0  ;;  %v103_v43 = vld [vmem:[%s176_s2] ss:$0 sm:$0xff] }
   0x7   :  { %25 = vadd.xlane.f32.xlu0 %v24_v6  ;;  %31 = vadd.xlane.f32.xlu1 %v30_v7 }
  0x90   :  { %v23_v8 = vpop.xlane.xlu0 %22  ;;  %v29_v9 = vpop.xlane.xlu1 %28 }
  0x91   :  { %v34_v10 = vmul.f32 0.03125, %v23_v8  ;;  %v36_v11 = vmul.f32 0.03125, %v29_v9 }
  0x93   :  { %v38_v12 = vsub.f32 %v14_v0, %v34_v10  ;;  %v40_v13 = vsub.f32 %v16_v1, %v36_v11 }
  0x94   :  { %v26_v14 = vpop.xlane.xlu0 %25  ;;  %v32_v15 = vpop.xlane.xlu1 %31 }
  0x95   :  { %v35_v16 = vmul.f32 0.03125, %v26_v14  ;;  %v37_v17 = vmul.f32 0.03125, %v32_v15  ;;  %v42_v18 = vmul.f32 %v38_v12, %v38_v12  ;;  %v44_v19 = vmul.f32 %v40_v13, %v40_v13 }
  0x97   :  { %v39_v20 = vsub.f32 %v15_v2, %v35_v16  ;;  %v41_v21 = vsub.f32 %v17_v5, %v37_v17  ;;  %v46_v22 = vsel %vm20_vm0, %v42_v18, 0.0  ;;  %v52_v23 = vsel %vm20_vm0, %v44_v19, 0.0 }
  0x98   :  { %47 = vadd.xlane.f32.xlu0 %v46_v22 }
  0x99   :  { %v43_v24 = vmul.f32 %v39_v20, %v39_v20  ;;  %v45_v25 = vmul.f32 %v41_v21, %v41_v21 }
  0x9b   :  { %v49_v26 = vsel %vm20_vm0, %v43_v24, 0.0  ;;  %v55_v27 = vsel %vm20_vm0, %v45_v25, 0.0 }
  0x9c   :  { %53 = vadd.xlane.f32.xlu0 %v52_v23  ;;  %50 = vadd.xlane.f32.xlu1 %v49_v26 }
  0xa0   :  { %56 = vadd.xlane.f32.xlu1 %v55_v27 }
 0x125   :  { %v48_v28 = vpop.xlane.xlu0 %47 }
 0x126   :  { %v58_v29 = vmul.f32 0.03125, %v48_v28 }
 0x128   :  { %v62_v30 = vadd.f32 1e-05, %v58_v29 }
 0x129   :  { %v51_v31 = vpop.xlane.xlu1 %50  ;;  %v54_v32 = vpop.xlane.xlu0 %53 }
 0x12a   :  { %104 = vrsqrt.f32 %v62_v30  ;;  %v59_v33 = vmul.f32 0.03125, %v51_v31  ;;  %v60_v34 = vmul.f32 0.03125, %v54_v32 }
 0x12c   :  { %v63_v35 = vadd.f32 1e-05, %v59_v33  ;;  %v64_v36 = vadd.f32 1e-05, %v60_v34 }
 0x12d   :  { %v57_v37 = vpop.xlane.xlu1 %56 }
 0x12e   :  { %106 = vrsqrt.f32 %v63_v35  ;;  %v61_v38 = vmul.f32 0.03125, %v57_v37 }
 0x12f   :  { %108 = vrsqrt.f32 %v64_v36 }
 0x130   :  { %v65_v39 = vadd.f32 1e-05, %v61_v38 }
 0x132   :  { %110 = vrsqrt.f32 %v65_v39 }
 0x134   :  { %v105_v40 = vpop.eup %104 }
 0x135   :  { %v70_v42 = vmul.f32 %v105_v40, %v38_v12 }
 0x137   :  { %v80_v44 = vmul.f32 %v102_v41, %v70_v42 }
 0x138   :  { %v107_v45 = vpop.eup %106 }
 0x139   :  { %v109_v46 = vpop.eup %108  ;;  %v90_v47 = vadd.f32 %v103_v43, %v80_v44  ;;  %v71_v48 = vmul.f32 %v107_v45, %v39_v20 }
 0x13a   :  { %v72_v49 = vmul.f32 %v109_v46, %v40_v13 }
 0x13b   :  { %94 = vst.msk [vmem:[%s177_s3] sm:$0xff] %vm20_vm0, %v90_v47  ;;  %v81_v50 = vmul.f32 %v102_v41, %v71_v48 }
 0x13c   :  { %v111_v51 = vpop.eup %110  ;;  %v82_v52 = vmul.f32 %v102_v41, %v72_v49 }
 0x13d   :  { %v91_v53 = vadd.f32 %v103_v43, %v81_v50  ;;  %v73_v54 = vmul.f32 %v111_v51, %v41_v21 }
 0x13e   :  { %v92_v55 = vadd.f32 %v103_v43, %v82_v52 }
 0x13f   :  { %95 = vst.msk [vmem:[%s177_s3 + $0x8] sm:$0xff] %vm20_vm0, %v91_v53  ;;  %v83_v56 = vmul.f32 %v102_v41, %v73_v54 }
 0x140   :  { %96 = vst.msk [vmem:[%s177_s3 + $0x10] sm:$0xff] %vm20_vm0, %v92_v55 }
 0x141   :  { %v93_v57 = vadd.f32 %v103_v43, %v83_v56 }
 0x143   :  { %97 = vst.msk [vmem:[%s177_s3 + $0x18] sm:$0xff] %vm20_vm0, %v93_v57 }

// kernel: bridger_vit_forward.79
= control target key start
LH: loop header
LB: loop body
LE: loop exit
PB: predicated region body
PF: predicated region fallthrough
CT: control target
= control target key end

     0   :  { %vm18_vm0 = vcmask 130048   ;;  %s118_s0 = inlined_call_operand.vmem [shape: f32[16,16], index: 0, kind: input, shape index: {}]   ;;  %s119_s1 = inlined_call_operand.vmem [shape: f32[1,16], index: 1, kind: input, shape index: {}]   ;;  %s120_s2 = inlined_call_operand.vmem [shape: f32[1,16], index: 2, kind: input, shape index: {}]   ;;  %s121_s3 = inlined_call_operand.vmem [shape: f32[16,16], index: 3, kind: output, shape index: {}]  }
   0x1   :  { %v14_v0 = vld [vmem:[%s118_s0] sm:$0xff]  ;;  %v15_v1 = vld [vmem:[%s118_s0 + $0x8] sm:$0xff] }
   0x2   :  { %v19_v2 = vsel %vm18_vm0, %v14_v0, 0.0  ;;  %v22_v3 = vsel %vm18_vm0, %v15_v1, 0.0  ;;  %v68_v21 = vld [vmem:[%s119_s1] ss:$0 sm:$0xff] }
   0x3   :  { %20 = vadd.xlane.f32.xlu0 %v19_v2  ;;  %v69_v23 = vld [vmem:[%s120_s2] ss:$0 sm:$0xff] }
   0x7   :  { %23 = vadd.xlane.f32.xlu0 %v22_v3 }
  0x90   :  { %v21_v4 = vpop.xlane.xlu0 %20 }
  0x91   :  { %v26_v5 = vmul.f32 0.0625, %v21_v4 }
  0x93   :  { %v28_v6 = vsub.f32 %v14_v0, %v26_v5 }
  0x94   :  { %v24_v7 = vpop.xlane.xlu0 %23 }
  0x95   :  { %v27_v8 = vmul.f32 0.0625, %v24_v7  ;;  %v30_v9 = vmul.f32 %v28_v6, %v28_v6 }
  0x97   :  { %v29_v10 = vsub.f32 %v15_v1, %v27_v8  ;;  %v32_v11 = vsel %vm18_vm0, %v30_v9, 0.0 }
  0x98   :  { %33 = vadd.xlane.f32.xlu1 %v32_v11 }
  0x99   :  { %v31_v12 = vmul.f32 %v29_v10, %v29_v10 }
  0x9b   :  { %v35_v13 = vsel %vm18_vm0, %v31_v12, 0.0 }
  0x9c   :  { %36 = vadd.xlane.f32.xlu1 %v35_v13 }
 0x125   :  { %v34_v14 = vpop.xlane.xlu1 %33 }
 0x126   :  { %v38_v15 = vmul.f32 0.0625, %v34_v14 }
 0x128   :  { %v40_v16 = vadd.f32 1e-05, %v38_v15 }
 0x129   :  { %v37_v17 = vpop.xlane.xlu1 %36 }
 0x12a   :  { %70 = vrsqrt.f32 %v40_v16  ;;  %v39_v18 = vmul.f32 0.0625, %v37_v17 }
 0x12c   :  { %v41_v19 = vadd.f32 1e-05, %v39_v18 }
 0x12e   :  { %72 = vrsqrt.f32 %v41_v19 }
 0x134   :  { %v71_v20 = vpop.eup %70 }
 0x135   :  { %v44_v22 = vmul.f32 %v71_v20, %v28_v6 }
 0x137   :  { %v52_v24 = vmul.f32 %v68_v21, %v44_v22 }
 0x138   :  { %v73_v25 = vpop.eup %72 }
 0x139   :  { %v60_v26 = vadd.f32 %v69_v23, %v52_v24  ;;  %v45_v27 = vmul.f32 %v73_v25, %v29_v10 }
 0x13b   :  { %62 = vst.msk [vmem:[%s121_s3] sm:$0xff] %vm18_vm0, %v60_v26  ;;  %v53_v28 = vmul.f32 %v68_v21, %v45_v27 }
 0x13d   :  { %v61_v29 = vadd.f32 %v69_v23, %v53_v28 }
 0x13f   :  { %63 = vst.msk [vmem:[%s121_s3 + $0x8] sm:$0xff] %vm18_vm0, %v61_v29 }

// kernel: bridger_vit_forward.101
= control target key start
LH: loop header
LB: loop body
LE: loop exit
PB: predicated region body
PF: predicated region fallthrough
CT: control target
= control target key end

     0   :  { %vm35_vm0 = vcmask 261120   ;;  %s210_s0 = inlined_call_operand.vmem [shape: f32[32,32], index: 0, kind: input, shape index: {}]   ;;  %s211_s1 = inlined_call_operand.vmem [shape: bf16[32,32], index: 1, kind: input, shape index: {}]   ;;  %s212_s2 = inlined_call_operand.hbm [shape: f32[32,32], index: 2, kind: output, shape index: {}]  }
   0x1   :  { %v130_v0 = vld [vmem:[%s211_s1] sm:$0xff]   ;;  %v131_v1 = vld [vmem:[%s211_s1 + $0x8] sm:$0xff]   ;;  %v15_v5 = vld [vmem:[%s210_s0 + $0x10] sm:$0xff] }
   0x2   :  { %119 = vmatprep.subr.bf16.mxu0 %v130_v0  ;;  %v13_v2 = vld [vmem:[%s210_s0] sm:$0xff]  ;;  %v14_v3 = vld [vmem:[%s210_s0 + $0x8] sm:$0xff]  ;;  %v16_v6 = vld [vmem:[%s210_s0 + $0x18] sm:$0xff] }
   0x3   :  { %120 = vmatpush3.bf16.msra.mxu0 %v130_v0  ;;  %v21_v4 = vpack.c.bf16 %v14_v3, %v13_v2 }
   0x4   :  { %7 = vsyncpa [#allocation3], 0  ;;  %121 = vmatprep.subr.bf16.mxu0 %v131_v1  ;;  %v22_v7 = vpack.c.bf16 %v16_v6, %v15_v5  ;;  %s156_s1 = smov [#allocation2]  }
   0x5   :  { %123 = vmatprep.mubr.msk.bf16.mxu0 %vm35_vm0, %v21_v4  ;;  %s100_s21 = sshll.u32 %s156_s1, 4  ;;  %s101_s21 = int_to_ptr.vmem [resolvable:$true] %s100_s21 }
   0x6   :  { %s132_s0 = scalar_lea.vmem %s101_s21, 512  ;;  %p137_p1 = scmp.lt.s32.totalorder %s101_s21, %s101_s21 }
   0x7   :  { %122 = vmatpush3.bf16.msra.mxu0 %v131_v1  ;;  %p133_p0 = scmp.ne.s32.totalorder %s101_s21, %s132_s0  ;;  %p138_p2 = scmp.lt.s32.totalorder %s132_s0, %s132_s0 }
   0x9   :  { %p139_p3 = por %p138_p2, %p137_p1 }
   0xa   :  { %124 = vmatmul.mubr.msk.bf16.vlgmr.msra.gmra.mrb[0].mxu0 %vm35_vm0, %v22_v7 }
   0xb   :  { %p140_p4 = pnand %p139_p3, %p133_p0 }
  0xdd   :  { %v125_v8 = vpop.f32.mrb[0].mxu0 }
  0xde   :  { %93 = vst.msk [vmem:[#allocation2 + $0x10] sm:$0xff] %vm35_vm0, %v125_v8  ;;  %v76_v9 = vpop.f32.mrb[1].mxu0 }
  0xdf   :  { %91 = vst.msk [vmem:[#allocation2] sm:$0xff] %vm35_vm0, %v76_v9  ;;  %v126_v10 = vpop.f32.mrb[2].mxu0 }
  0xe0   :  { %94 = vst.msk [vmem:[#allocation2 + $0x18] sm:$0xff] %vm35_vm0, %v126_v10  ;;  %v79_v11 = vpop.f32.mrb[3].mxu0 }
  0xe1   :  { %92 = vst.msk [vmem:[#allocation2 + $0x8] sm:$0xff] %vm35_vm0, %v79_v11 }
  0xe2   :  { %143 = shalt.err (!%p140_p4)
}
  0xe3   :  { %s144_s24 = scalar_lea.hbm %s212_s2, 512 }
  0xe4   :  { %p145_p5 = scmp.ne.s32.totalorder %s212_s2, %s144_s24  ;;  %p148_p6 = scmp.lt.u32.totalorder %s144_s24, %s212_s2 }
  0xe6   :  { %p150_p7 = pnand %p148_p6, %p145_p5 }
  0xe8   :  { %153 = shalt.err (!%p150_p7)
}
  0xe9   :  { %s157_s29 = smov 128   ;;  %s158_s30 = smov 8  }
  0xea   :  { %106 = dma.vmem_to_hbm [thread:$0]  %s101_s21, 512, %s212_s2, [#allocation3], %s157_s29, %s157_s29, %s158_s30  }
  0xeb   :  { %154 = dma.done.wait [#allocation3], 512  }
  0xec   :  { %155 = vsyncadd [#allocation3], 4294966784 }
  0xed   :  { %110 = vsyncpa [#allocation3], 1 }

// kernel: bridger_vit_forward.65
= control target key start
LH: loop header
LB: loop body
LE: loop exit
PB: predicated region body
PF: predicated region fallthrough
CT: control target
= control target key end

     0   :  { %s1877_s27 = smov 0   ;;  %s2053_s0 = inlined_call_operand.vmem [shape: f32[2,8,16], index: 0, kind: input, shape index: {}]   ;;  %s2054_s1 = inlined_call_operand.vmem [shape: f32[2,16,16], index: 1, kind: input, shape index: {}]   ;;  %s2055_s2 = inlined_call_operand.vmem [shape: f32[1,16], index: 2, kind: input, shape index: {}]   ;;  %s2056_s3 = inlined_call_operand.vmem [shape: f32[1,16], index: 3, kind: input, shape index: {}]   ;;  %s2057_s4 = inlined_call_operand.vmem [shape: f32[1,16], index: 4, kind: input, shape index: {}]   ;;  %s2058_s5 = inlined_call_operand.vmem [shape: f32[1,16], index: 5, kind: input, shape index: {}]   ;;  %s2059_s6 = inlined_call_operand.vmem [shape: bf16[16,16], index: 6, kind: input, shape index: {}]   ;;  %s2060_s7 = inlined_call_operand.vmem [shape: f32[1,16], index: 7, kind: input, shape index: {}]   ;;  %s2061_s8 = inlined_call_operand.vmem [shape: bf16[16,32], index: 8, kind: input, shape index: {}]   ;;  %s2062_s9 = inlined_call_operand.vmem [shape: f32[1,32], index: 9, kind: input, shape index: {}]   ;;  %s2063_s10 = inlined_call_operand.vmem [shape: bf16[16,16], index: 10, kind: input, shape index: {}]   ;;  %s2064_s11 = inlined_call_operand.vmem [shape: f32[1,16], index: 11, kind: input, shape index: {}]   ;;  %s2065_s12 = inlined_call_operand.vmem [shape: f32[1,16], index: 12, kind: input, shape index: {}]   ;;  %s2066_s13 = inlined_call_operand.vmem [shape: f32[1,16], index: 13, kind: input, shape index: {}]   ;;  %s2067_s14 = inlined_call_operand.vmem [shape: bf16[16,64], index: 14, kind: input, shape index: {}]   ;;  %s2068_s15 = inlined_call_operand.vmem [shape: f32[1,64], index: 15, kind: input, shape index: {}]   ;;  %s2069_s16 = inlined_call_operand.vmem [shape: bf16[64,16], index: 16, kind: input, shape index: {}]   ;;  %s2070_s17 = inlined_call_operand.vmem [shape: f32[1,16], index: 17, kind: input, shape index: {}]   ;;  %s2071_s18 = inlined_call_operand.vmem [shape: f32[2,8,16], index: 18, kind: output, shape index: {}]  }
   0x1   :  { %2072 = sst [smem:[#allocation2_spill]] %s2053_s0 }
   0x2   :  { %2073 = sst [smem:[#allocation3_spill]] %s2054_s1 }
   0x3   :  { %2074 = sst [smem:[#allocation4_spill]] %s2055_s2 }
   0x4 LB: > { %s1548_s28 = sadd.s32 4294967295, %s1768_s27   ;;  %p1552_p0 = scmp.ge.s32.totalorder %s1768_s27, 1  ;;  %s1768_s27 = sphi %s1877_s27, %s28_s27  }
   0x5   : > { %p521_p1 = scmp.lt.s32.totalorder %s1768_s27, 3 }
   0x7   : > { %p522_p2 = pnand %p1552_p0, %p521_p1 }
   0x8   : > { %p578_p3 = scmp.lt.s32.totalorder (!%p522_p2), %s1548_s28, 1  ;;  %vm597_vm0 = vcmask (!%p522_p2), 130048   ;;  %s2075_s1 = sld [smem:[#allocation3_spill]] (!%p522_p2)  ;;  %v1726_v21 = vld [vmem:[%s2059_s6] sm:$0xff] (!%p522_p2)   ;;  %v1770_v23 = vmov (!%p522_p2), 0.0   ;;  %vm1771_vm1 = vmmov (!%p522_p2), 0  }
   0x9   : > { %525 = sbr.rel (%p522_p2) target bundleno = 2408 (0x968), region = 92  ;;  %s2076_s2 = sld [smem:[#allocation2_spill]] (!%p522_p2)  ;;  %v1727_v22 = vld [vmem:[%s2061_s8] sm:$0xff] (!%p522_p2)   ;;  %1622 = vmatprep.subr.bf16.mxu0 (!%p522_p2), %v1770_v23  ;;  %1628 = vmatprep.subr.bf16.mxu1 (!%p522_p2), %v1770_v23  ;;  %vm794_vm2 = vcmask (!%p522_p2), 31744   ;;  %vm1238_vm3 = vcmask (!%p522_p2), 64512   ;;  %vm1240_vm4 = vcmask (!%p522_p2), 97280  }
   0xa   : > { %1623 = vmatpush3.bf16.msra.mxu0 (!%p522_p2), %v1726_v21  ;;  %1629 = vmatpush3.bf16.msra.mxu1 (!%p522_p2), %v1727_v22  ;;  %v1559_v35 = vld [vmem:[%s2057_s4] ss:$0 sm:$0xff] (!%p522_p2)  ;;  %s2077_s21 = sld [smem:[#allocation4_spill]] (!%p522_p2)  ;;  %s1772_s19 = smov (!%p522_p2), 124   ;;  %vm1437_vm5 = vcmask (!%p522_p2), 523264  }
   0xb   : > { %1624 = vmatprep.mubr.msk.bf16.mxu0 (!%p522_p2), %vm1771_vm1, %v1770_v23  ;;  %1630 = vmatprep.mubr.msk.bf16.mxu1 (!%p522_p2), %vm1771_vm1, %v1770_v23  ;;  %v1560_v42 = vld [vmem:[%s2058_s5] ss:$0 sm:$0xff] (!%p522_p2)  ;;  %s1776_s22 = smov (!%p522_p2), 104   ;;  %s1779_s24 = smov (!%p522_p2), 4  }
   0xc   : > { %1634 = vmatprep.subr.bf16.mxu1 (!%p522_p2), %v1770_v23  ;;  %1646 = vmatprep.subr.bf16.mxu0 (!%p522_p2), %v1770_v23  ;;  %v1558_v43 = vld [vmem:[%s2056_s3] ss:$0 sm:$0xff] (!%p522_p2)  ;;  %s1781_s0 = smov (!%p522_p2), 12  }
   0xd   : > { %v1561_v51 = vld [vmem:[%s2060_s7] ss:$0 sm:$0xff] (!%p522_p2) }
   0xe   : > { %v1564_v52 = vld [vmem:[%s2062_s9] ss:$0 sm:$0xff] (!%p522_p2) }
  0x10   : > { %s2079_s28 = smov (!%p578_p3, %s1548_s28), 1  ;;  %v1557_v39 = vld [vmem:[%s2077_s21] ss:$0 sm:$0xff]  ;;  %s1775_s21 = smov 108  }
  0x11   : > { %s1592_s29 = sshll.u32 %s2079_s28, 4  ;;  %s1553_s30 = sshll.u32 %s2079_s28, 3 }
  0x12   : > { %s586_s20 = scalar_lea.vmem %s2075_s1, %s1592_s29  ;;  %s581_s23 = scalar_lea.vmem %s2076_s2, %s1553_s30 }
  0x13   : > { %v593_v0 = vld [vmem:[%s586_s20] sm:$0xff]  ;;  %v594_v1 = vld [vmem:[%s586_s20 + $0x8] sm:$0xff]  ;;  %s1773_s1 = smov 116   ;;  %s1774_s20 = smov 120  }
  0x14   : > { %v1897_v2 = vld [vmem:[%s581_s23] sm:$0xff]  ;;  %v628_v3 = vsel %vm597_vm0, %v593_v0, 0.0  ;;  %v631_v5 = vsel %vm597_vm0, %v594_v1, 0.0  ;;  %s1777_s2 = smov 100   ;;  %s1778_s23 = smov 112  }
  0x15   : > { %v598_v4 = vsel %vm597_vm0, %v1897_v2, 0.0  ;;  %629 = vadd.xlane.f32.xlu0 %v628_v3  ;;  %s1780_s29 = smov 8  }
  0x16   : > { %599 = vadd.xlane.f32.xlu1 %v598_v4 }
  0x19   : > { %632 = vadd.xlane.f32.xlu0 %v631_v5 }
  0xa2   : > { %v630_v6 = vpop.xlane.xlu0 %629 }
  0xa3   : > { %v600_v7 = vpop.xlane.xlu1 %599  ;;  %v634_v8 = vmul.f32 0.0625, %v630_v6 }
  0xa4   : > { %v602_v9 = vmul.f32 0.0625, %v600_v7 }
  0xa5   : > { %v636_v10 = vsub.f32 %v593_v0, %v634_v8 }
  0xa6   : > { %v603_v11 = vsub.f32 %v1897_v2, %v602_v9  ;;  %v633_v12 = vpop.xlane.xlu0 %632 }
  0xa7   : > { %v635_v13 = vmul.f32 0.0625, %v633_v12  ;;  %v638_v14 = vmul.f32 %v636_v10, %v636_v10 }
  0xa8   : > { %v604_v15 = vmul.f32 %v603_v11, %v603_v11 }
  0xa9   : > { %v637_v16 = vsub.f32 %v594_v1, %v635_v13  ;;  %v640_v17 = vsel %vm597_vm0, %v638_v14, 0.0 }
  0xaa   : > { %641 = vadd.xlane.f32.xlu1 %v640_v17  ;;  %v605_v19 = vsel %vm597_vm0, %v604_v15, 0.0 }
  0xab   : > { %v639_v18 = vmul.f32 %v637_v16, %v637_v16 }
  0xad   : > { %v643_v20 = vsel %vm597_vm0, %v639_v18, 0.0 }
  0xae   : > { %644 = vadd.xlane.f32.xlu0 %v643_v20  ;;  %606 = vadd.xlane.f32.xlu1 %v605_v19 }
 0x137   : > { %v642_v24 = vpop.xlane.xlu1 %641 }
 0x138   : > { %v646_v25 = vmul.f32 0.0625, %v642_v24 }
 0x13a   : > { %v648_v26 = vadd.f32 1e-05, %v646_v25 }
 0x13b   : > { %v645_v27 = vpop.xlane.xlu0 %644  ;;  %v607_v28 = vpop.xlane.xlu1 %606 }
 0x13c   : > { %1734 = vrsqrt.f32 %v648_v26  ;;  %v647_v29 = vmul.f32 0.0625, %v645_v27  ;;  %v608_v30 = vmul.f32 0.0625, %v607_v28 }
 0x13e   : > { %v649_v31 = vadd.f32 1e-05, %v647_v29  ;;  %v609_v32 = vadd.f32 1e-05, %v608_v30 }
 0x140   : > { %1736 = vrsqrt.f32 %v649_v31 }
 0x141   : > { %1738 = vrsqrt.f32 %v609_v32 }
 0x146   : > { %v1735_v33 = vpop.eup %1734 }
 0x147   : > { %v652_v34 = vmul.f32 %v1735_v33, %v636_v10 }
 0x149   : > { %v660_v40 = vmul.f32 %v1559_v35, %v652_v34 }
 0x14a   : > { %v1737_v36 = vpop.eup %1736 }
 0x14b   : > { %v1739_v37 = vpop.eup %1738  ;;  %v653_v38 = vmul.f32 %v1737_v36, %v637_v16  ;;  %v668_v46 = vadd.f32 %v1560_v42, %v660_v40 }
 0x14c   : > { %v611_v41 = vmul.f32 %v1739_v37, %v603_v11 }
 0x14d   : > { %v661_v44 = vmul.f32 %v1559_v35, %v653_v38 }
 0x14e   : > { %v618_v45 = vmul.f32 %v1557_v39, %v611_v41 }
 0x14f   : > { %v669_v47 = vadd.f32 %v1560_v42, %v661_v44 }
 0x150   : > { %v625_v48 = vadd.f32 %v1558_v43, %v618_v45 }
 0x151   : > { %v731_v49 = vpack.c.bf16 %v669_v47, %v668_v46 }
 0x152   : > { %v672_v50 = vpack.c.bf16 %v625_v48, %v625_v48 }
 0x153   : > { %1631 = vmatmul.mubr.msk.bf16.vlgmr.msra.gmra.mrb[0].mxu1 %vm597_vm0, %v731_v49 }
 0x154   : > { %1625 = vmatmul.mubr.msk.bf16.vlgmr.msra.gmra.mrb[0].mxu0 %vm597_vm0, %v672_v50  ;;  %1636 = vmatprep.mubr.msk.bf16.mxu1 %vm1771_vm1, %v1770_v23 }
 0x155   : > { %1648 = vmatprep.mubr.msk.bf16.mxu0 %vm1771_vm1, %v1770_v23 }
 0x226   : > { %v782_v53 = vpop.f32.mrb[0].mxu1 }
 0x227   : > { %v723_v54 = vpop.f32.mrb[0].mxu0  ;;  %v1632_v55 = vpop.f32.mrb[1].mxu1  ;;  %v783_v59 = vadd.f32 %v1564_v52, %v782_v53 }
 0x228   : > { %v724_v56 = vadd.f32 %v1561_v51, %v723_v54  ;;  %v1626_v57 = vpop.f32.mrb[1].mxu0  ;;  %v785_v58 = vpop.f32.mrb[2].mxu1 }
 0x229   : > { %v726_v60 = vpop.f32.mrb[2].mxu0  ;;  %v786_v61 = vadd.f32 %v1564_v52, %v785_v58  ;;  %v1633_v62 = vpop.f32.mrb[3].mxu1 }
 0x22a   : > { %v791_v63 = vmul.f32 0.5, %v724_v56  ;;  %v1627_v0 = vpop.f32.mrb[3].mxu0 }
 0x22b   : > { %v1945_v1 = vpack.c.bf16 %v786_v61, %v783_v59 }
 0x22c   : > { %v792_v3 = vpack.c.bf16 %v791_v63, %v791_v63 }
 0x22d   : > { %903 = vrot.lane.b32.xlu0 %v1945_v1, %s1772_s19  ;;  %v799_v4 = vsel %vm794_vm2, %v1945_v1, 0 }
 0x22e   : > { %901 = vrot.lane.b32.xlu1 %v792_v3, %s1772_s19  ;;  %1635 = vmatpush3.bf16.xpose.msra.mxu1 %v799_v4 }
 0x22f   : > { %1640 = vmatprep.subr.bf16.mxu1 %v1770_v23 }
 0x231   : > { %1119 = vrot.lane.b32.xlu0 %v1945_v1, %s1773_s1 }
 0x232   : > { %1011 = vrot.lane.b32.xlu1 %v1945_v1, %s1774_s20 }
 0x235   : > { %1637 = vmatmul.mubr.msk.bf16.vlgmr.msra.gmra.mrb[4].mxu1 %vm794_vm2, %v792_v3 }
 0x236   : > { %1009 = vrot.lane.b32.xlu1 %v792_v3, %s1774_s20  ;;  %1642 = vmatprep.mubr.msk.bf16.mxu1 %vm1771_vm1, %v1770_v23 }
 0x23a   : > { %1117 = vrot.lane.b32.xlu1 %v792_v3, %s1773_s1 }
 0x29f   : > { %v904_v5 = vpop.permute.xlu0 %903 }
 0x2a0   : > { %v909_v6 = vsel %vm794_vm2, %v904_v5, 0  ;;  %v902_v7 = vpop.permute.xlu1 %901 }
 0x2a1   : > { %1647 = vmatpush3.bf16.xpose.msra.mxu0 %v909_v6 }
 0x2a2   : > { %1658 = vmatprep.subr.bf16.mxu0 %v1770_v23 }
 0x2a3   : > { %v1120_v10 = vpop.permute.xlu0 %1119 }
 0x2a4   : > { %v1012_v8 = vpop.permute.xlu1 %1011  ;;  %v1125_v12 = vsel %vm794_vm2, %v1120_v10, 0 }
 0x2a5   : > { %v1017_v9 = vsel %vm794_vm2, %v1012_v8, 0 }
 0x2a8   : > { %1649 = vmatmul.mubr.msk.bf16.vlgmr.msra.gmra.mrb[4].mxu0 %vm794_vm2, %v902_v7  ;;  %v1010_v11 = vpop.permute.xlu1 %1009 }
 0x2a9   : > { %1659 = vmatpush3.bf16.xpose.msra.mxu0 %v1017_v9  ;;  %1660 = vmatprep.mubr.msk.bf16.mxu0 %vm1771_vm1, %v1770_v23 }
 0x2aa   : > { %1670 = vmatprep.subr.bf16.mxu0 %v1770_v23 }
 0x2ac   : > { %v1118_v13 = vpop.permute.xlu1 %1117 }
 0x2b0   : > { %1661 = vmatmul.mubr.msk.bf16.vlgmr.msra.gmra.mrb[8].mxu0 %vm794_vm2, %v1010_v11 }
 0x2b1   : > { %1671 = vmatpush3.bf16.xpose.msra.mxu0 %v1125_v12  ;;  %1672 = vmatprep.mubr.msk.bf16.mxu0 %vm1771_vm1, %v1770_v23 }
 0x2b2   : > { %1682 = vmatprep.subr.bf16.mxu0 %v1770_v23 }
 0x2b8   : > { %1673 = vmatmul.mubr.msk.bf16.vlgmr.msra.gmra.mrb[12].mxu0 %vm794_vm2, %v1118_v13  ;;  %v1728_v13 = vld [vmem:[%s2063_s10] sm:$0xff]  }
 0x2b9   : > { %1684 = vmatprep.mubr.msk.bf16.mxu0 %vm1771_vm1, %v1770_v23  ;;  %1683 = vmatpush3.bf16.msra.mxu0 %v1728_v13  ;;  %v1584_v13 = vld [vmem:[%s2070_s17] ss:$0 sm:$0xff] }
 0x2ba   : > { %1694 = vmatprep.subr.bf16.mxu0 %v1770_v23 }
 0x308   : > { %v835_v14 = vpop.f32.mrb[4].mxu1 }
 0x309   : > { %v1638_v15 = vpop.f32.mrb[5].mxu1  ;;  %v841_v16 = vsel %vm597_vm0, %v835_v14, -inf }
 0x30a   : > { %842 = vmax.xlane.f32.xlu0 %v841_v16  ;;  %v838_v17 = vpop.f32.mrb[6].mxu1 }
 0x30b   : > { %v1639_v18 = vpop.f32.mrb[7].mxu1 }
 0x37b   : > { %v945_v19 = vpop.f32.mrb[4].mxu0 }
 0x37c   : > { %v1650_v20 = vpop.f32.mrb[5].mxu0  ;;  %v951_v21 = vsel %vm597_vm0, %v945_v19, -inf }
 0x37d   : > { %952 = vmax.xlane.f32.xlu1 %v951_v21  ;;  %v948_v22 = vpop.f32.mrb[6].mxu0 }
 0x37e   : > { %v1651_v24 = vpop.f32.mrb[7].mxu0 }
 0x383   : > { %v1053_v25 = vpop.f32.mrb[8].mxu0 }
 0x384   : > { %v1662_v26 = vpop.f32.mrb[9].mxu0  ;;  %v1059_v27 = vsel %vm597_vm0, %v1053_v25, -inf }
 0x385   : > { %1060 = vmax.xlane.f32.xlu0 %v1059_v27  ;;  %v1056_v28 = vpop.f32.mrb[10].mxu0 }
 0x386   : > { %v1663_v29 = vpop.f32.mrb[11].mxu0 }
 0x38b   : > { %v1161_v30 = vpop.f32.mrb[12].mxu0 }
 0x38c   : > { %v1674_v31 = vpop.f32.mrb[13].mxu0  ;;  %v1167_v32 = vsel %vm597_vm0, %v1161_v30, -inf }
 0x38d   : > { %1168 = vmax.xlane.f32.xlu0 %v1167_v32  ;;  %v1164_v33 = vpop.f32.mrb[14].mxu0 }
 0x38e   : > { %962 = vrot.lane.b32.xlu1 %v1945_v1, %s1775_s21  ;;  %v1675_v34 = vpop.f32.mrb[15].mxu0 }
 0x392   : > { %1070 = vrot.lane.b32.xlu1 %v1945_v1, %s1776_s22 }
 0x396   : > { %1178 = vrot.lane.b32.xlu1 %v1945_v1, %s1777_s2 }
 0x397   : > { %v843_v35 = vpop.xlane.xlu0 %842 }
 0x398   : > { %v844_v37 = vsub.f32 %v835_v14, %v843_v35 }
 0x39a   : > { %v845_v40 = vmul.f32 1.442695, %v844_v37 }
 0x3a3   : > { %853 = vrot.lane.b32.xlu0 %v1945_v1, %s1778_s23 }
 0x40a   : > { %v953_v36 = vpop.xlane.xlu1 %952 }
 0x40b   : > { %v954_v38 = vsub.f32 %v945_v19, %v953_v36 }
 0x40d   : > { %v955_v39 = vmul.f32 1.442695, %v954_v38  ;;  %v1577_v38 = vld [vmem:[%s2064_s11] ss:$0 sm:$0xff] }
 0x40e   : > { %v963_v53 = vpop.permute.xlu1 %962 }
 0x40f   : > { %1740 = vpow2.f32 %v955_v39 }
 0x410   : > { %1742 = vpow2.f32 %v845_v40 }
 0x412   : > { %v1061_v41 = vpop.xlane.xlu0 %1060  ;;  %v1071_v57 = vpop.permute.xlu1 %1070 }
 0x413   : > { %v1062_v42 = vsub.f32 %v1053_v25, %v1061_v41 }
 0x415   : > { %v1063_v43 = vmul.f32 1.442695, %v1062_v42 }
 0x416   : > { %v1179_v61 = vpop.permute.xlu1 %1178 }
 0x417   : > { %1744 = vpow2.f32 %v1063_v43 }
 0x419   : > { %v1741_v44 = vpop.eup %1740 }
 0x41a   : > { %v1169_v45 = vpop.xlane.xlu0 %1168  ;;  %v957_v46 = vsel %vm597_vm0, %v1741_v44, 0.0  ;;  %v1743_v48 = vpop.eup %1742  ;;  %v961_v55 = vpack.c.bf16 %v1741_v44, %v1741_v44 }
 0x41b   : > { %v1170_v47 = vsub.f32 %v1161_v30, %v1169_v45  ;;  %958 = vadd.xlane.f32.xlu0 %v957_v46  ;;  %v851_v51 = vpack.c.bf16 %v1743_v48, %v1743_v48  ;;  %v847_v59 = vsel %vm597_vm0, %v1743_v48, 0.0 }
 0x41d   : > { %v1171_v49 = vmul.f32 1.442695, %v1170_v47 }
 0x41e   : > { %v854_v50 = vpop.permute.xlu0 %853 }
 0x41f   : > { %1746 = vpow2.f32 %v1171_v49  ;;  %1641 = vmatpush3.bf16.msra.mxu1 %v854_v50  ;;  %v1729_v50 = vld [vmem:[%s2067_s14] sm:$0xff]  }
 0x420   : > { %1652 = vmatprep.subr.bf16.mxu1 %v1770_v23 }
 0x421   : > { %v1745_v52 = vpop.eup %1744 }
 0x422   : > { %1643 = vmatmul.mubr.msk.bf16.vlgmr.msra.gmra.mrb[8].mxu1 %vm597_vm0, %v851_v51  ;;  %v1065_v54 = vsel %vm597_vm0, %v1745_v52, 0.0  ;;  %v1069_v60 = vpack.c.bf16 %v1745_v52, %v1745_v52 }
 0x423   : > { %1066 = vadd.xlane.f32.xlu1 %v1065_v54  ;;  %1653 = vmatpush3.bf16.msra.mxu1 %v963_v53  ;;  %v1578_v54 = vld [vmem:[%s2065_s12] ss:$0 sm:$0xff] }
 0x424   : > { %1654 = vmatprep.mubr.msk.bf16.mxu1 %vm1771_vm1, %v1770_v23  ;;  %1664 = vmatprep.subr.bf16.mxu1 %v1770_v23 }
 0x429   : > { %v1747_v56 = vpop.eup %1746 }
 0x42a   : > { %1655 = vmatmul.mubr.msk.bf16.vlgmr.msra.gmra.mrb[12].mxu1 %vm597_vm0, %v961_v55  ;;  %v1173_v58 = vsel %vm597_vm0, %v1747_v56, 0.0  ;;  %v1177_v62 = vpack.c.bf16 %v1747_v56, %v1747_v56  ;;  %v1579_v56 = vld [vmem:[%s2066_s13] ss:$0 sm:$0xff] }
 0x42b   : > { %1665 = vmatpush3.bf16.msra.mxu1 %v1071_v57  ;;  %1174 = vadd.xlane.f32.xlu0 %v1173_v58 }
 0x42c   : > { %1666 = vmatprep.mubr.msk.bf16.mxu1 %vm1771_vm1, %v1770_v23  ;;  %1676 = vmatprep.subr.bf16.mxu1 %v1770_v23 }
 0x42f   : > { %848 = vadd.xlane.f32.xlu0 %v847_v59 }
 0x432   : > { %1667 = vmatmul.mubr.msk.bf16.vlgmr.msra.gmra.mrb[16].mxu1 %vm597_vm0, %v1069_v60  ;;  %v1730_v60 = vld [vmem:[%s2069_s16] sm:$0xff]  }
 0x433   : > { %1677 = vmatpush3.bf16.msra.mxu1 %v1179_v61  ;;  %1678 = vmatprep.mubr.msk.bf16.mxu1 %vm1771_vm1, %v1770_v23  ;;  %v1731_v61 = vld [vmem:[%s2069_s16 + $0x8] sm:$0xff]  }
 0x434   : > { %1688 = vmatprep.subr.bf16.mxu1 %v1770_v23 }
 0x43a   : > { %1679 = vmatmul.mubr.msk.bf16.vlgmr.msra.gmra.mrb[20].mxu1 %vm597_vm0, %v1177_v62  ;;  %v1732_v62 = vld [vmem:[%s2069_s16 + $0x10] sm:$0xff]  }
 0x43b   : > { %1690 = vmatprep.mubr.msk.bf16.mxu1 %vm1771_vm1, %v1770_v23  ;;  %1689 = vmatpush3.bf16.msra.mxu1 %v1729_v50 }
 0x4a8   : > { %v959_v63 = vpop.xlane.xlu0 %958 }
 0x4a9   : > { %1748 = vrcp.f32 %v959_v63  ;;  %v1733_v63 = vld [vmem:[%s2069_s16 + $0x18] sm:$0xff]  }
 0x4b0   : > { %v1067_v4 = vpop.xlane.xlu1 %1066 }
 0x4b1   : > { %1750 = vrcp.f32 %v1067_v4 }
 0x4b3   : > { %v1749_v6 = vpop.eup %1748 }
 0x4b8   : > { %v1175_v11 = vpop.xlane.xlu0 %1174 }
 0x4b9   : > { %1752 = vrcp.f32 %v1175_v11 }
 0x4bb   : > { %v1751_v14 = vpop.eup %1750 }
 0x4bc   : > { %v849_v27 = vpop.xlane.xlu0 %848 }
 0x4bd   : > { %1754 = vrcp.f32 %v849_v27 }
 0x4c3   : > { %v1753_v20 = vpop.eup %1752 }
 0x4c7   : > { %v1755_v28 = vpop.eup %1754 }
 0x4f5   : > { %v893_v0 = vpop.f32.mrb[8].mxu1 }
 0x4f6   : > { %v1644_v1 = vpop.f32.mrb[9].mxu1  ;;  %v899_v31 = vmul.f32 %v1755_v28, %v893_v0  ;;  %v1580_v0 = vld [vmem:[%s2068_s15] ss:$0 sm:$0xff] }
 0x4f7   : > { %v896_v3 = vpop.f32.mrb[10].mxu1 }
 0x4f8   : > { %v1645_v5 = vpop.f32.mrb[11].mxu1 }
 0x4fd   : > { %v1002_v7 = vpop.f32.mrb[12].mxu1 }
 0x4fe   : > { %v1008_v8 = vmul.f32 %v1749_v6, %v1002_v7  ;;  %v1656_v9 = vpop.f32.mrb[13].mxu1 }
 0x4ff   : > { %v1005_v10 = vpop.f32.mrb[14].mxu1 }
 0x500   : > { %v1657_v12 = vpop.f32.mrb[15].mxu1  ;;  %1226 = vrot.lane.b32.xlu0 %v1008_v8, %s1779_s24 }
 0x505   : > { %v1110_v15 = vpop.f32.mrb[16].mxu1 }
 0x506   : > { %v1116_v16 = vmul.f32 %v1751_v14, %v1110_v15  ;;  %v1668_v17 = vpop.f32.mrb[17].mxu1 }
 0x507   : > { %v1113_v18 = vpop.f32.mrb[18].mxu1 }
 0x508   : > { %1230 = vrot.lane.b32.xlu1 %v1116_v16, %s1780_s29  ;;  %v1669_v19 = vpop.f32.mrb[19].mxu1  ;;  %s590_s29 = scalar_lea.vmem %s2071_s18, %s1553_s30 }
 0x50d   : > { %v1218_v21 = vpop.f32.mrb[20].mxu1 }
 0x50e   : > { %v1224_v22 = vmul.f32 %v1753_v20, %v1218_v21  ;;  %v1680_v24 = vpop.f32.mrb[21].mxu1 }
 0x50f   : > { %v1221_v25 = vpop.f32.mrb[22].mxu1 }
 0x510   : > { %v1681_v26 = vpop.f32.mrb[23].mxu1  ;;  %1234 = vrot.lane.b32.xlu1 %v1224_v22, %s1781_s0 }
 0x572   : > { %v1227_v29 = vpop.permute.xlu0 %1226 }
 0x573   : > { %v1237_v32 = vsel %vm794_vm2, %v899_v31, %v1227_v29 }
 0x57a   : > { %v1231_v30 = vpop.permute.xlu1 %1230 }
 0x57b   : > { %v1239_v33 = vsel %vm1238_vm3, %v1237_v32, %v1231_v30 }
 0x582   : > { %v1235_v34 = vpop.permute.xlu1 %1234 }
 0x583   : > { %v1241_v35 = vsel %vm1240_vm4, %v1239_v33, %v1235_v34 }
 0x584   : > { %v1242_v36 = vpack.c.bf16 %v1241_v35, %v1241_v35 }
 0x586   : > { %1685 = vmatmul.mubr.msk.bf16.vlgmr.msra.gmra.mrb[16].mxu0 %vm597_vm0, %v1242_v36 }
 0x587   : > { %1702 = vmatprep.mubr.msk.bf16.mxu0 %vm1771_vm1, %v1770_v23  ;;  %1695 = vmatpush3.bf16.msra.mxu0 %v1730_v60 }
 0x588   : > { %1696 = vmatprep.subr.bf16.mxu0 %v1770_v23 }
 0x58b   : > { %1697 = vmatpush3.bf16.msra.mxu0 %v1731_v61 }
 0x58c   : > { %1698 = vmatprep.subr.bf16.mxu0 %v1770_v23 }
 0x58f   : > { %1699 = vmatpush3.bf16.msra.mxu0 %v1732_v62 }
 0x590   : > { %1700 = vmatprep.subr.bf16.mxu0 %v1770_v23 }
 0x593   : > { %1701 = vmatpush3.bf16.msra.mxu0 %v1733_v63 }
 0x659   : > { %v1286_v37 = vpop.f32.mrb[16].mxu0 }
 0x65a   : > { %v1292_v39 = vadd.f32 %v1286_v37, %v1897_v2  ;;  %v1686_v40 = vpop.f32.mrb[17].mxu0 }
 0x65b   : > { %v1289_v41 = vpop.f32.mrb[18].mxu0 }
 0x65c   : > { %v1300_v42 = vadd.f32 %v1577_v38, %v1292_v39  ;;  %v1687_v43 = vpop.f32.mrb[19].mxu0 }
 0x65e   : > { %v1303_v44 = vsel %vm597_vm0, %v1300_v42, 0.0 }
 0x65f   : > { %1304 = vadd.xlane.f32.xlu1 %v1303_v44 }
 0x6ec   : > { %v1305_v45 = vpop.xlane.xlu1 %1304 }
 0x6ed   : > { %v1306_v46 = vmul.f32 0.0625, %v1305_v45 }
 0x6ef   : > { %v1307_v47 = vsub.f32 %v1300_v42, %v1306_v46 }
 0x6f1   : > { %v1308_v48 = vmul.f32 %v1307_v47, %v1307_v47 }
 0x6f3   : > { %v1309_v49 = vsel %vm597_vm0, %v1308_v48, 0.0 }
 0x6f4   : > { %1310 = vadd.xlane.f32.xlu0 %v1309_v49 }
 0x781   : > { %v1311_v2 = vpop.xlane.xlu0 %1310 }
 0x782   : > { %v1312_v51 = vmul.f32 0.0625, %v1311_v2 }
 0x784   : > { %v1313_v52 = vadd.f32 1e-05, %v1312_v51 }
 0x786   : > { %1756 = vrsqrt.f32 %v1313_v52 }
 0x790   : > { %v1757_v53 = vpop.eup %1756 }
 0x791   : > { %v1315_v55 = vmul.f32 %v1757_v53, %v1307_v47 }
 0x793   : > { %v1322_v57 = vmul.f32 %v1578_v54, %v1315_v55 }
 0x795   : > { %v1329_v58 = vadd.f32 %v1579_v56, %v1322_v57 }
 0x797   : > { %v1332_v59 = vpack.c.bf16 %v1329_v58, %v1329_v58 }
 0x799   : > { %1691 = vmatmul.mubr.msk.bf16.vlgmr.msra.gmra.mrb[24].mxu1 %vm597_vm0, %v1332_v59 }
 0x86c   : > { %v1383_v1 = vpop.f32.mrb[24].mxu1 }
 0x86d   : > { %v1384_v3 = vadd.f32 %v1580_v0, %v1383_v1  ;;  %v1692_v4 = vpop.f32.mrb[25].mxu1 }
 0x86e   : > { %v1386_v5 = vpop.f32.mrb[26].mxu1 }
 0x86f   : > { %v1583_v6 = vmul.f32 -1.702, %v1384_v3  ;;  %v1693_v7 = vpop.f32.mrb[27].mxu1 }
 0x871   : > { %v1391_v8 = vmul.f32 1.442695, %v1583_v6 }
 0x873   : > { %1758 = vpow2.f32 %v1391_v8 }
 0x87d   : > { %v1759_v9 = vpop.eup %1758 }
 0x87e   : > { %v1393_v23 = vadd.f32 1.0, %v1759_v9 }
 0x880   : > { %1760 = vrcp.f32 %v1393_v23 }
 0x88a   : > { %v1761_v10 = vpop.eup %1760 }
 0x88b   : > { %v1396_v11 = vmul.f32 %v1761_v10, %v1384_v3 }
 0x88d   : > { %v1405_v12 = vpack.c.bf16 %v1396_v11, %v1396_v11 }
 0x88f   : > { %1703 = vmatmul.mubr.msk.bf16.vlgmr.msra.gmra.mrb[20].mxu0 %vm1437_vm5, %v1405_v12 }
 0x962   : > { %v1475_v14 = vpop.f32.mrb[20].mxu0 }
 0x963   : > { %v1476_v15 = vadd.f32 %v1584_v13, %v1475_v14  ;;  %v1704_v16 = vpop.f32.mrb[21].mxu0 }
 0x964   : > { %v1478_v17 = vpop.f32.mrb[22].mxu0 }
 0x965   : > { %v1481_v18 = vadd.f32 %v1476_v15, %v1300_v42  ;;  %v1705_v19 = vpop.f32.mrb[23].mxu0 }
 0x967   : > { %1482 = vst.msk [vmem:[%s590_s29] sm:$0xff] %vm597_vm0, %v1481_v18 }
 0x968 PF: > { %s28_s27 = sadd.s32 1, %s1768_s27  }
 0x969   : > { %p25_p4 = scmp.ge.s32.totalorder %s28_s27, 4  }
 0x96b   :  { %27 = sbr.rel (!%p25_p4) target bundleno = 4 (0x4), region = 125 }

// kernel: bridger_vit_forward.102
= control target key start
LH: loop header
LB: loop body
LE: loop exit
PB: predicated region body
PF: predicated region fallthrough
CT: control target
= control target key end

     0   :  { %vm18_vm0 = vcmask 261120   ;;  %s118_s0 = inlined_call_operand.vmem [shape: f32[16,32], index: 0, kind: input, shape index: {}]   ;;  %s119_s1 = inlined_call_operand.vmem [shape: f32[1,32], index: 1, kind: input, shape index: {}]   ;;  %s120_s2 = inlined_call_operand.vmem [shape: f32[1,32], index: 2, kind: input, shape index: {}]   ;;  %s121_s3 = inlined_call_operand.vmem [shape: f32[16,32], index: 3, kind: output, shape index: {}]  }
   0x1   :  { %v14_v0 = vld [vmem:[%s118_s0] sm:$0xff]  ;;  %v15_v1 = vld [vmem:[%s118_s0 + $0x8] sm:$0xff] }
   0x2   :  { %v19_v2 = vsel %vm18_vm0, %v14_v0, 0.0  ;;  %v22_v3 = vsel %vm18_vm0, %v15_v1, 0.0  ;;  %v68_v21 = vld [vmem:[%s119_s1] ss:$0 sm:$0xff] }
   0x3   :  { %20 = vadd.xlane.f32.xlu0 %v19_v2  ;;  %v69_v23 = vld [vmem:[%s120_s2] ss:$0 sm:$0xff] }
   0x7   :  { %23 = vadd.xlane.f32.xlu0 %v22_v3 }
  0x90   :  { %v21_v4 = vpop.xlane.xlu0 %20 }
  0x91   :  { %v26_v5 = vmul.f32 0.03125, %v21_v4 }
  0x93   :  { %v28_v6 = vsub.f32 %v14_v0, %v26_v5 }
  0x94   :  { %v24_v7 = vpop.xlane.xlu0 %23 }
  0x95   :  { %v27_v8 = vmul.f32 0.03125, %v24_v7  ;;  %v30_v9 = vmul.f32 %v28_v6, %v28_v6 }
  0x97   :  { %v29_v10 = vsub.f32 %v15_v1, %v27_v8  ;;  %v32_v11 = vsel %vm18_vm0, %v30_v9, 0.0 }
  0x98   :  { %33 = vadd.xlane.f32.xlu1 %v32_v11 }
  0x99   :  { %v31_v12 = vmul.f32 %v29_v10, %v29_v10 }
  0x9b   :  { %v35_v13 = vsel %vm18_vm0, %v31_v12, 0.0 }
  0x9c   :  { %36 = vadd.xlane.f32.xlu1 %v35_v13 }
 0x125   :  { %v34_v14 = vpop.xlane.xlu1 %33 }
 0x126   :  { %v38_v15 = vmul.f32 0.03125, %v34_v14 }
 0x128   :  { %v40_v16 = vadd.f32 1e-05, %v38_v15 }
 0x129   :  { %v37_v17 = vpop.xlane.xlu1 %36 }
 0x12a   :  { %70 = vrsqrt.f32 %v40_v16  ;;  %v39_v18 = vmul.f32 0.03125, %v37_v17 }
 0x12c   :  { %v41_v19 = vadd.f32 1e-05, %v39_v18 }
 0x12e   :  { %72 = vrsqrt.f32 %v41_v19 }
 0x134   :  { %v71_v20 = vpop.eup %70 }
 0x135   :  { %v44_v22 = vmul.f32 %v71_v20, %v28_v6 }
 0x137   :  { %v52_v24 = vmul.f32 %v68_v21, %v44_v22 }
 0x138   :  { %v73_v25 = vpop.eup %72 }
 0x139   :  { %v60_v26 = vadd.f32 %v69_v23, %v52_v24  ;;  %v45_v27 = vmul.f32 %v73_v25, %v29_v10 }
 0x13b   :  { %62 = vst.msk [vmem:[%s121_s3] sm:$0xff] %vm18_vm0, %v60_v26  ;;  %v53_v28 = vmul.f32 %v68_v21, %v45_v27 }
 0x13d   :  { %v61_v29 = vadd.f32 %v69_v23, %v53_v28 }
 0x13f   :  { %63 = vst.msk [vmem:[%s121_s3 + $0x8] sm:$0xff] %vm18_vm0, %v61_v29 }

// kernel: bridger_vit_forward.103
= control target key start
LH: loop header
LB: loop body
LE: loop exit
PB: predicated region body
PF: predicated region fallthrough
CT: control target
= control target key end

     0   :  { %v134_v1 = vmov 0.0   ;;  %vm135_vm0 = vmmov 0   ;;  %s173_s0 = inlined_call_operand.vmem [shape: f32[2,32], index: 0, kind: input, shape index: {}]   ;;  %s174_s1 = inlined_call_operand.vmem [shape: bf16[32,32], index: 1, kind: input, shape index: {}]   ;;  %s175_s2 = inlined_call_operand.hbm [shape: f32[2,32], index: 2, kind: output, shape index: {}]  }
   0x1   :  { %v108_v0 = vld [vmem:[%s174_s1] sm:$0xff]   ;;  %97 = vmatprep.subr.bf16.mxu0 %v134_v1  ;;  %v109_v2 = vld [vmem:[%s174_s1 + $0x8] sm:$0xff]   ;;  %101 = vmatprep.mubr.msk.bf16.mxu0 %vm135_vm0, %v134_v1 }
   0x2   :  { %98 = vmatpush3.bf16.msra.mxu0 %v108_v0  ;;  %v13_v3 = vld [vmem:[%s173_s0] sm:$0x3] }
   0x3   :  { %7 = vsyncpa [#allocation3], 0  ;;  %99 = vmatprep.subr.bf16.mxu0 %v134_v1  ;;  %v18_v4 = vpack.c.bf16 %v13_v3, %v13_v3  ;;  %vm31_vm1 = vcmask 261120   ;;  %s136_s15 = smov [#allocation2]   ;;  %vm75_vm2 = vcmask 254976  }
   0x4   :  { %s83_s16 = sshll.u32 %s136_s15, 4  ;;  %s84_s16 = int_to_ptr.vmem [resolvable:$true] %s83_s16 }
   0x5   :  { %s110_s1 = scalar_lea.vmem %s84_s16, 32  ;;  %p115_p1 = scmp.lt.s32.totalorder %s84_s16, %s84_s16 }
   0x6   :  { %100 = vmatpush3.bf16.msra.mxu0 %v109_v2  ;;  %p111_p0 = scmp.ne.s32.totalorder %s84_s16, %s110_s1  ;;  %p116_p2 = scmp.lt.s32.totalorder %s110_s1, %s110_s1 }
   0x8   :  { %p117_p3 = por %p116_p2, %p115_p1 }
   0x9   :  { %102 = vmatmul.mubr.msk.bf16.vlgmr.msra.gmra.mrb[0].mxu0 %vm31_vm1, %v18_v4 }
   0xa   :  { %p118_p4 = pnand %p117_p3, %p111_p0 }
  0xdc   :  { %v69_v5 = vpop.f32.mrb[0].mxu0 }
  0xdd   :  { %76 = vst.msk [vmem:[#allocation2] sm:$0x3] %vm75_vm2, %v69_v5  ;;  %v103_v6 = vpop.f32.mrb[1].mxu0 }
  0xde   :  { %v72_v7 = vpop.f32.mrb[2].mxu0 }
  0xdf   :  { %121 = shalt.err (!%p118_p4)
}
  0xe0   :  { %s122_s18 = scalar_lea.hbm %s175_s2, 32 }
  0xe1   :  { %p123_p5 = scmp.ne.s32.totalorder %s175_s2, %s122_s18  ;;  %p126_p6 = scmp.lt.u32.totalorder %s122_s18, %s175_s2 }
  0xe3   :  { %p128_p7 = pnand %p126_p6, %p123_p5 }
  0xe5   :  { %131 = shalt.err (!%p128_p7)
}
  0xe6   :  { %86 = dma.vmem_to_hbm [thread:$0]  %s84_s16, 32, %s175_s2, [#allocation3]   ;;  %v104_v8 = vpop.f32.mrb[3].mxu0 }
  0xe7   :  { %132 = dma.done.wait [#allocation3], 32  }
  0xe8   :  { %133 = vsyncadd [#allocation3], 4294967264 }
  0xe9   :  { %90 = vsyncpa [#allocation3], 1 }

</bundles_post_ra>
